<compile_context>
chip_gen: v5e
topology: v5e:2x2
jax: 0.10.0
libtpu: 0.0.40
codegen_flags: <defaults>
</compile_context>

<pallas_src>
import jax
import jax.numpy as jnp
from jax import lax
from jax.experimental import pallas as pl
from jax.experimental.pallas import tpu as pltpu

_LN_EPS = 1e-5  # matches torch.nn.LayerNorm default


def _standardize(v):
    # LayerNorm without affine params (gamma/beta are folded into the weights in glue).
    mu = jnp.mean(v, axis=-1, keepdims=True)
    var = jnp.mean(jnp.square(v - mu), axis=-1, keepdims=True)
    return (v - mu) * lax.rsqrt(var + _LN_EPS)


def _vmem_physical_bytes():
    try:
        info = pltpu.get_tpu_info()
        for attr in ("vmem_capacity_bytes", "vmem_size_bytes", "vmem_bytes"):
            v = getattr(info, attr, None)
            if v:
                return int(v)
    except Exception:
        pass
    return 128 * 2 ** 20  # assume a 128 MiB part if the query is unavailable


def _make_proj_kernel(H, D, mxu_dtype):
    """Pass 1: LN + fused projection + sigmoid gates + pair mask, once per element."""

    def kernel(x_ref, m_ref, w_ref, b_ref, left_ref, right_ref, og_ref):
        xb = x_ref[0].astype(jnp.float32)                        # (tr, tc, D)
        tr, tc, _ = xb.shape
        n = _standardize(xb).reshape(tr * tc, D)                 # LN affine folded into w/b
        p = jnp.dot(n.astype(mxu_dtype), w_ref[...],
                    preferred_element_type=jnp.float32) + b_ref[...]   # (tr*tc, 4H + D)

        lv, lg = p[:, 0:H], p[:, H:2 * H]
        rv, rg = p[:, 2 * H:3 * H], p[:, 3 * H:4 * H]
        og = p[:, 4 * H:]

        left = (lv * jax.nn.sigmoid(lg)).reshape(tr, tc, H)
        right = (rv * jax.nn.sigmoid(rg)).reshape(tr, tc, H)

        # One channel-major relayout per element (out of the hot k loop).  The mask
        # broadcasts over the leading H dim, so no lane broadcast is needed.
        mask = m_ref[0].astype(jnp.float32)                      # (tr, tc)
        left_t = pltpu.einshape("rch->hrc", left) * mask[None, :, :]
        right_t = pltpu.einshape("rch->hrc", right) * mask[None, :, :]

        left_ref[...] = left_t[None].astype(left_ref.dtype)
        right_ref[...] = right_t[None].astype(right_ref.dtype)
        og_ref[...] = jax.nn.sigmoid(og).reshape(1, tr, tc, D).astype(og_ref.dtype)

    return kernel


def _make_tri_kernel(mix, mxu_dtype):
    """Pass 2: H-batched MXU contraction with f32 accumulator + fused LN2 / out proj."""

    def kernel(l_ref, r_ref, w_o_ref, b_o_ref, out_ref, acc_ref):
        k_idx = pl.program_id(3)

        @pl.when(k_idx == 0)
        def _init():
            acc_ref[...] = jnp.zeros_like(acc_ref)

        if mix == 'outgoing':
            # l: (H, ti, tk), r: (H, tj, tk); out[h,i,j] += sum_k l[h,i,k] * r[h,j,k]
            contrib = lax.dot_general(
                l_ref[0], r_ref[0],
                dimension_numbers=(((2,), (2,)), ((0,), (0,))),
                preferred_element_type=jnp.float32)
        else:
            # l: (H, tk, tj), r: (H, tk, ti); out[h,i,j] += sum_k r[h,k,i] * l[h,k,j]
            contrib = lax.dot_general(
                r_ref[0], l_ref[0],
                dimension_numbers=(((1,), (1,)), ((0,), (0,))),
                preferred_element_type=jnp.float32)
        acc_ref[...] += contrib

        @pl.when(k_idx == pl.num_programs(3) - 1)
        def _finalize():
            Hh, ti, tj = acc_ref.shape
            Dd = w_o_ref.shape[1]
            mixed = pltpu.einshape("hij->ijh", acc_ref[...])     # (ti, tj, H), once per out tile
            normed = _standardize(mixed).reshape(ti * tj, Hh)    # ln2 affine folded into w_o/b_o
            outv = jnp.dot(normed.astype(mxu_dtype), w_o_ref[...],
                           preferred_element_type=jnp.float32) + b_o_ref[...]
            out_ref[...] = outv.reshape(1, ti, tj, Dd).astype(out_ref.dtype)

    return kernel


def triangle_multiplicative(x, sequence_mask, params, mix='ingoing',
                            tile_ij=None, tile_k=None, proj_tile=None,
                            mxu_dtype=jnp.bfloat16):
    """Pallas implementation of TriangleMultiplicativeModule.forward.

    x: (B, L, L, D); sequence_mask: (B, L) or None; params: see init_params().
    """
    # TODO(synk): extra leading '$' batch dims from the PyTorch spec must be flattened into B by the caller.
    assert mix in ('ingoing', 'outgoing')
    B, L, L2, D = x.shape
    assert L == L2, 'Feature map must be symmetrical.'
    H = params['w_left'].shape[1]

    if tile_ij is None:
        tile_ij = L if L <= 128 else 128
    if tile_k is None:
        # Deeper k chunk (256) fills the 256-wide MXU on v6e/v7x and halves acc RMW passes.
        tile_k = L if L <= 128 else (256 if L % 256 == 0 else 128)
    if proj_tile is None:
        proj_tile = L if L <= 128 else 128

    def _check(t, name):
        assert (t == L) or (t % 128 == 0 and L % t == 0), (
            f'{name} must equal L or be a multiple of 128 that divides L (lane-tiling rule).')
    _check(tile_ij, 'tile_ij'); _check(tile_k, 'tile_k'); _check(proj_tile, 'proj_tile')

    nTi = L // tile_ij
    nTk = L // tile_k
    nP = L // proj_tile

    # pairwise mask (outer product of the sequence mask), applied once in pass 1
    if sequence_mask is None:
        pair_mask = jnp.ones((B, L, L), jnp.float32)
    else:
        sm = sequence_mask.astype(jnp.float32)
        pair_mask = sm[:, :, None] * sm[:, None, :]

    # --- glue: fold LayerNorm affine params + biases into the weights; pre-cast to MXU dtype ---
    g1 = params['ln_g'].reshape(D)
    b1 = params['ln_b'].reshape(1, D)

    def fold(w, b):
        return g1[:, None] * w, b1 @ w + b

    wl, bl = fold(params['w_left'], params['b_left'])
    wlg, blg = fold(params['w_left_gate'], params['b_left_gate'])
    wr, br = fold(params['w_right'], params['b_right'])
    wrg, brg = fold(params['w_right_gate'], params['b_right_gate'])
    wog, bog = fold(params['w_out_gate'], params['b_out_gate'])

    w_fused = jnp.concatenate([wl, wlg, wr, wrg, wog], axis=1).astype(mxu_dtype)    # (D, 4H+D)
    b_fused = jnp.concatenate([bl, blg, br, brg, bog], axis=1).astype(jnp.float32)  # (1, 4H+D)

    g2 = params['ln2_g'].reshape(H)
    b2 = params['ln2_b'].reshape(1, H)
    w_out_f = (g2[:, None] * params['w_out']).astype(mxu_dtype)                     # (H, D)
    b_out_f = (b2 @ params['w_out'] + params['b_out']).astype(jnp.float32)          # (1, D)

    itm_x = x.dtype.itemsize
    itm_cm = jnp.dtype(mxu_dtype).itemsize
    vmem_cap = int(_vmem_physical_bytes() * 0.85)

    # ---------------- pass 1: projections / gating / masking ----------------
    x_blk = (1, proj_tile, proj_tile, D)
    m_blk = (1, proj_tile, proj_tile)
    cm_blk = (1, H, proj_tile, proj_tile)

    w1_bytes = int(w_fused.size) * itm_cm + int(b_fused.size) * 4
    blk_x = proj_tile * proj_tile * D * itm_x
    blk_m = proj_tile * proj_tile * 4
    blk_cm = H * proj_tile * proj_tile * itm_cm
    tmp1 = proj_tile * proj_tile * (2 * D + (4 * H + D) + 4 * H) * 4   # in-kernel f32 temporaries
    vmem1_est = 2 * (blk_x + blk_m + 2 * blk_cm + blk_x) + 2 * w1_bytes + tmp1
    vmem1 = int(min(max(vmem1_est, 16 * 2 ** 20), vmem_cap))

    cost1 = pl.CostEstimate(
        flops=int(2 * B * L * L * D * (4 * H + D)),
        transcendentals=int(B * L * L * (2 * H + D)),
        bytes_accessed=int(B * L * L * (2 * D * itm_x + 4 + 2 * H * itm_cm) + w1_bytes))

    left_cm, right_cm, out_gate = pl.pallas_call(
        _make_proj_kernel(H, D, mxu_dtype),
        out_shape=(jax.ShapeDtypeStruct((B, H, L, L), mxu_dtype),
                   jax.ShapeDtypeStruct((B, H, L, L), mxu_dtype),
                   jax.ShapeDtypeStruct((B, L, L, D), x.dtype)),
        grid=(B, nP, nP),
        in_specs=[pl.BlockSpec(x_blk, lambda b, r, c: (b, r, c, 0)),
                  pl.BlockSpec(m_blk, lambda b, r, c: (b, r, c)),
                  pl.BlockSpec(w_fused.shape, lambda b, r, c: (0, 0)),
                  pl.BlockSpec(b_fused.shape, lambda b, r, c: (0, 0))],
        out_specs=(pl.BlockSpec(cm_blk, lambda b, r, c: (b, 0, r, c)),
                   pl.BlockSpec(cm_blk, lambda b, r, c: (b, 0, r, c)),
                   pl.BlockSpec(x_blk, lambda b, r, c: (b, r, c, 0))),
        compiler_params=pltpu.CompilerParams(
            dimension_semantics=("parallel", "parallel", "parallel"),
            vmem_limit_bytes=vmem1),
        cost_estimate=cost1,
    )(x, pair_mask, w_fused, b_fused)

    # ---------------- pass 2: triangle contraction + LN2 + output projection ----------------
    if mix == 'outgoing':
        l_blk = (1, H, tile_ij, tile_k)
        r_blk = (1, H, tile_ij, tile_k)
        l_map = lambda b, i, j, k: (b, 0, i, k)
        r_map = lambda b, i, j, k: (b, 0, j, k)
    else:  # ingoing
        l_blk = (1, H, tile_k, tile_ij)
        r_blk = (1, H, tile_k, tile_ij)
        l_map = lambda b, i, j, k: (b, 0, k, j)
        r_map = lambda b, i, j, k: (b, 0, k, i)
    out_blk = (1, tile_ij, tile_ij, D)

    w2_bytes = int(w_out_f.size) * itm_cm + int(b_out_f.size) * 4
    blk_lr = H * tile_ij * tile_k * itm_cm
    blk_out = tile_ij * tile_ij * D * itm_x
    acc_bytes = H * tile_ij * tile_ij * 4
    tmp2 = tile_ij * tile_ij * (2 * H + 2 * D) * 4                      # finalize f32 temporaries
    vmem2_est = 2 * (2 * blk_lr + blk_out) + 2 * w2_bytes + acc_bytes + tmp2
    vmem2 = int(min(max(vmem2_est, 16 * 2 ** 20), vmem_cap))

    cost2 = pl.CostEstimate(
        flops=int(2 * B * L * L * L * H + 2 * B * L * L * H * D),
        transcendentals=0,
        bytes_accessed=int(2 * nTi * B * H * L * L * itm_cm + B * L * L * D * itm_x + w2_bytes))

    mixed_out = pl.pallas_call(
        _make_tri_kernel(mix, mxu_dtype),
        out_shape=jax.ShapeDtypeStruct(x.shape, x.dtype),
        grid=(B, nTi, nTi, nTk),
        in_specs=[pl.BlockSpec(l_blk, l_map),
                  pl.BlockSpec(r_blk, r_map),
                  pl.BlockSpec(w_out_f.shape, lambda b, i, j, k: (0, 0)),
                  pl.BlockSpec(b_out_f.shape, lambda b, i, j, k: (0, 0))],
        out_specs=pl.BlockSpec(out_blk, lambda b, i, j, k: (b, i, j, 0)),
        scratch_shapes=[pltpu.VMEM((H, tile_ij, tile_ij), jnp.float32)],
        compiler_params=pltpu.CompilerParams(
            dimension_semantics=("parallel", "parallel", "parallel", "arbitrary"),
            vmem_limit_bytes=vmem2),
        cost_estimate=cost2,
    )(left_cm, right_cm, w_out_f, b_out_f)

    # ---------------- epilogue: out-gate (plain XLA elementwise multiply) ----------------
    return mixed_out * out_gate


def init_params(key, dim, hidden_dim):
    """Deterministic parameter init mirroring the module's __init__ (gates = 0-weight / 1-bias)."""
    ks = jax.random.split(key, 3)

    def linear(k, fin, fout):
        bound = float(fin) ** -0.5
        kw, kb = jax.random.split(k)
        w = jax.random.uniform(kw, (fin, fout), jnp.float32, -bound, bound)
        b = jax.random.uniform(kb, (1, fout), jnp.float32, -bound, bound)
        return w, b

    wl, bl = linear(ks[0], dim, hidden_dim)
    wr, br = linear(ks[1], dim, hidden_dim)
    wo, bo = linear(ks[2], hidden_dim, dim)
    return dict(
        ln_g=jnp.ones((1, dim), jnp.float32), ln_b=jnp.zeros((1, dim), jnp.float32),
        w_left=wl, b_left=bl, w_right=wr, b_right=br,
        w_left_gate=jnp.zeros((dim, hidden_dim), jnp.float32),
        b_left_gate=jnp.ones((1, hidden_dim), jnp.float32),
        w_right_gate=jnp.zeros((dim, hidden_dim), jnp.float32),
        b_right_gate=jnp.ones((1, hidden_dim), jnp.float32),
        w_out_gate=jnp.zeros((dim, dim), jnp.float32),
        b_out_gate=jnp.ones((1, dim), jnp.float32),
        ln2_g=jnp.ones((1, hidden_dim), jnp.float32),
        ln2_b=jnp.zeros((1, hidden_dim), jnp.float32),
        w_out=wo, b_out=bo,
    )


def reference(x, sequence_mask, p, mix):
    """Pure-JAX reference mirroring the PyTorch forward, for validation."""
    def ln(v, g, b, eps=_LN_EPS):
        mu = v.mean(-1, keepdims=True)
        var = ((v - mu) ** 2).mean(-1, keepdims=True)
        return (v - mu) / jnp.sqrt(var + eps) * g + b

    xn = ln(x, p['ln_g'][0], p['ln_b'][0])
    left = xn @ p['w_left'] + p['b_left'][0]
    right = xn @ p['w_right'] + p['b_right'][0]
    if sequence_mask is not None:
        sm = sequence_mask[..., None].astype(jnp.float32)          # (B, L, 1)
        mask = (sm @ jnp.swapaxes(sm, -2, -1))[..., None]          # (B, L, L, 1)
        left = left * mask
        right = right * mask
    lg = jax.nn.sigmoid(xn @ p['w_left_gate'] + p['b_left_gate'][0])
    rg = jax.nn.sigmoid(xn @ p['w_right_gate'] + p['b_right_gate'][0])
    og = jax.nn.sigmoid(xn @ p['w_out_gate'] + p['b_out_gate'][0])
    left = left * lg
    right = right * rg
    if mix == 'outgoing':
        out = jnp.einsum('bikd,bjkd->bijd', left, right)
    else:
        out = jnp.einsum('bkjd,bkid->bijd', left, right)
    out = ln(out, p['ln2_g'][0], p['ln2_b'][0])
    out = out @ p['w_out'] + p['b_out'][0]
    return out * og


if __name__ == "__main__":
    B, L, DIM, HIDDEN = 2, 16, 16, 32
    key = jax.random.PRNGKey(0)
    k_x, k_p, k_ln = jax.random.split(key, 3)

    x = jax.random.normal(k_x, (B, L, L, DIM), jnp.float32)
    lengths = jnp.array([L, L - 4])
    sequence_mask = (jnp.arange(L)[None, :] < lengths[:, None]).astype(jnp.float32)  # (B, L)

    params = init_params(k_p, DIM, HIDDEN)
    # Perturb the LayerNorm affine params and gate weights so the glue-side weight
    # folding and the gate paths are exercised with non-trivial values.
    pk = jax.random.split(k_ln, 7)
    params['ln_g'] = params['ln_g'] + 0.1 * jax.random.normal(pk[0], params['ln_g'].shape)
    params['ln_b'] = 0.1 * jax.random.normal(pk[1], params['ln_b'].shape)
    params['ln2_g'] = params['ln2_g'] + 0.1 * jax.random.normal(pk[2], params['ln2_g'].shape)
    params['ln2_b'] = 0.1 * jax.random.normal(pk[3], params['ln2_b'].shape)
    params['w_left_gate'] = 0.1 * jax.random.normal(pk[4], params['w_left_gate'].shape)
    params['w_right_gate'] = 0.1 * jax.random.normal(pk[5], params['w_right_gate'].shape)
    params['w_out_gate'] = 0.1 * jax.random.normal(pk[6], params['w_out_gate'].shape)

    ok = True

    # Single-tile path (L <= 128), both mixing modes, bf16 MXU operands.
    for mix in ('ingoing', 'outgoing'):
        out = jax.block_until_ready(triangle_multiplicative(x, sequence_mask, params, mix=mix))
        ref = reference(x, sequence_mask, params, mix)
        if not (out.shape == ref.shape and bool(jnp.allclose(out, ref, rtol=3e-2, atol=3e-2))):
            ok = False
            print(f"mismatch mix={mix}: max abs err = {float(jnp.max(jnp.abs(out - ref)))}")

    # Multi-tile path: 128x128 output tiles with the k contraction accumulated across 2 grid steps.
    L_big = 256
    xb = jax.random.normal(jax.random.PRNGKey(1), (1, L_big, L_big, DIM), jnp.float32)
    smb = (jnp.arange(L_big)[None, :] < (L_big - 37)).astype(jnp.float32)  # (1, L_big)
    outb = jax.block_until_ready(triangle_multiplicative(
        xb, smb, params, mix='outgoing', tile_ij=128, tile_k=128))
    refb = reference(xb, smb, params, 'outgoing')
    if not bool(jnp.allclose(outb, refb, rtol=3e-2, atol=3e-2)):
        ok = False
        print(f"mismatch multi-tile: max abs err = {float(jnp.max(jnp.abs(outb - refb)))}")

    if ok:
        print("KERNEL_OK")
</pallas_src>

<mosaic_0001>
module attributes {stable_mosaic.version = 11 : i64} {
  func.func @kernel(%arg0: i32, %arg1: i32, %arg2: i32, %arg3: memref<1x16x16x16xf32, #tpu.memory_space<vmem>>, %arg4: memref<1x16x16xf32, #tpu.memory_space<vmem>>, %arg5: memref<16x144xbf16, #tpu.memory_space<vmem>>, %arg6: memref<1x144xf32, #tpu.memory_space<vmem>>, %arg7: memref<1x32x16x16xbf16, #tpu.memory_space<vmem>>, %arg8: memref<1x32x16x16xbf16, #tpu.memory_space<vmem>>, %arg9: memref<1x16x16x16xf32, #tpu.memory_space<vmem>>) attributes {dimension_semantics = [#tpu.dimension_semantics<parallel>, #tpu.dimension_semantics<parallel>, #tpu.dimension_semantics<parallel>], iteration_bounds = array<i64: 2, 1, 1>, scalar_prefetch = 0 : i64, scratch_operands = 0 : i64, tpu.core_type = #tpu.core_type<tc>, window_params = [{transform_indices = @transform_0, window_bounds = array<i64: 1, 16, 16, 16>}, {transform_indices = @transform_1, window_bounds = array<i64: 1, 16, 16>}, {pipeline_mode = #tpu.pipeline_mode<synchronous>, transform_indices = @transform_2, window_bounds = array<i64: 16, 144>}, {pipeline_mode = #tpu.pipeline_mode<synchronous>, transform_indices = @transform_3, window_bounds = array<i64: 1, 144>}, {transform_indices = @transform_4, window_bounds = array<i64: 1, 32, 16, 16>}, {transform_indices = @transform_5, window_bounds = array<i64: 1, 32, 16, 16>}, {transform_indices = @transform_6, window_bounds = array<i64: 1, 16, 16, 16>}]} {
    %c0 = arith.constant 0 : index
    %c0_0 = arith.constant 0 : index
    %c0_1 = arith.constant 0 : index
    %c0_2 = arith.constant 0 : index
    %0 = vector.load %arg3[%c0, %c0_0, %c0_1, %c0_2] : memref<1x16x16x16xf32, #tpu.memory_space<vmem>>, vector<1x16x16x16xf32>
    %1 = vector.shape_cast %0 : vector<1x16x16x16xf32> to vector<16x16x16xf32>
    %cst = arith.constant dense<0.000000e+00> : vector<16x16xf32>
    %2 = vector.multi_reduction <add>, %1, %cst [2] : vector<16x16x16xf32> to vector<16x16xf32>
    %3 = vector.shape_cast %2 : vector<16x16xf32> to vector<16x16x1xf32>
    %cst_3 = arith.constant 1.600000e+01 : f32
    %4 = vector.broadcast %cst_3 : f32 to vector<16x16x1xf32>
    %5 = arith.divf %3, %4 : vector<16x16x1xf32>
    %6 = vector.broadcast %5 : vector<16x16x1xf32> to vector<16x16x16xf32>
    %7 = arith.subf %1, %6 : vector<16x16x16xf32>
    %8 = arith.mulf %7, %7 : vector<16x16x16xf32>
    %cst_4 = arith.constant dense<0.000000e+00> : vector<16x16xf32>
    %9 = vector.multi_reduction <add>, %8, %cst_4 [2] : vector<16x16x16xf32> to vector<16x16xf32>
    %10 = vector.shape_cast %9 : vector<16x16xf32> to vector<16x16x1xf32>
    %cst_5 = arith.constant 1.600000e+01 : f32
    %11 = vector.broadcast %cst_5 : f32 to vector<16x16x1xf32>
    %12 = arith.divf %10, %11 : vector<16x16x1xf32>
    %13 = vector.broadcast %5 : vector<16x16x1xf32> to vector<16x16x16xf32>
    %14 = arith.subf %1, %13 : vector<16x16x16xf32>
    %cst_6 = arith.constant 9.99999974E-6 : f32
    %15 = vector.broadcast %cst_6 : f32 to vector<16x16x1xf32>
    %16 = arith.addf %12, %15 : vector<16x16x1xf32>
    %17 = math.rsqrt %16 : vector<16x16x1xf32>
    %18 = vector.broadcast %17 : vector<16x16x1xf32> to vector<16x16x16xf32>
    %19 = arith.mulf %14, %18 : vector<16x16x16xf32>
    %20 = vector.shape_cast %19 : vector<16x16x16xf32> to vector<256x16xf32>
    %21 = arith.truncf %20 : vector<256x16xf32> to vector<256x16xbf16>
    %c0_7 = arith.constant 0 : index
    %c0_8 = arith.constant 0 : index
    %22 = vector.load %arg5[%c0_7, %c0_8] : memref<16x144xbf16, #tpu.memory_space<vmem>>, vector<16x144xbf16>
    %cst_9 = arith.constant dense<0.000000e+00> : vector<256x144xf32>
    %23 = tpu.matmul %21, %22, %cst_9 {dimension_numbers = #tpu.dot_dimension_numbers<[1], [0], [0], [1], [0, 0, 1, 1], [], []>} : vector<256x16xbf16>, vector<16x144xbf16>, vector<256x144xf32> -> vector<256x144xf32>
    %c0_10 = arith.constant 0 : index
    %c0_11 = arith.constant 0 : index
    %24 = vector.load %arg6[%c0_10, %c0_11] : memref<1x144xf32, #tpu.memory_space<vmem>>, vector<1x144xf32>
    %25 = vector.broadcast %24 : vector<1x144xf32> to vector<256x144xf32>
    %26 = arith.addf %23, %25 : vector<256x144xf32>
    %27 = vector.extract_strided_slice %26 {offsets = [0, 0], sizes = [256, 32], strides = [1, 1]} : vector<256x144xf32> to vector<256x32xf32>
    %28 = vector.extract_strided_slice %26 {offsets = [0, 32], sizes = [256, 32], strides = [1, 1]} : vector<256x144xf32> to vector<256x32xf32>
    %29 = vector.extract_strided_slice %26 {offsets = [0, 64], sizes = [256, 32], strides = [1, 1]} : vector<256x144xf32> to vector<256x32xf32>
    %30 = vector.extract_strided_slice %26 {offsets = [0, 96], sizes = [256, 32], strides = [1, 1]} : vector<256x144xf32> to vector<256x32xf32>
    %31 = vector.extract_strided_slice %26 {offsets = [0, 128], sizes = [256, 16], strides = [1, 1]} : vector<256x144xf32> to vector<256x16xf32>
    %32 = arith.negf %28 : vector<256x32xf32>
    %33 = math.exp %32 : vector<256x32xf32>
    %cst_12 = arith.constant 1.000000e+00 : f32
    %34 = vector.broadcast %cst_12 : f32 to vector<256x32xf32>
    %35 = arith.addf %34, %33 : vector<256x32xf32>
    %36 = arith.divf %34, %35 : vector<256x32xf32>
    %37 = arith.mulf %27, %36 : vector<256x32xf32>
    %38 = vector.shape_cast %37 : vector<256x32xf32> to vector<16x16x32xf32>
    %39 = arith.negf %30 : vector<256x32xf32>
    %40 = math.exp %39 : vector<256x32xf32>
    %cst_13 = arith.constant 1.000000e+00 : f32
    %41 = vector.broadcast %cst_13 : f32 to vector<256x32xf32>
    %42 = arith.addf %41, %40 : vector<256x32xf32>
    %43 = arith.divf %41, %42 : vector<256x32xf32>
    %44 = arith.mulf %29, %43 : vector<256x32xf32>
    %45 = vector.shape_cast %44 : vector<256x32xf32> to vector<16x16x32xf32>
    %c0_14 = arith.constant 0 : index
    %c0_15 = arith.constant 0 : index
    %c0_16 = arith.constant 0 : index
    %46 = vector.load %arg4[%c0_14, %c0_15, %c0_16] : memref<1x16x16xf32, #tpu.memory_space<vmem>>, vector<1x16x16xf32>
    %47 = vector.shape_cast %46 : vector<1x16x16xf32> to vector<16x16xf32>
    %48 = tpu.transpose %38, [2, 0, 1] : vector<16x16x32xf32> -> vector<32x16x16xf32>
    %49 = vector.shape_cast %47 : vector<16x16xf32> to vector<1x16x16xf32>
    %50 = vector.broadcast %49 : vector<1x16x16xf32> to vector<32x16x16xf32>
    %51 = arith.mulf %48, %50 : vector<32x16x16xf32>
    %52 = tpu.transpose %45, [2, 0, 1] : vector<16x16x32xf32> -> vector<32x16x16xf32>
    %53 = vector.shape_cast %47 : vector<16x16xf32> to vector<1x16x16xf32>
    %54 = vector.broadcast %53 : vector<1x16x16xf32> to vector<32x16x16xf32>
    %55 = arith.mulf %52, %54 : vector<32x16x16xf32>
    %56 = vector.shape_cast %51 : vector<32x16x16xf32> to vector<1x32x16x16xf32>
    %57 = arith.truncf %56 : vector<1x32x16x16xf32> to vector<1x32x16x16xbf16>
    %c0_17 = arith.constant 0 : index
    %c0_18 = arith.constant 0 : index
    %c0_19 = arith.constant 0 : index
    %c0_20 = arith.constant 0 : index
    %58 = vector.load %arg7[%c0_17, %c0_18, %c0_19, %c0_20] : memref<1x32x16x16xbf16, #tpu.memory_space<vmem>>, vector<1x32x16x16xbf16>
    tpu.vector_store %arg7[%c0_17, %c0_18, %c0_19, %c0_20], %57 {strides = array<i32>} : memref<1x32x16x16xbf16, #tpu.memory_space<vmem>>, vector<1x32x16x16xbf16>,
    %59 = vector.shape_cast %55 : vector<32x16x16xf32> to vector<1x32x16x16xf32>
    %60 = arith.truncf %59 : vector<1x32x16x16xf32> to vector<1x32x16x16xbf16>
    %c0_21 = arith.constant 0 : index
    %c0_22 = arith.constant 0 : index
    %c0_23 = arith.constant 0 : index
    %c0_24 = arith.constant 0 : index
    %61 = vector.load %arg8[%c0_21, %c0_22, %c0_23, %c0_24] : memref<1x32x16x16xbf16, #tpu.memory_space<vmem>>, vector<1x32x16x16xbf16>
    tpu.vector_store %arg8[%c0_21, %c0_22, %c0_23, %c0_24], %60 {strides = array<i32>} : memref<1x32x16x16xbf16, #tpu.memory_space<vmem>>, vector<1x32x16x16xbf16>,
    %62 = arith.negf %31 : vector<256x16xf32>
    %63 = math.exp %62 : vector<256x16xf32>
    %cst_25 = arith.constant 1.000000e+00 : f32
    %64 = vector.broadcast %cst_25 : f32 to vector<256x16xf32>
    %65 = arith.addf %64, %63 : vector<256x16xf32>
    %66 = arith.divf %64, %65 : vector<256x16xf32>
    %67 = vector.shape_cast %66 : vector<256x16xf32> to vector<1x16x16x16xf32>
    %c0_26 = arith.constant 0 : index
    %c0_27 = arith.constant 0 : index
    %c0_28 = arith.constant 0 : index
    %c0_29 = arith.constant 0 : index
    %68 = vector.load %arg9[%c0_26, %c0_27, %c0_28, %c0_29] : memref<1x16x16x16xf32, #tpu.memory_space<vmem>>, vector<1x16x16x16xf32>
    tpu.vector_store %arg9[%c0_26, %c0_27, %c0_28, %c0_29], %67 {strides = array<i32>} : memref<1x16x16x16xf32, #tpu.memory_space<vmem>>, vector<1x16x16x16xf32>,
    return
  }
  func.func @transform_0(%arg0: i32, %arg1: i32, %arg2: i32) -> (i32, i32, i32, i32) {
    %c0_i32 = arith.constant 0 : i32
    %c0_i32_0 = arith.constant 0 : i32
    return %arg0, %arg1, %arg2, %c0_i32 : i32, i32, i32, i32
  }
  func.func @transform_1(%arg0: i32, %arg1: i32, %arg2: i32) -> (i32, i32, i32) {
    %c0_i32 = arith.constant 0 : i32
    return %arg0, %arg1, %arg2 : i32, i32, i32
  }
  func.func @transform_2(%arg0: i32, %arg1: i32, %arg2: i32) -> (i32, i32) {
    %c0_i32 = arith.constant 0 : i32
    %c0_i32_0 = arith.constant 0 : i32
    %c0_i32_1 = arith.constant 0 : i32
    return %c0_i32, %c0_i32_0 : i32, i32
  }
  func.func @transform_3(%arg0: i32, %arg1: i32, %arg2: i32) -> (i32, i32) {
    %c0_i32 = arith.constant 0 : i32
    %c0_i32_0 = arith.constant 0 : i32
    %c0_i32_1 = arith.constant 0 : i32
    return %c0_i32, %c0_i32_0 : i32, i32
  }
  func.func @transform_4(%arg0: i32, %arg1: i32, %arg2: i32) -> (i32, i32, i32, i32) {
    %c0_i32 = arith.constant 0 : i32
    %c0_i32_0 = arith.constant 0 : i32
    return %arg0, %c0_i32, %arg1, %arg2 : i32, i32, i32, i32
  }
  func.func @transform_5(%arg0: i32, %arg1: i32, %arg2: i32) -> (i32, i32, i32, i32) {
    %c0_i32 = arith.constant 0 : i32
    %c0_i32_0 = arith.constant 0 : i32
    return %arg0, %c0_i32, %arg1, %arg2 : i32, i32, i32, i32
  }
  func.func @transform_6(%arg0: i32, %arg1: i32, %arg2: i32) -> (i32, i32, i32, i32) {
    %c0_i32 = arith.constant 0 : i32
    %c0_i32_0 = arith.constant 0 : i32
    return %arg0, %arg1, %arg2, %c0_i32 : i32, i32, i32, i32
  }
}

</mosaic_0001>

<bundles_post_ra>
// kernel: tpu_custom_call.1
= control target key start
LH: loop header
LB: loop body
LE: loop exit
PB: predicated region body
PF: predicated region fallthrough
CT: control target
= control target key end

     0   :  { %s11723_s0 = inlined_call_operand.hbm [shape: f32[2,16,16,16], index: 0, kind: input, shape index: {}]   ;;  %s11724_s1 = inlined_call_operand.hbm [shape: f32[2,16,16], index: 1, kind: input, shape index: {}]   ;;  %s11725_s2 = inlined_call_operand.hbm [shape: bf16[16,144], index: 2, kind: input, shape index: {}]   ;;  %s11726_s3 = inlined_call_operand.vmem [shape: f32[1,144], index: 3, kind: input, shape index: {}]   ;;  %s11727_s4 = inlined_call_operand.vmem [shape: bf16[2,32,16,16], index: 4, kind: output, shape index: {0}]   ;;  %s11728_s5 = inlined_call_operand.vmem [shape: bf16[2,32,16,16], index: 5, kind: output, shape index: {1}]   ;;  %s11729_s6 = inlined_call_operand.hbm [shape: f32[2,16,16,16], index: 6, kind: output, shape index: {2}]  }
   0x1   :  { %11765 = sst [smem:[#allocation53_spill]] %s11725_s2 }
   0x2   :  { %12 = vsyncpa [#allocation3], 0 }
   0x3   :  { %14 = vsyncpa [#allocation3 + $0x1], 0 }
   0x4   :  { %15 = vsyncpa [#allocation6], 0 }
   0x5   :  { %17 = vsyncpa [#allocation6 + $0x1], 0 }
   0x6   :  { %18 = vsyncpa [#allocation4], 0 }
   0x7   :  { %20 = vsyncpa [#allocation4 + $0x1], 0  ;;  %s7230_s21 = smov 0   ;;  %s7232_s22 = smov 0  }
   0x8   :  { %s7234_s23 = smov 0   ;;  %s7236_s24 = smov 0  }
   0x9   :  { %s7238_s25 = smov 0   ;;  %s7240_s26 = smov 0  }
   0xa LB: > { %11766 = sst [smem:[#allocation13_spill]] %s7163_s21  ;;  %s7261_s27 = sadd.s32 4294967295, %s7183_s26   ;;  %s7183_s26 = sphi %s7240_s26, %s26_s26   ;;  %s7179_s25 = sphi %s7238_s25, %s12020_s25   ;;  %s7175_s24 = sphi %s7236_s24, %s12019_s24   ;;  %s7171_s23 = sphi %s7234_s23, %s12018_s23   ;;  %s7167_s22 = sphi %s7232_s22, %s12017_s22   ;;  %s7163_s21 = sphi %s7230_s21, %s12016_s21  }
   0xb   : > { %11767 = sst [smem:[#allocation14_spill]] %s7171_s23  ;;  %s6454_s28 = sadd.s32 4294967294, %s7183_s26  }
   0xc   : > { %p69_p0 = scmp.ne.s32.totalorder %s7167_s22, %s7163_s21  ;;  %p70_p1 = scmp.eq.s32.totalorder %s7261_s27, 0 }
   0xd   : > { %p229_p2 = scmp.eq.s32.totalorder %s7261_s27, 1  ;;  %p235_p3 = scmp.eq.s32.totalorder %s6454_s28, 1 }
   0xe   : > { %p7270_p4 = por %p70_p1, %p69_p0  ;;  %p6455_p5 = scmp.ge.s32.totalorder %s7183_s26, 1 }
   0xf   : > { %p7275_p6 = por %p235_p3, %p69_p0  ;;  %p242_p7 = scmp.lt.s32.totalorder %s7183_s26, 3 }
  0x10   : > { %s11771_s2 = sld [smem:[#allocation53_spill]]  ;;  %s7185_s11 = smov [#allocation7]  }
  0x11   : > { %s11769_s30 = scalar_select %p7275_p6, 1, 0 }
  0x12   : > { %p7283_p8 = pnand %p6455_p5, %p242_p7  ;;  %s255_s12 = sshll.u32 %s7185_s11, 4  ;;  %s256_s12 = int_to_ptr.vmem [resolvable:$true] %s255_s12 }
  0x13   : > { %11770 = sst [smem:[#allocation15_spill]] %s11769_s30  ;;  %p6457_p11 = scmp.ge.s32.totalorder %s7183_s26, 2 }
  0x14   : > { %p6601_p9 = pneg %p7283_p8  ;;  %s11730_s13 = smov 128  }
  0x15   : > { %s11732_s14 = smov 8   ;;  %s45_s15 = sadd.s32 1, %s7179_s25 }
  0x16   : > { %s253_s9 = sshll.u32 %s11771_s2, 4  ;;  %p6602_p10 = pnand %p6601_p9, %p70_p1  ;;  %s254_s9 = int_to_ptr.hbm [resolvable:$true] %s253_s9 }
  0x17   : > { %p47_p12 = scmp.ge.s32.totalorder %s45_s15, 2  ;;  %s56_s16 = sadd.s32 1, %s7171_s23 }
  0x18   : > { %6604 = dma.hbm_to_vmem [thread:$0]  (!%p6602_p10), %s254_s9, 256, %s256_s12, [#allocation6], %s11730_s13, %s11730_s13, %s11732_s14  }
  0x19   : > { %p63_p13 = scmp.ne.s32.totalorder %s7171_s23, %s7167_s22  ;;  %p64_p0 = scmp.eq.s32.totalorder %s7183_s26, 0 }
  0x1a   : > { %s12022_s15 = smov (%p47_p12, %s45_s15), 0  ;;  %p6617_p7 = scmp.lt.s32.totalorder %s7183_s26, 2 }
  0x1b   : > { %11773 = sst [smem:[#allocation16_spill]] %s12022_s15  ;;  %p7302_p3 = por %p64_p0, %p63_p13 }
  0x1c   : > { %p7308_p5 = por %p229_p2, %p63_p13  ;;  %s49_s19 = ssub.s32 %s7179_s25, %s12022_s15 }
  0x1d   : > { %p54_p9 = scmp.eq.s32.totalorder %s49_s19, 0  ;;  %s272_s20 = sand.u32 1, %s7171_s23  }
  0x1e   : > { %s11775_s18 = scalar_select %p7308_p5, 1, 0 }
  0x1f   : > { %s6458_s28 = sshll.u32 %s272_s20, 8  ;;  %s6582_s8 = sshll.u32 %s7179_s25, 8 }
  0x20   : > { %11776 = sst [smem:[#allocation17_spill]] %s11775_s18  ;;  %s286_s12 = scalar_lea.hbm %s11723_s0, %s6582_s8 }
  0x21   : > { %s7317_s7 = scalar_select %p54_p9, %s7171_s23, %s56_s16  }
  0x22   : > { %s276_s13 = scalar_lea.vmem [#allocation2], %s6458_s28  ;;  %s287_s2 = sshll.u32 %s286_s12, 4  ;;  %s288_s2 = int_to_ptr.hbm [resolvable:$true] %s287_s2 }
  0x23   : > { %11777 = sst [smem:[#allocation18_spill]] %s7317_s7  ;;  %s289_s14 = sshll.u32 %s276_s13, 4  ;;  %s290_s14 = int_to_ptr.vmem [resolvable:$true] %s289_s14 }
  0x24   : > { %p6606_p2 = pnand %p6617_p7, %p7302_p3  ;;  %s299_s15 = sand.u32 1, %s7183_s26  }
  0x25   : > { %s6461_s30 = sshll.u32 %s272_s20, 4  ;;  %s273_s19 = scalar_lea.sflag [#allocation3], %s272_s20 }
  0x26   : > { %s11778_s21 = smov 8   ;;  %s11779_s18 = smov 128  }
  0x27   : > { %6608 = dma.hbm_to_vmem [thread:$0]  (!%p6606_p2), %s288_s2, 4096, %s290_s14, %s273_s19, %s11779_s18, %s11779_s18, %s11778_s21  }
  0x28   : > { %s6583_s16 = sshll.u32 %s7179_s25, 4  ;;  %s303_s8 = scalar_lea.vmem [#allocation5], %s6461_s30 }
  0x29   : > { %s311_s9 = scalar_lea.hbm %s11724_s1, %s6583_s16  ;;  %s314_s28 = sshll.u32 %s303_s8, 4  ;;  %s315_s28 = int_to_ptr.vmem [resolvable:$true] %s314_s28 }
  0x2a   : > { %s312_s13 = sshll.u32 %s311_s9, 4  ;;  %s300_s11 = scalar_lea.sflag [#allocation6], %s299_s15  ;;  %s313_s13 = int_to_ptr.hbm [resolvable:$true] %s312_s13 }
  0x2b   : > { %6611 = dma.hbm_to_vmem [thread:$0]  (!%p6606_p2), %s313_s13, 256, %s315_s28, %s300_s11, %s11779_s18, %s11779_s18, %s11778_s21  }
  0x2c   : > { %326 = sbr.rel (%p7283_p8) target bundleno = 2062 (0x80e), region = 36 }
  0x31   : > { %s7339_s2 = sand.u32 1, %s7167_s22  }
  0x32   : > { %s6465_s23 = sshll.u32 %s7339_s2, 8  ;;  %s329_s30 = scalar_lea.sflag [#allocation3], %s7339_s2 }
  0x33   : > { %s7345_s14 = scalar_lea.vmem [#allocation2], %s6465_s23 }
  0x34   : > { %7146 = dma.done.wait (%p7270_p4), %s329_s30, 4096  }
  0x35   : > { %7148 = vsyncadd (%p7270_p4), %s329_s30, 4294963200  ;;  %s338_s21 = sand.u32 1, %s7261_s27   ;;  %s6466_s10 = sshll.u32 %s7339_s2, 4 }
  0x36   : > { %s339_s15 = scalar_lea.sflag [#allocation6], %s338_s21  ;;  %s7353_s17 = scalar_lea.vmem [#allocation5], %s6466_s10 }
  0x37   : > { %7150 = dma.done.wait (%p7270_p4), %s339_s15, 256  }
  0x38   : > { %7152 = vsyncadd (%p7270_p4), %s339_s15, 4294967040 }
  0x39   : > { %7154 = dma.done.wait (%p70_p1), [#allocation6], 256  }
  0x3a   : > { %7156 = vsyncadd (%p70_p1), [#allocation6], 4294967040  ;;  %vm470_vm0 = vcmask 130048   ;;  %v7364_v0 = vld [vmem:[%s7345_s14 + $0x20] sm:$0xff]  ;;  %v7367_v1 = vld [vmem:[%s7345_s14 + $0x10] sm:$0xff]  ;;  %s8415_s18 = scalar_lea.vmem [#allocation8], %s6465_s23 }
  0x3b   : > { %v7370_v2 = vld [vmem:[%s7345_s14] sm:$0xff]  ;;  %v483_v3 = vsel %vm470_vm0, %v7364_v0, 0.0  ;;  %v477_v4 = vsel %vm470_vm0, %v7367_v1, 0.0  ;;  %v7379_v6 = vld [vmem:[%s7345_s14 + $0x28] sm:$0xff]  ;;  %v7382_v7 = vld [vmem:[%s7345_s14 + $0x18] sm:$0xff]  ;;  %s7189_s20 = smov 96  }
  0x3c   : > { %v471_v5 = vsel %vm470_vm0, %v7370_v2, 0.0  ;;  %484 = vadd.xlane.f32.xlu2 %v483_v3  ;;  %478 = vadd.xlane.f32.xlu1 %v477_v4  ;;  %v7385_v8 = vld [vmem:[%s7345_s14 + $0x8] sm:$0xff]  ;;  %v486_v9 = vsel %vm470_vm0, %v7379_v6, 0.0  ;;  %v480_v10 = vsel %vm470_vm0, %v7382_v7, 0.0  ;;  %v7394_v12 = vld [vmem:[%s7345_s14 + $0x40] sm:$0xff]  ;;  %v7397_v13 = vld [vmem:[%s7345_s14 + $0x38] sm:$0xff] }
  0x3d   : > { %472 = vadd.xlane.f32.xlu0 %v471_v5  ;;  %v474_v11 = vsel %vm470_vm0, %v7385_v8, 0.0  ;;  %v7400_v14 = vld [vmem:[%s7345_s14 + $0x30] sm:$0xff]  ;;  %v495_v15 = vsel %vm470_vm0, %v7394_v12, 0.0  ;;  %v492_v16 = vsel %vm470_vm0, %v7397_v13, 0.0  ;;  %v7409_v18 = vld [vmem:[%s7345_s14 + $0x58] sm:$0xff]  ;;  %v7415_v20 = vld [vmem:[%s7345_s14 + $0x48] sm:$0xff] }
  0x3e   : > { %v489_v17 = vsel %vm470_vm0, %v7400_v14, 0.0  ;;  %v7412_v19 = vld [vmem:[%s7345_s14 + $0x50] sm:$0xff]  ;;  %v504_v21 = vsel %vm470_vm0, %v7409_v18, 0.0  ;;  %v498_v23 = vsel %vm470_vm0, %v7415_v20, 0.0  ;;  %v7427_v25 = vld [vmem:[%s7345_s14 + $0x68] sm:$0xff]  ;;  %v7430_v26 = vld [vmem:[%s7345_s14 + $0x60] sm:$0xff] }
  0x3f   : > { %v501_v22 = vsel %vm470_vm0, %v7412_v19, 0.0  ;;  %v7424_v24 = vld [vmem:[%s7345_s14 + $0x70] sm:$0xff]  ;;  %v510_v28 = vsel %vm470_vm0, %v7427_v25, 0.0  ;;  %v507_v29 = vsel %vm470_vm0, %v7430_v26, 0.0  ;;  %v7439_v30 = vld [vmem:[%s7345_s14 + $0x88] sm:$0xff]  ;;  %v7442_v31 = vld [vmem:[%s7345_s14 + $0x80] sm:$0xff] }
  0x40   : > { %v513_v27 = vsel %vm470_vm0, %v7424_v24, 0.0  ;;  %v7445_v32 = vld [vmem:[%s7345_s14 + $0x78] sm:$0xff]  ;;  %v522_v33 = vsel %vm470_vm0, %v7439_v30, 0.0  ;;  %v519_v34 = vsel %vm470_vm0, %v7442_v31, 0.0  ;;  %v7454_v36 = vld [vmem:[%s7345_s14 + $0xa0] sm:$0xff]  ;;  %v7460_v38 = vld [vmem:[%s7345_s14 + $0x90] sm:$0xff] }
  0x41   : > { %v516_v35 = vsel %vm470_vm0, %v7445_v32, 0.0  ;;  %v7457_v37 = vld [vmem:[%s7345_s14 + $0x98] sm:$0xff]  ;;  %v531_v39 = vsel %vm470_vm0, %v7454_v36, 0.0  ;;  %v525_v41 = vsel %vm470_vm0, %v7460_v38, 0.0  ;;  %v7472_v43 = vld [vmem:[%s7345_s14 + $0xb0] sm:$0xff]  ;;  %v7475_v44 = vld [vmem:[%s7345_s14 + $0xa8] sm:$0xff] }
  0x42   : > { %v528_v40 = vsel %vm470_vm0, %v7457_v37, 0.0  ;;  %v7469_v42 = vld [vmem:[%s7345_s14 + $0xb8] sm:$0xff]  ;;  %v537_v46 = vsel %vm470_vm0, %v7472_v43, 0.0  ;;  %v534_v47 = vsel %vm470_vm0, %v7475_v44, 0.0  ;;  %v7484_v48 = vld [vmem:[%s7345_s14 + $0xd0] sm:$0xff]  ;;  %v7487_v49 = vld [vmem:[%s7345_s14 + $0xc8] sm:$0xff] }
  0x43   : > { %v540_v45 = vsel %vm470_vm0, %v7469_v42, 0.0  ;;  %v7490_v50 = vld [vmem:[%s7345_s14 + $0xc0] sm:$0xff]  ;;  %v549_v51 = vsel %vm470_vm0, %v7484_v48, 0.0  ;;  %v546_v52 = vsel %vm470_vm0, %v7487_v49, 0.0  ;;  %v7499_v54 = vld [vmem:[%s7345_s14 + $0xe8] sm:$0xff]  ;;  %v7505_v56 = vld [vmem:[%s7345_s14 + $0xd8] sm:$0xff] }
  0x44   : > { %487 = vadd.xlane.f32.xlu2 %v486_v9  ;;  %481 = vadd.xlane.f32.xlu1 %v480_v10  ;;  %v543_v53 = vsel %vm470_vm0, %v7490_v50, 0.0  ;;  %v7502_v55 = vld [vmem:[%s7345_s14 + $0xe0] sm:$0xff]  ;;  %v558_v57 = vsel %vm470_vm0, %v7499_v54, 0.0  ;;  %v552_v59 = vsel %vm470_vm0, %v7505_v56, 0.0  ;;  %v7514_v60 = vld [vmem:[%s7345_s14 + $0xf8] sm:$0xff]  ;;  %v7517_v61 = vld [vmem:[%s7345_s14 + $0xf0] sm:$0xff] }
  0x45   : > { %475 = vadd.xlane.f32.xlu0 %v474_v11  ;;  %v555_v58 = vsel %vm470_vm0, %v7502_v55, 0.0  ;;  %v564_v62 = vsel %vm470_vm0, %v7514_v60, 0.0  ;;  %v561_v63 = vsel %vm470_vm0, %v7517_v61, 0.0  ;;  %v7188_v3 = vmov 16.0   ;;  %s7190_s7 = smov 64   ;;  %p410_p1 = scmp.lt.s32.totalorder %s7175_s24, 1 }
  0x46   : > { %6679 = vrcp.f32 %v7188_v3  ;;  %s6588_s23 = sshll.u32 %s7175_s24, 8  ;;  %s6232_s10 = sshll.u32 %s8415_s18, 4  ;;  %s11139_s10 = int_to_ptr.vmem [resolvable:$true] %s6232_s10 }
  0x47   : > { %s10126_s12 = scalar_select %p410_p1, %s7175_s24, 1 }
  0x48   : > { %s6231_s21 = scalar_lea.hbm %s11729_s6, %s6588_s23  ;;  %s6207_s27 = scalar_lea.sflag [#allocation4], %s7339_s2 }
  0x49   : > { %s6584_s19 = sshll.u32 %s10126_s12, 8  ;;  %s6234_s24 = sshll.u32 %s6231_s21, 4  ;;  %s11141_s24 = int_to_ptr.hbm [resolvable:$true] %s6234_s24 }
  0x4a   : > { %s10166_s8 = scalar_lea.vmem %s11727_s4, %s6584_s19  ;;  %s11016_s11 = scalar_lea.vmem %s11728_s5, %s6584_s19 }
  0x4b   : > { %s7107_s29 = sshra.s32 %s11141_s24, 4  ;;  %s7113_s12 = scalar_lea.hbm %s11729_s6, 512  ;;  %s7108_s29 = int_to_ptr.hbm [resolvable:$true] %s7107_s29 }
  0x4c   : > { %496 = vadd.xlane.f32.xlu2 %v495_v15  ;;  %493 = vadd.xlane.f32.xlu1 %v492_v16  ;;  %v6680_v4 = vpop.eup %6679  ;;  %p7114_p12 = scmp.lt.s32.totalorder %s7108_s29, %s11729_s6 }
  0x4d   : > { %490 = vadd.xlane.f32.xlu0 %v489_v17  ;;  %v568_v5 = vmul.f32 16.0, %v6680_v4  ;;  %vm572_vm1 = vweird.f32 %v6680_v4 }
  0x4f   : > { %v569_v9 = vsub.f32 1.0, %v568_v5 }
  0x51   : > { %v570_v10 = vmul.f32 %v6680_v4, %v569_v9 }
  0x53   : > { %v571_v11 = vadd.f32 %v6680_v4, %v570_v10 }
  0x54   : > { %505 = vadd.xlane.f32.xlu2 %v504_v21  ;;  %502 = vadd.xlane.f32.xlu1 %v501_v22 }
  0x55   : > { %499 = vadd.xlane.f32.xlu0 %v498_v23  ;;  %v7523_v15 = vsel %vm572_vm1, %v6680_v4, %v571_v11 }
  0x5c   : > { %514 = vadd.xlane.f32.xlu2 %v513_v27  ;;  %511 = vadd.xlane.f32.xlu1 %v510_v28 }
  0x5d   : > { %508 = vadd.xlane.f32.xlu0 %v507_v29 }
  0x64   : > { %523 = vadd.xlane.f32.xlu2 %v522_v33  ;;  %520 = vadd.xlane.f32.xlu1 %v519_v34 }
  0x65   : > { %517 = vadd.xlane.f32.xlu0 %v516_v35 }
  0x6c   : > { %532 = vadd.xlane.f32.xlu2 %v531_v39  ;;  %529 = vadd.xlane.f32.xlu1 %v528_v40 }
  0x6d   : > { %526 = vadd.xlane.f32.xlu0 %v525_v41 }
  0x74   : > { %541 = vadd.xlane.f32.xlu2 %v540_v45  ;;  %538 = vadd.xlane.f32.xlu1 %v537_v46 }
  0x75   : > { %535 = vadd.xlane.f32.xlu0 %v534_v47 }
  0x7c   : > { %550 = vadd.xlane.f32.xlu2 %v549_v51  ;;  %547 = vadd.xlane.f32.xlu1 %v546_v52 }
  0x7d   : > { %544 = vadd.xlane.f32.xlu0 %v543_v53 }
  0x84   : > { %559 = vadd.xlane.f32.xlu2 %v558_v57  ;;  %556 = vadd.xlane.f32.xlu1 %v555_v58 }
  0x85   : > { %553 = vadd.xlane.f32.xlu0 %v552_v59 }
  0x8c   : > { %565 = vadd.xlane.f32.xlu1 %v564_v62 }
  0x8d   : > { %562 = vadd.xlane.f32.xlu0 %v561_v63 }
  0xaf   : > { %v485_v16 = vpop.xlane.xlu2 %484  ;;  %v479_v17 = vpop.xlane.xlu1 %478 }
  0xb0   : > { %v576_v21 = vmul.f32 %v7523_v15, %v479_v17  ;;  %v473_v22 = vpop.xlane.xlu0 %472  ;;  %v578_v51 = vmul.f32 %v7523_v15, %v485_v16 }
  0xb1   : > { %v574_v23 = vmul.f32 %v7523_v15, %v473_v22 }
  0xb2   : > { %v7528_v27 = vsub.f32 %v7367_v1, %v576_v21 }
  0xb3   : > { %v7531_v28 = vsub.f32 %v7370_v2, %v574_v23 }
  0xb4   : > { %v640_v29 = vmul.f32 %v7528_v27, %v7528_v27 }
  0xb5   : > { %v638_v33 = vmul.f32 %v7531_v28, %v7531_v28 }
  0xb6   : > { %v676_v34 = vsel %vm470_vm0, %v640_v29, 0.0 }
  0xb7   : > { %v488_v35 = vpop.xlane.xlu2 %487  ;;  %677 = vadd.xlane.f32.xlu1 %v676_v34  ;;  %v482_v39 = vpop.xlane.xlu1 %481  ;;  %v670_v40 = vsel %vm470_vm0, %v638_v33, 0.0 }
  0xb8   : > { %v579_v41 = vmul.f32 %v7523_v15, %v488_v35  ;;  %v577_v1 = vmul.f32 %v7523_v15, %v482_v39  ;;  %671 = vadd.xlane.f32.xlu2 %v670_v40  ;;  %v476_v2 = vpop.xlane.xlu0 %475 }
  0xb9   : > { %v575_v45 = vmul.f32 %v7523_v15, %v476_v2 }
  0xba   : > { %v7543_v46 = vsub.f32 %v7379_v6, %v579_v41  ;;  %v7546_v47 = vsub.f32 %v7382_v7, %v577_v1  ;;  %v7561_v7 = vsub.f32 %v7364_v0, %v578_v51 }
  0xbb   : > { %v7550_v52 = vsub.f32 %v7385_v8, %v575_v45 }
  0xbc   : > { %v643_v53 = vmul.f32 %v7543_v46, %v7543_v46  ;;  %v641_v57 = vmul.f32 %v7546_v47, %v7546_v47  ;;  %v642_v11 = vmul.f32 %v7561_v7, %v7561_v7 }
  0xbd   : > { %v639_v58 = vmul.f32 %v7550_v52, %v7550_v52 }
  0xbe   : > { %v685_v6 = vsel %vm470_vm0, %v643_v53, 0.0  ;;  %v679_v59 = vsel %vm470_vm0, %v641_v57, 0.0 }
  0xbf   : > { %v497_v62 = vpop.xlane.xlu2 %496  ;;  %686 = vadd.xlane.f32.xlu1 %v685_v6  ;;  %v673_v8 = vsel %vm470_vm0, %v639_v58, 0.0  ;;  %v494_v63 = vpop.xlane.xlu1 %493 }
  0xc0   : > { %v582_v3 = vmul.f32 %v7523_v15, %v497_v62  ;;  %680 = vadd.xlane.f32.xlu2 %v679_v59  ;;  %674 = vadd.xlane.f32.xlu0 %v673_v8  ;;  %v491_v4 = vpop.xlane.xlu0 %490  ;;  %v581_v9 = vmul.f32 %v7523_v15, %v494_v63 }
  0xc1   : > { %v580_v5 = vmul.f32 %v7523_v15, %v491_v4 }
  0xc2   : > { %v7568_v10 = vsub.f32 %v7394_v12, %v582_v3  ;;  %v7578_v17 = vsub.f32 %v7397_v13, %v581_v9  ;;  %v682_v12 = vsel %vm470_vm0, %v642_v11, 0.0 }
  0xc3   : > { %v7571_v0 = vsub.f32 %v7400_v14, %v580_v5 }
  0xc4   : > { %v646_v16 = vmul.f32 %v7568_v10, %v7568_v10  ;;  %v645_v39 = vmul.f32 %v7578_v17, %v7578_v17 }
  0xc5   : > { %v644_v21 = vmul.f32 %v7571_v0, %v7571_v0 }
  0xc6   : > { %v694_v22 = vsel %vm470_vm0, %v646_v16, 0.0  ;;  %v691_v45 = vsel %vm470_vm0, %v645_v39, 0.0 }
  0xc7   : > { %v506_v23 = vpop.xlane.xlu2 %505  ;;  %695 = vadd.xlane.f32.xlu1 %v694_v22  ;;  %v688_v14 = vsel %vm470_vm0, %v644_v21, 0.0  ;;  %v503_v29 = vpop.xlane.xlu1 %502 }
  0xc8   : > { %v585_v33 = vmul.f32 %v7523_v15, %v506_v23  ;;  %683 = vadd.xlane.f32.xlu0 %v682_v12  ;;  %689 = vadd.xlane.f32.xlu2 %v688_v14  ;;  %v500_v34 = vpop.xlane.xlu0 %499  ;;  %v584_v35 = vmul.f32 %v7523_v15, %v503_v29 }
  0xc9   : > { %v583_v13 = vmul.f32 %v7523_v15, %v500_v34 }
  0xca   : > { %v7591_v40 = vsub.f32 %v7409_v18, %v585_v33  ;;  %v7599_v2 = vsub.f32 %v7412_v19, %v584_v35 }
  0xcb   : > { %v7594_v41 = vsub.f32 %v7415_v20, %v583_v13 }
  0xcc   : > { %v649_v1 = vmul.f32 %v7591_v40, %v7591_v40  ;;  %v648_v62 = vmul.f32 %v7599_v2, %v7599_v2 }
  0xcd   : > { %v647_v51 = vmul.f32 %v7594_v41, %v7594_v41 }
  0xce   : > { %v703_v53 = vsel %vm470_vm0, %v649_v1, 0.0  ;;  %v700_v5 = vsel %vm470_vm0, %v648_v62, 0.0 }
  0xcf   : > { %v515_v57 = vpop.xlane.xlu2 %514  ;;  %704 = vadd.xlane.f32.xlu1 %v703_v53  ;;  %v697_v18 = vsel %vm470_vm0, %v647_v51, 0.0  ;;  %v512_v58 = vpop.xlane.xlu1 %511 }
  0xd0   : > { %v588_v20 = vmul.f32 %v7523_v15, %v515_v57  ;;  %692 = vadd.xlane.f32.xlu0 %v691_v45  ;;  %698 = vadd.xlane.f32.xlu2 %v697_v18  ;;  %v509_v6 = vpop.xlane.xlu0 %508  ;;  %v587_v59 = vmul.f32 %v7523_v15, %v512_v58 }
  0xd1   : > { %v586_v19 = vmul.f32 %v7523_v15, %v509_v6 }
  0xd2   : > { %v7612_v8 = vsub.f32 %v7424_v24, %v588_v20  ;;  %v7620_v4 = vsub.f32 %v7427_v25, %v587_v59 }
  0xd3   : > { %v7615_v63 = vsub.f32 %v7430_v26, %v586_v19 }
  0xd4   : > { %v652_v3 = vmul.f32 %v7612_v8, %v7612_v8  ;;  %v651_v12 = vmul.f32 %v7620_v4, %v7620_v4 }
  0xd5   : > { %v650_v9 = vmul.f32 %v7615_v63, %v7615_v63 }
  0xd6   : > { %v712_v11 = vsel %vm470_vm0, %v652_v3, 0.0  ;;  %v709_v13 = vsel %vm470_vm0, %v651_v12, 0.0 }
  0xd7   : > { %v524_v16 = vpop.xlane.xlu2 %523  ;;  %713 = vadd.xlane.f32.xlu1 %v712_v11  ;;  %v706_v24 = vsel %vm470_vm0, %v650_v9, 0.0  ;;  %v521_v21 = vpop.xlane.xlu1 %520 }
  0xd8   : > { %v591_v26 = vmul.f32 %v7523_v15, %v524_v16  ;;  %701 = vadd.xlane.f32.xlu0 %v700_v5  ;;  %707 = vadd.xlane.f32.xlu2 %v706_v24  ;;  %v518_v22 = vpop.xlane.xlu0 %517  ;;  %v590_v23 = vmul.f32 %v7523_v15, %v521_v21 }
  0xd9   : > { %v589_v25 = vmul.f32 %v7523_v15, %v518_v22 }
  0xda   : > { %v7633_v14 = vsub.f32 %v7439_v30, %v591_v26  ;;  %v7641_v34 = vsub.f32 %v7442_v31, %v590_v23 }
  0xdb   : > { %v7636_v29 = vsub.f32 %v7445_v32, %v589_v25 }
  0xdc   : > { %v655_v33 = vmul.f32 %v7633_v14, %v7633_v14  ;;  %v654_v57 = vmul.f32 %v7641_v34, %v7641_v34 }
  0xdd   : > { %v653_v35 = vmul.f32 %v7636_v29, %v7636_v29 }
  0xde   : > { %v721_v39 = vsel %vm470_vm0, %v655_v33, 0.0  ;;  %v718_v19 = vsel %vm470_vm0, %v654_v57, 0.0 }
  0xdf   : > { %v533_v1 = vpop.xlane.xlu2 %532  ;;  %722 = vadd.xlane.f32.xlu1 %v721_v39  ;;  %v715_v30 = vsel %vm470_vm0, %v653_v35, 0.0  ;;  %v530_v45 = vpop.xlane.xlu1 %529 }
  0xe0   : > { %v594_v32 = vmul.f32 %v7523_v15, %v533_v1  ;;  %710 = vadd.xlane.f32.xlu0 %v709_v13  ;;  %716 = vadd.xlane.f32.xlu2 %v715_v30  ;;  %v527_v51 = vpop.xlane.xlu0 %526  ;;  %v593_v53 = vmul.f32 %v7523_v15, %v530_v45 }
  0xe1   : > { %v592_v31 = vmul.f32 %v7523_v15, %v527_v51 }
  0xe2   : > { %v7654_v18 = vsub.f32 %v7454_v36, %v594_v32  ;;  %v7662_v6 = vsub.f32 %v7457_v37, %v593_v53 }
  0xe3   : > { %v7657_v58 = vsub.f32 %v7460_v38, %v592_v31 }
  0xe4   : > { %v658_v20 = vmul.f32 %v7654_v18, %v7654_v18  ;;  %v657_v16 = vmul.f32 %v7662_v6, %v7662_v6 }
  0xe5   : > { %v656_v59 = vmul.f32 %v7657_v58, %v7657_v58 }
  0xe6   : > { %v730_v62 = vsel %vm470_vm0, %v658_v20, 0.0  ;;  %v727_v25 = vsel %vm470_vm0, %v657_v16, 0.0 }
  0xe7   : > { %v542_v3 = vpop.xlane.xlu2 %541  ;;  %731 = vadd.xlane.f32.xlu1 %v730_v62  ;;  %v724_v36 = vsel %vm470_vm0, %v656_v59, 0.0  ;;  %v539_v5 = vpop.xlane.xlu1 %538 }
  0xe8   : > { %v597_v38 = vmul.f32 %v7523_v15, %v542_v3  ;;  %719 = vadd.xlane.f32.xlu0 %v718_v19  ;;  %725 = vadd.xlane.f32.xlu2 %v724_v36  ;;  %v536_v9 = vpop.xlane.xlu0 %535  ;;  %v596_v11 = vmul.f32 %v7523_v15, %v539_v5 }
  0xe9   : > { %v595_v37 = vmul.f32 %v7523_v15, %v536_v9 }
  0xea   : > { %v7675_v24 = vsub.f32 %v7469_v42, %v597_v38  ;;  %v7683_v22 = vsub.f32 %v7472_v43, %v596_v11 }
  0xeb   : > { %v7678_v21 = vsub.f32 %v7475_v44, %v595_v37 }
  0xec   : > { %v661_v26 = vmul.f32 %v7675_v24, %v7675_v24  ;;  %v660_v1 = vmul.f32 %v7683_v22, %v7683_v22 }
  0xed   : > { %v659_v23 = vmul.f32 %v7678_v21, %v7678_v21 }
  0xee   : > { %v739_v12 = vsel %vm470_vm0, %v661_v26, 0.0  ;;  %v736_v31 = vsel %vm470_vm0, %v660_v1, 0.0  ;;  %v6475_v1 = vld [vmem:[#allocation7] sm:$0xf] }
  0xef   : > { %v551_v33 = vpop.xlane.xlu2 %550  ;;  %740 = vadd.xlane.f32.xlu1 %v739_v12  ;;  %v733_v42 = vsel %vm470_vm0, %v659_v23, 0.0  ;;  %v548_v13 = vpop.xlane.xlu1 %547 }
  0xf0   : > { %v600_v44 = vmul.f32 %v7523_v15, %v551_v33  ;;  %728 = vadd.xlane.f32.xlu0 %v727_v25  ;;  %734 = vadd.xlane.f32.xlu2 %v733_v42  ;;  %v545_v35 = vpop.xlane.xlu0 %544  ;;  %v599_v39 = vmul.f32 %v7523_v15, %v548_v13 }
  0xf1   : > { %v598_v43 = vmul.f32 %v7523_v15, %v545_v35 }
  0xf2   : > { %v7696_v30 = vsub.f32 %v7484_v48, %v600_v44  ;;  %v7704_v51 = vsub.f32 %v7487_v49, %v599_v39 }
  0xf3   : > { %v7699_v45 = vsub.f32 %v7490_v50, %v598_v43 }
  0xf4   : > { %v664_v32 = vmul.f32 %v7696_v30, %v7696_v30  ;;  %v663_v3 = vmul.f32 %v7704_v51, %v7704_v51 }
  0xf5   : > { %v662_v53 = vmul.f32 %v7699_v45, %v7699_v45 }
  0xf6   : > { %v748_v57 = vsel %vm470_vm0, %v664_v32, 0.0  ;;  %v745_v37 = vsel %vm470_vm0, %v663_v3, 0.0  ;;  %v6587_v32 = vld [vmem:[#allocation7 + $0x4] sm:$0xf0] }
  0xf7   : > { %v560_v20 = vpop.xlane.xlu2 %559  ;;  %749 = vadd.xlane.f32.xlu1 %v748_v57  ;;  %v742_v48 = vsel %vm470_vm0, %v662_v53, 0.0  ;;  %v557_v19 = vpop.xlane.xlu1 %556  ;;  %v6476_v53 = vor.u32 %v6587_v32, %v6475_v1  ;;  %v6477_v57 = vld [vmem:[#allocation7 + $0x8] sm:$0xf0] }
  0xf8   : > { %v603_v50 = vmul.f32 %v7523_v15, %v560_v20  ;;  %737 = vadd.xlane.f32.xlu0 %v736_v31  ;;  %743 = vadd.xlane.f32.xlu2 %v742_v48  ;;  %v554_v59 = vpop.xlane.xlu0 %553  ;;  %v602_v62 = vmul.f32 %v7523_v15, %v557_v19  ;;  %v6586_v31 = vld [vmem:[#allocation7 + $0x4] sm:$0xf] }
  0xf9   : > { %v601_v49 = vmul.f32 %v7523_v15, %v554_v59  ;;  %v6480_v48 = vor.u32 %v6586_v31, %v6477_v57  ;;  %1271 = vmatpush.bf16.msra.mxu0 %v6476_v53  ;;  %6589 = vmatpush.bf16.msra.mxu2 %v6476_v53 }
  0xfa   : > { %v7717_v36 = vsub.f32 %v7499_v54, %v603_v50  ;;  %v7725_v9 = vsub.f32 %v7502_v55, %v602_v62 }
  0xfb   : > { %v7720_v5 = vsub.f32 %v7505_v56, %v601_v49  ;;  %1360 = vmatpush.bf16.msra.mxu1 %v6480_v48  ;;  %6590 = vmatpush.bf16.msra.mxu3 %v6480_v48 }
  0xfc   : > { %11780 = vst [vmem:[#allocation19_spill] sm:$0xff] %v7717_v36  ;;  %v667_v38 = vmul.f32 %v7717_v36, %v7717_v36  ;;  %v666_v55 = vmul.f32 %v7725_v9, %v7725_v9 }
  0xfd   : > { %v665_v11 = vmul.f32 %v7720_v5, %v7720_v5 }
  0xfe   : > { %v757_v16 = vsel %vm470_vm0, %v667_v38, 0.0  ;;  %v754_v42 = vsel %vm470_vm0, %v666_v55, 0.0 }
  0xff   : > { %758 = vadd.xlane.f32.xlu1 %v757_v16  ;;  %v751_v54 = vsel %vm470_vm0, %v665_v11, 0.0  ;;  %v566_v26 = vpop.xlane.xlu1 %565 }
 0x100   : > { %746 = vadd.xlane.f32.xlu0 %v745_v37  ;;  %752 = vadd.xlane.f32.xlu2 %v751_v54  ;;  %v563_v56 = vpop.xlane.xlu0 %562  ;;  %v605_v23 = vmul.f32 %v7523_v15, %v566_v26 }
 0x101   : > { %v604_v25 = vmul.f32 %v7523_v15, %v563_v56 }
 0x102   : > { %v7740_v33 = vsub.f32 %v7514_v60, %v605_v23 }
 0x103   : > { %v7737_v12 = vsub.f32 %v7517_v61, %v604_v25 }
 0x104   : > { %11782 = vst [vmem:[#allocation21_spill] sm:$0xff] %v7740_v33  ;;  %v669_v35 = vmul.f32 %v7740_v33, %v7740_v33 }
 0x105   : > { %11781 = vst [vmem:[#allocation20_spill] sm:$0xff] %v7737_v12  ;;  %v668_v13 = vmul.f32 %v7737_v12, %v7737_v12 }
 0x106   : > { %v763_v43 = vsel %vm470_vm0, %v669_v35, 0.0 }
 0x107   : > { %v760_v44 = vsel %vm470_vm0, %v668_v13, 0.0 }
 0x108   : > { %755 = vadd.xlane.f32.xlu0 %v754_v42  ;;  %761 = vadd.xlane.f32.xlu2 %v760_v44 }
 0x110   : > { %764 = vadd.xlane.f32.xlu0 %v763_v43 }
 0x12a   : > { %v678_v61 = vpop.xlane.xlu1 %677 }
 0x12b   : > { %v672_v39 = vpop.xlane.xlu2 %671  ;;  %v768_v37 = vmul.f32 %v678_v61, %v7523_v15 }
 0x12c   : > { %v766_v60 = vmul.f32 %v672_v39, %v7523_v15 }
 0x12d   : > { %v7759_v25 = vadd.f32 1e-05, %v768_v37 }
 0x12e   : > { %v798_v20 = vadd.f32 1e-05, %v766_v60 }
 0x12f   : > { %vm856_vm10 = vweird.f32 %v7759_v25 }
 0x130   : > { %6681 = vrsqrt.f32 %v798_v20  ;;  %vm836_vm6 = vweird.f32 %v798_v20 }
 0x132   : > { %v687_v19 = vpop.xlane.xlu1 %686 }
 0x133   : > { %v681_v50 = vpop.xlane.xlu2 %680  ;;  %v675_v59 = vpop.xlane.xlu0 %674  ;;  %v771_v57 = vmul.f32 %v687_v19, %v7523_v15 }
 0x134   : > { %v767_v49 = vmul.f32 %v675_v59, %v7523_v15  ;;  %v769_v38 = vmul.f32 %v681_v50, %v7523_v15 }
 0x135   : > { %v7785_v19 = vadd.f32 1e-05, %v771_v57 }
 0x136   : > { %v799_v62 = vadd.f32 1e-05, %v767_v49  ;;  %v6682_v3 = vpop.eup %6681  ;;  %v7755_v54 = vadd.f32 1e-05, %v769_v38 }
 0x137   : > { %v831_v11 = vmul.f32 %v6682_v3, %v798_v20  ;;  %vm837_vm3 = vweird.f32 %v6682_v3  ;;  %vm886_vm14 = vweird.f32 %v7785_v19 }
 0x138   : > { %6683 = vrsqrt.f32 %v799_v62  ;;  %vm846_vm4 = vweird.f32 %v799_v62  ;;  %vm838_vm7 = vmor %vm836_vm6, %vm837_vm3  ;;  %vm866_vm8 = vweird.f32 %v7755_v54 }
 0x139   : > { %v832_v23 = vmul.f32 %v6682_v3, %v831_v11  ;;  %6685 = vrsqrt.f32 %v7755_v54 }
 0x13a   : > { %v7753_v16 = vpop.xlane.xlu1 %695  ;;  %6687 = vrsqrt.f32 %v7759_v25 }
 0x13b   : > { %v7757_v26 = vpop.xlane.xlu2 %689  ;;  %v684_v56 = vpop.xlane.xlu0 %683  ;;  %v833_v13 = vmul.f32 0.5, %v832_v23 }
 0x13c   : > { %v770_v53 = vmul.f32 %v684_v56, %v7523_v15 }
 0x13d   : > { %v834_v1 = vsub.f32 1.5, %v833_v13 }
 0x13e   : > { %v6684_v55 = vpop.eup %6683  ;;  %v7779_v37 = vadd.f32 1e-05, %v770_v53 }
 0x13f   : > { %v841_v42 = vmul.f32 %v6684_v55, %v799_v62  ;;  %v7767_v60 = vpop.eup %6685  ;;  %vm847_vm2 = vweird.f32 %v6684_v55  ;;  %v835_v49 = vmul.f32 %v6682_v3, %v834_v1 }
 0x140   : > { %v7769_v31 = vpop.eup %6687  ;;  %v861_v48 = vmul.f32 %v7767_v60, %v7755_v54  ;;  %vm848_vm5 = vmor %vm846_vm4, %vm847_vm2  ;;  %6689 = vrsqrt.f32 %v7779_v37  ;;  %vm867_vm9 = vweird.f32 %v7767_v60  ;;  %vm876_vm2 = vweird.f32 %v7779_v37 }
 0x141   : > { %v842_v44 = vmul.f32 %v6684_v55, %v841_v42  ;;  %v851_v59 = vmul.f32 %v7769_v31, %v7759_v25  ;;  %6691 = vrsqrt.f32 %v7785_v19  ;;  %vm857_vm11 = vweird.f32 %v7769_v31  ;;  %vm868_vm12 = vmor %vm866_vm8, %vm867_vm9 }
 0x142   : > { %v7763_v35 = vpop.xlane.xlu1 %704  ;;  %v862_v23 = vmul.f32 %v7767_v60, %v861_v48  ;;  %vm858_vm13 = vmor %vm856_vm10, %vm857_vm11 }
 0x143   : > { %v7765_v43 = vpop.xlane.xlu2 %698  ;;  %v693_v61 = vpop.xlane.xlu0 %692  ;;  %v843_v39 = vmul.f32 0.5, %v842_v44  ;;  %v852_v13 = vmul.f32 %v7769_v31, %v851_v59  ;;  %v839_v44 = vsel %vm838_vm7, %v6682_v3, %v835_v49 }
 0x144   : > { %v1150_v1 = vmul.f32 %v839_v44, %v7531_v28  ;;  %v773_v28 = vmul.f32 %v693_v61, %v7523_v15  ;;  %v772_v44 = vmul.f32 %v7757_v26, %v7523_v15 }
 0x145   : > { %v844_v32 = vsub.f32 1.5, %v843_v39  ;;  %v863_v39 = vmul.f32 0.5, %v862_v23 }
 0x146   : > { %v7819_v61 = vadd.f32 1e-05, %v773_v28  ;;  %v7825_v26 = vadd.f32 1e-05, %v772_v44 }
 0x147   : > { %v845_v50 = vmul.f32 %v6684_v55, %v844_v32  ;;  %v853_v32 = vmul.f32 0.5, %v852_v13 }
 0x148   : > { %vm896_vm8 = vweird.f32 %v7825_v26 }
 0x149   : > { %v849_v42 = vsel %vm848_vm5, %v6684_v55, %v845_v50  ;;  %v864_v55 = vsub.f32 1.5, %v863_v39  ;;  %v7796_v50 = vpop.eup %6689  ;;  %v854_v59 = vsub.f32 1.5, %v853_v32 }
 0x14a   : > { %v7777_v38 = vpop.xlane.xlu1 %713  ;;  %v1151_v62 = vmul.f32 %v849_v42, %v7550_v52  ;;  %v7802_v3 = vpop.eup %6691  ;;  %v871_v42 = vmul.f32 %v7796_v50, %v7779_v37  ;;  %vm877_vm15 = vweird.f32 %v7796_v50 }
 0x14b   : > { %v7781_v11 = vpop.xlane.xlu2 %707  ;;  %v7783_v56 = vpop.xlane.xlu0 %701  ;;  %v865_v23 = vmul.f32 %v7767_v60, %v864_v55  ;;  %v881_v13 = vmul.f32 %v7802_v3, %v7785_v19  ;;  %vm887_vm1 = vweird.f32 %v7802_v3  ;;  %vm878_vm3 = vmor %vm876_vm2, %vm877_vm15  ;;  %vm906_vm15 = vweird.f32 %v7819_v61 }
 0x14c   : > { %v1182_v53 = vpack.c.bf16 %v1151_v62, %v1150_v1  ;;  %v855_v62 = vmul.f32 %v7769_v31, %v854_v59  ;;  %v872_v39 = vmul.f32 %v7796_v50, %v871_v42  ;;  %vm888_vm4 = vmor %vm886_vm14, %vm887_vm1 }
 0x14d   : > { %v869_v1 = vsel %vm868_vm12, %v7767_v60, %v865_v23  ;;  %v882_v32 = vmul.f32 %v7802_v3, %v881_v13 }
 0x14e   : > { %6481 = vmatmul.msk.bf16.vlgmr.msra.gmra.mxu0 %vm470_vm0, %v1182_v53  ;;  %6497 = vmatmul.msk.bf16.vlgmr.msra.gmra.mxu1 %vm470_vm0, %v1182_v53  ;;  %v859_v25 = vsel %vm858_vm13, %v7769_v31, %v855_v62  ;;  %v873_v55 = vmul.f32 0.5, %v872_v39 }
 0x14f   : > { %v883_v28 = vmul.f32 0.5, %v882_v32  ;;  %v1152_v23 = vmul.f32 %v859_v25, %v7528_v27 }
 0x150   : > { %v874_v62 = vsub.f32 1.5, %v873_v55 }
 0x151   : > { %v884_v39 = vsub.f32 1.5, %v883_v28 }
 0x152   : > { %v723_v20 = vpop.xlane.xlu1 %722 }
 0x153   : > { %v783_v57 = vmul.f32 %v723_v20, %v7523_v15  ;;  %v7794_v48 = vpop.xlane.xlu0 %710  ;;  %v7800_v52 = vpop.xlane.xlu2 %716 }
 0x155   : > { %v7805_v49 = vadd.f32 1e-05, %v783_v57  ;;  %v1153_v57 = vmul.f32 %v869_v1, %v7546_v47  ;;  %v774_v47 = vmul.f32 %v7753_v16, %v7523_v15  ;;  %v775_v1 = vmul.f32 %v7765_v43, %v7523_v15 }
 0x156   : > { %v885_v43 = vmul.f32 %v7802_v3, %v884_v39 }
 0x157   : > { %6693 = vrsqrt.f32 %v7805_v49  ;;  %v1183_v13 = vpack.c.bf16 %v1153_v57, %v1152_v23  ;;  %v7857_v25 = vadd.f32 1e-05, %v774_v47  ;;  %vm1006_vm5 = vweird.f32 %v7805_v49 }
 0x158   : > { %6695 = vrsqrt.f32 %v7819_v61 }
 0x159   : > { %6697 = vrsqrt.f32 %v7825_v26 }
 0x15b   : > { %v720_v54 = vpop.xlane.xlu0 %719  ;;  %v726_v53 = vpop.xlane.xlu2 %725 }
 0x15c   : > { %v782_v20 = vmul.f32 %v720_v54, %v7523_v15  ;;  %v784_v42 = vmul.f32 %v726_v53, %v7523_v15  ;;  %v875_v53 = vmul.f32 %v7796_v50, %v874_v62 }
 0x15d   : > { %v7831_v59 = vpop.eup %6693 }
 0x15e   : > { %v7834_v60 = vadd.f32 1e-05, %v782_v20  ;;  %v7839_v31 = vpop.eup %6695  ;;  %v1001_v54 = vmul.f32 %v7831_v59, %v7805_v49  ;;  %6482 = vmatmul.msk.bf16.gmra.mxu0 %vm470_vm0, %v1183_v13  ;;  %6498 = vmatmul.msk.bf16.gmra.mxu1 %vm470_vm0, %v1183_v13  ;;  %v7850_v32 = vadd.f32 1e-05, %v784_v42  ;;  %v7871_v42 = vadd.f32 1e-05, %v775_v1 }
 0x15f   : > { %v7852_v20 = vpop.eup %6697  ;;  %v901_v16 = vmul.f32 %v7839_v31, %v7819_v61  ;;  %v879_v62 = vsel %vm878_vm3, %v7796_v50, %v875_v53  ;;  %v889_v1 = vsel %vm888_vm4, %v7802_v3, %v885_v43  ;;  %vm1007_vm6 = vweird.f32 %v7831_v59 }
 0x160   : > { %6699 = vrsqrt.f32 %v7834_v60  ;;  %v1002_v57 = vmul.f32 %v7831_v59, %v1001_v54  ;;  %v891_v23 = vmul.f32 %v7852_v20, %v7825_v26  ;;  %v1154_v12 = vmul.f32 %v879_v62, %v7561_v7  ;;  %vm7921_vm10 = vmor %vm1006_vm5, %vm1007_vm6 }
 0x161   : > { %6701 = vrsqrt.f32 %v7850_v32  ;;  %v1155_v53 = vmul.f32 %v889_v1, %v7543_v46  ;;  %vm897_vm9 = vweird.f32 %v7852_v20  ;;  %vm996_vm11 = vweird.f32 %v7834_v60 }
 0x162   : > { %v1003_v37 = vmul.f32 0.5, %v1002_v57  ;;  %v892_v54 = vmul.f32 %v7852_v20, %v891_v23  ;;  %vm907_vm12 = vweird.f32 %v7839_v31  ;;  %vm7948_vm14 = vmor %vm896_vm8, %vm897_vm9  ;;  %vm1016_vm2 = vweird.f32 %v7850_v32 }
 0x163   : > { %v729_v44 = vpop.xlane.xlu0 %728  ;;  %vm7955_vm1 = vmor %vm906_vm15, %vm907_vm12 }
 0x164   : > { %v785_v27 = vmul.f32 %v729_v44, %v7523_v15  ;;  %v902_v44 = vmul.f32 %v7839_v31, %v901_v16  ;;  %v1004_v57 = vsub.f32 1.5, %v1003_v37 }
 0x166   : > { %v7862_v55 = vpop.eup %6699  ;;  %v7867_v28 = vadd.f32 1e-05, %v785_v27  ;;  %v735_v27 = vpop.xlane.xlu2 %734  ;;  %v903_v16 = vmul.f32 0.5, %v902_v44  ;;  %v1184_v44 = vpack.c.bf16 %v1155_v53, %v1154_v12  ;;  %v1005_v62 = vmul.f32 %v7831_v59, %v1004_v57 }
 0x167   : > { %v991_v13 = vmul.f32 %v7862_v55, %v7834_v60  ;;  %v7887_v33 = vpop.eup %6701  ;;  %v787_v19 = vmul.f32 %v735_v27, %v7523_v15  ;;  %vm997_vm7 = vweird.f32 %v7862_v55  ;;  %v777_v27 = vmul.f32 %v7763_v35, %v7523_v15 }
 0x168   : > { %6703 = vrsqrt.f32 %v7867_v28  ;;  %v904_v7 = vsub.f32 1.5, %v903_v16  ;;  %v1011_v46 = vmul.f32 %v7887_v33, %v7850_v32  ;;  %v776_v57 = vmul.f32 %v7783_v56, %v7523_v15  ;;  %vm998_vm13 = vmor %vm996_vm11, %vm997_vm7 }
 0x169   : > { %6705 = vrsqrt.f32 %v7857_v25  ;;  %v992_v47 = vmul.f32 %v7862_v55, %v991_v13  ;;  %v732_v13 = vpop.xlane.xlu1 %731  ;;  %v7912_v12 = vadd.f32 1e-05, %v787_v19  ;;  %v1009_v53 = vsel %vm7921_vm10, %v7831_v59, %v1005_v62 }
 0x16a   : > { %6707 = vrsqrt.f32 %v7871_v42  ;;  %v786_v43 = vmul.f32 %v732_v13, %v7523_v15  ;;  %v905_v49 = vmul.f32 %v7839_v31, %v904_v7  ;;  %v1012_v19 = vmul.f32 %v7887_v33, %v1011_v46 }
 0x16b   : > { %v993_v39 = vmul.f32 0.5, %v992_v47  ;;  %v893_v47 = vmul.f32 0.5, %v892_v54  ;;  %6709 = vrsqrt.f32 %v7912_v12  ;;  %v7959_v59 = vadd.f32 1e-05, %v776_v57 }
 0x16c   : > { %v7932_v13 = vadd.f32 1e-05, %v786_v43  ;;  %v1167_v26 = vmul.f32 %v1009_v53, %v7633_v14  ;;  %v1013_v46 = vmul.f32 0.5, %v1012_v19  ;;  %v909_v61 = vsel %vm7955_vm1, %v7839_v31, %v905_v49 }
 0x16d   : > { %v994_v36 = vsub.f32 1.5, %v993_v39  ;;  %v894_v1 = vsub.f32 1.5, %v893_v47  ;;  %v1157_v14 = vmul.f32 %v909_v61, %v7578_v17  ;;  %vm1017_vm3 = vweird.f32 %v7887_v33 }
 0x16e   : > { %v7889_v50 = vpop.eup %6703  ;;  %6483 = vmatmul.msk.bf16.gmra.mxu0 %vm470_vm0, %v1184_v44  ;;  %6499 = vmatmul.msk.bf16.gmra.mxu1 %vm470_vm0, %v1184_v44  ;;  %6711 = vrsqrt.f32 %v7932_v13  ;;  %vm1026_vm4 = vweird.f32 %v7867_v28  ;;  %vm7994_vm6 = vmor %vm1016_vm2, %vm1017_vm3  ;;  %vm926_vm7 = vweird.f32 %v7871_v42  ;;  %v779_v61 = vmul.f32 %v7794_v48, %v7523_v15 }
 0x16f   : > { %v7893_v23 = vpop.eup %6705  ;;  %v1021_v3 = vmul.f32 %v7889_v50, %v7867_v28  ;;  %v995_v54 = vmul.f32 %v7862_v55, %v994_v36  ;;  %v895_v47 = vmul.f32 %v7852_v20, %v894_v1  ;;  %v738_v1 = vpop.xlane.xlu0 %737  ;;  %6713 = vrsqrt.f32 %v7959_v59 }
 0x170   : > { %v7900_v37 = vpop.eup %6707  ;;  %v911_v39 = vmul.f32 %v7893_v23, %v7857_v25  ;;  %vm1027_vm5 = vweird.f32 %v7889_v50  ;;  %vm916_vm10 = vweird.f32 %v7857_v25  ;;  %vm917_vm12 = vweird.f32 %v7893_v23 }
 0x171   : > { %v1022_v35 = vmul.f32 %v7889_v50, %v1021_v3  ;;  %v921_v16 = vmul.f32 %v7900_v37, %v7871_v42  ;;  %v999_v60 = vsel %vm998_vm13, %v7862_v55, %v995_v54  ;;  %v7952_v3 = vadd.f32 1e-05, %v777_v27  ;;  %vm8001_vm8 = vmor %vm1026_vm4, %vm1027_vm5 }
 0x172   : > { %v1166_v43 = vmul.f32 %v999_v60, %v7641_v34  ;;  %v912_v44 = vmul.f32 %v7893_v23, %v911_v39  ;;  %v899_v36 = vsel %vm7948_vm14, %v7852_v20, %v895_v47  ;;  %v1014_v39 = vsub.f32 1.5, %v1013_v46  ;;  %vm8054_vm13 = vmor %vm916_vm10, %vm917_vm12 }
 0x173   : > { %v1023_v55 = vmul.f32 0.5, %v1022_v35  ;;  %v922_v62 = vmul.f32 %v7900_v37, %v921_v16  ;;  %v7972_v35 = vpop.eup %6709  ;;  %6715 = vrsqrt.f32 %v7952_v3  ;;  %v741_v16 = vpop.xlane.xlu1 %740  ;;  %v788_v20 = vmul.f32 %v738_v1, %v7523_v15 }
 0x174   : > { %v1190_v54 = vpack.c.bf16 %v1167_v26, %v1166_v43  ;;  %v913_v34 = vmul.f32 0.5, %v912_v44  ;;  %v7979_v57 = vpop.eup %6711  ;;  %v1156_v49 = vmul.f32 %v899_v36, %v7571_v0  ;;  %v1041_v19 = vmul.f32 %v7972_v35, %v7912_v12 }
 0x175   : > { %v1024_v27 = vsub.f32 1.5, %v1023_v55  ;;  %v923_v31 = vmul.f32 0.5, %v922_v62  ;;  %v789_v60 = vmul.f32 %v741_v16, %v7523_v15  ;;  %v1031_v32 = vmul.f32 %v7979_v57, %v7932_v13  ;;  %v7998_v55 = vpop.eup %6713 }
 0x176   : > { %6489 = vmatmul.msk.bf16.vlgmr.msra.gmra.mxu2 %vm470_vm0, %v1190_v54  ;;  %6505 = vmatmul.msk.bf16.vlgmr.msra.gmra.mxu3 %vm470_vm0, %v1190_v54  ;;  %v1185_v53 = vpack.c.bf16 %v1157_v14, %v1156_v49  ;;  %v1015_v56 = vmul.f32 %v7887_v33, %v1014_v39  ;;  %v914_v7 = vsub.f32 1.5, %v913_v34  ;;  %v8005_v43 = vadd.f32 1e-05, %v788_v20 }
 0x177   : > { %v1025_v17 = vmul.f32 %v7889_v50, %v1024_v27  ;;  %v924_v47 = vsub.f32 1.5, %v923_v31  ;;  %vm927_vm9 = vweird.f32 %v7900_v37  ;;  %v778_v44 = vmul.f32 %v7781_v11, %v7523_v15 }
 0x178   : > { %v1042_v62 = vmul.f32 %v7972_v35, %v1041_v19  ;;  %v8020_v54 = vadd.f32 1e-05, %v789_v60  ;;  %v931_v27 = vmul.f32 %v7998_v55, %v7959_v59  ;;  %v1032_v1 = vmul.f32 %v7979_v57, %v1031_v32  ;;  %vm8034_vm11 = vmor %vm926_vm7, %vm927_vm9 }
 0x179   : > { %v8009_v26 = vpop.eup %6715  ;;  %v1029_v46 = vsel %vm8001_vm8, %v7889_v50, %v1025_v17  ;;  %v1019_v11 = vsel %vm7994_vm6, %v7887_v33, %v1015_v56  ;;  %v925_v36 = vmul.f32 %v7900_v37, %v924_v47  ;;  %6717 = vrsqrt.f32 %v8005_v43  ;;  %v744_v56 = vpop.xlane.xlu2 %743 }
 0x17a   : > { %v941_v50 = vmul.f32 %v8009_v26, %v7952_v3  ;;  %v1169_v14 = vmul.f32 %v1029_v46, %v7662_v6  ;;  %v8041_v33 = vadd.f32 1e-05, %v778_v44  ;;  %v1043_v34 = vmul.f32 0.5, %v1042_v62 }
 0x17b   : > { %v915_v31 = vmul.f32 %v7893_v23, %v914_v7  ;;  %v8044_v39 = vadd.f32 1e-05, %v779_v61  ;;  %6719 = vrsqrt.f32 %v8020_v54  ;;  %v1168_v42 = vmul.f32 %v1019_v11, %v7657_v58  ;;  %v747_v58 = vpop.xlane.xlu0 %746 }
 0x17c   : > { %v932_v16 = vmul.f32 %v7998_v55, %v931_v27  ;;  %v1033_v20 = vmul.f32 0.5, %v1032_v1  ;;  %v929_v6 = vsel %vm8034_vm11, %v7900_v37, %v925_v36  ;;  %v942_v19 = vmul.f32 %v8009_v26, %v941_v50 }
 0x17d   : > { %v1191_v17 = vpack.c.bf16 %v1169_v14, %v1168_v42  ;;  %6721 = vrsqrt.f32 %v8041_v33  ;;  %v1044_v60 = vsub.f32 1.5, %v1043_v34  ;;  %v1159_v25 = vmul.f32 %v929_v6, %v7594_v41 }
 0x17e   : > { %6484 = vmatmul.msk.bf16.gmra.mxu0 %vm470_vm0, %v1185_v53  ;;  %6500 = vmatmul.msk.bf16.gmra.mxu1 %vm470_vm0, %v1185_v53  ;;  %v919_v53 = vsel %vm8054_vm13, %v7893_v23, %v915_v31  ;;  %6723 = vrsqrt.f32 %v8044_v39  ;;  %v933_v37 = vmul.f32 0.5, %v932_v16  ;;  %v1034_v32 = vsub.f32 1.5, %v1033_v20 }
 0x17f   : > { %v8063_v47 = vpop.eup %6717  ;;  %vm1046_vm14 = vweird.f32 %v7912_v12  ;;  %vm1047_vm15 = vweird.f32 %v7972_v35  ;;  %v943_v23 = vmul.f32 0.5, %v942_v19  ;;  %v791_v7 = vmul.f32 %v747_v58, %v7523_v15 }
 0x180   : > { %v1158_v28 = vmul.f32 %v919_v53, %v7568_v10  ;;  %vm1036_vm1 = vweird.f32 %v7932_v13  ;;  %vm1037_vm2 = vweird.f32 %v7979_v57  ;;  %v1045_v41 = vmul.f32 %v7972_v35, %v1044_v60  ;;  %vm8080_vm3 = vmor %vm1046_vm14, %vm1047_vm15 }
 0x181   : > { %v8071_v0 = vpop.eup %6719  ;;  %v1051_v44 = vmul.f32 %v8063_v47, %v8005_v43  ;;  %v790_v62 = vmul.f32 %v744_v56, %v7523_v15  ;;  %v934_v27 = vsub.f32 1.5, %v933_v37  ;;  %v1035_v10 = vmul.f32 %v7979_v57, %v1034_v32  ;;  %vm8092_vm4 = vmor %vm1036_vm1, %vm1037_vm2  ;;  %v753_v56 = vpop.xlane.xlu2 %752 }
 0x182   : > { %v1186_v46 = vpack.c.bf16 %v1159_v25, %v1158_v28  ;;  %v1061_v13 = vmul.f32 %v8071_v0, %v8020_v54  ;;  %v8096_v36 = vadd.f32 1e-05, %v791_v7  ;;  %v944_v50 = vsub.f32 1.5, %v943_v23 }
 0x183   : > { %v8085_v61 = vpop.eup %6721  ;;  %v781_v48 = vmul.f32 %v7800_v52, %v7523_v15  ;;  %v1052_v14 = vmul.f32 %v8063_v47, %v1051_v44  ;;  %v1049_v34 = vsel %vm8080_vm3, %v7972_v35, %v1045_v41  ;;  %vm946_vm5 = vweird.f32 %v7952_v3  ;;  %v750_v41 = vpop.xlane.xlu1 %749 }
 0x184   : > { %v8090_v1 = vpop.eup %6723  ;;  %v780_v31 = vmul.f32 %v7777_v38, %v7523_v15  ;;  %vm937_vm6 = vweird.f32 %v7998_v55  ;;  %v8110_v42 = vadd.f32 1e-05, %v790_v62  ;;  %v1062_v52 = vmul.f32 %v8071_v0, %v1061_v13 }
 0x185   : > { %v961_v16 = vmul.f32 %v8090_v1, %v8044_v39  ;;  %v1039_v20 = vsel %vm8092_vm4, %v7979_v57, %v1035_v10  ;;  %v935_v35 = vmul.f32 %v7998_v55, %v934_v27  ;;  %vm947_vm7 = vweird.f32 %v8009_v26 }
 0x186   : > { %6490 = vmatmul.msk.bf16.gmra.mxu2 %vm470_vm0, %v1191_v17  ;;  %6506 = vmatmul.msk.bf16.gmra.mxu3 %vm470_vm0, %v1191_v17  ;;  %v951_v38 = vmul.f32 %v8085_v61, %v8041_v33  ;;  %6725 = vrsqrt.f32 %v8096_v36  ;;  %v1171_v6 = vmul.f32 %v1049_v34, %v7678_v21  ;;  %vm936_vm8 = vweird.f32 %v7959_v59  ;;  %vm8146_vm10 = vmor %vm946_vm5, %vm947_vm7 }
 0x187   : > { %v8125_v49 = vadd.f32 1e-05, %v781_v48  ;;  %v1053_v19 = vmul.f32 0.5, %v1052_v14  ;;  %v945_v17 = vmul.f32 %v8009_v26, %v944_v50  ;;  %v8128_v60 = vadd.f32 1e-05, %v780_v31  ;;  %vm8132_vm9 = vmor %vm936_vm8, %vm937_vm6 }
 0x188   : > { %6727 = vrsqrt.f32 %v8110_v42  ;;  %v1170_v58 = vmul.f32 %v1039_v20, %v7654_v18  ;;  %v962_v21 = vmul.f32 %v8090_v1, %v961_v16  ;;  %v1063_v59 = vmul.f32 0.5, %v1062_v52 }
 0x189   : > { %v939_v53 = vsel %vm8132_vm9, %v7998_v55, %v935_v35  ;;  %v952_v37 = vmul.f32 %v8085_v61, %v951_v38  ;;  %6729 = vrsqrt.f32 %v8125_v49  ;;  %v1054_v18 = vsub.f32 1.5, %v1053_v19 }
 0x18a   : > { %v1192_v32 = vpack.c.bf16 %v1171_v6, %v1170_v58  ;;  %v949_v23 = vsel %vm8146_vm10, %v8009_v26, %v945_v17  ;;  %6731 = vrsqrt.f32 %v8128_v60  ;;  %v1160_v3 = vmul.f32 %v939_v53, %v7599_v2 }
 0x18b   : > { %v963_v7 = vmul.f32 0.5, %v962_v21  ;;  %v1064_v28 = vsub.f32 1.5, %v1063_v59  ;;  %vm1056_vm11 = vweird.f32 %v8005_v43  ;;  %vm1057_vm12 = vweird.f32 %v8063_v47 }
 0x18c   : > { %v8155_v55 = vpop.eup %6725  ;;  %v953_v26 = vmul.f32 0.5, %v952_v37  ;;  %v793_v12 = vmul.f32 %v753_v56, %v7523_v15  ;;  %v1161_v62 = vmul.f32 %v949_v23, %v7591_v40  ;;  %vm1066_vm13 = vweird.f32 %v8020_v54  ;;  %vm8173_vm15 = vmor %vm1056_vm11, %vm1057_vm12  ;;  %v756_v37 = vpop.xlane.xlu0 %755 }
 0x18d   : > { %vm1067_vm14 = vweird.f32 %v8071_v0  ;;  %v1081_v2 = vmul.f32 %v8155_v55, %v8096_v36  ;;  %v792_v43 = vmul.f32 %v750_v41, %v7523_v15  ;;  %v964_v11 = vsub.f32 1.5, %v963_v7 }
 0x18e   : > { %6485 = vmatmul.msk.bf16.gmra.mxu0 %vm470_vm0, %v1186_v46  ;;  %6501 = vmatmul.msk.bf16.gmra.mxu1 %vm470_vm0, %v1186_v46  ;;  %v8163_v44 = vpop.eup %6727  ;;  %v1055_v46 = vmul.f32 %v8063_v47, %v1054_v18  ;;  %v1187_v10 = vpack.c.bf16 %v1161_v62, %v1160_v3  ;;  %v1065_v54 = vmul.f32 %v8071_v0, %v1064_v28  ;;  %vm8184_vm1 = vmor %vm1066_vm13, %vm1067_vm14  ;;  %v8188_v14 = vadd.f32 1e-05, %v793_v12 }
 0x18f   : > { %v8177_v13 = vpop.eup %6729  ;;  %v1071_v40 = vmul.f32 %v8163_v44, %v8110_v42  ;;  %v954_v34 = vsub.f32 1.5, %v953_v26  ;;  %v1082_v31 = vmul.f32 %v8155_v55, %v1081_v2  ;;  %vm956_vm2 = vweird.f32 %v8041_v33 }
 0x190   : > { %v8182_v50 = vpop.eup %6731  ;;  %v1059_v16 = vsel %vm8173_vm15, %v8063_v47, %v1055_v46  ;;  %vm957_vm3 = vweird.f32 %v8085_v61  ;;  %v981_v52 = vmul.f32 %v8177_v13, %v8125_v49  ;;  %v8200_v20 = vadd.f32 1e-05, %v792_v43 }
 0x191   : > { %v965_v35 = vmul.f32 %v8090_v1, %v964_v11  ;;  %vm967_vm4 = vweird.f32 %v8090_v1  ;;  %v1072_v38 = vmul.f32 %v8163_v44, %v1071_v40  ;;  %v1069_v6 = vsel %vm8184_vm1, %v8071_v0, %v1065_v54  ;;  %vm8212_vm5 = vmor %vm956_vm2, %vm957_vm3 }
 0x192   : > { %v971_v33 = vmul.f32 %v8182_v50, %v8128_v60  ;;  %6733 = vrsqrt.f32 %v8188_v14  ;;  %v1172_v47 = vmul.f32 %v1059_v16, %v7683_v22  ;;  %vm966_vm6 = vweird.f32 %v8044_v39 }
 0x193   : > { %v1083_v17 = vmul.f32 0.5, %v1082_v31  ;;  %v955_v57 = vmul.f32 %v8085_v61, %v954_v34  ;;  %vm968_vm7 = vmor %vm966_vm6, %vm967_vm4  ;;  %6735 = vrsqrt.f32 %v8200_v20  ;;  %v1173_v0 = vmul.f32 %v1069_v6, %v7675_v24 }
 0x194   : > { %v982_v58 = vmul.f32 %v8177_v13, %v981_v52  ;;  %v1073_v21 = vmul.f32 0.5, %v1072_v38  ;;  %v969_v59 = vsel %vm968_vm7, %v8090_v1, %v965_v35  ;;  %v972_v22 = vmul.f32 %v8182_v50, %v971_v33  ;;  %v759_v1 = vpop.xlane.xlu1 %758 }
 0x195   : > { %v1193_v53 = vpack.c.bf16 %v1173_v0, %v1172_v47  ;;  %v1084_v25 = vsub.f32 1.5, %v1083_v17  ;;  %v959_v39 = vsel %vm8212_vm5, %v8085_v61, %v955_v57  ;;  %v1163_v24 = vmul.f32 %v969_v59, %v7620_v4 }
 0x196   : > { %6491 = vmatmul.msk.bf16.gmra.mxu2 %vm470_vm0, %v1192_v32  ;;  %6507 = vmatmul.msk.bf16.gmra.mxu3 %vm470_vm0, %v1192_v32  ;;  %v983_v18 = vmul.f32 0.5, %v982_v58  ;;  %v1074_v56 = vsub.f32 1.5, %v1073_v21  ;;  %vm1086_vm8 = vweird.f32 %v8096_v36  ;;  %vm1087_vm9 = vweird.f32 %v8155_v55 }
 0x197   : > { %v973_v3 = vmul.f32 0.5, %v972_v22  ;;  %v794_v61 = vmul.f32 %v756_v37, %v7523_v15  ;;  %v1162_v7 = vmul.f32 %v959_v39, %v7615_v63  ;;  %vm1076_vm10 = vweird.f32 %v8110_v42  ;;  %vm8243_vm12 = vmor %vm1086_vm8, %vm1087_vm9  ;;  %v1200_v39 = vld [vmem:[%s11726_s3] sm:$0x3] }
 0x198   : > { %v8226_v32 = vpop.eup %6733  ;;  %vm1077_vm11 = vweird.f32 %v8163_v44  ;;  %v1085_v28 = vmul.f32 %v8155_v55, %v1084_v25  ;;  %v795_v36 = vmul.f32 %v759_v1, %v7523_v15  ;;  %v984_v12 = vsub.f32 1.5, %v983_v18 }
 0x199   : > { %v8233_v23 = vpop.eup %6735  ;;  %v1101_v4 = vmul.f32 %v8226_v32, %v8188_v14  ;;  %v1188_v26 = vpack.c.bf16 %v1163_v24, %v1162_v7  ;;  %v1075_v42 = vmul.f32 %v8163_v44, %v1074_v56  ;;  %vm986_vm13 = vweird.f32 %v8125_v49  ;;  %vm8251_vm14 = vmor %vm1076_vm10, %vm1077_vm11 }
 0x19a   : > { %v1091_v63 = vmul.f32 %v8233_v23, %v8200_v20  ;;  %v8255_v2 = vadd.f32 1e-05, %v794_v61  ;;  %v974_v46 = vsub.f32 1.5, %v973_v3  ;;  %vm987_vm15 = vweird.f32 %v8177_v13 }
 0x19b   : > { %v1102_v43 = vmul.f32 %v8226_v32, %v1101_v4  ;;  %v1089_v27 = vsel %vm8243_vm12, %v8155_v55, %v1085_v28  ;;  %v8264_v49 = vadd.f32 1e-05, %v795_v36  ;;  %v1079_v40 = vsel %vm8251_vm14, %v8163_v44, %v1075_v42  ;;  %vm8271_vm1 = vmor %vm986_vm13, %vm987_vm15 }
 0x19c   : > { %v1092_v11 = vmul.f32 %v8233_v23, %v1091_v63  ;;  %6737 = vrsqrt.f32 %v8255_v2  ;;  %v1175_v48 = vmul.f32 %v1089_v27, %v7704_v51  ;;  %v975_v55 = vmul.f32 %v8182_v50, %v974_v46  ;;  %v765_v51 = vpop.xlane.xlu0 %764 }
 0x19d   : > { %vm976_vm2 = vweird.f32 %v8128_v60  ;;  %vm977_vm3 = vweird.f32 %v8182_v50  ;;  %v1103_v34 = vmul.f32 0.5, %v1102_v43  ;;  %6739 = vrsqrt.f32 %v8264_v49 }
 0x19e   : > { %6486 = vmatmul.msk.bf16.gmra.mxu0 %vm470_vm0, %v1187_v10  ;;  %6502 = vmatmul.msk.bf16.gmra.mxu1 %vm470_vm0, %v1187_v10  ;;  %v985_v10 = vmul.f32 %v8177_v13, %v984_v12  ;;  %v1174_v31 = vmul.f32 %v1079_v40, %v7699_v45  ;;  %v1093_v44 = vmul.f32 0.5, %v1092_v11  ;;  %vm978_vm4 = vmor %vm976_vm2, %vm977_vm3  ;;  %vm1106_vm5 = vweird.f32 %v8188_v14  ;;  %v11817_v40 = vld [vmem:[#allocation19_spill] sm:$0xff] }
 0x19f   : > { %v1104_v35 = vsub.f32 1.5, %v1103_v34  ;;  %v979_v38 = vsel %vm978_vm4, %v8182_v50, %v975_v55  ;;  %vm1107_vm6 = vweird.f32 %v8226_v32  ;;  %v797_v47 = vmul.f32 %v765_v51, %v7523_v15 }
 0x1a0   : > { %v989_v16 = vsel %vm8271_vm1, %v8177_v13, %v985_v10  ;;  %v1194_v52 = vpack.c.bf16 %v1175_v48, %v1174_v31  ;;  %v1094_v45 = vsub.f32 1.5, %v1093_v44  ;;  %v762_v13 = vpop.xlane.xlu2 %761  ;;  %v1164_v50 = vmul.f32 %v979_v38, %v7612_v8  ;;  %vm1108_vm9 = vmor %vm1106_vm5, %vm1107_vm6 }
 0x1a1   : > { %v1165_v60 = vmul.f32 %v989_v16, %v7636_v29  ;;  %vm1096_vm7 = vweird.f32 %v8200_v20  ;;  %vm1097_vm8 = vweird.f32 %v8233_v23  ;;  %v1105_v19 = vmul.f32 %v8226_v32, %v1104_v35 }
 0x1a2   : > { %v8286_v6 = vpop.eup %6737  ;;  %v796_v14 = vmul.f32 %v762_v13, %v7523_v15  ;;  %v1095_v57 = vmul.f32 %v8233_v23, %v1094_v45  ;;  %vm1098_vm10 = vmor %vm1096_vm7, %vm1097_vm8  ;;  %v8306_v8 = vadd.f32 1e-05, %v797_v47  ;;  %v8327_v56 = vperm.slane %v1200_v39, 0 }
 0x1a3   : > { %v8293_v33 = vpop.eup %6739  ;;  %v1111_v29 = vmul.f32 %v8286_v6, %v8255_v2  ;;  %v1189_v17 = vpack.c.bf16 %v1165_v60, %v1164_v50  ;;  %v1109_v58 = vsel %vm1108_vm9, %v8226_v32, %v1105_v19  ;;  %vm1116_vm11 = vweird.f32 %v8255_v2 }
 0x1a4   : > { %v1121_v0 = vmul.f32 %v8293_v33, %v8264_v49  ;;  %v8312_v21 = vadd.f32 1e-05, %v796_v14  ;;  %v1099_v59 = vsel %vm1098_vm10, %v8233_v23, %v1095_v57  ;;  %6741 = vrsqrt.f32 %v8306_v8 }
 0x1a5   : > { %v1112_v20 = vmul.f32 %v8286_v6, %v1111_v29  ;;  %v1177_v22 = vmul.f32 %v1109_v58, %v7720_v5  ;;  %v1176_v25 = vmul.f32 %v1099_v59, %v7696_v30  ;;  %v8329_v5 = vperm.slane %v1200_v39, 1 }
 0x1a6   : > { %6492 = vmatmul.msk.bf16.gmra.mxu2 %vm470_vm0, %v1193_v53  ;;  %6508 = vmatmul.msk.bf16.gmra.mxu3 %vm470_vm0, %v1193_v53  ;;  %v1122_v15 = vmul.f32 %v8293_v33, %v1121_v0  ;;  %6743 = vrsqrt.f32 %v8312_v21  ;;  %vm1117_vm12 = vweird.f32 %v8286_v6  ;;  %vm1126_vm13 = vweird.f32 %v8264_v49 }
 0x1a7   : > { %v1113_v53 = vmul.f32 0.5, %v1112_v20  ;;  %v1195_v32 = vpack.c.bf16 %v1177_v22, %v1176_v25  ;;  %vm1127_vm14 = vweird.f32 %v8293_v33  ;;  %vm1118_vm15 = vmor %vm1116_vm11, %vm1117_vm12  ;;  %vm1146_vm2 = vweird.f32 %v8306_v8 }
 0x1a8   : > { %v1123_v37 = vmul.f32 0.5, %v1122_v15  ;;  %vm1128_vm1 = vmor %vm1126_vm13, %vm1127_vm14  ;;  %vm1136_vm4 = vweird.f32 %v8312_v21  ;;  %v11822_v15 = vld [vmem:[#allocation21_spill] sm:$0xff] }
 0x1a9   : > { %v1114_v24 = vsub.f32 1.5, %v1113_v53 }
 0x1aa   : > { %v8323_v18 = vpop.eup %6741  ;;  %v1124_v1 = vsub.f32 1.5, %v1123_v37 }
 0x1ab   : > { %v1115_v23 = vmul.f32 %v8286_v6, %v1114_v24  ;;  %v1141_v3 = vmul.f32 %v8323_v18, %v8306_v8  ;;  %vm1147_vm3 = vweird.f32 %v8323_v18  ;;  %v11823_v24 = vld [vmem:[#allocation20_spill] sm:$0xff] }
 0x1ac   : > { %v8333_v30 = vpop.eup %6743  ;;  %v1125_v36 = vmul.f32 %v8293_v33, %v1124_v1  ;;  %vm8368_vm6 = vmor %vm1146_vm2, %vm1147_vm3 }
 0x1ad   : > { %v1131_v41 = vmul.f32 %v8333_v30, %v8312_v21  ;;  %v1142_v63 = vmul.f32 %v8323_v18, %v1141_v3  ;;  %v1119_v42 = vsel %vm1118_vm15, %v8286_v6, %v1115_v23  ;;  %vm1137_vm5 = vweird.f32 %v8333_v30 }
 0x1ae   : > { %6487 = vmatmul.msk.bf16.gmra.mxu0 %vm470_vm0, %v1188_v26  ;;  %6503 = vmatmul.msk.bf16.gmra.mxu1 %vm470_vm0, %v1188_v26  ;;  %v1129_v2 = vsel %vm1128_vm1, %v8293_v33, %v1125_v36  ;;  %v1178_v46 = vmul.f32 %v1119_v42, %v7725_v9  ;;  %vm8378_vm7 = vmor %vm1136_vm4, %vm1137_vm5 }
 0x1af   : > { %v1132_v62 = vmul.f32 %v8333_v30, %v1131_v41  ;;  %v1143_v43 = vmul.f32 0.5, %v1142_v63  ;;  %v1179_v54 = vmul.f32 %v1129_v2, %v11817_v40 }
 0x1b1   : > { %v1133_v48 = vmul.f32 0.5, %v1132_v62  ;;  %v1196_v31 = vpack.c.bf16 %v1179_v54, %v1178_v46  ;;  %v1144_v16 = vsub.f32 1.5, %v1143_v43 }
 0x1b3   : > { %v1134_v9 = vsub.f32 1.5, %v1133_v48  ;;  %v1145_v38 = vmul.f32 %v8323_v18, %v1144_v16 }
 0x1b5   : > { %v1135_v47 = vmul.f32 %v8333_v30, %v1134_v9 }
 0x1b6   : > { %6493 = vmatmul.msk.bf16.gmra.mxu2 %vm470_vm0, %v1194_v52  ;;  %6509 = vmatmul.msk.bf16.gmra.mxu3 %vm470_vm0, %v1194_v52 }
 0x1b7   : > { %v1139_v58 = vsel %vm8378_vm7, %v8333_v30, %v1135_v47 }
 0x1be   : > { %6488 = vmatmul.msk.bf16.gmra.mxu0 %vm470_vm0, %v1189_v17  ;;  %6504 = vmatmul.msk.bf16.gmra.mxu1 %vm470_vm0, %v1189_v17  ;;  %v1149_v17 = vsel %vm8368_vm6, %v8323_v18, %v1145_v38  ;;  %v1180_v18 = vmul.f32 %v1139_v58, %v11823_v24 }
 0x1bf   : > { %v1181_v59 = vmul.f32 %v1149_v17, %v11822_v15 }
 0x1c1   : > { %v1197_v3 = vpack.c.bf16 %v1181_v59, %v1180_v18 }
 0x1c6   : > { %6494 = vmatmul.msk.bf16.gmra.mxu2 %vm470_vm0, %v1195_v32  ;;  %6510 = vmatmul.msk.bf16.gmra.mxu3 %vm470_vm0, %v1195_v32 }
 0x1cb   : > { %v1273_v61 = vpop.f32.mrf.mxu0  ;;  %v1362_v7 = vpop.f32.mrf.mxu1 }
 0x1cc   : > { %v8341_v4 = vadd.f32 %v1273_v61, %v8327_v56  ;;  %v1363_v28 = vadd.f32 %v1362_v7, %v8329_v5 }
 0x1ce   : > { %v6513_v26 = vmul.f32 -1.442695, %v8341_v4  ;;  %v6545_v12 = vmul.f32 -1.442695, %v1363_v28 }
 0x1d0   : > { %6745 = vpow2.f32 %v6513_v26 }
 0x1d1   : > { %6747 = vpow2.f32 %v6545_v12 }
 0x1d3   : > { %v1275_v27 = vpop.f32.mrf.mxu0  ;;  %v1364_v49 = vpop.f32.mrf.mxu1 }
 0x1d4   : > { %v8354_v10 = vadd.f32 %v1275_v27, %v8327_v56  ;;  %v1365_v11 = vadd.f32 %v1364_v49, %v8329_v5 }
 0x1d6   : > { %v6746_v55 = vpop.eup %6745  ;;  %v6514_v34 = vmul.f32 -1.442695, %v8354_v10  ;;  %v6546_v52 = vmul.f32 -1.442695, %v1365_v11  ;;  %6495 = vmatmul.msk.bf16.gmra.mxu2 %vm470_vm0, %v1196_v31  ;;  %6511 = vmatmul.msk.bf16.gmra.mxu3 %vm470_vm0, %v1196_v31 }
 0x1d7   : > { %v6748_v44 = vpop.eup %6747  ;;  %v8363_v51 = vadd.f32 1.0, %v6746_v55 }
 0x1d8   : > { %v5638_v35 = vadd.f32 1.0, %v6748_v44  ;;  %6749 = vpow2.f32 %v6514_v34 }
 0x1d9   : > { %v1581_v2 = vand.u32 2147483648, %v8363_v51  ;;  %v1579_v49 = vand.u32 2147483647, %v8363_v51  ;;  %vm1575_vm14 = vweird.f32 %v8363_v51 }
 0x1da   : > { %6751 = vrcp.f32 %v5638_v35  ;;  %v5679_v25 = vand.u32 2147483647, %v5638_v35  ;;  %v5681_v32 = vand.u32 2147483648, %v5638_v35  ;;  %vm5675_vm9 = vweird.f32 %v5638_v35 }
 0x1db   : > { %6753 = vpow2.f32 %v6546_v52  ;;  %v1278_v6 = vpop.f32.mrf.mxu0  ;;  %v1367_v60 = vpop.f32.mrf.mxu1  ;;  %v1582_v52 = vor.u32 1.1754944e-38, %v1581_v2  ;;  %vm1580_vm2 = vcmp.eq.f32.partialorder %v1579_v49, 8.507059e+37 }
 0x1dc   : > { %v8373_v13 = vadd.f32 %v1278_v6, %v8327_v56  ;;  %v1368_v33 = vadd.f32 %v1367_v60, %v8329_v5  ;;  %6755 = vrcp.f32 %v8363_v51  ;;  %vm5680_vm10 = vcmp.eq.f32.partialorder %v5679_v25, 8.507059e+37 }
 0x1dd   : > { %v5682_v36 = vor.u32 1.1754944e-38, %v5681_v32 }
 0x1de   : > { %v6750_v50 = vpop.eup %6749  ;;  %v6515_v29 = vmul.f32 -1.442695, %v8373_v13  ;;  %v6547_v14 = vmul.f32 -1.442695, %v1368_v33 }
 0x1df   : > { %v8386_v20 = vadd.f32 1.0, %v6750_v50 }
 0x1e0   : > { %v6752_v57 = vpop.eup %6751  ;;  %6757 = vpow2.f32 %v6515_v29 }
 0x1e1   : > { %v6754_v0 = vpop.eup %6753  ;;  %v5671_v8 = vmul.f32 %v6752_v57, %v5638_v35  ;;  %6759 = vpow2.f32 %v6547_v14  ;;  %vm5676_vm8 = vweird.f32 %v6752_v57  ;;  %v1594_v17 = vand.u32 2147483647, %v8386_v20 }
 0x1e2   : > { %v8391_v21 = vadd.f32 1.0, %v6754_v0  ;;  %v6756_v22 = vpop.eup %6755  ;;  %vm5677_vm11 = vmor %vm5675_vm9, %vm5676_vm8  ;;  %vm1590_vm6 = vweird.f32 %v8386_v20 }
 0x1e3   : > { %v5672_v53 = vsub.f32 1.0, %v5671_v8  ;;  %v1280_v37 = vpop.f32.mrf.mxu0  ;;  %v1369_v39 = vpop.f32.mrf.mxu1  ;;  %v1571_v61 = vmul.f32 %v6756_v22, %v8363_v51  ;;  %vm1576_vm13 = vweird.f32 %v6756_v22  ;;  %vm1595_vm9 = vcmp.eq.f32.partialorder %v1594_v17, 8.507059e+37 }
 0x1e4   : > { %6761 = vrcp.f32 %v8391_v21  ;;  %v1370_v30 = vadd.f32 %v1369_v39, %v8329_v5  ;;  %v8400_v41 = vadd.f32 %v1280_v37, %v8327_v56  ;;  %vm5690_vm12 = vweird.f32 %v8391_v21  ;;  %vm1577_vm15 = vmor %vm1575_vm14, %vm1576_vm13 }
 0x1e5   : > { %v5673_v1 = vmul.f32 %v6752_v57, %v5672_v53  ;;  %6763 = vrcp.f32 %v8386_v20  ;;  %v1572_v12 = vsub.f32 1.0, %v1571_v61  ;;  %v5694_v54 = vand.u32 2147483647, %v8391_v21 }
 0x1e6   : > { %v6758_v23 = vpop.eup %6757  ;;  %v6548_v26 = vmul.f32 -1.442695, %v1370_v30  ;;  %6496 = vmatmul.msk.bf16.gmra.mxu2 %vm470_vm0, %v1197_v3  ;;  %6512 = vmatmul.msk.bf16.gmra.mxu3 %vm470_vm0, %v1197_v3  ;;  %v5696_v48 = vand.u32 2147483648, %v8391_v21  ;;  %v6516_v31 = vmul.f32 -1.442695, %v8400_v41 }
 0x1e7   : > { %v5674_v7 = vadd.f32 %v6752_v57, %v5673_v1  ;;  %v6760_v28 = vpop.eup %6759  ;;  %v8405_v42 = vadd.f32 1.0, %v6758_v23  ;;  %v1573_v27 = vmul.f32 %v6756_v22, %v1572_v12  ;;  %vm8433_vm3 = vcmp.eq.f32.partialorder %v5694_v54, 8.507059e+37 }
 0x1e8   : > { %v8407_v62 = vadd.f32 1.0, %v6760_v28  ;;  %v5697_v47 = vor.u32 1.1754944e-38, %v5696_v48 }
 0x1e9   : > { %v5678_v63 = vsel %vm5677_vm11, %v6752_v57, %v5674_v7  ;;  %v1574_v44 = vadd.f32 %v6756_v22, %v1573_v27  ;;  %v1596_v57 = vand.u32 2147483648, %v8386_v20 }
 0x1ea   : > { %v6762_v46 = vpop.eup %6761  ;;  %v5683_v43 = vsel %vm5680_vm10, %v5682_v36, %v5678_v63  ;;  %6765 = vrcp.f32 %v8407_v62  ;;  %v5709_v14 = vand.u32 2147483647, %v8407_v62  ;;  %vm5705_vm10 = vweird.f32 %v8407_v62 }
 0x1eb   : > { %v8411_v11 = vpop.eup %6763  ;;  %6150 = vst.msk [vmem:[%s8415_s18] sm:$0xff] %vm470_vm0, %v5683_v43  ;;  %v5686_v40 = vmul.f32 %v6762_v46, %v8391_v21  ;;  %v1283_v55 = vpop.f32.mrf.mxu0  ;;  %6767 = vpow2.f32 %v6548_v26  ;;  %vm5691_vm1 = vweird.f32 %v6762_v46  ;;  %v1578_v9 = vsel %vm1577_vm15, %v6756_v22, %v1574_v44 }
 0x1ec   : > { %v1372_v34 = vpop.f32.mrf.mxu1  ;;  %6769 = vrcp.f32 %v8405_v42  ;;  %v1586_v38 = vmul.f32 %v8411_v11, %v8386_v20  ;;  %v1583_v60 = vsel %vm1580_vm2, %v1582_v52, %v1578_v9  ;;  %v8431_v45 = vadd.f32 %v1283_v55, %v8327_v56  ;;  %vm5692_vm4 = vmor %vm5690_vm12, %vm5691_vm1 }
 0x1ed   : > { %v5687_v16 = vsub.f32 1.0, %v5686_v40  ;;  %v1373_v35 = vadd.f32 %v1372_v34, %v8329_v5  ;;  %6771 = vpow2.f32 %v6516_v31  ;;  %2082 = vrot.lane.b32.xlu1 %v1583_v60, %s7189_s20  ;;  %vm1591_vm5 = vweird.f32 %v8411_v11 }
 0x1ee   : > { %v1587_v50 = vsub.f32 1.0, %v1586_v38  ;;  %v5711_v22 = vand.u32 2147483648, %v8407_v62  ;;  %v6517_v25 = vmul.f32 -1.442695, %v8431_v45  ;;  %vm1592_vm8 = vmor %vm1590_vm6, %vm1591_vm5  ;;  %v1597_v18 = vor.u32 1.1754944e-38, %v1596_v57 }
 0x1ef   : > { %v5688_v6 = vmul.f32 %v6762_v46, %v5687_v16  ;;  %v6549_v51 = vmul.f32 -1.442695, %v1373_v35  ;;  %vm5710_vm12 = vcmp.eq.f32.partialorder %v5709_v14, 8.507059e+37 }
 0x1f0   : > { %v6766_v19 = vpop.eup %6765  ;;  %v1588_v58 = vmul.f32 %v8411_v11, %v1587_v50  ;;  %v5712_v26 = vor.u32 1.1754944e-38, %v5711_v22 }
 0x1f1   : > { %v5689_v29 = vadd.f32 %v6762_v46, %v5688_v6  ;;  %v6768_v0 = vpop.eup %6767  ;;  %v5701_v8 = vmul.f32 %v6766_v19, %v8407_v62  ;;  %6773 = vpow2.f32 %v6549_v51  ;;  %vm5706_vm7 = vweird.f32 %v6766_v19 }
 0x1f2   : > { %v8447_v15 = vpop.eup %6769  ;;  %v8450_v53 = vadd.f32 1.0, %v6768_v0  ;;  %v1589_v24 = vadd.f32 %v8411_v11, %v1588_v58  ;;  %vm5707_vm11 = vmor %vm5705_vm10, %vm5706_vm7 }
 0x1f3   : > { %v5693_v59 = vsel %vm5692_vm4, %v6762_v46, %v5689_v29  ;;  %v1285_v37 = vpop.f32.mrf.mxu0  ;;  %v5702_v32 = vsub.f32 1.0, %v5701_v8  ;;  %v6772_v1 = vpop.eup %6771  ;;  %v1601_v38 = vmul.f32 %v8447_v15, %v8405_v42 }
 0x1f4   : > { %v1374_v21 = vpop.f32.mrf.mxu1  ;;  %v5698_v39 = vsel %vm8433_vm3, %v5697_v47, %v5693_v59  ;;  %6775 = vrcp.f32 %v8450_v53  ;;  %v1593_v23 = vsel %vm1592_vm8, %v8411_v11, %v1589_v24  ;;  %v8464_v3 = vadd.f32 %v1285_v37, %v8327_v56 }
 0x1f5   : > { %6151 = vst.msk [vmem:[%s8415_s18 + $0x8] sm:$0xff] %vm470_vm0, %v5698_v39  ;;  %v5703_v30 = vmul.f32 %v6766_v19, %v5702_v32  ;;  %v1375_v61 = vadd.f32 %v1374_v21, %v8329_v5  ;;  %v1598_v20 = vsel %vm1595_vm9, %v1597_v18, %v1593_v23  ;;  %6777 = vpow2.f32 %v6517_v25 }
 0x1f6   : > { %2084 = vrot.lane.b32.xlu2 %v1598_v20, %s7189_s20  ;;  %v6518_v36 = vmul.f32 -1.442695, %v8464_v3  ;;  %v8476_v62 = vadd.f32 1.0, %v6772_v1  ;;  %v5724_v48 = vand.u32 2147483647, %v8450_v53  ;;  %v5726_v44 = vand.u32 2147483648, %v8450_v53 }
 0x1f7   : > { %v6774_v7 = vpop.eup %6773  ;;  %v5704_v28 = vadd.f32 %v6766_v19, %v5703_v30  ;;  %v6550_v63 = vmul.f32 -1.442695, %v1375_v61  ;;  %vm5720_vm14 = vweird.f32 %v8450_v53 }
 0x1f8   : > { %v8471_v12 = vadd.f32 1.0, %v6774_v7  ;;  %vm8494_vm15 = vcmp.eq.f32.partialorder %v5724_v48, 8.507059e+37  ;;  %v5727_v14 = vor.u32 1.1754944e-38, %v5726_v44 }
 0x1f9   : > { %v5708_v2 = vsel %vm5707_vm11, %v6766_v19, %v5704_v28  ;;  %v1313_v27 = vpop.f32.mrf.mxu2  ;;  %v1402_v49 = vpop.f32.mrf.mxu3  ;;  %v1611_v28 = vand.u32 2147483648, %v8405_v42 }
 0x1fa   : > { %v6776_v46 = vpop.eup %6775  ;;  %v5713_v43 = vsel %vm5710_vm12, %v5712_v26, %v5708_v2  ;;  %6779 = vrcp.f32 %v8471_v12  ;;  %v8481_v55 = vadd.f32 %v1313_v27, %v8327_v56  ;;  %v1403_v34 = vadd.f32 %v1402_v49, %v8329_v5 }
 0x1fb   : > { %6152 = vst.msk [vmem:[%s8415_s18 + $0x10] sm:$0xff] %vm470_vm0, %v5713_v43  ;;  %v5716_v11 = vmul.f32 %v6776_v46, %v8450_v53  ;;  %6781 = vpow2.f32 %v6518_v36  ;;  %v1288_v40 = vpop.f32.mrf.mxu0  ;;  %v6778_v6 = vpop.eup %6777  ;;  %vm5721_vm13 = vweird.f32 %v6776_v46  ;;  %v5739_v8 = vand.u32 2147483647, %v8471_v12 }
 0x1fc   : > { %v1377_v54 = vpop.f32.mrf.mxu1  ;;  %6783 = vpow2.f32 %v6550_v63  ;;  %v8486_v16 = vadd.f32 %v1288_v40, %v8327_v56  ;;  %v6529_v35 = vmul.f32 -1.442695, %v8481_v55  ;;  %v6561_v9 = vmul.f32 -1.442695, %v1403_v34  ;;  %vm5722_vm1 = vmor %vm5720_vm14, %vm5721_vm13 }
 0x1fd   : > { %v5717_v31 = vsub.f32 1.0, %v5716_v11  ;;  %v1378_v52 = vadd.f32 %v1377_v54, %v8329_v5  ;;  %6785 = vrcp.f32 %v8476_v62  ;;  %v8500_v0 = vadd.f32 1.0, %v6778_v6 }
 0x1fe   : > { %11826 = vst [vmem:[#allocation19_spill] sm:$0xff] %v8486_v16  ;;  %6787 = vpow2.f32 %v6529_v35  ;;  %v6519_v50 = vmul.f32 -1.442695, %v8486_v16  ;;  %v5741_v58 = vand.u32 2147483648, %v8471_v12  ;;  %v1602_v53 = vsub.f32 1.0, %v1601_v38 }
 0x1ff   : > { %v5718_v60 = vmul.f32 %v6776_v46, %v5717_v31  ;;  %v6551_v51 = vmul.f32 -1.442695, %v1378_v52  ;;  %6789 = vpow2.f32 %v6561_v9  ;;  %vm5735_vm3 = vweird.f32 %v8471_v12 }
 0x200   : > { %v6780_v33 = vpop.eup %6779  ;;  %vm5740_vm4 = vcmp.eq.f32.partialorder %v5739_v8, 8.507059e+37  ;;  %v5742_v63 = vor.u32 1.1754944e-38, %v5741_v58  ;;  %v1603_v54 = vmul.f32 %v8447_v15, %v1602_v53  ;;  %v8542_v6 = vor.u32 1.1754944e-38, %v1611_v28 }
 0x201   : > { %v6782_v19 = vpop.eup %6781  ;;  %v5719_v29 = vadd.f32 %v6776_v46, %v5718_v60  ;;  %v5731_v17 = vmul.f32 %v6780_v33, %v8471_v12  ;;  %v1315_v59 = vpop.f32.mrf.mxu2  ;;  %6791 = vpow2.f32 %v6551_v51  ;;  %vm5736_vm2 = vweird.f32 %v6780_v33 }
 0x202   : > { %v6784_v57 = vpop.eup %6783  ;;  %v1404_v22 = vpop.f32.mrf.mxu3  ;;  %6793 = vpow2.f32 %v6519_v50  ;;  %v8509_v32 = vadd.f32 %v1315_v59, %v8327_v56  ;;  %v8516_v30 = vadd.f32 1.0, %v6782_v19  ;;  %vm5737_vm5 = vmor %vm5735_vm3, %vm5736_vm2 }
 0x203   : > { %v5723_v25 = vsel %vm5722_vm1, %v6776_v46, %v5719_v29  ;;  %v5732_v37 = vsub.f32 1.0, %v5731_v17  ;;  %v8504_v21 = vadd.f32 1.0, %v6784_v57  ;;  %v1405_v24 = vadd.f32 %v1404_v22, %v8329_v5  ;;  %v8512_v18 = vpop.eup %6785  ;;  %v1290_v61 = vpop.f32.mrf.mxu0 }
 0x204   : > { %v5728_v39 = vsel %vm8494_vm15, %v5727_v14, %v5723_v25  ;;  %v6788_v23 = vpop.eup %6787  ;;  %v1379_v20 = vpop.f32.mrf.mxu1  ;;  %v6530_v2 = vmul.f32 -1.442695, %v8509_v32  ;;  %v8528_v12 = vadd.f32 %v1290_v61, %v8327_v56  ;;  %v8557_v29 = vadd.f32 %v8447_v15, %v1603_v54 }
 0x205   : > { %6153 = vst.msk [vmem:[%s8415_s18 + $0x18] sm:$0xff] %vm470_vm0, %v5728_v39  ;;  %v5733_v1 = vmul.f32 %v6780_v33, %v5732_v37  ;;  %6795 = vrcp.f32 %v8504_v21  ;;  %v6790_v36 = vpop.eup %6789  ;;  %v6562_v43 = vmul.f32 -1.442695, %v1405_v24  ;;  %v1380_v27 = vadd.f32 %v1379_v20, %v8329_v5 }
 0x206   : > { %6797 = vrcp.f32 %v8500_v0  ;;  %v8525_v46 = vadd.f32 1.0, %v6790_v36  ;;  %11829 = vst [vmem:[#allocation21_spill] sm:$0xff] %v8528_v12  ;;  %v5754_v40 = vand.u32 2147483647, %v8504_v21  ;;  %v5756_v31 = vand.u32 2147483648, %v8504_v21 }
 0x207   : > { %v5734_v26 = vadd.f32 %v6780_v33, %v5733_v1  ;;  %v6792_v49 = vpop.eup %6791  ;;  %6799 = vrcp.f32 %v8516_v30  ;;  %v8535_v44 = vadd.f32 1.0, %v6788_v23  ;;  %v6552_v9 = vmul.f32 -1.442695, %v1380_v27 }
 0x208   : > { %v6794_v48 = vpop.eup %6793  ;;  %6801 = vrcp.f32 %v8525_v46  ;;  %v8540_v35 = vadd.f32 1.0, %v6792_v49  ;;  %vm5750_vm6 = vweird.f32 %v8504_v21  ;;  %vm8549_vm7 = vcmp.eq.f32.partialorder %v5754_v40, 8.507059e+37 }
 0x209   : > { %v5738_v11 = vsel %vm5737_vm5, %v6780_v33, %v5734_v26  ;;  %6803 = vpow2.f32 %v6530_v2  ;;  %v1318_v38 = vpop.f32.mrf.mxu2  ;;  %v6520_v33 = vmul.f32 -1.442695, %v8528_v12  ;;  %v8553_v19 = vadd.f32 1.0, %v6794_v48 }
 0x20a   : > { %v5743_v34 = vsel %vm5740_vm4, %v5742_v63, %v5738_v11  ;;  %6805 = vpow2.f32 %v6562_v43  ;;  %v1407_v47 = vpop.f32.mrf.mxu3  ;;  %v5757_v17 = vor.u32 1.1754944e-38, %v5756_v31  ;;  %v8561_v57 = vadd.f32 %v1318_v38, %v8327_v56 }
 0x20b   : > { %v6796_v52 = vpop.eup %6795  ;;  %6154 = vst.msk [vmem:[%s8415_s18 + $0x20] sm:$0xff] %vm470_vm0, %v5743_v34  ;;  %6807 = vrcp.f32 %v8540_v35  ;;  %vm5915_vm9 = vweird.f32 %v8525_v46  ;;  %v1408_v58 = vadd.f32 %v1407_v47, %v8329_v5  ;;  %v1293_v59 = vpop.f32.mrf.mxu0  ;;  %v5919_v23 = vand.u32 2147483647, %v8525_v46 }
 0x20c   : > { %v8544_v60 = vpop.eup %6797  ;;  %v5746_v51 = vmul.f32 %v6796_v52, %v8504_v21  ;;  %6809 = vrcp.f32 %v8535_v44  ;;  %vm5751_vm8 = vweird.f32 %v6796_v52  ;;  %v6531_v25 = vmul.f32 -1.442695, %v8561_v57  ;;  %v1382_v39 = vpop.f32.mrf.mxu1 }
 0x20d   : > { %v8563_v8 = vpop.eup %6799  ;;  %6811 = vpow2.f32 %v6552_v9  ;;  %v8569_v37 = vadd.f32 %v1293_v59, %v8327_v56  ;;  %v6563_v61 = vmul.f32 -1.442695, %v1408_v58  ;;  %v5921_v36 = vand.u32 2147483648, %v8525_v46  ;;  %vm5752_vm10 = vmor %vm5750_vm6, %vm5751_vm8 }
 0x20e   : > { %v5747_v14 = vsub.f32 1.0, %v5746_v51  ;;  %v6802_v22 = vpop.eup %6801  ;;  %6813 = vpow2.f32 %v6520_v33  ;;  %v1383_v27 = vadd.f32 %v1382_v39, %v8329_v5  ;;  %v5769_v54 = vand.u32 2147483647, %v8540_v35 }
 0x20f   : > { %11832 = vst [vmem:[#allocation20_spill] sm:$0xff] %v8569_v37  ;;  %v6804_v24 = vpop.eup %6803  ;;  %v5911_v1 = vmul.f32 %v6802_v22, %v8525_v46  ;;  %6815 = vrcp.f32 %v8553_v19  ;;  %v6521_v26 = vmul.f32 -1.442695, %v8569_v37  ;;  %vm5916_vm11 = vweird.f32 %v6802_v22 }
 0x210   : > { %v5748_v53 = vmul.f32 %v6796_v52, %v5747_v14  ;;  %v6806_v20 = vpop.eup %6805  ;;  %6817 = vpow2.f32 %v6531_v25  ;;  %v8586_v48 = vadd.f32 1.0, %v6804_v24  ;;  %vm8593_vm12 = vcmp.eq.f32.partialorder %v5919_v23, 8.507059e+37  ;;  %vm5917_vm13 = vmor %vm5915_vm9, %vm5916_vm11 }
 0x211   : > { %v6808_v63 = vpop.eup %6807  ;;  %v5912_v2 = vsub.f32 1.0, %v5911_v1  ;;  %v8579_v43 = vadd.f32 1.0, %v6806_v20  ;;  %6819 = vpow2.f32 %v6563_v61  ;;  %v5771_v50 = vand.u32 2147483648, %v8540_v35  ;;  %v1320_v20 = vpop.f32.mrf.mxu2 }
 0x212   : > { %v5749_v28 = vadd.f32 %v6796_v52, %v5748_v53  ;;  %v8582_v49 = vpop.eup %6809  ;;  %v5761_v40 = vmul.f32 %v6808_v63, %v8540_v35  ;;  %vm5765_vm14 = vweird.f32 %v8540_v35  ;;  %vm5766_vm15 = vweird.f32 %v6808_v63 }
 0x213   : > { %v6812_v34 = vpop.eup %6811  ;;  %v5913_v31 = vmul.f32 %v6802_v22, %v5912_v2  ;;  %6821 = vrcp.f32 %v8579_v43  ;;  %vm8606_vm1 = vcmp.eq.f32.partialorder %v5769_v54, 8.507059e+37  ;;  %v5934_v23 = vand.u32 2147483647, %v8579_v43  ;;  %vm5767_vm2 = vmor %vm5765_vm14, %vm5766_vm15 }
 0x214   : > { %v5753_v11 = vsel %vm5752_vm10, %v6796_v52, %v5749_v28  ;;  %v6814_v9 = vpop.eup %6813  ;;  %v5922_v52 = vor.u32 1.1754944e-38, %v5921_v36  ;;  %v5762_v51 = vsub.f32 1.0, %v5761_v40  ;;  %6823 = vpow2.f32 %v6521_v26 }
 0x215   : > { %v5758_v21 = vsel %vm8549_vm7, %v5757_v17, %v5753_v11  ;;  %v8597_v33 = vpop.eup %6815  ;;  %v5914_v47 = vadd.f32 %v6802_v22, %v5913_v31  ;;  %v8600_v14 = vadd.f32 1.0, %v6812_v34  ;;  %v6553_v17 = vmul.f32 -1.442695, %v1383_v27  ;;  %v1409_v34 = vpop.f32.mrf.mxu3 }
 0x216   : > { %6155 = vst.msk [vmem:[%s8415_s18 + $0x28] sm:$0xff] %vm470_vm0, %v5758_v21  ;;  %v6818_v58 = vpop.eup %6817  ;;  %v5763_v59 = vmul.f32 %v6808_v63, %v5762_v51  ;;  %6825 = vrcp.f32 %v8586_v48  ;;  %v8610_v24 = vadd.f32 1.0, %v6814_v9  ;;  %v5936_v61 = vand.u32 2147483648, %v8579_v43  ;;  %v1384_v51 = vpop.f32.mrf.mxu1 }
 0x217   : > { %v6820_v53 = vpop.eup %6819  ;;  %v5918_v25 = vsel %vm5917_vm13, %v6802_v22, %v5914_v47  ;;  %6827 = vrcp.f32 %v8600_v14  ;;  %v5772_v22 = vor.u32 1.1754944e-38, %v5771_v50  ;;  %v5784_v36 = vand.u32 2147483647, %v8600_v14 }
 0x218   : > { %v5923_v46 = vsel %vm8593_vm12, %v5922_v52, %v5918_v25  ;;  %v5764_v1 = vadd.f32 %v6808_v63, %v5763_v59  ;;  %v8622_v26 = vadd.f32 1.0, %v6820_v53  ;;  %6829 = vpow2.f32 %v6553_v17  ;;  %v1295_v52 = vpop.f32.mrf.mxu0 }
 0x219   : > { %v6822_v28 = vpop.eup %6821  ;;  %6166 = vst.msk [vmem:[%s8415_s18 + $0x80] sm:$0xff] %vm470_vm0, %v5923_v46  ;;  %v5786_v40 = vand.u32 2147483648, %v8600_v14  ;;  %v8626_v54 = vadd.f32 1.0, %v6818_v58  ;;  %vm5930_vm3 = vweird.f32 %v8579_v43  ;;  %6831 = vrcp.f32 %v8610_v24 }
 0x21a   : > { %v6824_v2 = vpop.eup %6823  ;;  %v5768_v27 = vsel %vm5767_vm2, %v6808_v63, %v5764_v1  ;;  %v5926_v11 = vmul.f32 %v6822_v28, %v8579_v43  ;;  %v8633_v21 = vadd.f32 %v1320_v20, %v8327_v56  ;;  %vm8639_vm4 = vcmp.eq.f32.partialorder %v5934_v23, 8.507059e+37 }
 0x21b   : > { %v5773_v35 = vsel %vm8606_vm1, %v5772_v22, %v5768_v27  ;;  %v5937_v38 = vor.u32 1.1754944e-38, %v5936_v61  ;;  %6833 = vrcp.f32 %v8622_v26  ;;  %vm5931_vm5 = vweird.f32 %v6822_v28 }
 0x21c   : > { %v8635_v31 = vpop.eup %6825  ;;  %6156 = vst.msk [vmem:[%s8415_s18 + $0x30] sm:$0xff] %vm470_vm0, %v5773_v35  ;;  %v5927_v63 = vsub.f32 1.0, %v5926_v11  ;;  %vm5780_vm6 = vweird.f32 %v8600_v14  ;;  %v8645_v50 = vadd.f32 1.0, %v6824_v2  ;;  %v1410_v17 = vadd.f32 %v1409_v34, %v8329_v5  ;;  %vm5932_vm8 = vmor %vm5930_vm3, %vm5931_vm5 }
 0x21d   : > { %v6828_v47 = vpop.eup %6827  ;;  %vm8649_vm7 = vcmp.eq.f32.partialorder %v5784_v36, 8.507059e+37  ;;  %v5787_v25 = vor.u32 1.1754944e-38, %v5786_v40  ;;  %6835 = vrcp.f32 %v8626_v54  ;;  %v6532_v46 = vmul.f32 -1.442695, %v8633_v21 }
 0x21e   : > { %v5928_v58 = vmul.f32 %v6822_v28, %v5927_v63  ;;  %v5776_v59 = vmul.f32 %v6828_v47, %v8600_v14  ;;  %v6830_v39 = vpop.eup %6829  ;;  %v6564_v1 = vmul.f32 -1.442695, %v1410_v17  ;;  %v8656_v23 = vadd.f32 %v1295_v52, %v8327_v56 }
 0x21f   : > { %v1385_v61 = vadd.f32 %v1384_v51, %v8329_v5  ;;  %v8659_v2 = vadd.f32 1.0, %v6830_v39  ;;  %v1811_v36 = vmul.f32 %v8582_v49, %v8535_v44  ;;  %v8663_v27 = vpop.eup %6831  ;;  %vm5945_vm9 = vweird.f32 %v8622_v26 }
 0x220   : > { %11841 = vst [vmem:[#allocation22_spill] sm:$0xff] %v8656_v23  ;;  %v5929_v20 = vadd.f32 %v6822_v28, %v5928_v58  ;;  %v5777_v22 = vsub.f32 1.0, %v5776_v59  ;;  %v5949_v11 = vand.u32 2147483647, %v8622_v26  ;;  %6837 = vpow2.f32 %v6564_v1  ;;  %v1298_v7 = vpop.f32.mrf.mxu0 }
 0x221   : > { %v6554_v40 = vmul.f32 -1.442695, %v1385_v61  ;;  %v6834_v34 = vpop.eup %6833  ;;  %vm5781_vm10 = vweird.f32 %v6828_v47  ;;  %6839 = vrcp.f32 %v8659_v2  ;;  %v6522_v43 = vmul.f32 -1.442695, %v8656_v23 }
 0x222   : > { %v5933_v35 = vsel %vm5932_vm8, %v6822_v28, %v5929_v20  ;;  %v5778_v63 = vmul.f32 %v6828_v47, %v5777_v22  ;;  %v5941_v51 = vmul.f32 %v6834_v34, %v8622_v26  ;;  %6841 = vrcp.f32 %v8645_v50  ;;  %vm5782_vm11 = vmor %vm5780_vm6, %vm5781_vm10 }
 0x223   : > { %v5938_v52 = vsel %vm8639_vm4, %v5937_v38, %v5933_v35  ;;  %v8676_v17 = vpop.eup %6835  ;;  %v5951_v28 = vand.u32 2147483648, %v8622_v26  ;;  %6843 = vpow2.f32 %v6532_v46  ;;  %v1812_v59 = vsub.f32 1.0, %v1811_v36  ;;  %v1323_v46 = vpop.f32.mrf.mxu2 }
 0x224   : > { %6167 = vst.msk [vmem:[%s8415_s18 + $0x88] sm:$0xff] %vm470_vm0, %v5938_v52  ;;  %v5779_v58 = vadd.f32 %v6828_v47, %v5778_v63  ;;  %v5942_v9 = vsub.f32 1.0, %v5941_v51  ;;  %vm8683_vm12 = vcmp.eq.f32.partialorder %v5949_v11, 8.507059e+37  ;;  %6845 = vpow2.f32 %v6554_v40 }
 0x225   : > { %vm1816_vm13 = vweird.f32 %v8582_v49  ;;  %vm5946_vm14 = vweird.f32 %v6834_v34  ;;  %v1813_v1 = vmul.f32 %v8582_v49, %v1812_v59  ;;  %v1819_v61 = vand.u32 2147483647, %v8535_v44  ;;  %v1412_v59 = vpop.f32.mrf.mxu3 }
 0x226   : > { %v5783_v39 = vsel %vm5782_vm11, %v6828_v47, %v5779_v58  ;;  %v6838_v20 = vpop.eup %6837  ;;  %v5943_v22 = vmul.f32 %v6834_v34, %v5942_v9  ;;  %6847 = vpow2.f32 %v6522_v43  ;;  %v1821_v36 = vand.u32 2147483648, %v8535_v44  ;;  %vm5947_vm3 = vmor %vm5945_vm9, %vm5946_vm14 }
 0x227   : > { %v5788_v14 = vsel %vm8649_vm7, %v5787_v25, %v5783_v39  ;;  %v6840_v11 = vpop.eup %6839  ;;  %v5952_v40 = vor.u32 1.1754944e-38, %v5951_v28  ;;  %v8695_v35 = vadd.f32 1.0, %v6838_v20  ;;  %v1814_v47 = vadd.f32 %v8582_v49, %v1813_v1  ;;  %v1387_v20 = vpop.f32.mrf.mxu1 }
 0x228   : > { %6157 = vst.msk [vmem:[%s8415_s18 + $0x38] sm:$0xff] %vm470_vm0, %v5788_v14  ;;  %vm1815_vm15 = vweird.f32 %v8535_v44  ;;  %v8699_v63 = vpop.eup %6841  ;;  %v5944_v52 = vadd.f32 %v6834_v34, %v5943_v22  ;;  %v5791_v53 = vmul.f32 %v6840_v11, %v8659_v2  ;;  %vm5795_vm1 = vweird.f32 %v8659_v2 }
 0x229   : > { %vm8705_vm2 = vmor %vm1815_vm15, %vm1816_vm13  ;;  %v8710_v51 = vadd.f32 %v1323_v46, %v8327_v56  ;;  %v6844_v43 = vpop.eup %6843  ;;  %v5799_v44 = vand.u32 2147483647, %v8659_v2  ;;  %v5801_v58 = vand.u32 2147483648, %v8659_v2  ;;  %6849 = vrcp.f32 %v8695_v35 }
 0x22a   : > { %vm8718_vm4 = vcmp.eq.f32.partialorder %v1819_v61, 8.507059e+37  ;;  %v6846_v9 = vpop.eup %6845  ;;  %v5948_v39 = vsel %vm5947_vm3, %v6834_v34, %v5944_v52  ;;  %v5792_v1 = vsub.f32 1.0, %v5791_v53  ;;  %v1818_v26 = vsel %vm8705_vm2, %v8582_v49, %v1814_v47 }
 0x22b   : > { %v1822_v46 = vor.u32 1.1754944e-38, %v1821_v36  ;;  %v5953_v14 = vsel %vm8683_vm12, %v5952_v40, %v5948_v39  ;;  %vm5796_vm5 = vweird.f32 %v6840_v11  ;;  %v5966_v22 = vand.u32 2147483648, %v8695_v35 }
 0x22c   : > { %v8728_v61 = vadd.f32 1.0, %v6846_v9  ;;  %v6848_v23 = vpop.eup %6847  ;;  %6168 = vst.msk [vmem:[%s8415_s18 + $0x90] sm:$0xff] %vm470_vm0, %v5953_v14  ;;  %v5793_v34 = vmul.f32 %v6840_v11, %v5792_v1  ;;  %v5964_v52 = vand.u32 2147483647, %v8695_v35  ;;  %v6533_v36 = vmul.f32 -1.442695, %v8710_v51  ;;  %vm5797_vm8 = vmor %vm5795_vm1, %vm5796_vm5 }
 0x22d   : > { %v1823_v49 = vsel %vm8718_vm4, %v1822_v46, %v1818_v26  ;;  %vm8736_vm6 = vcmp.eq.f32.partialorder %v5799_v44, 8.507059e+37  ;;  %v5802_v40 = vor.u32 1.1754944e-38, %v5801_v58  ;;  %v8740_v47 = vadd.f32 1.0, %v6844_v43  ;;  %v1414_v38 = vpop.f32.mrf.mxu3 }
 0x22e   : > { %6851 = vrcp.f32 %v8728_v61  ;;  %2114 = vrot.lane.b32.xlu1 %v1823_v49, %s7189_s20  ;;  %v5794_v53 = vadd.f32 %v6840_v11, %v5793_v34  ;;  %vm5960_vm7 = vweird.f32 %v8695_v35  ;;  %v1413_v25 = vadd.f32 %v1412_v59, %v8329_v5 }
 0x22f   : > { %v8747_v28 = vadd.f32 %v1298_v7, %v8327_v56  ;;  %v6850_v9 = vpop.eup %6849  ;;  %v5967_v43 = vor.u32 1.1754944e-38, %v5966_v22  ;;  %v8752_v44 = vadd.f32 1.0, %v6848_v23  ;;  %v1388_v58 = vadd.f32 %v1387_v20, %v8329_v5 }
 0x230   : > { %v1826_v39 = vmul.f32 %v8635_v31, %v8586_v48  ;;  %v5798_v1 = vsel %vm5797_vm8, %v6840_v11, %v5794_v53  ;;  %v5956_v59 = vmul.f32 %v6850_v9, %v8695_v35  ;;  %vm8758_vm9 = vcmp.eq.f32.partialorder %v5964_v52, 8.507059e+37 }
 0x231   : > { %11850 = vst [vmem:[#allocation23_spill] sm:$0xff] %v8747_v28  ;;  %6853 = vpow2.f32 %v6533_v36  ;;  %v6565_v26 = vmul.f32 -1.442695, %v1413_v25  ;;  %v5803_v2 = vsel %vm8736_vm6, %v5802_v40, %v5798_v1  ;;  %v6523_v23 = vmul.f32 -1.442695, %v8747_v28  ;;  %v1325_v36 = vpop.f32.mrf.mxu2  ;;  %v1389_v25 = vpop.f32.mrf.mxu1 }
 0x232   : > { %v6555_v46 = vmul.f32 -1.442695, %v1388_v58  ;;  %v1827_v14 = vsub.f32 1.0, %v1826_v39  ;;  %vm1606_vm10 = vweird.f32 %v8447_v15  ;;  %6158 = vst.msk [vmem:[%s8415_s18 + $0x40] sm:$0xff] %vm470_vm0, %v5803_v2  ;;  %v5957_v11 = vsub.f32 1.0, %v5956_v59 }
 0x233   : > { %v5814_v20 = vand.u32 2147483647, %v8728_v61  ;;  %6855 = vpow2.f32 %v6565_v26  ;;  %vm1831_vm11 = vweird.f32 %v8635_v31  ;;  %v1834_v52 = vand.u32 2147483647, %v8586_v48 }
 0x234   : > { %v6852_v22 = vpop.eup %6851  ;;  %6857 = vpow2.f32 %v6523_v23  ;;  %v1828_v34 = vmul.f32 %v8635_v31, %v1827_v14  ;;  %v1836_v49 = vand.u32 2147483648, %v8586_v48  ;;  %vm1605_vm12 = vweird.f32 %v8405_v42 }
 0x235   : > { %v5958_v40 = vmul.f32 %v6850_v9, %v5957_v11  ;;  %vm5961_vm13 = vweird.f32 %v6850_v9  ;;  %v5806_v53 = vmul.f32 %v6852_v22, %v8728_v61  ;;  %6859 = vpow2.f32 %v6555_v46 }
 0x236   : > { %v5816_v58 = vand.u32 2147483648, %v8728_v61  ;;  %v1829_v39 = vadd.f32 %v8635_v31, %v1828_v34  ;;  %vm1830_vm14 = vweird.f32 %v8586_v48  ;;  %v1837_v1 = vor.u32 1.1754944e-38, %v1836_v49  ;;  %vm5962_vm1 = vmor %vm5960_vm7, %vm5961_vm13  ;;  %v1300_v48 = vpop.f32.mrf.mxu0 }
 0x237   : > { %v6854_v59 = vpop.eup %6853  ;;  %v5959_v26 = vadd.f32 %v6850_v9, %v5958_v40  ;;  %v5807_v2 = vsub.f32 1.0, %v5806_v53  ;;  %vm1832_vm15 = vmor %vm1830_vm14, %vm1831_vm11  ;;  %v8781_v23 = vadd.f32 %v1325_v36, %v8327_v56  ;;  %v1415_v14 = vadd.f32 %v1414_v38, %v8329_v5 }
 0x238   : > { %vm5811_vm2 = vweird.f32 %v6852_v22  ;;  %v1833_v46 = vsel %vm1832_vm15, %v8635_v31, %v1829_v39  ;;  %vm1835_vm3 = vcmp.eq.f32.partialorder %v1834_v52, 8.507059e+37  ;;  %v1390_v11 = vadd.f32 %v1389_v25, %v8329_v5  ;;  %vm8812_vm7 = vmor %vm1605_vm12, %vm1606_vm10 }
 0x239   : > { %v6856_v34 = vpop.eup %6855  ;;  %v5963_v49 = vsel %vm5962_vm1, %v6850_v9, %v5959_v26  ;;  %v5808_v40 = vmul.f32 %v6852_v22, %v5807_v2  ;;  %v1838_v53 = vsel %vm1835_vm3, %v1837_v1, %v1833_v46  ;;  %v6534_v36 = vmul.f32 -1.442695, %v8781_v23  ;;  %v1328_v46 = vpop.f32.mrf.mxu2 }
 0x23a   : > { %v6858_v28 = vpop.eup %6857  ;;  %6861 = vrcp.f32 %v8740_v47  ;;  %v5968_v35 = vsel %vm8758_vm9, %v5967_v43, %v5963_v49  ;;  %v8792_v38 = vadd.f32 1.0, %v6856_v34  ;;  %2116 = vrot.lane.b32.xlu0 %v1838_v53, %s7189_s20  ;;  %v6566_v31 = vmul.f32 -1.442695, %v1415_v14 }
 0x23b   : > { %v6860_v52 = vpop.eup %6859  ;;  %6169 = vst.msk [vmem:[%s8415_s18 + $0x98] sm:$0xff] %vm470_vm0, %v5968_v35  ;;  %6863 = vrcp.f32 %v8752_v44  ;;  %v5809_v9 = vadd.f32 %v6852_v22, %v5808_v40  ;;  %vm5810_vm4 = vweird.f32 %v8728_v61  ;;  %v8800_v25 = vadd.f32 %v1300_v48, %v8327_v56 }
 0x23c   : > { %vm5812_vm5 = vmor %vm5810_vm4, %vm5811_vm2  ;;  %vm5815_vm6 = vcmp.eq.f32.partialorder %v5814_v20, 8.507059e+37  ;;  %v5817_v43 = vor.u32 1.1754944e-38, %v5816_v58  ;;  %v8803_v7 = vadd.f32 1.0, %v6854_v59  ;;  %6865 = vrcp.f32 %v8792_v38 }
 0x23d   : > { %11853 = vst [vmem:[#allocation24_spill] sm:$0xff] %v8800_v25  ;;  %v5813_v39 = vsel %vm5812_vm5, %v6852_v22, %v5809_v9  ;;  %v8806_v1 = vadd.f32 1.0, %v6860_v52  ;;  %6867 = vpow2.f32 %v6534_v36  ;;  %v6556_v26 = vmul.f32 -1.442695, %v1390_v11 }
 0x23e   : > { %v5818_v2 = vsel %vm5815_vm6, %v5817_v43, %v5813_v39  ;;  %v8816_v20 = vadd.f32 1.0, %v6858_v28  ;;  %6869 = vpow2.f32 %v6566_v31  ;;  %v1608_v22 = vsel %vm8812_vm7, %v8447_v15, %v8557_v29  ;;  %v1417_v29 = vpop.f32.mrf.mxu3 }
 0x23f   : > { %6159 = vst.msk [vmem:[%s8415_s18 + $0x48] sm:$0xff] %vm470_vm0, %v5818_v2  ;;  %v5979_v58 = vand.u32 2147483647, %v8792_v38  ;;  %v5981_v59 = vand.u32 2147483648, %v8792_v38  ;;  %6871 = vrcp.f32 %v8806_v1  ;;  %v6524_v14 = vmul.f32 -1.442695, %v8800_v25  ;;  %v1303_v25 = vpop.f32.mrf.mxu0 }
 0x240   : > { %v8828_v48 = vpop.eup %6861  ;;  %6873 = vrcp.f32 %v8803_v7  ;;  %v11856_v28 = vand.u32 2147483647, %v8405_v42  ;;  %v1841_v15 = vmul.f32 %v8676_v17, %v8626_v54  ;;  %vm5975_vm9 = vweird.f32 %v8792_v38 }
 0x241   : > { %v8835_v11 = vpop.eup %6863  ;;  %6875 = vpow2.f32 %v6556_v26  ;;  %v5829_v40 = vand.u32 2147483647, %v8806_v1  ;;  %v8843_v53 = vadd.f32 %v1328_v46, %v8327_v56  ;;  %vm8846_vm10 = vcmp.eq.f32.partialorder %v5979_v58, 8.507059e+37 }
 0x242   : > { %vm1610_vm8 = vcmp.eq.f32.partialorder %v11856_v28, 8.507059e+37  ;;  %v6866_v49 = vpop.eup %6865  ;;  %6877 = vrcp.f32 %v8816_v20  ;;  %v1842_v42 = vsub.f32 1.0, %v1841_v15  ;;  %v5982_v52 = vor.u32 1.1754944e-38, %v5981_v59 }
 0x243   : > { %v1613_v34 = vsel %vm1610_vm8, %v8542_v6, %v1608_v22  ;;  %11857 = vst [vmem:[#allocation25_spill] sm:$0xff] %v8843_v53  ;;  %v6868_v36 = vpop.eup %6867  ;;  %v5971_v35 = vmul.f32 %v6866_v49, %v8792_v38  ;;  %6879 = vpow2.f32 %v6524_v14  ;;  %v1418_v6 = vadd.f32 %v1417_v29, %v8329_v5 }
 0x244   : > { %2086 = vrot.lane.b32.xlu0 %v1613_v34, %s7189_s20  ;;  %v6870_v9 = vpop.eup %6869  ;;  %vm5825_vm11 = vweird.f32 %v8806_v1  ;;  %v5831_v43 = vand.u32 2147483648, %v8806_v1  ;;  %v1843_v39 = vmul.f32 %v8676_v17, %v1842_v42  ;;  %vm1845_vm12 = vweird.f32 %v8626_v54 }
 0x245   : > { %v1851_v26 = vand.u32 2147483648, %v8626_v54  ;;  %v6872_v61 = vpop.eup %6871  ;;  %v5972_v2 = vsub.f32 1.0, %v5971_v35  ;;  %v8856_v22 = vadd.f32 1.0, %v6870_v9  ;;  %vm1846_vm13 = vweird.f32 %v8676_v17 }
 0x246   : > { %v6567_v58 = vmul.f32 -1.442695, %v1418_v6  ;;  %v8859_v59 = vpop.eup %6873  ;;  %v5821_v14 = vmul.f32 %v6872_v61, %v8806_v1  ;;  %vm8862_vm14 = vcmp.eq.f32.partialorder %v5829_v40, 8.507059e+37  ;;  %v1844_v28 = vadd.f32 %v8676_v17, %v1843_v39  ;;  %vm8880_vm1 = vmor %vm1845_vm12, %vm1846_vm13 }
 0x247   : > { %v6535_v15 = vmul.f32 -1.442695, %v8843_v53  ;;  %v6876_v29 = vpop.eup %6875  ;;  %v5973_v34 = vmul.f32 %v6866_v49, %v5972_v2  ;;  %vm5976_vm15 = vweird.f32 %v6866_v49  ;;  %6881 = vrcp.f32 %v8856_v22 }
 0x248   : > { %v1849_v42 = vand.u32 2147483647, %v8626_v54  ;;  %v8870_v35 = vpop.eup %6877  ;;  %v5822_v6 = vsub.f32 1.0, %v5821_v14  ;;  %v8872_v9 = vadd.f32 1.0, %v6868_v36  ;;  %v8874_v40 = vadd.f32 1.0, %v6876_v29  ;;  %vm5977_vm3 = vmor %vm5975_vm9, %vm5976_vm15 }
 0x249   : > { %v1852_v2 = vor.u32 1.1754944e-38, %v1851_v26  ;;  %v6880_v37 = vpop.eup %6879  ;;  %v5974_v53 = vadd.f32 %v6866_v49, %v5973_v34  ;;  %vm5826_vm2 = vweird.f32 %v6872_v61  ;;  %v1848_v36 = vsel %vm8880_vm1, %v8676_v17, %v1844_v28  ;;  %v1392_v26 = vpop.f32.mrf.mxu1 }
 0x24a   : > { %6883 = vpow2.f32 %v6567_v58  ;;  %v5823_v54 = vmul.f32 %v6872_v61, %v5822_v6  ;;  %v5994_v14 = vand.u32 2147483647, %v8856_v22  ;;  %v5996_v29 = vand.u32 2147483648, %v8856_v22  ;;  %vm5827_vm5 = vmor %vm5825_vm11, %vm5826_vm2 }
 0x24b   : > { %6885 = vpow2.f32 %v6535_v15  ;;  %v5978_v12 = vsel %vm5977_vm3, %v6866_v49, %v5974_v53  ;;  %vm1850_vm4 = vcmp.eq.f32.partialorder %v1849_v42, 8.507059e+37  ;;  %v8894_v34 = vadd.f32 %v1303_v25, %v8327_v56 }
 0x24c   : > { %6887 = vrcp.f32 %v8874_v40  ;;  %v5983_v17 = vsel %vm8846_vm10, %v5982_v52, %v5978_v12  ;;  %v5824_v38 = vadd.f32 %v6872_v61, %v5823_v54  ;;  %v8898_v58 = vadd.f32 1.0, %v6880_v37 }
 0x24d   : > { %11864 = vst [vmem:[#allocation26_spill] sm:$0xff] %v8894_v34  ;;  %v1853_v28 = vsel %vm1850_vm4, %v1852_v2, %v1848_v36  ;;  %v6882_v6 = vpop.eup %6881  ;;  %v5832_v49 = vor.u32 1.1754944e-38, %v5831_v43  ;;  %6889 = vrcp.f32 %v8872_v9  ;;  %vm5990_vm6 = vweird.f32 %v8856_v22 }
 0x24e   : > { %6170 = vst.msk [vmem:[%s8415_s18 + $0xa0] sm:$0xff] %vm470_vm0, %v5983_v17  ;;  %2118 = vrot.lane.b32.xlu2 %v1853_v28, %s7189_s20  ;;  %v1393_v12 = vadd.f32 %v1392_v26, %v8329_v5  ;;  %v5828_v37 = vsel %vm5827_vm5, %v6872_v61, %v5824_v38  ;;  %v5986_v25 = vmul.f32 %v6882_v6, %v8856_v22  ;;  %vm8910_vm7 = vcmp.eq.f32.partialorder %v5994_v14, 8.507059e+37 }
 0x24f   : > { %v5997_v31 = vor.u32 1.1754944e-38, %v5996_v29  ;;  %v5844_v1 = vand.u32 2147483647, %v8874_v40  ;;  %v5833_v43 = vsel %vm8862_vm14, %v5832_v49, %v5828_v37  ;;  %v5846_v15 = vand.u32 2147483648, %v8874_v40 }
 0x250   : > { %v6884_v52 = vpop.eup %6883  ;;  %v6557_v42 = vmul.f32 -1.442695, %v1393_v12  ;;  %v1856_v39 = vmul.f32 %v8828_v48, %v8740_v47  ;;  %6160 = vst.msk [vmem:[%s8415_s18 + $0x50] sm:$0xff] %vm470_vm0, %v5833_v43  ;;  %v5987_v2 = vsub.f32 1.0, %v5986_v25  ;;  %6891 = vrcp.f32 %v8898_v58 }
 0x251   : > { %v6886_v61 = vpop.eup %6885  ;;  %v8923_v36 = vadd.f32 1.0, %v6884_v52  ;;  %v6525_v54 = vmul.f32 -1.442695, %v8894_v34  ;;  %vm5991_vm8 = vweird.f32 %v6882_v6  ;;  %vm5840_vm9 = vweird.f32 %v8874_v40 }
 0x252   : > { %v6888_v14 = vpop.eup %6887  ;;  %6893 = vpow2.f32 %v6557_v42  ;;  %v1857_v46 = vsub.f32 1.0, %v1856_v39  ;;  %v5988_v29 = vmul.f32 %v6882_v6, %v5987_v2  ;;  %vm8928_vm10 = vcmp.eq.f32.partialorder %v5844_v1, 8.507059e+37  ;;  %vm5992_vm12 = vmor %vm5990_vm6, %vm5991_vm8 }
 0x253   : > { %v5836_v26 = vmul.f32 %v6888_v14, %v8874_v40  ;;  %6895 = vrcp.f32 %v8923_v36  ;;  %v1866_v38 = vand.u32 2147483648, %v8740_v47  ;;  %v8934_v28 = vpop.eup %6889  ;;  %v5847_v49 = vor.u32 1.1754944e-38, %v5846_v15  ;;  %v1419_v40 = vpop.f32.mrf.mxu3 }
 0x254   : > { %v1858_v12 = vmul.f32 %v8828_v48, %v1857_v46  ;;  %vm1861_vm11 = vweird.f32 %v8828_v48  ;;  %v1864_v37 = vand.u32 2147483647, %v8740_v47  ;;  %v5989_v25 = vadd.f32 %v6882_v6, %v5988_v29 }
 0x255   : > { %v5837_v52 = vsub.f32 1.0, %v5836_v26  ;;  %v8939_v43 = vadd.f32 1.0, %v6886_v61  ;;  %6897 = vpow2.f32 %v6525_v54  ;;  %vm5841_vm13 = vweird.f32 %v6888_v14 }
 0x256   : > { %v6009_v1 = vand.u32 2147483647, %v8923_v36  ;;  %v1859_v15 = vadd.f32 %v8828_v48, %v1858_v12  ;;  %vm1860_vm14 = vweird.f32 %v8740_v47  ;;  %v8947_v42 = vpop.eup %6891  ;;  %v5993_v39 = vsel %vm5992_vm12, %v6882_v6, %v5989_v25  ;;  %vm5842_vm2 = vmor %vm5840_vm9, %vm5841_vm13 }
 0x257   : > { %v5838_v2 = vmul.f32 %v6888_v14, %v5837_v52  ;;  %vm1862_vm15 = vmor %vm1860_vm14, %vm1861_vm11  ;;  %v1867_v61 = vor.u32 1.1754944e-38, %v1866_v38  ;;  %v1616_v54 = vmul.f32 %v8512_v18, %v8476_v62  ;;  %v5998_v22 = vsel %vm8910_vm7, %v5997_v31, %v5993_v39  ;;  %v1330_v31 = vpop.f32.mrf.mxu2 }
 0x258   : > { %v6894_v46 = vpop.eup %6893  ;;  %v6011_v29 = vand.u32 2147483648, %v8923_v36  ;;  %v1863_v26 = vsel %vm1862_vm15, %v8828_v48, %v1859_v15  ;;  %vm1865_vm1 = vcmp.eq.f32.partialorder %v1864_v37, 8.507059e+37  ;;  %6171 = vst.msk [vmem:[%s8415_s18 + $0xa8] sm:$0xff] %vm470_vm0, %v5998_v22  ;;  %6899 = vrcp.f32 %v8939_v43  ;;  %v1394_v22 = vpop.f32.mrf.mxu1 }
 0x259   : > { %v6896_v12 = vpop.eup %6895  ;;  %v5839_v47 = vadd.f32 %v6888_v14, %v5838_v2  ;;  %v8957_v6 = vadd.f32 1.0, %v6894_v46  ;;  %v1868_v25 = vsel %vm1865_vm1, %v1867_v61, %v1863_v26  ;;  %v1617_v38 = vsub.f32 1.0, %v1616_v54  ;;  %v1305_v46 = vpop.f32.mrf.mxu0 }
 0x25a   : > { %v6001_v53 = vmul.f32 %v6896_v12, %v8923_v36  ;;  %vm6005_vm3 = vweird.f32 %v8923_v36  ;;  %2120 = vrot.lane.b32.xlu1 %v1868_v25, %s7189_s20  ;;  %v1626_v48 = vand.u32 2147483648, %v8476_v62  ;;  %vm8967_vm4 = vcmp.eq.f32.partialorder %v6009_v1, 8.507059e+37 }
 0x25b   : > { %v6898_v37 = vpop.eup %6897  ;;  %v5843_v52 = vsel %vm5842_vm2, %v6888_v14, %v5839_v47  ;;  %6901 = vrcp.f32 %v8957_v6  ;;  %vm1621_vm5 = vweird.f32 %v8512_v18  ;;  %v1618_v61 = vmul.f32 %v8512_v18, %v1617_v38 }
 0x25c   : > { %v5848_v39 = vsel %vm8928_vm10, %v5847_v49, %v5843_v52  ;;  %v6002_v2 = vsub.f32 1.0, %v6001_v53  ;;  %v1624_v54 = vand.u32 2147483647, %v8476_v62  ;;  %vm6006_vm6 = vweird.f32 %v6896_v12 }
 0x25d   : > { %6161 = vst.msk [vmem:[%s8415_s18 + $0x58] sm:$0xff] %vm470_vm0, %v5848_v39  ;;  %v6012_v14 = vor.u32 1.1754944e-38, %v6011_v29  ;;  %vm1620_vm7 = vweird.f32 %v8476_v62  ;;  %v8981_v1 = vadd.f32 %v1330_v31, %v8327_v56  ;;  %v1619_v17 = vadd.f32 %v8512_v18, %v1618_v61  ;;  %vm6007_vm10 = vmor %vm6005_vm3, %vm6006_vm6 }
 0x25e   : > { %v6003_v26 = vmul.f32 %v6896_v12, %v6002_v2  ;;  %v1627_v49 = vor.u32 1.1754944e-38, %v1626_v48  ;;  %v1420_v47 = vadd.f32 %v1419_v40, %v8329_v5  ;;  %vm1622_vm8 = vmor %vm1620_vm7, %vm1621_vm5  ;;  %v8989_v38 = vadd.f32 %v1305_v46, %v8327_v56  ;;  %v8994_v53 = vpop.eup %6899 }
 0x25f   : > { %11871 = vst [vmem:[#allocation27_spill] sm:$0xff] %v8981_v1  ;;  %v6536_v25 = vmul.f32 -1.442695, %v8981_v1  ;;  %v1395_v29 = vadd.f32 %v1394_v22, %v8329_v5  ;;  %v1871_v62 = vmul.f32 %v8859_v59, %v8803_v7  ;;  %v1623_v48 = vsel %vm1622_vm8, %v8512_v18, %v1619_v17 }
 0x260   : > { %11872 = vst [vmem:[#allocation28_spill] sm:$0xff] %v8989_v38  ;;  %v6004_v31 = vadd.f32 %v6896_v12, %v6003_v26  ;;  %vm1625_vm9 = vcmp.eq.f32.partialorder %v1624_v54, 8.507059e+37  ;;  %v6568_v52 = vmul.f32 -1.442695, %v1420_v47  ;;  %v6526_v2 = vmul.f32 -1.442695, %v8989_v38 }
 0x261   : > { %v6902_v40 = vpop.eup %6901  ;;  %v1628_v39 = vsel %vm1625_vm9, %v1627_v49, %v1623_v48  ;;  %6903 = vpow2.f32 %v6536_v25  ;;  %v6558_v61 = vmul.f32 -1.442695, %v1395_v29  ;;  %v5859_v26 = vand.u32 2147483647, %v8957_v6 }
 0x262   : > { %v6008_v46 = vsel %vm6007_vm10, %v6896_v12, %v6004_v31  ;;  %v5851_v22 = vmul.f32 %v6902_v40, %v8957_v6  ;;  %2088 = vrot.lane.b32.xlu2 %v1628_v39, %s7189_s20  ;;  %6905 = vpow2.f32 %v6568_v52  ;;  %v5861_v54 = vand.u32 2147483648, %v8957_v6 }
 0x263   : > { %v6013_v18 = vsel %vm8967_vm4, %v6012_v14, %v6008_v46  ;;  %6907 = vpow2.f32 %v6526_v2  ;;  %v1872_v36 = vsub.f32 1.0, %v1871_v62  ;;  %v1879_v12 = vand.u32 2147483647, %v8803_v7  ;;  %v1422_v62 = vpop.f32.mrf.mxu3  ;;  %v1333_v46 = vpop.f32.mrf.mxu2 }
 0x264   : > { %6172 = vst.msk [vmem:[%s8415_s18 + $0xb0] sm:$0xff] %vm470_vm0, %v6013_v18  ;;  %v5852_v17 = vsub.f32 1.0, %v5851_v22  ;;  %6909 = vpow2.f32 %v6558_v61  ;;  %v1881_v49 = vand.u32 2147483648, %v8803_v7  ;;  %v9011_v47 = vadd.f32 1.0, %v6898_v37 }
 0x265   : > { %v1873_v25 = vmul.f32 %v8859_v59, %v1872_v36  ;;  %vm1876_vm11 = vweird.f32 %v8859_v59  ;;  %v1631_v15 = vmul.f32 %v8544_v60, %v8500_v0  ;;  %vm5855_vm12 = vweird.f32 %v8957_v6 }
 0x266   : > { %v5853_v14 = vmul.f32 %v6902_v40, %v5852_v17  ;;  %vm5856_vm13 = vweird.f32 %v6902_v40  ;;  %vm9018_vm14 = vcmp.eq.f32.partialorder %v5859_v26, 8.507059e+37  ;;  %v5862_v48 = vor.u32 1.1754944e-38, %v5861_v54 }
 0x267   : > { %v6904_v31 = vpop.eup %6903  ;;  %v1874_v37 = vadd.f32 %v8859_v59, %v1873_v25  ;;  %vm1875_vm15 = vweird.f32 %v8803_v7  ;;  %v1632_v52 = vsub.f32 1.0, %v1631_v15  ;;  %vm1880_vm2 = vcmp.eq.f32.partialorder %v1879_v12, 8.507059e+37  ;;  %vm5857_vm4 = vmor %vm5855_vm12, %vm5856_vm13  ;;  %v1308_v15 = vpop.f32.mrf.mxu0 }
 0x268   : > { %v6906_v39 = vpop.eup %6905  ;;  %v5854_v2 = vadd.f32 %v6902_v40, %v5853_v14  ;;  %vm1877_vm1 = vmor %vm1875_vm15, %vm1876_vm11  ;;  %v1882_v61 = vor.u32 1.1754944e-38, %v1881_v49  ;;  %vm1636_vm3 = vweird.f32 %v8544_v60  ;;  %v1423_v54 = vadd.f32 %v1422_v62, %v8329_v5 }
 0x269   : > { %v6908_v22 = vpop.eup %6907  ;;  %v9028_v26 = vadd.f32 1.0, %v6906_v39  ;;  %v1878_v18 = vsel %vm1877_vm1, %v8859_v59, %v1874_v37  ;;  %v1633_v7 = vmul.f32 %v8544_v60, %v1632_v52  ;;  %v1639_v49 = vand.u32 2147483647, %v8500_v0 }
 0x26a   : > { %v6910_v36 = vpop.eup %6909  ;;  %v5858_v17 = vsel %vm5857_vm4, %v6902_v40, %v5854_v2  ;;  %v1883_v12 = vsel %vm1880_vm2, %v1882_v61, %v1878_v18  ;;  %v1641_v25 = vand.u32 2147483648, %v8500_v0  ;;  %v9037_v14 = vadd.f32 1.0, %v6904_v31 }
 0x26b   : > { %v5863_v6 = vsel %vm9018_vm14, %v5862_v48, %v5858_v17  ;;  %6911 = vrcp.f32 %v9028_v26  ;;  %2122 = vrot.lane.b32.xlu0 %v1883_v12, %s7189_s20  ;;  %v9042_v59 = vadd.f32 %v1333_v46, %v8327_v56  ;;  %v9047_v40 = vadd.f32 1.0, %v6910_v36  ;;  %v1397_v48 = vpop.f32.mrf.mxu1  ;;  %v1335_v17 = vpop.f32.mrf.mxu2 }
 0x26c   : > { %6913 = vrcp.f32 %v9011_v47  ;;  %6162 = vst.msk [vmem:[%s8415_s18 + $0x60] sm:$0xff] %vm470_vm0, %v5863_v6  ;;  %v1634_v62 = vadd.f32 %v8544_v60, %v1633_v7  ;;  %v9050_v37 = vadd.f32 1.0, %v6908_v22  ;;  %vm1635_vm5 = vweird.f32 %v8500_v0 }
 0x26d   : > { %11875 = vst [vmem:[#allocation29_spill] sm:$0xff] %v9042_v59  ;;  %v6569_v29 = vmul.f32 -1.442695, %v1423_v54  ;;  %v9054_v31 = vadd.f32 %v1308_v15, %v8327_v56  ;;  %v6024_v52 = vand.u32 2147483647, %v9028_v26  ;;  %v6026_v39 = vand.u32 2147483648, %v9028_v26  ;;  %vm1637_vm6 = vmor %vm1635_vm5, %vm1636_vm3 }
 0x26e   : > { %6915 = vrcp.f32 %v9047_v40  ;;  %v1642_v2 = vor.u32 1.1754944e-38, %v1641_v25  ;;  %v1638_v61 = vsel %vm1637_vm6, %v8544_v60, %v1634_v62  ;;  %vm1640_vm7 = vcmp.eq.f32.partialorder %v1639_v49, 8.507059e+37 }
 0x26f   : > { %11876 = vst [vmem:[#allocation30_spill] sm:$0xff] %v9054_v31  ;;  %6917 = vrcp.f32 %v9037_v14  ;;  %v6537_v0 = vmul.f32 -1.442695, %v9042_v59  ;;  %v1398_v22 = vadd.f32 %v1397_v48, %v8329_v5  ;;  %vm6020_vm8 = vweird.f32 %v9028_v26 }
 0x270   : > { %v1643_v46 = vsel %vm1640_vm7, %v1642_v2, %v1638_v61  ;;  %6919 = vpow2.f32 %v6569_v29  ;;  %v6527_v7 = vmul.f32 -1.442695, %v9054_v31  ;;  %v1646_v54 = vmul.f32 %v8563_v8, %v8516_v30 }
 0x271   : > { %v6912_v18 = vpop.eup %6911  ;;  %6921 = vrcp.f32 %v9050_v37  ;;  %2090 = vrot.lane.b32.xlu1 %v1643_v46, %s7189_s20  ;;  %vm9074_vm9 = vcmp.eq.f32.partialorder %v6024_v52, 8.507059e+37  ;;  %v6027_v12 = vor.u32 1.1754944e-38, %v6026_v39  ;;  %v6559_v49 = vmul.f32 -1.442695, %v1398_v22 }
 0x272   : > { %v9071_v60 = vpop.eup %6913  ;;  %v6016_v36 = vmul.f32 %v6912_v18, %v9028_v26  ;;  %vm5870_vm10 = vweird.f32 %v9047_v40  ;;  %6923 = vpow2.f32 %v6537_v0  ;;  %v1647_v25 = vsub.f32 1.0, %v1646_v54 }
 0x273   : > { %v1886_v15 = vmul.f32 %v8934_v28, %v8872_v9  ;;  %v5874_v29 = vand.u32 2147483647, %v9047_v40  ;;  %v5876_v48 = vand.u32 2147483648, %v9047_v40  ;;  %6925 = vpow2.f32 %v6559_v49 }
 0x274   : > { %v6916_v6 = vpop.eup %6915  ;;  %v6017_v62 = vsub.f32 1.0, %v6016_v36  ;;  %vm6021_vm11 = vweird.f32 %v6912_v18  ;;  %6927 = vpow2.f32 %v6527_v7  ;;  %v1648_v2 = vmul.f32 %v8563_v8, %v1647_v25 }
 0x275   : > { %v9083_v52 = vpop.eup %6917  ;;  %v5866_v39 = vmul.f32 %v6916_v6, %v9047_v40  ;;  %vm1651_vm12 = vweird.f32 %v8563_v8  ;;  %v1656_v46 = vand.u32 2147483648, %v8516_v30  ;;  %v1887_v22 = vsub.f32 1.0, %v1886_v15  ;;  %vm9098_vm13 = vmor %vm6020_vm8, %vm6021_vm11 }
 0x276   : > { %v6920_v61 = vpop.eup %6919  ;;  %v6018_v0 = vmul.f32 %v6912_v18, %v6017_v62  ;;  %v1649_v49 = vadd.f32 %v8563_v8, %v1648_v2  ;;  %v1654_v38 = vand.u32 2147483647, %v8516_v30  ;;  %vm9102_vm14 = vcmp.eq.f32.partialorder %v5874_v29, 8.507059e+37 }
 0x277   : > { %v9089_v54 = vpop.eup %6921  ;;  %v5867_v36 = vsub.f32 1.0, %v5866_v39  ;;  %v9091_v31 = vadd.f32 1.0, %v6920_v61  ;;  %vm1650_vm15 = vweird.f32 %v8516_v30  ;;  %v1888_v15 = vmul.f32 %v8934_v28, %v1887_v22 }
 0x278   : > { %v6019_v34 = vadd.f32 %v6912_v18, %v6018_v0  ;;  %v6924_v62 = vpop.eup %6923  ;;  %vm5871_vm1 = vweird.f32 %v6916_v6  ;;  %v5877_v2 = vor.u32 1.1754944e-38, %v5876_v48  ;;  %vm1652_vm2 = vmor %vm1650_vm15, %vm1651_vm12  ;;  %v1657_v0 = vor.u32 1.1754944e-38, %v1656_v46 }
 0x279   : > { %v5868_v39 = vmul.f32 %v6916_v6, %v5867_v36  ;;  %6929 = vrcp.f32 %v9091_v31  ;;  %v6926_v26 = vpop.eup %6925  ;;  %v1653_v61 = vsel %vm1652_vm2, %v8563_v8, %v1649_v49  ;;  %vm1891_vm3 = vweird.f32 %v8934_v28  ;;  %vm5872_vm5 = vmor %vm5870_vm10, %vm5871_vm1 }
 0x27a   : > { %v6023_v29 = vsel %vm9098_vm13, %v6912_v18, %v6019_v34  ;;  %v6928_v30 = vpop.eup %6927  ;;  %v9117_v48 = vadd.f32 1.0, %v6926_v26  ;;  %vm1655_vm4 = vcmp.eq.f32.partialorder %v1654_v38, 8.507059e+37  ;;  %v6039_v34 = vand.u32 2147483647, %v9091_v31  ;;  %v1399_v26 = vpop.f32.mrf.mxu1 }
 0x27b   : > { %v6028_v22 = vsel %vm9074_vm9, %v6027_v12, %v6023_v29  ;;  %v5869_v36 = vadd.f32 %v6916_v6, %v5868_v39  ;;  %v1658_v8 = vsel %vm1655_vm4, %v1657_v0, %v1653_v61  ;;  %v1889_v18 = vadd.f32 %v8934_v28, %v1888_v15  ;;  %v1424_v12 = vpop.f32.mrf.mxu3 }
 0x27c   : > { %6173 = vst.msk [vmem:[%s8415_s18 + $0xb8] sm:$0xff] %vm470_vm0, %v6028_v22  ;;  %v1894_v46 = vand.u32 2147483647, %v8872_v9  ;;  %v9127_v7 = vadd.f32 1.0, %v6924_v62  ;;  %6931 = vrcp.f32 %v9117_v48  ;;  %2092 = vrot.lane.b32.xlu0 %v1658_v8, %s7189_s20  ;;  %vm1890_vm6 = vweird.f32 %v8872_v9  ;;  %v1310_v62 = vpop.f32.mrf.mxu0 }
 0x27d   : > { %v5873_v49 = vsel %vm5872_vm5, %v6916_v6, %v5869_v36  ;;  %v6041_v40 = vand.u32 2147483648, %v9091_v31  ;;  %v9135_v15 = vadd.f32 1.0, %v6928_v30  ;;  %vm9139_vm7 = vmor %vm1890_vm6, %vm1891_vm3  ;;  %v1896_v6 = vand.u32 2147483648, %v8872_v9 }
 0x27e   : > { %v5878_v38 = vsel %vm9102_vm14, %v5877_v2, %v5873_v49  ;;  %vm6035_vm8 = vweird.f32 %v9091_v31  ;;  %v1893_v25 = vsel %vm9139_vm7, %v8934_v28, %v1889_v18  ;;  %v9151_v2 = vadd.f32 %v1335_v17, %v8327_v56 }
 0x27f   : > { %v6930_v29 = vpop.eup %6929  ;;  %6163 = vst.msk [vmem:[%s8415_s18 + $0x68] sm:$0xff] %vm470_vm0, %v5878_v38  ;;  %v1425_v61 = vadd.f32 %v1424_v12, %v8329_v5  ;;  %vm9155_vm9 = vcmp.eq.f32.partialorder %v6039_v34, 8.507059e+37  ;;  %vm1895_vm10 = vcmp.eq.f32.partialorder %v1894_v46, 8.507059e+37  ;;  %v1897_v30 = vor.u32 1.1754944e-38, %v1896_v6 }
 0x280   : > { %11885 = vst [vmem:[#allocation31_spill] sm:$0xff] %v9151_v2  ;;  %v6031_v0 = vmul.f32 %v6930_v29, %v9091_v31  ;;  %v6538_v22 = vmul.f32 -1.442695, %v9151_v2  ;;  %v9161_v8 = vadd.f32 %v1310_v62, %v8327_v56  ;;  %v1400_v28 = vadd.f32 %v1399_v26, %v8329_v5 }
 0x281   : > { %v6570_v36 = vmul.f32 -1.442695, %v1425_v61  ;;  %v6042_v17 = vor.u32 1.1754944e-38, %v6041_v40  ;;  %v1898_v49 = vsel %vm1895_vm10, %v1897_v30, %v1893_v25  ;;  %v1661_v12 = vmul.f32 %v8597_v33, %v8553_v19 }
 0x282   : > { %11888 = vst [vmem:[#allocation32_spill] sm:$0xff] %v9161_v8  ;;  %v6032_v18 = vsub.f32 1.0, %v6031_v0  ;;  %v6932_v34 = vpop.eup %6931  ;;  %vm5885_vm11 = vweird.f32 %v9117_v48  ;;  %v5889_v46 = vand.u32 2147483647, %v9117_v48  ;;  %2124 = vrot.lane.b32.xlu2 %v1898_v49, %s7189_s20  ;;  %6933 = vpow2.f32 %v6538_v22 }
 0x283   : > { %v6560_v38 = vmul.f32 -1.442695, %v1400_v28  ;;  %vm6036_vm12 = vweird.f32 %v6930_v29  ;;  %v5881_v6 = vmul.f32 %v6932_v34, %v9117_v48  ;;  %6935 = vpow2.f32 %v6570_v36 }
 0x284   : > { %v6033_v39 = vmul.f32 %v6930_v29, %v6032_v18  ;;  %v5891_v40 = vand.u32 2147483648, %v9117_v48  ;;  %v6528_v62 = vmul.f32 -1.442695, %v9161_v8  ;;  %v1662_v26 = vsub.f32 1.0, %v1661_v12  ;;  %vm6037_vm13 = vmor %vm6035_vm8, %vm6036_vm12  ;;  %v1338_v18 = vpop.f32.mrf.mxu2 }
 0x285   : > { %v1671_v25 = vand.u32 2147483648, %v8553_v19  ;;  %v5882_v0 = vsub.f32 1.0, %v5881_v6  ;;  %6937 = vpow2.f32 %v6560_v38  ;;  %v1901_v30 = vmul.f32 %v8994_v53, %v8939_v43 }
 0x286   : > { %v6034_v61 = vadd.f32 %v6930_v29, %v6033_v39  ;;  %vm9177_vm14 = vcmp.eq.f32.partialorder %v5889_v46, 8.507059e+37  ;;  %v1663_v36 = vmul.f32 %v8597_v33, %v1662_v26  ;;  %vm1666_vm15 = vweird.f32 %v8597_v33 }
 0x287   : > { %v1669_v28 = vand.u32 2147483647, %v8553_v19  ;;  %v5883_v12 = vmul.f32 %v6932_v34, %v5882_v0  ;;  %vm5886_vm1 = vweird.f32 %v6932_v34  ;;  %v1902_v38 = vsub.f32 1.0, %v1901_v30 }
 0x288   : > { %v6038_v49 = vsel %vm6037_vm13, %v6930_v29, %v6034_v61  ;;  %v6934_v39 = vpop.eup %6933  ;;  %6939 = vpow2.f32 %v6528_v62  ;;  %v1664_v46 = vadd.f32 %v8597_v33, %v1663_v36  ;;  %vm1665_vm2 = vweird.f32 %v8553_v19  ;;  %vm5887_vm4 = vmor %vm5885_vm11, %vm5886_vm1 }
 0x289   : > { %v6043_v31 = vsel %vm9155_vm9, %v6042_v17, %v6038_v49  ;;  %v6936_v6 = vpop.eup %6935  ;;  %v5884_v26 = vadd.f32 %v6932_v34, %v5883_v12  ;;  %vm1667_vm3 = vmor %vm1665_vm2, %vm1666_vm15  ;;  %v1672_v29 = vor.u32 1.1754944e-38, %v1671_v25  ;;  %v1903_v61 = vmul.f32 %v8994_v53, %v1902_v38  ;;  %v1427_v12 = vpop.f32.mrf.mxu3 }
 0x28a   : > { %6174 = vst.msk [vmem:[%s8415_s18 + $0xc0] sm:$0xff] %vm470_vm0, %v6043_v31  ;;  %v9194_v0 = vadd.f32 %v1338_v18, %v8327_v56  ;;  %v5892_v9 = vor.u32 1.1754944e-38, %v5891_v40  ;;  %v9198_v17 = vadd.f32 1.0, %v6936_v6  ;;  %v1668_v19 = vsel %vm1667_vm3, %v8597_v33, %v1664_v46 }
 0x28b   : > { %vm1670_vm5 = vcmp.eq.f32.partialorder %v1669_v28, 8.507059e+37  ;;  %v6938_v62 = vpop.eup %6937  ;;  %v5888_v30 = vsel %vm5887_vm4, %v6932_v34, %v5884_v26  ;;  %v1909_v25 = vand.u32 2147483647, %v8939_v43  ;;  %v1911_v49 = vand.u32 2147483648, %v8939_v43 }
 0x28c   : > { %11891 = vst [vmem:[#allocation33_spill] sm:$0xff] %v9194_v0  ;;  %v1673_v36 = vsel %vm1670_vm5, %v1672_v29, %v1668_v19  ;;  %v5893_v18 = vsel %vm9177_vm14, %v5892_v9, %v5888_v30  ;;  %v9205_v48 = vadd.f32 1.0, %v6934_v39  ;;  %6941 = vrcp.f32 %v9198_v17 }
 0x28d   : > { %2094 = vrot.lane.b32.xlu2 %v1673_v36, %s7189_s20  ;;  %vm1906_vm6 = vweird.f32 %v8994_v53  ;;  %6943 = vrcp.f32 %v9127_v7  ;;  %6164 = vst.msk [vmem:[%s8415_s18 + $0x70] sm:$0xff] %vm470_vm0, %v5893_v18  ;;  %v9213_v33 = vadd.f32 1.0, %v6938_v62  ;;  %v1904_v34 = vadd.f32 %v8994_v53, %v1903_v61 }
 0x28e   : > { %v6539_v40 = vmul.f32 -1.442695, %v9194_v0  ;;  %v6940_v22 = vpop.eup %6939  ;;  %6945 = vrcp.f32 %v9135_v15  ;;  %v6056_v28 = vand.u32 2147483648, %v9198_v17  ;;  %vm1905_vm7 = vweird.f32 %v8939_v43 }
 0x28f   : > { %v1428_v38 = vadd.f32 %v1427_v12, %v8329_v5  ;;  %v6054_v39 = vand.u32 2147483647, %v9198_v17  ;;  %6947 = vrcp.f32 %v9213_v33  ;;  %vm1907_vm8 = vmor %vm1905_vm7, %vm1906_vm6  ;;  %vm1910_vm9 = vcmp.eq.f32.partialorder %v1909_v25, 8.507059e+37 }
 0x290   : > { %v1912_v31 = vor.u32 1.1754944e-38, %v1911_v49  ;;  %6949 = vrcp.f32 %v9205_v48  ;;  %v1908_v46 = vsel %vm1907_vm8, %v8994_v53, %v1904_v34  ;;  %v1916_v26 = vmul.f32 %v9083_v52, %v9037_v14 }
 0x291   : > { %v6571_v6 = vmul.f32 -1.442695, %v1428_v38  ;;  %vm6050_vm10 = vweird.f32 %v9198_v17  ;;  %v9228_v43 = vadd.f32 1.0, %v6940_v22  ;;  %6951 = vpow2.f32 %v6539_v40  ;;  %v1429_v8 = vpop.f32.mrf.mxu3 }
 0x292   : > { %v1913_v29 = vsel %vm1910_vm9, %v1912_v31, %v1908_v46  ;;  %v6942_v61 = vpop.eup %6941  ;;  %v6057_v9 = vor.u32 1.1754944e-38, %v6056_v28  ;;  %v1917_v19 = vsub.f32 1.0, %v1916_v26  ;;  %v1924_v62 = vand.u32 2147483647, %v9037_v14  ;;  %v1340_v31 = vpop.f32.mrf.mxu2 }
 0x293   : > { %2126 = vrot.lane.b32.xlu1 %v1913_v29, %s7189_s20  ;;  %6953 = vpow2.f32 %v6571_v6  ;;  %v9232_v30 = vpop.eup %6943  ;;  %v6046_v53 = vmul.f32 %v6942_v61, %v9198_v17  ;;  %vm9235_vm11 = vcmp.eq.f32.partialorder %v6054_v39, 8.507059e+37  ;;  %v5904_v25 = vand.u32 2147483647, %v9213_v33 }
 0x294   : > { %v1926_v49 = vand.u32 2147483648, %v9037_v14  ;;  %v1676_v12 = vmul.f32 %v8663_v27, %v8610_v24  ;;  %v9243_v18 = vpop.eup %6945  ;;  %v5906_v34 = vand.u32 2147483648, %v9213_v33  ;;  %v1918_v40 = vmul.f32 %v9083_v52, %v1917_v19 }
 0x295   : > { %vm1920_vm12 = vweird.f32 %v9037_v14  ;;  %vm1921_vm13 = vweird.f32 %v9083_v52  ;;  %v6948_v22 = vpop.eup %6947  ;;  %v6047_v28 = vsub.f32 1.0, %v6046_v53  ;;  %vm6051_vm14 = vweird.f32 %v6942_v61 }
 0x296   : > { %vm9249_vm15 = vcmp.eq.f32.partialorder %v1924_v62, 8.507059e+37  ;;  %v1677_v39 = vsub.f32 1.0, %v1676_v12  ;;  %v9253_v46 = vpop.eup %6949  ;;  %v5896_v6 = vmul.f32 %v6948_v22, %v9213_v33  ;;  %v1919_v26 = vadd.f32 %v9083_v52, %v1918_v40  ;;  %vm1922_vm3 = vmor %vm1920_vm12, %vm1921_vm13 }
 0x297   : > { %vm1680_vm1 = vweird.f32 %v8610_v24  ;;  %vm1681_vm2 = vweird.f32 %v8663_v27  ;;  %v6952_v29 = vpop.eup %6951  ;;  %v6048_v19 = vmul.f32 %v6942_v61, %v6047_v28  ;;  %v1927_v62 = vor.u32 1.1754944e-38, %v1926_v49  ;;  %vm6052_vm4 = vmor %vm6050_vm10, %vm6051_vm14 }
 0x298   : > { %v1678_v53 = vmul.f32 %v8663_v27, %v1677_v39  ;;  %v1686_v12 = vand.u32 2147483648, %v8610_v24  ;;  %v5897_v2 = vsub.f32 1.0, %v5896_v6  ;;  %v1923_v1 = vsel %vm1922_vm3, %v9083_v52, %v1919_v26  ;;  %vm1682_vm7 = vmor %vm1680_vm1, %vm1681_vm2 }
 0x299   : > { %v6954_v0 = vpop.eup %6953  ;;  %v1684_v40 = vand.u32 2147483647, %v8610_v24  ;;  %v9266_v59 = vadd.f32 %v1340_v31, %v8327_v56  ;;  %v6049_v16 = vadd.f32 %v6942_v61, %v6048_v19  ;;  %v1928_v14 = vsel %vm9249_vm15, %v1927_v62, %v1923_v1 }
 0x29a   : > { %v9268_v28 = vadd.f32 1.0, %v6954_v0  ;;  %v1679_v49 = vadd.f32 %v8663_v27, %v1678_v53  ;;  %v5898_v39 = vmul.f32 %v6948_v22, %v5897_v2  ;;  %vm5901_vm5 = vweird.f32 %v6948_v22  ;;  %2128 = vrot.lane.b32.xlu0 %v1928_v14, %s7189_s20  ;;  %v1343_v26 = vpop.f32.mrf.mxu2  ;;  %v1432_v53 = vpop.f32.mrf.mxu3 }
 0x29b   : > { %v6540_v52 = vmul.f32 -1.442695, %v9266_v59  ;;  %v1430_v31 = vadd.f32 %v1429_v8, %v8329_v5  ;;  %v6053_v0 = vsel %vm6052_vm4, %v6942_v61, %v6049_v16  ;;  %vm5900_vm6 = vweird.f32 %v9213_v33 }
 0x29c   : > { %6955 = vrcp.f32 %v9268_v28  ;;  %v1687_v1 = vor.u32 1.1754944e-38, %v1686_v12  ;;  %v6058_v2 = vsel %vm9235_vm11, %v6057_v9, %v6053_v0  ;;  %v5899_v17 = vadd.f32 %v6948_v22, %v5898_v39  ;;  %vm5902_vm9 = vmor %vm5900_vm6, %vm5901_vm5 }
 0x29d   : > { %v1683_v38 = vsel %vm1682_vm7, %v8663_v27, %v1679_v49  ;;  %vm1685_vm8 = vcmp.eq.f32.partialorder %v1684_v40, 8.507059e+37  ;;  %6175 = vst.msk [vmem:[%s8415_s18 + $0xc8] sm:$0xff] %vm470_vm0, %v6058_v2  ;;  %v5907_v16 = vor.u32 1.1754944e-38, %v5906_v34  ;;  %v6071_v8 = vand.u32 2147483648, %v9268_v28 }
 0x29e   : > { %v1688_v33 = vsel %vm1685_vm8, %v1687_v1, %v1683_v38  ;;  %v6572_v61 = vmul.f32 -1.442695, %v1430_v31  ;;  %v5903_v6 = vsel %vm5902_vm9, %v6948_v22, %v5899_v17  ;;  %vm5905_vm10 = vcmp.eq.f32.partialorder %v5904_v25, 8.507059e+37 }
 0x29f   : > { %2096 = vrot.lane.b32.xlu1 %v1688_v33, %s7189_s20  ;;  %6957 = vpow2.f32 %v6540_v52  ;;  %v1691_v24 = vmul.f32 %v8699_v63, %v8645_v50  ;;  %v5908_v9 = vsel %vm5905_vm10, %v5907_v16, %v5903_v6  ;;  %v9294_v27 = vadd.f32 1.0, %v6952_v29 }
 0x2a0   : > { %6959 = vpow2.f32 %v6572_v61  ;;  %v1699_v36 = vand.u32 2147483647, %v8645_v50  ;;  %6165 = vst.msk [vmem:[%s8415_s18 + $0x78] sm:$0xff] %vm470_vm0, %v5908_v9  ;;  %vm6065_vm11 = vweird.f32 %v9268_v28  ;;  %v6069_v34 = vand.u32 2147483647, %v9268_v28 }
 0x2a1   : > { %v1692_v22 = vsub.f32 1.0, %v1691_v24  ;;  %v1931_v25 = vmul.f32 %v9232_v30, %v9127_v7  ;;  %v6072_v62 = vor.u32 1.1754944e-38, %v6071_v8  ;;  %vm1695_vm12 = vweird.f32 %v8645_v50 }
 0x2a2   : > { %v6956_v19 = vpop.eup %6955  ;;  %vm1696_vm13 = vweird.f32 %v8699_v63  ;;  %v1701_v29 = vand.u32 2147483648, %v8645_v50  ;;  %vm9308_vm14 = vcmp.eq.f32.partialorder %v1699_v36, 8.507059e+37  ;;  %vm1935_vm15 = vweird.f32 %v9127_v7 }
 0x2a3   : > { %v6061_v12 = vmul.f32 %v6956_v19, %v9268_v28  ;;  %v1693_v40 = vmul.f32 %v8699_v63, %v1692_v22  ;;  %v1932_v49 = vsub.f32 1.0, %v1931_v25  ;;  %vm1936_vm1 = vweird.f32 %v9232_v30  ;;  %vm1697_vm2 = vmor %vm1695_vm12, %vm1696_vm13 }
 0x2a4   : > { %v1939_v39 = vand.u32 2147483647, %v9127_v7  ;;  %v9316_v52 = vadd.f32 %v1343_v26, %v8327_v56  ;;  %v1941_v2 = vand.u32 2147483648, %v9127_v7  ;;  %v1433_v17 = vadd.f32 %v1432_v53, %v8329_v5  ;;  %vm1937_vm4 = vmor %vm1935_vm15, %vm1936_vm1 }
 0x2a5   : > { %v6958_v31 = vpop.eup %6957  ;;  %v6062_v0 = vsub.f32 1.0, %v6061_v12  ;;  %v1694_v1 = vadd.f32 %v8699_v63, %v1693_v40  ;;  %v1702_v16 = vor.u32 1.1754944e-38, %v1701_v29  ;;  %v1933_v8 = vmul.f32 %v9232_v30, %v1932_v49 }
 0x2a6   : > { %v6960_v38 = vpop.eup %6959  ;;  %v6541_v33 = vmul.f32 -1.442695, %v9316_v52  ;;  %v1946_v61 = vmul.f32 %v9253_v46, %v9205_v48  ;;  %vm6066_vm3 = vweird.f32 %v6956_v19  ;;  %v6573_v22 = vmul.f32 -1.442695, %v1433_v17  ;;  %v1434_v17 = vpop.f32.mrf.mxu3 }
 0x2a7   : > { %v6063_v6 = vmul.f32 %v6956_v19, %v6062_v0  ;;  %v9329_v24 = vadd.f32 1.0, %v6960_v38  ;;  %v1698_v9 = vsel %vm1697_vm2, %v8699_v63, %v1694_v1  ;;  %v1934_v50 = vadd.f32 %v9232_v30, %v1933_v8  ;;  %vm6067_vm5 = vmor %vm6065_vm11, %vm6066_vm3 }
 0x2a8   : > { %v1703_v36 = vsel %vm9308_vm14, %v1702_v16, %v1698_v9  ;;  %6961 = vpow2.f32 %v6541_v33  ;;  %v9335_v26 = vadd.f32 1.0, %v6958_v31  ;;  %v1942_v63 = vor.u32 1.1754944e-38, %v1941_v2 }
 0x2a9   : > { %v6064_v25 = vadd.f32 %v6956_v19, %v6063_v6  ;;  %6963 = vrcp.f32 %v9329_v24  ;;  %2098 = vrot.lane.b32.xlu0 %v1703_v36, %s7189_s20  ;;  %v1938_v29 = vsel %vm1937_vm4, %v9232_v30, %v1934_v50  ;;  %vm1940_vm6 = vcmp.eq.f32.partialorder %v1939_v39, 8.507059e+37  ;;  %v1345_v39 = vpop.f32.mrf.mxu2 }
 0x2aa   : > { %6965 = vpow2.f32 %v6573_v22  ;;  %v1947_v53 = vsub.f32 1.0, %v1946_v61  ;;  %vm6070_vm7 = vcmp.eq.f32.partialorder %v6069_v34, 8.507059e+37  ;;  %v1943_v40 = vsel %vm1940_vm6, %v1942_v63, %v1938_v29 }
 0x2ab   : > { %6967 = vrcp.f32 %v9228_v43  ;;  %v6068_v12 = vsel %vm6067_vm5, %v6956_v19, %v6064_v25  ;;  %2130 = vrot.lane.b32.xlu2 %v1943_v40, %s7189_s20  ;;  %vm1951_vm8 = vweird.f32 %v9253_v46  ;;  %v1954_v30 = vand.u32 2147483647, %v9205_v48 }
 0x2ac   : > { %6969 = vrcp.f32 %v9294_v27  ;;  %v6073_v14 = vsel %vm6070_vm7, %v6072_v62, %v6068_v12  ;;  %v1948_v7 = vmul.f32 %v9253_v46, %v1947_v53  ;;  %v1956_v28 = vand.u32 2147483648, %v9205_v48 }
 0x2ad   : > { %6176 = vst.msk [vmem:[%s8415_s18 + $0xd0] sm:$0xff] %vm470_vm0, %v6073_v14  ;;  %6971 = vrcp.f32 %v9335_v26  ;;  %v1706_v34 = vmul.f32 %v8835_v11, %v8752_v44  ;;  %vm6080_vm9 = vweird.f32 %v9329_v24  ;;  %v6084_v62 = vand.u32 2147483647, %v9329_v24 }
 0x2ae   : > { %v6962_v19 = vpop.eup %6961  ;;  %v1949_v49 = vadd.f32 %v9253_v46, %v1948_v7  ;;  %vm1950_vm10 = vweird.f32 %v9205_v48  ;;  %v6086_v0 = vand.u32 2147483648, %v9329_v24  ;;  %v1957_v1 = vor.u32 1.1754944e-38, %v1956_v28 }
 0x2af   : > { %v6964_v31 = vpop.eup %6963  ;;  %vm1952_vm11 = vmor %vm1950_vm10, %vm1951_vm8  ;;  %v1707_v2 = vsub.f32 1.0, %v1706_v34  ;;  %vm1711_vm12 = vweird.f32 %v8835_v11  ;;  %vm1955_vm13 = vcmp.eq.f32.partialorder %v1954_v30, 8.507059e+37  ;;  %v1714_v33 = vand.u32 2147483647, %v8752_v44 }
 0x2b0   : > { %v6966_v38 = vpop.eup %6965  ;;  %v6076_v16 = vmul.f32 %v6964_v31, %v9329_v24  ;;  %v1953_v8 = vsel %vm1952_vm11, %v9253_v46, %v1949_v49  ;;  %v1716_v36 = vand.u32 2147483648, %v8752_v44  ;;  %v9375_v25 = vadd.f32 1.0, %v6962_v19 }
 0x2b1   : > { %v9367_v61 = vpop.eup %6967  ;;  %v9369_v48 = vadd.f32 1.0, %v6966_v38  ;;  %v1958_v6 = vsel %vm1955_vm13, %v1957_v1, %v1953_v8  ;;  %v1708_v9 = vmul.f32 %v8835_v11, %v1707_v2  ;;  %v9379_v46 = vadd.f32 %v1345_v39, %v8327_v56 }
 0x2b2   : > { %v9373_v50 = vpop.eup %6969  ;;  %v6077_v22 = vsub.f32 1.0, %v6076_v16  ;;  %2132 = vrot.lane.b32.xlu1 %v1958_v6, %s7189_s20  ;;  %v1435_v63 = vadd.f32 %v1434_v17, %v8329_v5  ;;  %vm6081_vm14 = vweird.f32 %v6964_v31  ;;  %vm9384_vm15 = vcmp.eq.f32.partialorder %v6084_v62, 8.507059e+37  ;;  %v1348_v17 = vpop.f32.mrf.mxu2 }
 0x2b3   : > { %v9382_v29 = vpop.eup %6971  ;;  %6973 = vrcp.f32 %v9369_v48  ;;  %vm1710_vm1 = vweird.f32 %v8752_v44  ;;  %v1709_v40 = vadd.f32 %v8835_v11, %v1708_v9  ;;  %v6542_v14 = vmul.f32 -1.442695, %v9379_v46  ;;  %vm6082_vm4 = vmor %vm6080_vm9, %vm6081_vm14 }
 0x2b4   : > { %v6078_v12 = vmul.f32 %v6964_v31, %v6077_v22  ;;  %v6574_v7 = vmul.f32 -1.442695, %v1435_v63  ;;  %v6087_v30 = vor.u32 1.1754944e-38, %v6086_v0  ;;  %vm1712_vm2 = vmor %vm1710_vm1, %vm1711_vm12  ;;  %vm1715_vm3 = vcmp.eq.f32.partialorder %v1714_v33, 8.507059e+37 }
 0x2b5   : > { %v1717_v28 = vor.u32 1.1754944e-38, %v1716_v36  ;;  %v1961_v34 = vmul.f32 %v9373_v50, %v9294_v27  ;;  %6975 = vrcp.f32 %v9375_v25  ;;  %v6099_v44 = vand.u32 2147483647, %v9369_v48 }
 0x2b6   : > { %v6079_v19 = vadd.f32 %v6964_v31, %v6078_v12  ;;  %v1713_v62 = vsel %vm1712_vm2, %v8835_v11, %v1709_v40  ;;  %6977 = vpow2.f32 %v6574_v7  ;;  %v1969_v0 = vand.u32 2147483647, %v9294_v27 }
 0x2b7   : > { %v1718_v49 = vsel %vm1715_vm3, %v1717_v28, %v1713_v62  ;;  %v1962_v39 = vsub.f32 1.0, %v1961_v34  ;;  %vm6095_vm5 = vweird.f32 %v9369_v48  ;;  %6979 = vpow2.f32 %v6542_v14 }
 0x2b8   : > { %v6083_v1 = vsel %vm6082_vm4, %v6964_v31, %v6079_v19  ;;  %2100 = vrot.lane.b32.xlu2 %v1718_v49, %s7189_s20  ;;  %v1971_v2 = vand.u32 2147483648, %v9294_v27  ;;  %v1721_v11 = vmul.f32 %v8870_v35, %v8816_v20  ;;  %v6101_v16 = vand.u32 2147483648, %v9369_v48  ;;  %v1437_v31 = vpop.f32.mrf.mxu3 }
 0x2b9   : > { %v6974_v24 = vpop.eup %6973  ;;  %v6088_v38 = vsel %vm9384_vm15, %v6087_v30, %v6083_v1  ;;  %v1963_v8 = vmul.f32 %v9373_v50, %v1962_v39  ;;  %vm1966_vm6 = vweird.f32 %v9373_v50  ;;  %vm1965_vm7 = vweird.f32 %v9294_v27 }
 0x2ba   : > { %6177 = vst.msk [vmem:[%s8415_s18 + $0xd8] sm:$0xff] %vm470_vm0, %v6088_v38  ;;  %v6091_v33 = vmul.f32 %v6974_v24, %v9369_v48  ;;  %vm9417_vm8 = vcmp.eq.f32.partialorder %v1969_v0, 8.507059e+37  ;;  %v1722_v9 = vsub.f32 1.0, %v1721_v11  ;;  %v1972_v22 = vor.u32 1.1754944e-38, %v1971_v2  ;;  %vm1967_vm9 = vmor %vm1965_vm7, %vm1966_vm6 }
 0x2bb   : > { %v1964_v36 = vadd.f32 %v9373_v50, %v1963_v8  ;;  %v1731_v63 = vand.u32 2147483648, %v8816_v20  ;;  %v9424_v53 = vadd.f32 %v1348_v17, %v8327_v56  ;;  %v9426_v12 = vpop.eup %6975  ;;  %v1438_v27 = vadd.f32 %v1437_v31, %v8329_v5 }
 0x2bc   : > { %v6092_v40 = vsub.f32 1.0, %v6091_v33  ;;  %v1723_v14 = vmul.f32 %v8870_v35, %v1722_v9  ;;  %v1736_v7 = vmul.f32 %v8947_v42, %v8898_v58  ;;  %v6978_v30 = vpop.eup %6977  ;;  %vm6096_vm10 = vweird.f32 %v6974_v24 }
 0x2bd   : > { %v1968_v28 = vsel %vm1967_vm9, %v9373_v50, %v1964_v36  ;;  %vm1726_vm11 = vweird.f32 %v8870_v35  ;;  %v1729_v34 = vand.u32 2147483647, %v8816_v20  ;;  %v6980_v19 = vpop.eup %6979  ;;  %v9435_v49 = vadd.f32 1.0, %v6978_v30  ;;  %vm6097_vm14 = vmor %vm6095_vm5, %vm6096_vm10  ;;  %v1350_v36 = vpop.f32.mrf.mxu2 }
 0x2be   : > { %v6093_v62 = vmul.f32 %v6974_v24, %v6092_v40  ;;  %v1973_v39 = vsel %vm9417_vm8, %v1972_v22, %v1968_v28  ;;  %v1724_v0 = vadd.f32 %v8870_v35, %v1723_v14  ;;  %vm1725_vm12 = vweird.f32 %v8816_v20 }
 0x2bf   : > { %2134 = vrot.lane.b32.xlu0 %v1973_v39, %s7189_s20  ;;  %v6543_v1 = vmul.f32 -1.442695, %v9424_v53  ;;  %v6575_v50 = vmul.f32 -1.442695, %v1438_v27  ;;  %v1737_v2 = vsub.f32 1.0, %v1736_v7  ;;  %v6102_v17 = vor.u32 1.1754944e-38, %v6101_v16  ;;  %vm1727_vm13 = vmor %vm1725_vm12, %vm1726_vm11 }
 0x2c0   : > { %v6094_v11 = vadd.f32 %v6974_v24, %v6093_v62  ;;  %6981 = vrcp.f32 %v9435_v49  ;;  %v1732_v38 = vor.u32 1.1754944e-38, %v1731_v63  ;;  %v9449_v8 = vadd.f32 1.0, %v6980_v19  ;;  %v1439_v7 = vpop.f32.mrf.mxu3 }
 0x2c1   : > { %v1728_v20 = vsel %vm1727_vm13, %v8870_v35, %v1724_v0  ;;  %vm1730_vm15 = vcmp.eq.f32.partialorder %v1729_v34, 8.507059e+37  ;;  %v1738_v31 = vmul.f32 %v8947_v42, %v1737_v2  ;;  %vm6100_vm1 = vcmp.eq.f32.partialorder %v6099_v44, 8.507059e+37 }
 0x2c2   : > { %v6098_v33 = vsel %vm6097_vm14, %v6974_v24, %v6094_v11  ;;  %v1733_v16 = vsel %vm1730_vm15, %v1732_v38, %v1728_v20  ;;  %6983 = vpow2.f32 %v6575_v50  ;;  %vm1740_vm2 = vweird.f32 %v8898_v58 }
 0x2c3   : > { %v6103_v6 = vsel %vm6100_vm1, %v6102_v17, %v6098_v33  ;;  %2102 = vrot.lane.b32.xlu1 %v1733_v16, %s7189_s20  ;;  %6985 = vpow2.f32 %v6543_v1  ;;  %v1739_v9 = vadd.f32 %v8947_v42, %v1738_v31  ;;  %vm1741_vm3 = vweird.f32 %v8947_v42 }
 0x2c4   : > { %6178 = vst.msk [vmem:[%s8415_s18 + $0xe0] sm:$0xff] %vm470_vm0, %v6103_v6  ;;  %v1744_v35 = vand.u32 2147483647, %v8898_v58  ;;  %v1746_v48 = vand.u32 2147483648, %v8898_v58  ;;  %v1976_v44 = vmul.f32 %v9382_v29, %v9335_v26  ;;  %6987 = vrcp.f32 %v9449_v8  ;;  %vm1742_vm5 = vmor %vm1740_vm2, %vm1741_vm3 }
 0x2c5   : > { %vm6110_vm4 = vweird.f32 %v9435_v49  ;;  %v6114_v24 = vand.u32 2147483647, %v9435_v49  ;;  %v6116_v63 = vand.u32 2147483648, %v9435_v49  ;;  %v1743_v40 = vsel %vm1742_vm5, %v8947_v42, %v1739_v9 }
 0x2c6   : > { %v6982_v22 = vpop.eup %6981  ;;  %v1747_v14 = vor.u32 1.1754944e-38, %v1746_v48  ;;  %v1977_v27 = vsub.f32 1.0, %v1976_v44  ;;  %vm1745_vm6 = vcmp.eq.f32.partialorder %v1744_v35, 8.507059e+37  ;;  %vm1981_vm7 = vweird.f32 %v9382_v29 }
 0x2c7   : > { %v6106_v58 = vmul.f32 %v6982_v22, %v9435_v49  ;;  %v1986_v30 = vand.u32 2147483648, %v9335_v26  ;;  %v1984_v62 = vand.u32 2147483647, %v9335_v26  ;;  %v9474_v39 = vadd.f32 %v1350_v36, %v8327_v56 }
 0x2c8   : > { %v6984_v28 = vpop.eup %6983  ;;  %v1748_v34 = vsel %vm1745_vm6, %v1747_v14, %v1743_v40  ;;  %v1978_v19 = vmul.f32 %v9382_v29, %v1977_v27  ;;  %v1440_v50 = vadd.f32 %v1439_v7, %v8329_v5  ;;  %v1751_v2 = vmul.f32 %v9071_v60, %v9011_v47 }
 0x2c9   : > { %v6986_v42 = vpop.eup %6985  ;;  %v6107_v0 = vsub.f32 1.0, %v6106_v58  ;;  %v9476_v1 = vadd.f32 1.0, %v6984_v28  ;;  %2104 = vrot.lane.b32.xlu0 %v1748_v34, %s7189_s20  ;;  %vm9482_vm8 = vcmp.eq.f32.partialorder %v6114_v24, 8.507059e+37  ;;  %vm1980_vm9 = vweird.f32 %v9335_v26 }
 0x2ca   : > { %v1979_v17 = vadd.f32 %v9382_v29, %v1978_v19  ;;  %v6544_v56 = vmul.f32 -1.442695, %v9474_v39  ;;  %v9489_v38 = vpop.eup %6987  ;;  %vm6111_vm10 = vweird.f32 %v6982_v22  ;;  %vm1982_vm11 = vmor %vm1980_vm9, %vm1981_vm7  ;;  %v1987_v5 = vor.u32 1.1754944e-38, %v1986_v30 }
 0x2cb   : > { %v6108_v20 = vmul.f32 %v6982_v22, %v6107_v0  ;;  %6989 = vrcp.f32 %v9476_v1  ;;  %v9494_v31 = vadd.f32 1.0, %v6986_v42  ;;  %vm1985_vm12 = vcmp.eq.f32.partialorder %v1984_v62, 8.507059e+37  ;;  %vm6112_vm13 = vmor %vm6110_vm4, %vm6111_vm10 }
 0x2cc   : > { %v1983_v33 = vsel %vm1982_vm11, %v9382_v29, %v1979_v17  ;;  %v6576_v16 = vmul.f32 -1.442695, %v1440_v50  ;;  %6991 = vpow2.f32 %v6544_v56  ;;  %v1752_v9 = vsub.f32 1.0, %v1751_v2 }
 0x2cd   : > { %v6109_v6 = vadd.f32 %v6982_v22, %v6108_v20  ;;  %v1988_v26 = vsel %vm1985_vm12, %v1987_v5, %v1983_v33  ;;  %v6117_v35 = vor.u32 1.1754944e-38, %v6116_v63  ;;  %vm1756_vm14 = vweird.f32 %v9071_v60  ;;  %v2083_v20 = vpop.permute.xlu1 %2082 }
 0x2ce   : > { %2136 = vrot.lane.b32.xlu2 %v1988_v26, %s7189_s20  ;;  %6993 = vpow2.f32 %v6576_v16  ;;  %v1759_v48 = vand.u32 2147483647, %v9011_v47  ;;  %v1753_v29 = vmul.f32 %v9071_v60, %v1752_v9  ;;  %v1761_v24 = vand.u32 2147483648, %v9011_v47 }
 0x2cf   : > { %v6113_v44 = vsel %vm6112_vm13, %v6982_v22, %v6109_v6  ;;  %v1991_v36 = vmul.f32 %v9426_v12, %v9375_v25  ;;  %6995 = vrcp.f32 %v9494_v31  ;;  %vm6125_vm15 = vweird.f32 %v9476_v1 }
 0x2d0   : > { %v6118_v49 = vsel %vm9482_vm8, %v6117_v35, %v6113_v44  ;;  %vm1755_vm1 = vweird.f32 %v9011_v47  ;;  %v6129_v22 = vand.u32 2147483647, %v9476_v1  ;;  %v6131_v40 = vand.u32 2147483648, %v9476_v1 }
 0x2d1   : > { %v6990_v63 = vpop.eup %6989  ;;  %6179 = vst.msk [vmem:[%s8415_s18 + $0xe8] sm:$0xff] %vm470_vm0, %v6118_v49  ;;  %v1754_v14 = vadd.f32 %v9071_v60, %v1753_v29  ;;  %v1992_v27 = vsub.f32 1.0, %v1991_v36  ;;  %vm9519_vm2 = vmor %vm1755_vm1, %vm1756_vm14  ;;  %vm1760_vm3 = vcmp.eq.f32.partialorder %v1759_v48, 8.507059e+37  ;;  %v1762_v47 = vor.u32 1.1754944e-38, %v1761_v24 }
 0x2d2   : > { %v6121_v7 = vmul.f32 %v6990_v63, %v9476_v1  ;;  %v2006_v30 = vmul.f32 %v9489_v38, %v9449_v8  ;;  %v6992_v28 = vpop.eup %6991  ;;  %v1999_v62 = vand.u32 2147483647, %v9375_v25  ;;  %v2001_v42 = vand.u32 2147483648, %v9375_v25 }
 0x2d3   : > { %v1758_v34 = vsel %vm9519_vm2, %v9071_v60, %v1754_v14  ;;  %v1993_v19 = vmul.f32 %v9426_v12, %v1992_v27  ;;  %vm1995_vm4 = vweird.f32 %v9375_v25  ;;  %vm1996_vm5 = vweird.f32 %v9426_v12 }
 0x2d4   : > { %v6994_v0 = vpop.eup %6993  ;;  %v6122_v50 = vsub.f32 1.0, %v6121_v7  ;;  %v2007_v2 = vsub.f32 1.0, %v2006_v30  ;;  %vm6126_vm6 = vweird.f32 %v6990_v63  ;;  %v1763_v17 = vsel %vm1760_vm3, %v1762_v47, %v1758_v34  ;;  %vm1997_vm8 = vmor %vm1995_vm4, %vm1996_vm5 }
 0x2d5   : > { %v9533_v11 = vadd.f32 1.0, %v6994_v0  ;;  %v1994_v56 = vadd.f32 %v9426_v12, %v1993_v19  ;;  %v9536_v60 = vpop.eup %6995  ;;  %v9538_v33 = vadd.f32 1.0, %v6992_v28  ;;  %vm2011_vm7 = vweird.f32 %v9489_v38  ;;  %vm6127_vm11 = vmor %vm6125_vm15, %vm6126_vm6 }
 0x2d6   : > { %v6123_v5 = vmul.f32 %v6990_v63, %v6122_v50  ;;  %2106 = vrot.lane.b32.xlu2 %v1763_v17, %s7189_s20  ;;  %v2008_v16 = vmul.f32 %v9489_v38, %v2007_v2  ;;  %vm2000_vm9 = vcmp.eq.f32.partialorder %v1999_v62, 8.507059e+37  ;;  %v2002_v6 = vor.u32 1.1754944e-38, %v2001_v42 }
 0x2d7   : > { %6997 = vrcp.f32 %v9533_v11  ;;  %vm2010_vm10 = vweird.f32 %v9449_v8  ;;  %v1998_v9 = vsel %vm1997_vm8, %v9426_v12, %v1994_v56  ;;  %v2014_v48 = vand.u32 2147483647, %v9449_v8 }
 0x2d8   : > { %v6124_v26 = vadd.f32 %v6990_v63, %v6123_v5  ;;  %v2009_v35 = vadd.f32 %v9489_v38, %v2008_v16  ;;  %v9554_v44 = vmul.f32 %v2083_v20, %v8341_v4  ;;  %v6132_v25 = vor.u32 1.1754944e-38, %v6131_v40  ;;  %vm9556_vm12 = vmor %vm2010_vm10, %vm2011_vm7 }
 0x2d9   : > { %v2003_v29 = vsel %vm2000_vm9, %v2002_v6, %v1998_v9  ;;  %v2016_v36 = vand.u32 2147483648, %v9449_v8  ;;  %vm6130_vm13 = vcmp.eq.f32.partialorder %v6129_v22, 8.507059e+37  ;;  %v1766_v4 = vmul.f32 %v9089_v54, %v9050_v37 }
 0x2da   : > { %v6128_v1 = vsel %vm6127_vm11, %v6990_v63, %v6124_v26  ;;  %2138 = vrot.lane.b32.xlu1 %v2003_v29, %s7189_s20  ;;  %v2013_v12 = vsel %vm9556_vm12, %v9489_v38, %v2009_v35  ;;  %6999 = vrcp.f32 %v9538_v33  ;;  %v1774_v14 = vand.u32 2147483647, %v9050_v37 }
 0x2db   : > { %v6133_v49 = vsel %vm6130_vm13, %v6132_v25, %v6128_v1  ;;  %v2017_v40 = vor.u32 1.1754944e-38, %v2016_v36  ;;  %vm6140_vm14 = vweird.f32 %v9533_v11  ;;  %v6144_v8 = vand.u32 2147483647, %v9533_v11  ;;  %v2115_v36 = vpop.permute.xlu1 %2114 }
 0x2dc   : > { %6180 = vst.msk [vmem:[%s8415_s18 + $0xf0] sm:$0xff] %vm470_vm0, %v6133_v49  ;;  %vm2015_vm15 = vcmp.eq.f32.partialorder %v2014_v48, 8.507059e+37  ;;  %v1767_v63 = vsub.f32 1.0, %v1766_v4  ;;  %v1781_v38 = vmul.f32 %v9243_v18, %v9135_v15  ;;  %v6146_v27 = vand.u32 2147483648, %v9533_v11 }
 0x2dd   : > { %v6998_v22 = vpop.eup %6997  ;;  %v2018_v7 = vsel %vm2015_vm15, %v2017_v40, %v2013_v12  ;;  %vm1770_vm1 = vweird.f32 %v9050_v37  ;;  %v1776_v58 = vand.u32 2147483648, %v9050_v37  ;;  %vm1771_vm2 = vweird.f32 %v9089_v54 }
 0x2de   : > { %v6136_v47 = vmul.f32 %v6998_v22, %v9533_v11  ;;  %3717 = vrot.lane.b32.xlu2 %v9554_v44, %s7190_s7  ;;  %2140 = vrot.lane.b32.xlu0 %v2018_v7, %s7189_s20  ;;  %v1768_v30 = vmul.f32 %v9089_v54, %v1767_v63  ;;  %vm9584_vm3 = vcmp.eq.f32.partialorder %v1774_v14, 8.507059e+37  ;;  %v1782_v34 = vsub.f32 1.0, %v1781_v38  ;;  %vm1772_vm7 = vmor %vm1770_vm1, %vm1771_vm2 }
 0x2df   : > { %vm1785_vm4 = vweird.f32 %v9135_v15  ;;  %vm1786_vm5 = vweird.f32 %v9243_v18  ;;  %v2021_v19 = vmul.f32 %v9536_v60, %v9494_v31  ;;  %vm6141_vm6 = vweird.f32 %v6998_v22 }
 0x2e0   : > { %v6137_v62 = vsub.f32 1.0, %v6136_v47  ;;  %v1769_v42 = vadd.f32 %v9089_v54, %v1768_v30  ;;  %v1791_v0 = vand.u32 2147483648, %v9135_v15  ;;  %v9594_v50 = vpop.eup %6999  ;;  %v1777_v2 = vor.u32 1.1754944e-38, %v1776_v58  ;;  %vm1787_vm9 = vmor %vm1785_vm4, %vm1786_vm5 }
 0x2e1   : > { %v1783_v17 = vmul.f32 %v9243_v18, %v1782_v34  ;;  %v1789_v56 = vand.u32 2147483647, %v9135_v15  ;;  %v2022_v20 = vsub.f32 1.0, %v2021_v19  ;;  %vm2026_vm8 = vweird.f32 %v9536_v60  ;;  %vm6142_vm11 = vmor %vm6140_vm14, %vm6141_vm6 }
 0x2e2   : > { %v6138_v5 = vmul.f32 %v6998_v22, %v6137_v62  ;;  %v1773_v16 = vsel %vm1772_vm7, %v9089_v54, %v1769_v42  ;;  %v2031_v6 = vand.u32 2147483648, %v9494_v31  ;;  %v2029_v35 = vand.u32 2147483647, %v9494_v31 }
 0x2e3   : > { %v1778_v26 = vsel %vm9584_vm3, %v1777_v2, %v1773_v16  ;;  %v1784_v9 = vadd.f32 %v9243_v18, %v1783_v17  ;;  %v2023_v37 = vmul.f32 %v9536_v60, %v2022_v20  ;;  %v6147_v25 = vor.u32 1.1754944e-38, %v6146_v27 }
 0x2e4   : > { %v6139_v48 = vadd.f32 %v6998_v22, %v6138_v5  ;;  %2108 = vrot.lane.b32.xlu1 %v1778_v26, %s7189_s20  ;;  %v1792_v54 = vor.u32 1.1754944e-38, %v1791_v0  ;;  %vm2025_vm10 = vweird.f32 %v9494_v31  ;;  %vm1790_vm12 = vcmp.eq.f32.partialorder %v1789_v56, 8.507059e+37  ;;  %v2117_v0 = vpop.permute.xlu0 %2116 }
 0x2e5   : > { %v1788_v29 = vsel %vm1787_vm9, %v9243_v18, %v1784_v9  ;;  %v2024_v24 = vadd.f32 %v9536_v60, %v2023_v37  ;;  %v1796_v1 = vmul.f32 %v9367_v61, %v9228_v43  ;;  %vm6145_vm13 = vcmp.eq.f32.partialorder %v6144_v8, 8.507059e+37  ;;  %vm2027_vm15 = vmor %vm2025_vm10, %vm2026_vm8 }
 0x2e6   : > { %v6143_v12 = vsel %vm6142_vm11, %v6998_v22, %v6139_v48  ;;  %v1793_v15 = vsel %vm1790_vm12, %v1792_v54, %v1788_v29  ;;  %v2032_v31 = vor.u32 1.1754944e-38, %v2031_v6  ;;  %vm2030_vm14 = vcmp.eq.f32.partialorder %v2029_v35, 8.507059e+37  ;;  %v2085_v22 = vpop.permute.xlu2 %2084  ;;  %v11911_v35 = vld [vmem:[#allocation21_spill] sm:$0xff] }
 0x2e7   : > { %v6148_v4 = vsel %vm6145_vm13, %v6147_v25, %v6143_v12  ;;  %2110 = vrot.lane.b32.xlu0 %v1793_v15, %s7189_s20  ;;  %v2028_v11 = vsel %vm2027_vm15, %v9536_v60, %v2024_v24  ;;  %v1797_v18 = vsub.f32 1.0, %v1796_v1  ;;  %v2194_v40 = vmul.f32 %v2115_v36, %v8481_v55  ;;  %v11912_v48 = vld [vmem:[#allocation25_spill] sm:$0xff]  ;;  %v11914_v12 = vld [vmem:[#allocation20_spill] sm:$0xff] }
 0x2e8   : > { %6181 = vst.msk [vmem:[%s8415_s18 + $0xf8] sm:$0xff] %vm470_vm0, %v6148_v4  ;;  %v2033_v49 = vsel %vm2030_vm14, %v2032_v31, %v2028_v11  ;;  %vm1801_vm1 = vweird.f32 %v9367_v61  ;;  %v2036_v8 = vmul.f32 %v9594_v50, %v9538_v33  ;;  %v1806_v63 = vand.u32 2147483648, %v9228_v43  ;;  %v11913_v54 = vld [vmem:[#allocation29_spill] sm:$0xff]  ;;  %s7109_s18 = scalar_lea.hbm %s7108_s29, 256 }
 0x2e9   : > { %2142 = vrot.lane.b32.xlu2 %v2033_v49, %s7189_s20  ;;  %v1798_v14 = vmul.f32 %v9367_v61, %v1797_v18  ;;  %vm1800_vm2 = vweird.f32 %v9228_v43  ;;  %v1804_v38 = vand.u32 2147483647, %v9228_v43  ;;  %v2179_v30 = vmul.f32 %v2085_v22, %v8354_v10  ;;  %v11915_v18 = vld [vmem:[#allocation22_spill] sm:$0xff]  ;;  %p7110_p4 = scmp.ne.s32.totalorder %s7108_s29, %s7109_s18  ;;  %p7115_p13 = scmp.lt.s32.totalorder %s7113_s12, %s7109_s18 }
 0x2ea   : > { %vm1802_vm0 = vmor %vm1800_vm2, %vm1801_vm1  ;;  %v2037_v55 = vsub.f32 1.0, %v2036_v8  ;;  %v1807_v7 = vor.u32 1.1754944e-38, %v1806_v63  ;;  %vm2041_vm4 = vweird.f32 %v9594_v50  ;;  %v2046_v34 = vand.u32 2147483648, %v9538_v33  ;;  %v11916_v8 = vld [vmem:[#allocation27_spill] sm:$0xff] }
 0x2eb   : > { %v1799_v60 = vadd.f32 %v9367_v61, %v1798_v14  ;;  %vm1805_vm3 = vcmp.eq.f32.partialorder %v1804_v38, 8.507059e+37  ;;  %vm2040_vm5 = vweird.f32 %v9538_v33  ;;  %vm2725_vm8 = vcmask 1047556   ;;  %p7111_p8 = pnand %p7110_p4, %p7308_p5  ;;  %p7116_p0 = por %p7115_p13, %p7114_p12 }
 0x2ec   : > { %3749 = vrot.lane.b32.xlu1 %v2194_v40, %s7190_s7  ;;  %v2038_v47 = vmul.f32 %v9594_v50, %v2037_v55  ;;  %vm2042_vm6 = vmor %vm2040_vm5, %vm2041_vm4  ;;  %v2047_v10 = vor.u32 1.1754944e-38, %v2046_v34  ;;  %v2087_v2 = vpop.permute.xlu0 %2086  ;;  %vm5349_vm9 = vcmask 125952  }
 0x2ed   : > { %v1803_v27 = vsel %vm1802_vm0, %v9367_v61, %v1799_v60  ;;  %v2044_v61 = vand.u32 2147483647, %v9538_v33  ;;  %v2180_v17 = vmul.f32 %v2087_v2, %v8373_v13  ;;  %p7112_p10 = pneg %p7111_p8 }
 0x2ee   : > { %v1808_v58 = vsel %vm1805_vm3, %v1807_v7, %v1803_v27  ;;  %v2119_v28 = vpop.permute.xlu2 %2118  ;;  %v2039_v43 = vadd.f32 %v9594_v50, %v2038_v47 }
 0x2ef   : > { %v2196_v19 = vmul.f32 %v2119_v28, %v8561_v57  ;;  %vm2045_vm7 = vcmp.eq.f32.partialorder %v2044_v61, 8.507059e+37  ;;  %p7117_p3 = pnand %p7116_p0, %p7112_p10 }
 0x2f0   : > { %v2043_v62 = vsel %vm2042_vm6, %v9594_v50, %v2039_v43  ;;  %v2195_v50 = vmul.f32 %v2117_v0, %v8509_v32 }
 0x2f1   : > { %2112 = vrot.lane.b32.xlu2 %v1808_v58, %s7189_s20  ;;  %v2048_v42 = vsel %vm2045_vm7, %v2047_v10, %v2043_v62 }
 0x2f4   : > { %3719 = vrot.lane.b32.xlu1 %v2179_v30, %s7190_s7  ;;  %v2123_v56 = vpop.permute.xlu0 %2122 }
 0x2f5   : > { %v2198_v16 = vmul.f32 %v2123_v56, %v8710_v51 }
 0x2f6   : > { %v2089_v33 = vpop.permute.xlu2 %2088 }
 0x2f7   : > { %v2181_v57 = vmul.f32 %v2089_v33, %v8400_v41 }
 0x2f9   : > { %3753 = vrot.lane.b32.xlu2 %v2196_v19, %s7190_s7 }
 0x2fc   : > { %2144 = vrot.lane.b32.xlu1 %v2048_v42, %s7189_s20  ;;  %v2093_v13 = vpop.permute.xlu0 %2092 }
 0x2fd   : > { %v2183_v41 = vmul.f32 %v2093_v13, %v8464_v3 }
 0x2fe   : > { %v2125_v6 = vpop.permute.xlu2 %2124 }
 0x306   : > { %v2095_v26 = vpop.permute.xlu2 %2094 }
 0x309   : > { %2212 = vxpose.xlu0.b32.start [1/2] (short) (narrow) %v9554_v44, 32  ;;  %v2121_v44 = vpop.permute.xlu1 %2120 }
 0x30a   : > { %v2197_v20 = vmul.f32 %v2121_v44, %v8633_v21  ;;  %v2199_v21 = vmul.f32 %v2125_v6, %v8781_v23 }
 0x30c   : > { %v2129_v24 = vpop.permute.xlu0 %2128 }
 0x30d   : > { %v2201_v63 = vmul.f32 %v2129_v24, %v11916_v8  ;;  %v11924_v24 = vld [vmem:[#allocation23_spill] sm:$0xff] }
 0x30e   : > { %v2131_v25 = vpop.permute.xlu2 %2130 }
 0x30f   : > { %v2202_v29 = vmul.f32 %v2131_v25, %v11913_v54 }
 0x311   : > { %2213 = vxpose.xlu0.b32.end [2/2] (short) (narrow) %v2179_v30, 32  ;;  %v2091_v5 = vpop.permute.xlu1 %2090 }
 0x312   : > { %v2182_v32 = vmul.f32 %v2091_v5, %v8431_v45  ;;  %v11910_v45 = vld [vmem:[#allocation19_spill] sm:$0xff] }
 0x313   : > { %v2184_v9 = vmul.f32 %v2095_v26, %v11910_v45  ;;  %v11922_v26 = vld [vmem:[#allocation31_spill] sm:$0xff] }
 0x316   : > { %v2101_v4 = vpop.permute.xlu2 %2100 }
 0x317   : > { %v2187_v49 = vmul.f32 %v2101_v4, %v11915_v18 }
 0x319   : > { %v2127_v3 = vpop.permute.xlu1 %2126 }
 0x31a   : > { %v2200_v23 = vmul.f32 %v2127_v3, %v11912_v48 }
 0x31b   : > { %v2099_v36 = vpop.permute.xlu0 %2098 }
 0x31c   : > { %v2186_v15 = vmul.f32 %v2099_v36, %v11914_v12 }
 0x31f   : > { %2244 = vxpose.xlu2.b32.start [1/2] (short) (narrow) %v2180_v17, 32 }
 0x321   : > { %v2097_v37 = vpop.permute.xlu1 %2096 }
 0x322   : > { %v2185_v51 = vmul.f32 %v2097_v37, %v11911_v35  ;;  %v7191_v37 = vmov 1983009808  }
 0x323   : > { %v2730_v35 = vunpack.c.l.s4 %v7191_v37 }
 0x325   : > { %v9750_v54 = vunpack.c.0.s8 %v2730_v35 }
 0x327   : > { %2245 = vxpose.xlu2.b32.end [2/2] (short) (narrow) %v2181_v57, 32 }
 0x328   : > { %v9696_v58 = vpop.permute.xlu2 %2136 }
 0x329   : > { %v2133_v1 = vpop.permute.xlu1 %2132 }
 0x32a   : > { %v2203_v45 = vmul.f32 %v2133_v1, %v11922_v26 }
 0x330   : > { %v9700_v28 = vpop.permute.xlu2 %2106 }
 0x331   : > { %2468 = vxpose.xlu1.b32.start [1/2] (short) (narrow) %v2194_v40, 32  ;;  %v9678_v31 = vpop.permute.xlu0 %2134 }
 0x335   : > { %v2103_v11 = vpop.permute.xlu1 %2102 }
 0x336   : > { %v9753_v36 = vmul.f32 %v2103_v11, %v11924_v24 }
 0x338   : > { %v9706_v61 = vpop.permute.xlu2 %3717 }
 0x339   : > { %2469 = vxpose.xlu1.b32.end [2/2] (short) (narrow) %v2195_v50, 32 }
 0x33b   : > { %v9681_v40 = vpop.permute.xlu0 %2104 }
 0x343   : > { %v9712_v10 = vpop.permute.xlu2 %2142 }
 0x34b   : > { %v9718_v2 = vpop.permute.xlu2 %2112 }
 0x34c   : > { %v9683_v14 = vpop.permute.xlu1 %2138 }
 0x350   : > { %v9686_v60 = vpop.permute.xlu0 %2140 }
 0x356   : > { %v9688_v38 = vpop.permute.xlu1 %2108 }
 0x359   : > { %v9690_v22 = vpop.permute.xlu0 %2110 }
 0x35e   : > { %v9692_v55 = vpop.permute.xlu1 %3749 }
 0x35f   : > { %11917 = vst [vmem:[#allocation19_spill] sm:$0xff] %v9692_v55  ;;  %v11928_v55 = vld [vmem:[#allocation33_spill] sm:$0xff] }
 0x366   : > { %v9694_v7 = vpop.permute.xlu1 %3719 }
 0x36e   : > { %v9698_v30 = vpop.permute.xlu1 %2144 }
 0x38f   : > { %3751 = vrot.lane.b32.xlu0 %v2195_v50, %s7190_s7 }
 0x397   : > { %3721 = vrot.lane.b32.xlu0 %v2180_v17, %s7190_s7 }
 0x3a0   : > { %3723 = vrot.lane.b32.xlu2 %v2181_v57, %s7190_s7  ;;  %v9724_v57 = vpop.permute.xlu2 %3753 }
 0x3a1   : > { %11919 = vst [vmem:[#allocation25_spill] sm:$0xff] %v9724_v57 }
 0x3a3   : > { %3755 = vrot.lane.b32.xlu1 %v2197_v20, %s7190_s7 }
 0x3a8   : > { %3727 = vrot.lane.b32.xlu2 %v2183_v41, %s7190_s7 }
 0x3ab   : > { %3725 = vrot.lane.b32.xlu1 %v2182_v32, %s7190_s7 }
 0x3ad   : > { %v2228_v27 = vpop.trf.xlu0 }
 0x3b5   : > { %v2229_v47 = vpop.trf.xlu0 }
 0x3b6   : > { %v2951_v4 = vrot.slane %v2229_v47, 4 }
 0x3b8   : > { %v2260_v44 = vpop.trf.xlu2 }
 0x3b9   : > { %2500 = vxpose.xlu0.b32.start [1/2] (short) (narrow) %v2196_v19, 32 }
 0x3bd   : > { %v9702_v43 = vpop.trf.xlu0 }
 0x3c0   : > { %v2261_v5 = vpop.trf.xlu2 }
 0x3c1   : > { %2501 = vxpose.xlu0.b32.end [2/2] (short) (narrow) %v2197_v20, 32 }
 0x3c5   : > { %v9708_v19 = vpop.trf.xlu0 }
 0x3ce   : > { %2532 = vxpose.xlu2.b32.start [1/2] (short) (narrow) %v2198_v16, 32 }
 0x3d5   : > { %v9704_v34 = vpop.trf.xlu1 }
 0x3d6   : > { %2533 = vxpose.xlu2.b32.end [2/2] (short) (narrow) %v2199_v21, 32 }
 0x3dd   : > { %v9710_v62 = vpop.trf.xlu1 }
 0x3e0   : > { %2276 = vxpose.xlu1.b32.start [1/2] (short) (narrow) %v2182_v32, 32 }
 0x3e5   : > { %v9716_v0 = vpop.trf.xlu1 }
 0x3e8   : > { %2277 = vxpose.xlu1.b32.end [2/2] (short) (narrow) %v2183_v41, 32 }
 0x3ed   : > { %v9722_v33 = vpop.trf.xlu1 }
 0x401   : > { %v9714_v42 = vpop.permute.xlu0 %3751 }
 0x402   : > { %11918 = vst [vmem:[#allocation21_spill] sm:$0xff] %v9714_v42 }
 0x409   : > { %v9720_v17 = vpop.permute.xlu0 %3721 }
 0x415   : > { %v9728_v56 = vpop.permute.xlu1 %3755 }
 0x416   : > { %11920 = vst [vmem:[#allocation29_spill] sm:$0xff] %v9728_v56 }
 0x41d   : > { %v9733_v13 = vpop.permute.xlu1 %3725 }
 0x41e   : > { %11921 = vst [vmem:[#allocation20_spill] sm:$0xff] %v9733_v13 }
 0x43f   : > { %3757 = vrot.lane.b32.xlu0 %v2198_v16, %s7190_s7  ;;  %v9737_v16 = vpop.trf.xlu2 }
 0x447   : > { %v9742_v3 = vpop.trf.xlu2 }
 0x44f   : > { %3759 = vrot.lane.b32.xlu2 %v2199_v21, %s7190_s7  ;;  %v9756_v12 = vpop.permute.xlu2 %3723 }
 0x450   : > { %11925 = vst [vmem:[#allocation27_spill] sm:$0xff] %v9756_v12 }
 0x452   : > { %3729 = vrot.lane.b32.xlu1 %v2184_v9, %s7190_s7 }
 0x457   : > { %3731 = vrot.lane.b32.xlu2 %v2185_v51, %s7190_s7 }
 0x45a   : > { %3761 = vrot.lane.b32.xlu1 %v2200_v23, %s7190_s7 }
 0x45d   : > { %v9726_v50 = vpop.trf.xlu0 }
 0x45f   : > { %3765 = vrot.lane.b32.xlu2 %v2202_v29, %s7190_s7 }
 0x461   : > { %2308 = vxpose.xlu0.b32.start [1/2] (short) (narrow) %v2184_v9, 32  ;;  %v2727_v9 = vrot.slane %v2228_v27, 4 }
 0x465   : > { %v9731_v20 = vpop.trf.xlu0 }
 0x469   : > { %2309 = vxpose.xlu0.b32.end [2/2] (short) (narrow) %v2185_v51, 32 }
 0x46d   : > { %v9735_v41 = vpop.trf.xlu0 }
 0x475   : > { %v9740_v6 = vpop.trf.xlu0 }
 0x484   : > { %v2292_v32 = vpop.trf.xlu1 }
 0x485   : > { %2340 = vxpose.xlu2.b32.start [1/2] (short) (narrow) %v2186_v15, 32  ;;  %v2724_v51 = vrot.slane %v2292_v32, 4 }
 0x487   : > { %v2726_v1 = vsel %vm2725_vm8, %v2724_v51, %v2228_v27 }
 0x488   : > { %v2732_v18 = vperm.slane %v2726_v1, %v9750_v54  ;;  %v2963_v1 = vrot.slane %v2261_v5, 4 }
 0x48a   : > { %v2775_v26 = vrot.slane %v2732_v18, 4 }
 0x48c   : > { %v2293_v21 = vpop.trf.xlu1 }
 0x48d   : > { %2341 = vxpose.xlu2.b32.end [2/2] (short) (narrow) %v2187_v49, 32  ;;  %v2952_v27 = vsel %vm2725_vm8, %v2293_v21, %v2951_v4 }
 0x48e   : > { %v2960_v56 = vperm.slane %v2952_v27, %v9750_v54 }
 0x48f   : > { %2564 = vxpose.xlu1.b32.start [1/2] (short) (narrow) %v2200_v23, 32  ;;  %v2728_v23 = vsel %vm2725_vm8, %v2292_v32, %v2727_v9 }
 0x494   : > { %v2294_v25 = vpop.trf.xlu1 }
 0x497   : > { %2565 = vxpose.xlu1.b32.end [2/2] (short) (narrow) %v2201_v63, 32 }
 0x4b1   : > { %v9747_v48 = vpop.permute.xlu0 %3757 }
 0x4b2   : > { %11923 = vst [vmem:[#allocation22_spill] sm:$0xff] %v9747_v48 }
 0x4e7   : > { %3763 = vrot.lane.b32.xlu0 %v2201_v63, %s7190_s7 }
 0x501   : > { %3733 = vrot.lane.b32.xlu1 %v2186_v15, %s7190_s7  ;;  %v2739_v15 = vrot.slane %v2260_v44, 4 }
 0x505   : > { %v2324_v63 = vpop.trf.xlu0 }
 0x506   : > { %3735 = vrot.lane.b32.xlu2 %v2187_v49, %s7190_s7  ;;  %v2949_v49 = vrot.slane %v2293_v21, 4  ;;  %v2737_v32 = vrot.slane %v2324_v63, 4  ;;  %v2740_v11 = vsel %vm2725_vm8, %v2324_v63, %v2739_v15  ;;  %v9772_v15 = vpop.permute.xlu2 %3727 }
 0x507   : > { %v2748_v9 = vperm.slane %v2740_v11, %v9750_v54  ;;  %11926 = vst [vmem:[#allocation31_spill] sm:$0xff] %v9772_v15  ;;  %v3173_v11 = vrot.slane %v2294_v25, 4 }
 0x508   : > { %v2950_v37 = vsel %vm2725_vm8, %v2949_v49, %v2229_v47  ;;  %v2738_v35 = vsel %vm2725_vm8, %v2737_v32, %v2260_v44  ;;  %v3175_v44 = vrot.slane %v9702_v43, 4  ;;  %v3011_v32 = vrot.slane %v2960_v56, 4 }
 0x509   : > { %2596 = vxpose.xlu0.b32.start [1/2] (short) (narrow) %v2202_v29, 32  ;;  %3767 = vrot.lane.b32.xlu1 %v2203_v45, %s7190_s7  ;;  %v2736_v29 = vperm.slane %v2728_v23, %v9750_v54  ;;  %v2744_v51 = vperm.slane %v2738_v35, %v9750_v54  ;;  %v2785_v23 = vrot.slane %v2748_v9, 4  ;;  %v2956_v21 = vperm.slane %v2950_v37, %v9750_v54 }
 0x50a   : > { %v3176_v37 = vsel %vm2725_vm8, %v2294_v25, %v3175_v44 }
 0x50b   : > { %v2787_v8 = vrot.slane %v2736_v29, 4  ;;  %v2773_v4 = vrot.slane %v2744_v51, 4  ;;  %v9776_v63 = vsel %vm2725_vm8, %v2744_v51, %v2775_v26  ;;  %v9779_v47 = vsel %vm2725_vm8, %v2785_v23, %v2736_v29 }
 0x50c   : > { %v3174_v23 = vsel %vm2725_vm8, %v3173_v11, %v9702_v43  ;;  %v3399_v43 = vrot.slane %v9708_v19, 4 }
 0x50d   : > { %v9769_v24 = vsel %vm2725_vm8, %v2748_v9, %v2787_v8  ;;  %v9783_v49 = vsel %vm2725_vm8, %v2773_v4, %v2732_v18  ;;  %v2325_v8 = vpop.trf.xlu0  ;;  %v2999_v9 = vrot.slane %v2956_v21, 4  ;;  %v3180_v11 = vperm.slane %v3174_v23, %v9750_v54 }
 0x50e   : > { %v2961_v27 = vrot.slane %v2325_v8, 4  ;;  %v2964_v35 = vsel %vm2725_vm8, %v2325_v8, %v2963_v1  ;;  %v2548_v48 = vpop.trf.xlu2  ;;  %v3184_v1 = vperm.slane %v3176_v37, %v9750_v54  ;;  %v2839_v37 = vrot.slane %v9704_v34, 4 }
 0x50f   : > { %v2972_v51 = vperm.slane %v2964_v35, %v9750_v54  ;;  %v3223_v42 = vrot.slane %v3180_v11, 4  ;;  %v9816_v23 = vmul.f32 %v9678_v31, %v11928_v55 }
 0x510   : > { %v2962_v26 = vsel %vm2725_vm8, %v2961_v27, %v2261_v5  ;;  %v3187_v5 = vrot.slane %v9737_v16, 4 }
 0x511   : > { %2597 = vxpose.xlu0.b32.end [2/2] (short) (narrow) %v2203_v45, 32  ;;  %3737 = vrot.lane.b32.xlu1 %v9753_v36, %s7190_s7  ;;  %v2295_v45 = vpop.trf.xlu1  ;;  %v2968_v29 = vperm.slane %v2962_v26, %v9750_v54  ;;  %v3009_v4 = vrot.slane %v2972_v51, 4  ;;  %v9795_v57 = vsel %vm2725_vm8, %v2972_v51, %v3011_v32  ;;  %v3235_v32 = vrot.slane %v3184_v1, 4 }
 0x512   : > { %v3397_v35 = vrot.slane %v2295_v45, 4 }
 0x513   : > { %v2997_v8 = vrot.slane %v2968_v29, 4  ;;  %v9799_v25 = vsel %vm2725_vm8, %v2968_v29, %v2999_v9  ;;  %v9803_v44 = vsel %vm2725_vm8, %v3009_v4, %v2960_v56  ;;  %v2837_v29 = vrot.slane %v2548_v48, 4 }
 0x514   : > { %v3400_v56 = vsel %vm2725_vm8, %v2295_v45, %v3399_v43  ;;  %v3411_v45 = vrot.slane %v9742_v3, 4  ;;  %v2840_v43 = vsel %vm2725_vm8, %v2548_v48, %v2839_v37 }
 0x515   : > { %v9808_v27 = vsel %vm2725_vm8, %v2997_v8, %v2956_v21  ;;  %v2326_v26 = vpop.trf.xlu0  ;;  %v3398_v8 = vsel %vm2725_vm8, %v3397_v35, %v9708_v19  ;;  %v2838_v55 = vsel %vm2725_vm8, %v2837_v29, %v9704_v34  ;;  %v2848_v48 = vperm.slane %v2840_v43, %v9750_v54 }
 0x516   : > { %v3185_v51 = vrot.slane %v2326_v26, 4  ;;  %v3188_v9 = vsel %vm2725_vm8, %v2326_v26, %v3187_v5  ;;  %v3408_v26 = vperm.slane %v3400_v56, %v9750_v54  ;;  %v2844_v34 = vperm.slane %v2838_v55, %v9750_v54 }
 0x517   : > { %v3196_v4 = vperm.slane %v3188_v9, %v9750_v54  ;;  %v3063_v9 = vrot.slane %v9710_v62, 4 }
 0x518   : > { %v3186_v21 = vsel %vm2725_vm8, %v3185_v51, %v9737_v16  ;;  %v2549_v16 = vpop.trf.xlu2  ;;  %v3404_v51 = vperm.slane %v3398_v8, %v9750_v54  ;;  %v3459_v29 = vrot.slane %v3408_v26, 4  ;;  %v9852_v8 = vmul.f32 %v9696_v58, %v9266_v59 }
 0x519   : > { %v9792_v18 = vpop.permute.xlu1 %3729  ;;  %v3233_v15 = vrot.slane %v3196_v4, 4  ;;  %v9824_v5 = vsel %vm2725_vm8, %v3196_v4, %v3235_v32  ;;  %v3061_v4 = vrot.slane %v2549_v16, 4  ;;  %v2887_v55 = vrot.slane %v2844_v34, 4 }
 0x51a   : > { %11927 = vst [vmem:[#allocation23_spill] sm:$0xff] %v9792_v18  ;;  %v3192_v18 = vperm.slane %v3186_v21, %v9750_v54 }
 0x51b   : > { %v9838_v32 = vsel %vm2725_vm8, %v3233_v15, %v3184_v1  ;;  %v3447_v1 = vrot.slane %v3404_v51, 4 }
 0x51c   : > { %v3221_v19 = vrot.slane %v3192_v18, 4  ;;  %v9835_v35 = vsel %vm2725_vm8, %v3192_v18, %v3223_v42  ;;  %v2851_v42 = vrot.slane %v9726_v50, 4 }
 0x51d   : > { %v2327_v56 = vpop.trf.xlu0 }
 0x51e   : > { %v9843_v37 = vsel %vm2725_vm8, %v3221_v19, %v3180_v11  ;;  %v3409_v18 = vrot.slane %v2327_v56, 4  ;;  %v3412_v15 = vsel %vm2725_vm8, %v2327_v56, %v3411_v45  ;;  %v2899_v11 = vrot.slane %v2848_v48, 4 }
 0x51f   : > { %v3420_v21 = vperm.slane %v3412_v15, %v9750_v54  ;;  %v3062_v45 = vsel %vm2725_vm8, %v3061_v4, %v9710_v62  ;;  %v3064_v56 = vsel %vm2725_vm8, %v2549_v16, %v3063_v9 }
 0x520   : > { %v3410_v43 = vsel %vm2725_vm8, %v3409_v18, %v9742_v3 }
 0x521   : > { %v9829_v31 = vpop.permute.xlu1 %3761  ;;  %v3416_v19 = vperm.slane %v3410_v43, %v9750_v54  ;;  %v9858_v13 = vsel %vm2725_vm8, %v3420_v21, %v3459_v29 }
 0x522   : > { %11929 = vst [vmem:[#allocation33_spill] sm:$0xff] %v9829_v31  ;;  %v3457_v31 = vrot.slane %v3420_v21, 4  ;;  %v2550_v21 = vpop.trf.xlu2 }
 0x523   : > { %v3445_v15 = vrot.slane %v3416_v19, 4  ;;  %v9866_v3 = vsel %vm2725_vm8, %v3416_v19, %v3447_v1  ;;  %v3075_v1 = vrot.slane %v9731_v20, 4  ;;  %v3285_v19 = vrot.slane %v2550_v21, 4 }
 0x524   : > { %v9869_v18 = vsel %vm2725_vm8, %v3457_v31, %v3408_v26  ;;  %v3068_v26 = vperm.slane %v3062_v45, %v9750_v54  ;;  %v3072_v31 = vperm.slane %v3064_v56, %v9750_v54 }
 0x525   : > { %v9875_v16 = vsel %vm2725_vm8, %v3445_v15, %v3404_v51 }
 0x52c   : > { %2628 = vxpose.xlu2.b32.start [1/2] (short) (narrow) %v9816_v23, 32 }
 0x533   : > { %v2580_v12 = vpop.trf.xlu1 }
 0x534   : > { %2629 = vxpose.xlu2.b32.end [2/2] (short) (narrow) %v9852_v8, 32  ;;  %v2849_v59 = vrot.slane %v2580_v12, 4  ;;  %v2852_v58 = vsel %vm2725_vm8, %v2580_v12, %v2851_v42  ;;  %v3287_v42 = vrot.slane %v9716_v0, 4 }
 0x535   : > { %v2860_v29 = vperm.slane %v2852_v58, %v9750_v54  ;;  %v3123_v58 = vrot.slane %v3072_v31, 4 }
 0x536   : > { %v2850_v62 = vsel %vm2725_vm8, %v2849_v59, %v9726_v50  ;;  %v3288_v15 = vsel %vm2725_vm8, %v2550_v21, %v3287_v42  ;;  %v3299_v21 = vrot.slane %v9735_v41, 4 }
 0x537   : > { %v2856_v9 = vperm.slane %v2850_v62, %v9750_v54  ;;  %v2897_v4 = vrot.slane %v2860_v29, 4  ;;  %v9879_v12 = vsel %vm2725_vm8, %v2860_v29, %v2899_v11  ;;  %v3111_v29 = vrot.slane %v3068_v26, 4 }
 0x538   : > { %v3286_v62 = vsel %vm2725_vm8, %v3285_v19, %v9716_v0 }
 0x539   : > { %v2885_v43 = vrot.slane %v2856_v9, 4  ;;  %v9886_v50 = vsel %vm2725_vm8, %v2856_v9, %v2887_v55  ;;  %v9889_v51 = vsel %vm2725_vm8, %v2897_v4, %v2848_v48  ;;  %v3296_v9 = vperm.slane %v3288_v15, %v9750_v54 }
 0x53a   : > { %11930 = vst [vmem:[#allocation34_spill] sm:$0xff] %v9889_v51  ;;  %v3511_v4 = vrot.slane %v9722_v33, 4  ;;  %v3292_v0 = vperm.slane %v3286_v62, %v9750_v54 }
 0x53b   : > { %v9892_v59 = vsel %vm2725_vm8, %v2885_v43, %v2844_v34  ;;  %v2581_v11 = vpop.trf.xlu1  ;;  %v2551_v43 = vpop.trf.xlu2 }
 0x53c   : > { %11931 = vst [vmem:[#allocation35_spill] sm:$0xff] %v9892_v59  ;;  %v3073_v45 = vrot.slane %v2581_v11, 4  ;;  %v3076_v56 = vsel %vm2725_vm8, %v2581_v11, %v3075_v1  ;;  %v3509_v19 = vrot.slane %v2551_v43, 4 }
 0x53d   : > { %v3084_v48 = vperm.slane %v3076_v56, %v9750_v54 }
 0x53e   : > { %v3074_v55 = vsel %vm2725_vm8, %v3073_v45, %v9731_v20  ;;  %v3347_v45 = vrot.slane %v3296_v9, 4  ;;  %v3510_v62 = vsel %vm2725_vm8, %v3509_v19, %v9722_v33  ;;  %v3523_v33 = vrot.slane %v9740_v6, 4 }
 0x53f   : > { %v3080_v34 = vperm.slane %v3074_v55, %v9750_v54  ;;  %v3121_v42 = vrot.slane %v3084_v48, 4  ;;  %v9906_v1 = vsel %vm2725_vm8, %v3084_v48, %v3123_v58  ;;  %v3335_v58 = vrot.slane %v3292_v0, 4 }
 0x540   : > { %v3512_v48 = vsel %vm2725_vm8, %v2551_v43, %v3511_v4  ;;  %v11938_v43 = vld [vmem:[#allocation24_spill] sm:$0xff] }
 0x541   : > { %v3109_v11 = vrot.slane %v3080_v34, 4  ;;  %v9910_v20 = vsel %vm2725_vm8, %v3080_v34, %v3111_v29  ;;  %v9913_v15 = vsel %vm2725_vm8, %v3121_v42, %v3072_v31  ;;  %v2189_v19 = vmul.f32 %v9681_v40, %v11938_v43  ;;  %v11946_v43 = vld [vmem:[#allocation32_spill] sm:$0xff] }
 0x542   : > { %11932 = vst [vmem:[#allocation36_spill] sm:$0xff] %v9910_v20 }
 0x543   : > { %11933 = vst [vmem:[#allocation37_spill] sm:$0xff] %v9913_v15  ;;  %v9916_v56 = vsel %vm2725_vm8, %v3109_v11, %v3068_v26  ;;  %v2582_v55 = vpop.trf.xlu1  ;;  %v3520_v11 = vperm.slane %v3512_v48, %v9750_v54 }
 0x544   : > { %v3297_v59 = vrot.slane %v2582_v55, 4  ;;  %v3300_v51 = vsel %vm2725_vm8, %v2582_v55, %v3299_v21  ;;  %v3516_v21 = vperm.slane %v3510_v62, %v9750_v54 }
 0x545   : > { %v3308_v29 = vperm.slane %v3300_v51, %v9750_v54 }
 0x546   : > { %2372 = vxpose.xlu1.b32.start [1/2] (short) (narrow) %v9753_v36, 32  ;;  %v3298_v31 = vsel %vm2725_vm8, %v3297_v59, %v9735_v41  ;;  %v3559_v62 = vrot.slane %v3516_v21, 4 }
 0x547   : > { %v3304_v26 = vperm.slane %v3298_v31, %v9750_v54  ;;  %v3345_v34 = vrot.slane %v3308_v29, 4  ;;  %v9928_v42 = vsel %vm2725_vm8, %v3308_v29, %v3347_v45  ;;  %v3571_v45 = vrot.slane %v3520_v11, 4 }
 0x548   : > { %11934 = vst [vmem:[#allocation38_spill] sm:$0xff] %v9928_v42 }
 0x549   : > { %v3333_v4 = vrot.slane %v3304_v26, 4  ;;  %v9934_v51 = vsel %vm2725_vm8, %v3304_v26, %v3335_v58  ;;  %v9937_v36 = vsel %vm2725_vm8, %v3345_v34, %v3296_v9 }
 0x54a   : > { %11935 = vst [vmem:[#allocation39_spill] sm:$0xff] %v9934_v51 }
 0x54b   : > { %11936 = vst [vmem:[#allocation40_spill] sm:$0xff] %v9937_v36  ;;  %v9940_v41 = vsel %vm2725_vm8, %v3333_v4, %v3292_v0  ;;  %v2583_v59 = vpop.trf.xlu1 }
 0x54c   : > { %11937 = vst [vmem:[#allocation41_spill] sm:$0xff] %v9940_v41  ;;  %v3521_v55 = vrot.slane %v2583_v59, 4  ;;  %v3524_v48 = vsel %vm2725_vm8, %v2583_v59, %v3523_v33 }
 0x54d   : > { %v3532_v29 = vperm.slane %v3524_v48, %v9750_v54 }
 0x54e   : > { %2373 = vxpose.xlu1.b32.end [2/2] (short) (narrow) %v2189_v19, 32  ;;  %v3522_v58 = vsel %vm2725_vm8, %v3521_v55, %v9740_v6  ;;  %v11943_v6 = vld [vmem:[#allocation26_spill] sm:$0xff] }
 0x54f   : > { %v3528_v9 = vperm.slane %v3522_v58, %v9750_v54  ;;  %v3569_v31 = vrot.slane %v3532_v29, 4  ;;  %v9950_v0 = vsel %vm2725_vm8, %v3532_v29, %v3571_v45  ;;  %v2190_v4 = vmul.f32 %v9700_v28, %v11943_v6  ;;  %v11945_v28 = vld [vmem:[#allocation30_spill] sm:$0xff] }
 0x550   : > { %11939 = vst [vmem:[#allocation24_spill] sm:$0xff] %v9950_v0 }
 0x551   : > { %v3557_v26 = vrot.slane %v3528_v9, 4  ;;  %v9953_v40 = vsel %vm2725_vm8, %v3528_v9, %v3559_v62  ;;  %v9956_v34 = vsel %vm2725_vm8, %v3569_v31, %v3520_v11  ;;  %v2206_v11 = vmul.f32 %v9683_v14, %v9316_v52  ;;  %v9982_v14 = vpop.permute.xlu2 %3759 }
 0x552   : > { %11940 = vst [vmem:[#allocation42_spill] sm:$0xff] %v9953_v40  ;;  %v2193_v52 = vmul.f32 %v9718_v2, %v11946_v43 }
 0x553   : > { %11941 = vst [vmem:[#allocation43_spill] sm:$0xff] %v9956_v34  ;;  %v9959_v33 = vsel %vm2725_vm8, %v3557_v26, %v3516_v21  ;;  %v2208_v21 = vmul.f32 %v9712_v10, %v9424_v53  ;;  %v2207_v10 = vmul.f32 %v9686_v60, %v9379_v46 }
 0x554   : > { %11942 = vst [vmem:[#allocation44_spill] sm:$0xff] %v9959_v33 }
 0x559   : > { %v9984_v53 = vpop.permute.xlu2 %3731  ;;  %v9996_v2 = vpop.permute.xlu0 %3763 }
 0x573   : > { %v10009_v60 = vpop.permute.xlu1 %3733 }
 0x57b   : > { %v10016_v26 = vpop.permute.xlu1 %3767 }
 0x57c   : > { %11953 = vst [vmem:[#allocation47_spill] sm:$0xff] %v10016_v26  ;;  %v7192_v26 = vmov 1934713408  }
 0x58f   : > { %3769 = vrot.lane.b32.xlu0 %v9816_v23, %s7190_s7  ;;  %v11944_v23 = vld [vmem:[#allocation28_spill] sm:$0xff] }
 0x590   : > { %v2191_v59 = vmul.f32 %v9688_v38, %v11944_v23  ;;  %v9988_v38 = vpop.permute.xlu2 %3765 }
 0x591   : > { %11947 = vst [vmem:[#allocation26_spill] sm:$0xff] %v9988_v38 }
 0x597   : > { %3739 = vrot.lane.b32.xlu0 %v2189_v19, %s7190_s7 }
 0x598   : > { %v2356_v19 = vpop.trf.xlu2 }
 0x5a0   : > { %v9990_v45 = vpop.trf.xlu2 }
 0x5ad   : > { %3771 = vrot.lane.b32.xlu2 %v9852_v8, %s7190_s7  ;;  %v2192_v8 = vmul.f32 %v9690_v22, %v11945_v28  ;;  %v9992_v22 = vpop.trf.xlu2  ;;  %v10000_v48 = vpop.trf.xlu0 }
 0x5ae   : > { %v3199_v0 = vrot.slane %v9992_v22, 4 }
 0x5b5   : > { %3741 = vrot.lane.b32.xlu2 %v2190_v4, %s7190_s7  ;;  %v9994_v55 = vpop.trf.xlu2  ;;  %v10004_v29 = vpop.trf.xlu0 }
 0x5b6   : > { %11949 = vst [vmem:[#allocation30_spill] sm:$0xff] %v10004_v29 }
 0x5b8   : > { %3773 = vrot.lane.b32.xlu1 %v2206_v11, %s7190_s7 }
 0x5b9   : > { %2404 = vxpose.xlu0.b32.start [1/2] (short) (narrow) %v2190_v4, 32 }
 0x5bd   : > { %3777 = vrot.lane.b32.xlu2 %v2208_v21, %s7190_s7  ;;  %v9998_v62 = vpop.permute.xlu2 %3735  ;;  %v10011_v9 = vpop.trf.xlu0 }
 0x5be   : > { %11951 = vst [vmem:[#allocation45_spill] sm:$0xff] %v10011_v9 }
 0x5c0   : > { %3743 = vrot.lane.b32.xlu1 %v2191_v59, %s7190_s7 }
 0x5c1   : > { %2405 = vxpose.xlu0.b32.end [2/2] (short) (narrow) %v2191_v59, 32 }
 0x5c5   : > { %v10002_v58 = vpop.trf.xlu2  ;;  %v10018_v6 = vpop.trf.xlu0 }
 0x5c6   : > { %11948 = vst [vmem:[#allocation28_spill] sm:$0xff] %v10002_v58 }
 0x5c7   : > { %11954 = vst [vmem:[#allocation48_spill] sm:$0xff] %v10018_v6 }
 0x5cd   : > { %v10007_v46 = vpop.trf.xlu2 }
 0x5ce   : > { %11950 = vst [vmem:[#allocation32_spill] sm:$0xff] %v10007_v46 }
 0x5d5   : > { %v10014_v31 = vpop.trf.xlu2 }
 0x5d6   : > { %11952 = vst [vmem:[#allocation46_spill] sm:$0xff] %v10014_v31  ;;  %v2751_v31 = vrot.slane %v2356_v19, 4 }
 0x5dd   : > { %v10020_v4 = vpop.trf.xlu2 }
 0x5de   : > { %11955 = vst [vmem:[#allocation49_spill] sm:$0xff] %v10020_v4  ;;  %v2778_v4 = vunpack.c.l.s4 %v7192_v26 }
 0x5e3   : > { %2436 = vxpose.xlu2.b32.start [1/2] (short) (narrow) %v2192_v8, 32 }
 0x5eb   : > { %2437 = vxpose.xlu2.b32.end [2/2] (short) (narrow) %v2193_v52, 32 }
 0x5f5   : > { %2660 = vxpose.xlu1.b32.start [1/2] (short) (narrow) %v2206_v11, 32  ;;  %v10022_v11 = vpop.permute.xlu1 %3737 }
 0x5fd   : > { %2661 = vxpose.xlu1.b32.end [2/2] (short) (narrow) %v2207_v10, 32  ;;  %v10028_v28 = vpop.trf.xlu1 }
 0x5fe   : > { %v2763_v58 = vrot.slane %v10028_v28, 4 }
 0x601   : > { %v10024_v23 = vpop.permute.xlu0 %3769 }
 0x602   : > { %11956 = vst [vmem:[#allocation50_spill] sm:$0xff] %v10024_v23 }
 0x605   : > { %v10038_v33 = vpop.trf.xlu1 }
 0x607   : > { %v10026_v59 = vpop.permute.xlu2 %3771 }
 0x608   : > { %11957 = vst [vmem:[#allocation51_spill] sm:$0xff] %v10026_v59  ;;  %v10040_v59 = vunpack.c.0.s8 %v2778_v4 }
 0x609   : > { %v10030_v43 = vpop.permute.xlu0 %3739 }
 0x60a   : > { %v10056_v26 = vperm.slane %v9783_v49, %v10040_v59  ;;  %v10060_v4 = vperm.slane %v9779_v47, %v10040_v59  ;;  %v2975_v49 = vrot.slane %v9990_v45, 4  ;;  %v10076_v47 = vperm.slane %v9808_v27, %v10040_v59 }
 0x63f   : > { %3775 = vrot.lane.b32.xlu0 %v2207_v10, %s7190_s7  ;;  %v10036_v10 = vpop.permute.xlu2 %3741 }
 0x647   : > { %3745 = vrot.lane.b32.xlu0 %v2192_v8, %s7190_s7  ;;  %v2209_v8 = vmul.f32 %v9698_v30, %v9474_v39  ;;  %v10048_v39 = vperm.slane %v9776_v63, %v10040_v59  ;;  %v10050_v30 = vpop.permute.xlu2 %3777  ;;  %v10066_v63 = vperm.slane %v9799_v25, %v10040_v59  ;;  %v10084_v25 = vperm.slane %v9824_v5, %v10040_v59 }
 0x648   : > { %11958 = vst [vmem:[#allocation52_spill] sm:$0xff] %v10050_v30  ;;  %v10070_v30 = vperm.slane %v9795_v57, %v10040_v59  ;;  %v10088_v57 = vperm.slane %v9835_v35, %v10040_v59  ;;  %v10100_v5 = vperm.slane %v9843_v37, %v10040_v59 }
 0x65d   : > { %v2420_v6 = vpop.trf.xlu0 }
 0x65e   : > { %v2749_v46 = vrot.slane %v2420_v6, 4 }
 0x660   : > { %v2750_v40 = vsel %vm2725_vm8, %v2749_v46, %v2356_v19 }
 0x661   : > { %v2756_v37 = vperm.slane %v2750_v40, %v9750_v54 }
 0x664   : > { %3747 = vrot.lane.b32.xlu2 %v2193_v52, %s7190_s7  ;;  %v10044_v52 = vperm.slane %v9769_v24, %v10040_v59  ;;  %v2752_v24 = vsel %vm2725_vm8, %v2420_v6, %v2751_v31  ;;  %v10080_v31 = vperm.slane %v9803_v44, %v10040_v59  ;;  %v10092_v6 = vperm.slane %v9838_v32, %v10040_v59 }
 0x665   : > { %v2760_v27 = vperm.slane %v2752_v24, %v9750_v54  ;;  %v2831_v44 = vrot.slane %v10060_v4, 4 }
 0x667   : > { %3779 = vrot.lane.b32.xlu1 %v2209_v8, %s7190_s7  ;;  %v2811_v9 = vrot.slane %v2760_v27, 4 }
 0x669   : > { %2692 = vxpose.xlu0.b32.start [1/2] (short) (narrow) %v2208_v21, 32  ;;  %v10052_v21 = vpop.trf.xlu1 }
 0x671   : > { %2693 = vxpose.xlu0.b32.end [2/2] (short) (narrow) %v2209_v8, 32  ;;  %v2421_v8 = vpop.trf.xlu0  ;;  %v10121_v38 = vpop.trf.xlu1 }
 0x672   : > { %v2973_v32 = vrot.slane %v2421_v8, 4  ;;  %v2976_v19 = vsel %vm2725_vm8, %v2421_v8, %v2975_v49 }
 0x673   : > { %v10117_v41 = vperm.slane %v2976_v19, %v9750_v54  ;;  %v2799_v19 = vrot.slane %v2756_v37, 4 }
 0x674   : > { %v2974_v8 = vsel %vm2725_vm8, %v2973_v32, %v9990_v45 }
 0x675   : > { %v10142_v32 = vperm.slane %v2974_v8, %v9750_v54  ;;  %v11959_v8 = vrot.slane %v10044_v52, 4 }
 0x679   : > { %v2422_v24 = vpop.trf.xlu0 }
 0x67a   : > { %v3197_v42 = vrot.slane %v2422_v24, 4 }
 0x67c   : > { %v2452_v23 = vpop.trf.xlu2 }
 0x67d   : > { %v2761_v49 = vrot.slane %v2452_v23, 4  ;;  %v2764_v46 = vsel %vm2725_vm8, %v2452_v23, %v2763_v58 }
 0x67e   : > { %v2772_v35 = vperm.slane %v2764_v46, %v9750_v54  ;;  %v10138_v46 = vld [vmem:[%s7353_s17] sm:$0xff] }
 0x67f   : > { %v2762_v34 = vsel %vm2725_vm8, %v2761_v49, %v10028_v28 }
 0x680   : > { %v2768_v40 = vperm.slane %v2762_v34, %v9750_v54  ;;  %v2809_v36 = vrot.slane %v2772_v35, 4  ;;  %v2812_v29 = vsel %vm2725_vm8, %v2772_v35, %v2811_v9  ;;  %v3198_v9 = vsel %vm2725_vm8, %v3197_v42, %v9992_v22 }
 0x681   : > { %v2820_v45 = vperm.slane %v2812_v29, %v10040_v59 }
 0x682   : > { %v2797_v28 = vrot.slane %v2768_v40, 4  ;;  %v2800_v49 = vsel %vm2725_vm8, %v2768_v40, %v2799_v19  ;;  %v2810_v34 = vsel %vm2725_vm8, %v2809_v36, %v2760_v27  ;;  %v3200_v40 = vsel %vm2725_vm8, %v2422_v24, %v3199_v0 }
 0x683   : > { %v2808_v35 = vperm.slane %v2800_v49, %v10040_v59  ;;  %v2816_v58 = vperm.slane %v2810_v34, %v10040_v59  ;;  %v2833_v29 = vrot.slane %v2820_v45, 4  ;;  %v2836_v51 = vsel %vm2725_vm8, %v2820_v45, %v11959_v8 }
 0x684   : > { %v2798_v23 = vsel %vm2725_vm8, %v2797_v28, %v2756_v37  ;;  %v3635_v15 = vmul.f32 %v2836_v51, %v10138_v46  ;;  %v2453_v20 = vpop.trf.xlu2  ;;  %v10159_v36 = vperm.slane %v3198_v9, %v9750_v54  ;;  %v11960_v27 = vrot.slane %v10048_v39, 4 }
 0x685   : > { %v2804_v42 = vperm.slane %v2798_v23, %v10040_v59  ;;  %v2825_v22 = vrot.slane %v2808_v35, 4  ;;  %v2829_v37 = vrot.slane %v2816_v58, 4  ;;  %v2832_v0 = vsel %vm2725_vm8, %v2816_v58, %v2831_v44 }
 0x686   : > { %v2828_v51 = vsel %vm2725_vm8, %v2808_v35, %v11960_v27  ;;  %v2834_v24 = vsel %vm2725_vm8, %v2833_v29, %v10044_v52  ;;  %v5299_v45 = vpack.c.bf16 %v3635_v15, %v3635_v15  ;;  %v11961_v49 = vrot.slane %v10056_v26, 4 }
 0x687   : > { %v3627_v19 = vmul.f32 %v2828_v51, %v10138_v46  ;;  %v2821_v28 = vrot.slane %v2804_v42, 4  ;;  %v2826_v34 = vsel %vm2725_vm8, %v2825_v22, %v10048_v39  ;;  %v2830_v9 = vsel %vm2725_vm8, %v2829_v37, %v10060_v4 }
 0x688   : > { %v2824_v23 = vsel %vm2725_vm8, %v2804_v42, %v11961_v49  ;;  %v3625_v44 = vmul.f32 %v2826_v34, %v10138_v46  ;;  %v3629_v52 = vmul.f32 %v2830_v9, %v10138_v46  ;;  %v3631_v15 = vmul.f32 %v2832_v0, %v10138_v46  ;;  %5364 = vst.msk [vmem:[%s10166_s8 + $0x38] sm:$0xf] %vm5349_vm9, %v5299_v45 }
 0x689   : > { %v3623_v35 = vmul.f32 %v2824_v23, %v10138_v46  ;;  %v2822_v58 = vsel %vm2725_vm8, %v2821_v28, %v10056_v26  ;;  %v3633_v29 = vmul.f32 %v2834_v24, %v10138_v46  ;;  %v5291_v39 = vpack.c.bf16 %v3627_v19, %v3627_v19  ;;  %3813 = vxpose.xlu0.b32.start [1/2] (short) (narrow) %v9706_v61, 32 }
 0x68a   : > { %v2985_v8 = vrot.slane %v2453_v20, 4  ;;  %v3621_v4 = vmul.f32 %v2822_v58, %v10138_v46  ;;  %v5289_v22 = vpack.c.bf16 %v3625_v44, %v3625_v44  ;;  %v3023_v27 = vrot.slane %v10142_v32, 4  ;;  %3845 = vxpose.xlu2.b32.start [1/2] (short) (narrow) %v9720_v17, 32 }
 0x68b   : > { %v5287_v42 = vpack.c.bf16 %v3623_v35, %v3623_v35  ;;  %v5293_v51 = vpack.c.bf16 %v3629_v52, %v3629_v52  ;;  %5356 = vst.msk [vmem:[%s10166_s8 + $0x18] sm:$0xf] %vm5349_vm9, %v5291_v39  ;;  %v11962_v37 = vrot.slane %v10038_v33, 4  ;;  %v10204_v0 = vperm.slane %v3200_v40, %v9750_v54 }
 0x68c   : > { %v2986_v26 = vsel %vm2725_vm8, %v2985_v8, %v10038_v33  ;;  %v5285_v24 = vpack.c.bf16 %v3621_v4, %v3621_v4  ;;  %v5295_v19 = vpack.c.bf16 %v3631_v15, %v3631_v15  ;;  %v2454_v28 = vpop.trf.xlu2  ;;  %v5297_v49 = vpack.c.bf16 %v3633_v29, %v3633_v29  ;;  %5354 = vst.msk [vmem:[%s10166_s8 + $0x10] sm:$0xf] %vm5349_vm9, %v5289_v22 }
 0x68d   : > { %v2988_v61 = vsel %vm2725_vm8, %v2453_v20, %v11962_v37  ;;  %5352 = vst.msk [vmem:[%s10166_s8 + $0x8] sm:$0xf] %vm5349_vm9, %v5287_v42  ;;  %v2992_v17 = vperm.slane %v2986_v26, %v9750_v54  ;;  %v3247_v33 = vrot.slane %v10159_v36, 4  ;;  %v3209_v20 = vrot.slane %v2454_v28, 4 }
 0x68e   : > { %v2996_v45 = vperm.slane %v2988_v61, %v9750_v54  ;;  %v11963_v40 = vrot.slane %v10052_v21, 4  ;;  %5350 = vst.msk [vmem:[%s10166_s8] sm:$0xf] %vm5349_vm9, %v5285_v24  ;;  %v11964_v44 = vrot.slane %v10117_v41, 4  ;;  %v3259_v29 = vrot.slane %v10204_v0, 4 }
 0x68f   : > { %v3021_v34 = vrot.slane %v2992_v17, 4  ;;  %v3024_v9 = vsel %vm2725_vm8, %v2992_v17, %v3023_v27  ;;  %5358 = vst.msk [vmem:[%s10166_s8 + $0x20] sm:$0xf] %vm5349_vm9, %v5293_v51  ;;  %v3210_v39 = vsel %vm2725_vm8, %v3209_v20, %v10052_v21  ;;  %v11965_v21 = vrot.slane %v10066_v63, 4  ;;  %v11967_v17 = vld [vmem:[#allocation27_spill] sm:$0xff] }
 0x690   : > { %v3212_v23 = vsel %vm2725_vm8, %v2454_v28, %v11963_v40  ;;  %v3033_v35 = vrot.slane %v2996_v45, 4  ;;  %v3036_v52 = vsel %vm2725_vm8, %v2996_v45, %v11964_v44  ;;  %v3032_v15 = vperm.slane %v3024_v9, %v10040_v59  ;;  %5360 = vst.msk [vmem:[%s10166_s8 + $0x28] sm:$0xf] %vm5349_vm9, %v5295_v19  ;;  %v2423_v44 = vpop.trf.xlu0 }
 0x691   : > { %v3044_v58 = vperm.slane %v3036_v52, %v10040_v59  ;;  %v3022_v8 = vsel %vm2725_vm8, %v3021_v34, %v10142_v32  ;;  %v3216_v42 = vperm.slane %v3210_v39, %v9750_v54  ;;  %v3220_v22 = vperm.slane %v3212_v23, %v9750_v54  ;;  %5362 = vst.msk [vmem:[%s10166_s8 + $0x30] sm:$0xf] %vm5349_vm9, %v5297_v49 }
 0x692   : > { %v3034_v4 = vsel %vm2725_vm8, %v3033_v35, %v10117_v41  ;;  %v3028_v27 = vperm.slane %v3022_v8, %v10040_v59  ;;  %v3049_v26 = vrot.slane %v3032_v15, 4  ;;  %v3052_v37 = vsel %vm2725_vm8, %v3032_v15, %v11965_v21  ;;  %3814 = vxpose.xlu0.b32.end [2/2] (short) (narrow) %v9694_v7, 32  ;;  %3846 = vxpose.xlu2.b32.end [2/2] (short) (narrow) %v11967_v17, 32 }
 0x693   : > { %v3040_v51 = vperm.slane %v3034_v4, %v10040_v59  ;;  %v3057_v32 = vrot.slane %v3044_v58, 4  ;;  %v11966_v41 = vrot.slane %v10070_v30, 4  ;;  %v3643_v24 = vmul.f32 %v3052_v37, %v10138_v46 }
 0x694   : > { %v3245_v19 = vrot.slane %v3216_v42, 4  ;;  %v3045_v45 = vrot.slane %v3028_v27, 4  ;;  %v11968_v28 = vrot.slane %v10076_v47, 4  ;;  %v3050_v20 = vsel %vm2725_vm8, %v3049_v26, %v10066_v63 }
 0x695   : > { %v3060_v61 = vsel %vm2725_vm8, %v3044_v58, %v11966_v41  ;;  %v3053_v40 = vrot.slane %v3040_v51, 4  ;;  %v11969_v7 = vrot.slane %v10080_v31, 4  ;;  %v3058_v34 = vsel %vm2725_vm8, %v3057_v32, %v10070_v30 }
 0x696   : > { %v3048_v49 = vsel %vm2725_vm8, %v3028_v27, %v11968_v28  ;;  %v3641_v35 = vmul.f32 %v3050_v20, %v10138_v46  ;;  %v3046_v52 = vsel %vm2725_vm8, %v3045_v45, %v10076_v47  ;;  %v3649_v58 = vmul.f32 %v3058_v34, %v10138_v46 }
 0x697   : > { %v3056_v23 = vsel %vm2725_vm8, %v3040_v51, %v11969_v7  ;;  %v3639_v9 = vmul.f32 %v3048_v49, %v10138_v46  ;;  %v3054_v63 = vsel %vm2725_vm8, %v3053_v40, %v10080_v31  ;;  %v3637_v39 = vmul.f32 %v3046_v52, %v10138_v46 }
 0x698   : > { %v3647_v15 = vmul.f32 %v3056_v23, %v10138_v46  ;;  %v3645_v30 = vmul.f32 %v3054_v63, %v10138_v46  ;;  %v3651_v8 = vmul.f32 %v3060_v61, %v10138_v46  ;;  %v5305_v27 = vpack.c.bf16 %v3641_v35, %v3641_v35 }
 0x699   : > { %v5303_v4 = vpack.c.bf16 %v3639_v9, %v3639_v9  ;;  %v5307_v51 = vpack.c.bf16 %v3643_v24, %v3643_v24  ;;  %v3421_v47 = vrot.slane %v2423_v44, 4  ;;  %v5301_v21 = vpack.c.bf16 %v3637_v39, %v3637_v39 }
 0x69a   : > { %v5311_v26 = vpack.c.bf16 %v3647_v15, %v3647_v15  ;;  %v5309_v31 = vpack.c.bf16 %v3645_v30, %v3645_v30  ;;  %v5313_v37 = vpack.c.bf16 %v3649_v58, %v3649_v58  ;;  %v3246_v32 = vsel %vm2725_vm8, %v3245_v19, %v10159_v36  ;;  %5370 = vst.msk [vmem:[%s10166_s8 + $0x50] sm:$0xf] %vm5349_vm9, %v5305_v27 }
 0x69b   : > { %5368 = vst.msk [vmem:[%s10166_s8 + $0x48] sm:$0xf] %vm5349_vm9, %v5303_v4  ;;  %v3248_v41 = vsel %vm2725_vm8, %v3216_v42, %v3247_v33  ;;  %v3252_v61 = vperm.slane %v3246_v32, %v10040_v59  ;;  %v3257_v17 = vrot.slane %v3220_v22, 4  ;;  %v3260_v24 = vsel %vm2725_vm8, %v3220_v22, %v3259_v29 }
 0x69c   : > { %v5315_v45 = vpack.c.bf16 %v3651_v8, %v3651_v8  ;;  %5366 = vst.msk [vmem:[%s10166_s8 + $0x40] sm:$0xf] %vm5349_vm9, %v5301_v21  ;;  %v3256_v28 = vperm.slane %v3248_v41, %v10040_v59  ;;  %v3268_v49 = vperm.slane %v3260_v24, %v10040_v59  ;;  %v11970_v36 = vrot.slane %v9994_v55, 4 }
 0x69d   : > { %5372 = vst.msk [vmem:[%s10166_s8 + $0x58] sm:$0xf] %vm5349_vm9, %v5307_v51  ;;  %v3258_v33 = vsel %vm2725_vm8, %v3257_v17, %v10204_v0  ;;  %v3269_v42 = vrot.slane %v3252_v61, 4  ;;  %v11971_v29 = vrot.slane %v10100_v5, 4  ;;  %v11972_v23 = vrot.slane %v10088_v57, 4  ;;  %v11973_v0 = vld [vmem:[#allocation20_spill] sm:$0xff] }
 0x69e   : > { %v3424_v19 = vsel %vm2725_vm8, %v2423_v44, %v11970_v36  ;;  %5374 = vst.msk [vmem:[%s10166_s8 + $0x60] sm:$0xf] %vm5349_vm9, %v5309_v31  ;;  %v3264_v40 = vperm.slane %v3258_v33, %v10040_v59  ;;  %v3273_v7 = vrot.slane %v3256_v28, 4  ;;  %v3281_v9 = vrot.slane %v3268_v49, 4  ;;  %3877 = vxpose.xlu1.b32.start [1/2] (short) (narrow) %v11973_v0, 32 }
 0x69f   : > { %v3272_v22 = vsel %vm2725_vm8, %v3252_v61, %v11971_v29  ;;  %v10295_v20 = vperm.slane %v3424_v19, %v9750_v54  ;;  %v3276_v34 = vsel %vm2725_vm8, %v3256_v28, %v11972_v23  ;;  %5376 = vst.msk [vmem:[%s10166_s8 + $0x68] sm:$0xf] %vm5349_vm9, %v5311_v26  ;;  %v3270_v35 = vsel %vm2725_vm8, %v3269_v42, %v10100_v5  ;;  %v11977_v42 = vld [vmem:[#allocation31_spill] sm:$0xff] }
 0x6a0   : > { %v11974_v44 = vrot.slane %v10084_v25, 4  ;;  %v3655_v63 = vmul.f32 %v3272_v22, %v10138_v46  ;;  %v3659_v15 = vmul.f32 %v3276_v34, %v10138_v46  ;;  %5378 = vst.msk [vmem:[%s10166_s8 + $0x70] sm:$0xf] %vm5349_vm9, %v5313_v37  ;;  %v3274_v58 = vsel %vm2725_vm8, %v3273_v7, %v10088_v57  ;;  %v2455_v37 = vpop.trf.xlu2 }
 0x6a1   : > { %v3277_v39 = vrot.slane %v3264_v40, 4  ;;  %v11975_v30 = vrot.slane %v10092_v6, 4  ;;  %v3282_v5 = vsel %vm2725_vm8, %v3281_v9, %v10084_v25  ;;  %5380 = vst.msk [vmem:[%s10166_s8 + $0x78] sm:$0xf] %vm5349_vm9, %v5315_v45  ;;  %v3653_v4 = vmul.f32 %v3270_v35, %v10138_v46 }
 0x6a2   : > { %v3284_v52 = vsel %vm2725_vm8, %v3268_v49, %v11974_v44  ;;  %v3657_v27 = vmul.f32 %v3274_v58, %v10138_v46  ;;  %v3422_v57 = vsel %vm2725_vm8, %v3421_v47, %v9994_v55  ;;  %v3665_v21 = vmul.f32 %v3282_v5, %v10138_v46 }
 0x6a3   : > { %v3280_v8 = vsel %vm2725_vm8, %v3264_v40, %v11975_v30  ;;  %v3278_v26 = vsel %vm2725_vm8, %v3277_v39, %v10092_v6  ;;  %v3667_v25 = vmul.f32 %v3284_v52, %v10138_v46  ;;  %v5319_v31 = vpack.c.bf16 %v3655_v63, %v3655_v63  ;;  %v11978_v39 = vld [vmem:[#allocation23_spill] sm:$0xff] }
 0x6a4   : > { %v3663_v51 = vmul.f32 %v3280_v8, %v10138_v46  ;;  %v3661_v32 = vmul.f32 %v3278_v26, %v10138_v46  ;;  %v5317_v41 = vpack.c.bf16 %v3653_v4, %v3653_v4  ;;  %v5321_v61 = vpack.c.bf16 %v3657_v27, %v3657_v27 }
 0x6a5   : > { %v5323_v17 = vpack.c.bf16 %v3659_v15, %v3659_v15  ;;  %v3468_v24 = vperm.slane %v9858_v13, %v10040_v59  ;;  %5384 = vst.msk [vmem:[%s10166_s8 + $0x88] sm:$0xf] %vm5349_vm9, %v5319_v31  ;;  %v3428_v55 = vperm.slane %v3422_v57, %v9750_v54  ;;  %v3483_v6 = vrot.slane %v10295_v20, 4 }
 0x6a6   : > { %v5325_v47 = vpack.c.bf16 %v3661_v32, %v3661_v32  ;;  %v5327_v45 = vpack.c.bf16 %v3663_v51, %v3663_v51  ;;  %5382 = vst.msk [vmem:[%s10166_s8 + $0x80] sm:$0xf] %vm5349_vm9, %v5317_v41  ;;  %v3433_v28 = vrot.slane %v2455_v37, 4  ;;  %v11976_v49 = vrot.slane %v10121_v38, 4  ;;  %3878 = vxpose.xlu1.b32.end [2/2] (short) (narrow) %v11977_v42, 32 }
 0x6a7   : > { %v3456_v13 = vperm.slane %v9866_v3, %v10040_v59  ;;  %v5329_v19 = vpack.c.bf16 %v3665_v21, %v3665_v21  ;;  %5386 = vst.msk [vmem:[%s10166_s8 + $0x90] sm:$0xf] %vm5349_vm9, %v5321_v61  ;;  %v3452_v29 = vperm.slane %v9875_v16, %v10040_v59  ;;  %v3464_v22 = vperm.slane %v9869_v18, %v10040_v59 }
 0x6a8   : > { %v3436_v36 = vsel %vm2725_vm8, %v2455_v37, %v11976_v49  ;;  %v5331_v40 = vpack.c.bf16 %v3667_v25, %v3667_v25  ;;  %5388 = vst.msk [vmem:[%s10166_s8 + $0x98] sm:$0xf] %vm5349_vm9, %v5323_v17  ;;  %v3434_v3 = vsel %vm2725_vm8, %v3433_v28, %v10121_v38  ;;  %v3471_v7 = vrot.slane %v3428_v55, 4 }
 0x6a9   : > { %v3444_v33 = vperm.slane %v3436_v36, %v9750_v54  ;;  %5390 = vst.msk [vmem:[%s10166_s8 + $0xa0] sm:$0xf] %vm5349_vm9, %v5325_v47  ;;  %v3440_v23 = vperm.slane %v3434_v3, %v9750_v54  ;;  %v3507_v0 = vrot.slane %v3468_v24, 4  ;;  %v3499_v16 = vrot.slane %v3456_v13, 4  ;;  %v11980_v3 = vld [vmem:[#allocation21_spill] sm:$0xff] }
 0x6aa   : > { %5392 = vst.msk [vmem:[%s10166_s8 + $0xa8] sm:$0xf] %vm5349_vm9, %v5327_v45  ;;  %3909 = vxpose.xlu0.b32.start [1/2] (short) (narrow) %v11978_v39, 32  ;;  %v3495_v30 = vrot.slane %v3452_v29, 4  ;;  %v3503_v8 = vrot.slane %v3464_v22, 4  ;;  %3941 = vxpose.xlu2.b32.start [1/2] (short) (narrow) %v10009_v60, 32 }
 0x6ab   : > { %v3481_v34 = vrot.slane %v3444_v33, 4  ;;  %v3484_v9 = vsel %vm2725_vm8, %v3444_v33, %v3483_v6  ;;  %5394 = vst.msk [vmem:[%s10166_s8 + $0xb0] sm:$0xf] %vm5349_vm9, %v5329_v19  ;;  %v3469_v35 = vrot.slane %v3440_v23, 4  ;;  %v3472_v44 = vsel %vm2725_vm8, %v3440_v23, %v3471_v7  ;;  %v11981_v7 = vld [vmem:[#allocation22_spill] sm:$0xff]  ;;  %v11989_v39 = vld [vmem:[#allocation39_spill] sm:$0xff] }
 0x6ac   : > { %v3492_v18 = vperm.slane %v3484_v9, %v10040_v59  ;;  %5396 = vst.msk [vmem:[%s10166_s8 + $0xb8] sm:$0xf] %vm5349_vm9, %v5331_v40  ;;  %v3480_v52 = vperm.slane %v3472_v44, %v10040_v59  ;;  %v11979_v40 = vld [vmem:[#allocation19_spill] sm:$0xff]  ;;  %v11984_v9 = vld [vmem:[#allocation33_spill] sm:$0xff]  ;;  %v10445_v44 = vperm.slane %v9906_v1, %v10040_v59 }
 0x6ad   : > { %v3482_v38 = vsel %vm2725_vm8, %v3481_v34, %v10295_v20  ;;  %v3470_v5 = vsel %vm2725_vm8, %v3469_v35, %v3428_v55  ;;  %v11986_v35 = vld [vmem:[#allocation35_spill] sm:$0xff] }
 0x6ae   : > { %v3488_v63 = vperm.slane %v3482_v38, %v10040_v59  ;;  %v3505_v15 = vrot.slane %v3492_v18, 4  ;;  %v3508_v58 = vsel %vm2725_vm8, %v3492_v18, %v3507_v0  ;;  %v3476_v20 = vperm.slane %v3470_v5, %v10040_v59  ;;  %v11985_v18 = vld [vmem:[#allocation34_spill] sm:$0xff] }
 0x6af   : > { %v3683_v4 = vmul.f32 %v3508_v58, %v10138_v46  ;;  %v3497_v27 = vrot.slane %v3480_v52, 4  ;;  %v3500_v51 = vsel %vm2725_vm8, %v3480_v52, %v3499_v16  ;;  %v10433_v0 = vperm.slane %v9886_v50, %v10040_v59  ;;  %v11987_v50 = vld [vmem:[#allocation36_spill] sm:$0xff] }
 0x6b0   : > { %v3501_v57 = vrot.slane %v3488_v63, 4  ;;  %v3504_v26 = vsel %vm2725_vm8, %v3488_v63, %v3503_v8  ;;  %v3506_v21 = vsel %vm2725_vm8, %v3505_v15, %v3468_v24  ;;  %v3675_v25 = vmul.f32 %v3500_v51, %v10138_v46  ;;  %v11988_v63 = vld [vmem:[#allocation37_spill] sm:$0xff]  ;;  %v11992_v51 = vld [vmem:[#allocation40_spill] sm:$0xff] }
 0x6b1   : > { %v5347_v31 = vpack.c.bf16 %v3683_v4, %v3683_v4  ;;  %v3493_v37 = vrot.slane %v3476_v20, 4  ;;  %v3496_v32 = vsel %vm2725_vm8, %v3476_v20, %v3495_v30  ;;  %v3498_v60 = vsel %vm2725_vm8, %v3497_v27, %v3456_v13 }
 0x6b2   : > { %v3502_v41 = vsel %vm2725_vm8, %v3501_v57, %v3464_v22  ;;  %v3671_v61 = vmul.f32 %v3496_v32, %v10138_v46  ;;  %v3673_v17 = vmul.f32 %v3498_v60, %v10138_v46  ;;  %v3679_v24 = vmul.f32 %v3504_v26, %v10138_v46  ;;  %3942 = vxpose.xlu2.b32.end [2/2] (short) (narrow) %v9998_v62, 32  ;;  %v10417_v62 = vpop.permute.xlu1 %3773 }
 0x6b3   : > { %v3677_v55 = vmul.f32 %v3502_v41, %v10138_v46  ;;  %5412 = vst.msk [vmem:[%s10166_s8 + $0xf8] sm:$0xf] %vm5349_vm9, %v5347_v31  ;;  %v3494_v6 = vsel %vm2725_vm8, %v3493_v37, %v3452_v29  ;;  %v3681_v47 = vmul.f32 %v3506_v21, %v10138_v46  ;;  %v5339_v45 = vpack.c.bf16 %v3675_v25, %v3675_v25  ;;  %v11993_v31 = vld [vmem:[#allocation41_spill] sm:$0xff] }
 0x6b4   : > { %v3669_v28 = vmul.f32 %v3494_v6, %v10138_v46  ;;  %v5335_v49 = vpack.c.bf16 %v3671_v61, %v3671_v61  ;;  %v5337_v36 = vpack.c.bf16 %v3673_v17, %v3673_v17  ;;  %v5343_v33 = vpack.c.bf16 %v3679_v24, %v3679_v24  ;;  %3910 = vxpose.xlu0.b32.end [2/2] (short) (narrow) %v9984_v53, 32  ;;  %v10414_v46 = vpop.permute.xlu0 %3775 }
 0x6b5   : > { %v5341_v13 = vpack.c.bf16 %v3677_v55, %v3677_v55  ;;  %5404 = vst.msk [vmem:[%s10166_s8 + $0xd8] sm:$0xf] %vm5349_vm9, %v5339_v45  ;;  %v5345_v42 = vpack.c.bf16 %v3681_v47, %v3681_v47  ;;  %v10437_v16 = vperm.slane %v11985_v18, %v10040_v59  ;;  %v2863_v38 = vrot.slane %v10000_v48, 4  ;;  %v11994_v45 = vld [vmem:[#allocation50_spill] sm:$0xff] }
 0x6b6   : > { %v5333_v19 = vpack.c.bf16 %v3669_v28, %v3669_v28  ;;  %5400 = vst.msk [vmem:[%s10166_s8 + $0xc8] sm:$0xf] %vm5349_vm9, %v5335_v49  ;;  %v10455_v52 = vperm.slane %v11987_v50, %v10040_v59  ;;  %v10459_v15 = vperm.slane %v11988_v63, %v10040_v59  ;;  %v10464_v30 = vperm.slane %v11989_v39, %v10040_v59  ;;  %v11995_v49 = vld [vmem:[#allocation45_spill] sm:$0xff] }
 0x6b7   : > { %5402 = vst.msk [vmem:[%s10166_s8 + $0xd0] sm:$0xf] %vm5349_vm9, %v5337_v36  ;;  %v2939_v20 = vrot.slane %v10433_v0, 4  ;;  %v2943_v27 = vrot.slane %v10437_v16, 4  ;;  %v10475_v57 = vperm.slane %v11992_v51, %v10040_v59  ;;  %v3171_v25 = vrot.slane %v10445_v44, 4  ;;  %v12003_v51 = vld [vmem:[#allocation48_spill] sm:$0xff] }
 0x6b8   : > { %5398 = vst.msk [vmem:[%s10166_s8 + $0xc0] sm:$0xf] %vm5349_vm9, %v5333_v19  ;;  %v10481_v37 = vperm.slane %v11993_v31, %v10040_v59  ;;  %v3163_v41 = vrot.slane %v10455_v52, 4  ;;  %v3167_v61 = vrot.slane %v10459_v15, 4  ;;  %v3387_v55 = vrot.slane %v10464_v30, 4  ;;  %v12004_v31 = vld [vmem:[#allocation49_spill] sm:$0xff] }
 0x6b9   : > { %5406 = vst.msk [vmem:[%s10166_s8 + $0xe0] sm:$0xf] %vm5349_vm9, %v5341_v13  ;;  %v3311_v36 = vrot.slane %v11995_v49, 4 }
 0x6ba   : > { %5408 = vst.msk [vmem:[%s10166_s8 + $0xe8] sm:$0xf] %vm5349_vm9, %v5343_v33  ;;  %v3744_v22 = vpop.permute.xlu1 %3743  ;;  %v11996_v33 = vld [vmem:[#allocation26_spill] sm:$0xff] }
 0x6bb   : > { %5410 = vst.msk [vmem:[%s10166_s8 + $0xf0] sm:$0xf] %vm5349_vm9, %v5345_v42  ;;  %v11997_v42 = vld [vmem:[#allocation24_spill] sm:$0xff] }
 0x6bc   : > { %v3746_v29 = vpop.permute.xlu0 %3745 }
 0x6be   : > { %3973 = vxpose.xlu1.b32.start [1/2] (short) (narrow) %v10022_v11, 32  ;;  %v3748_v53 = vpop.permute.xlu2 %3747  ;;  %v11982_v11 = vld [vmem:[#allocation25_spill] sm:$0xff] }
 0x6c2   : > { %v2676_v23 = vpop.trf.xlu1 }
 0x6c3   : > { %v2861_v58 = vrot.slane %v2676_v23, 4  ;;  %v2864_v32 = vsel %vm2725_vm8, %v2676_v23, %v2863_v38 }
 0x6c4   : > { %v2872_v13 = vperm.slane %v2864_v32, %v9750_v54  ;;  %v3547_v32 = vrot.slane %v12004_v31, 4 }
 0x6c5   : > { %v2862_v17 = vsel %vm2725_vm8, %v2861_v58, %v10000_v48  ;;  %v3383_v48 = vrot.slane %v10481_v37, 4  ;;  %v12002_v58 = vld [vmem:[#allocation46_spill] sm:$0xff] }
 0x6c6   : > { %3974 = vxpose.xlu1.b32.end [2/2] (short) (narrow) %v10030_v43, 32  ;;  %v11983_v43 = vld [vmem:[#allocation29_spill] sm:$0xff]  ;;  %v3323_v39 = vrot.slane %v12002_v58, 4 }
 0x6ca   : > { %4037 = vxpose.xlu2.b32.start [1/2] (short) (narrow) %v3746_v29, 32  ;;  %v2677_v34 = vpop.trf.xlu1  ;;  %v10502_v29 = vperm.slane %v11997_v42, %v10040_v59 }
 0x6cb   : > { %v3085_v26 = vrot.slane %v2677_v34, 4 }
 0x6cc   : > { %4005 = vxpose.xlu0.b32.start [1/2] (short) (narrow) %v10036_v10, 32  ;;  %v10429_v10 = vperm.slane %v9879_v12, %v10040_v59  ;;  %v10451_v12 = vperm.slane %v9916_v56, %v10040_v59  ;;  %v11991_v56 = vld [vmem:[#allocation30_spill] sm:$0xff] }
 0x6cd   : > { %v3087_v5 = vrot.slane %v11991_v56, 4  ;;  %v3086_v19 = vsel %vm2725_vm8, %v3085_v26, %v11991_v56  ;;  %v3535_v26 = vrot.slane %v12003_v51, 4 }
 0x6ce   : > { %v2947_v1 = vrot.slane %v10429_v10, 4  ;;  %v3159_v60 = vrot.slane %v10451_v12, 4 }
 0x6cf   : > { %v3088_v6 = vsel %vm2725_vm8, %v2677_v34, %v3087_v5 }
 0x6d2   : > { %4038 = vxpose.xlu2.b32.end [2/2] (short) (narrow) %v3748_v53, 32  ;;  %v2678_v4 = vpop.trf.xlu1  ;;  %v11998_v53 = vld [vmem:[#allocation28_spill] sm:$0xff] }
 0x6d3   : > { %v3309_v47 = vrot.slane %v2678_v4, 4  ;;  %v3312_v56 = vsel %vm2725_vm8, %v2678_v4, %v3311_v36 }
 0x6d4   : > { %4006 = vxpose.xlu0.b32.end [2/2] (short) (narrow) %v3744_v22, 32  ;;  %v2875_v22 = vrot.slane %v11998_v53, 4  ;;  %v10539_v42 = vperm.slane %v3312_v56, %v9750_v54 }
 0x6d5   : > { %v3310_v38 = vsel %vm2725_vm8, %v3309_v47, %v11995_v49 }
 0x6de   : > { %4069 = vxpose.xlu1.b32.start [1/2] (short) (narrow) %v11979_v40, 32  ;;  %v2868_v40 = vperm.slane %v2862_v17, %v9750_v54 }
 0x6e0   : > { %v2911_v17 = vrot.slane %v2868_v40, 4 }
 0x6e6   : > { %4070 = vxpose.xlu1.b32.end [2/2] (short) (narrow) %v11980_v3, 32  ;;  %v11999_v3 = vld [vmem:[#allocation42_spill] sm:$0xff] }
 0x6ea   : > { %4133 = vxpose.xlu2.b32.start [1/2] (short) (narrow) %v11981_v7, 32  ;;  %v10508_v7 = vperm.slane %v11999_v3, %v10040_v59 }
 0x6ec   : > { %4101 = vxpose.xlu0.b32.start [1/2] (short) (narrow) %v11982_v11, 32  ;;  %v12000_v11 = vld [vmem:[#allocation43_spill] sm:$0xff] }
 0x6ed   : > { %v10512_v23 = vperm.slane %v12000_v11, %v10040_v59 }
 0x6f2   : > { %4134 = vxpose.xlu2.b32.end [2/2] (short) (narrow) %v9982_v14, 32  ;;  %v10441_v14 = vperm.slane %v11986_v35, %v10040_v59  ;;  %v10519_v35 = vperm.slane %v3086_v19, %v9750_v54 }
 0x6f4   : > { %4102 = vxpose.xlu0.b32.end [2/2] (short) (narrow) %v11983_v43, 32  ;;  %v2935_v21 = vrot.slane %v10441_v14, 4  ;;  %v12001_v43 = vld [vmem:[#allocation32_spill] sm:$0xff]  ;;  %v3135_v4 = vrot.slane %v10519_v35, 4 }
 0x6f5   : > { %v3099_v34 = vrot.slane %v12001_v43, 4 }
 0x6fe   : > { %4165 = vxpose.xlu1.b32.start [1/2] (short) (narrow) %v11984_v9, 32  ;;  %v10516_v9 = vperm.slane %v3088_v6, %v9750_v54  ;;  %v2679_v6 = vpop.trf.xlu1 }
 0x6ff   : > { %v3533_v11 = vrot.slane %v2679_v6, 4 }
 0x700   : > { %v3147_v36 = vrot.slane %v10516_v9, 4 }
 0x706   : > { %4166 = vxpose.xlu1.b32.end [2/2] (short) (narrow) %v9996_v2, 32  ;;  %v11990_v2 = vld [vmem:[#allocation38_spill] sm:$0xff] }
 0x707   : > { %v10468_v8 = vperm.slane %v11990_v2, %v10040_v59  ;;  %v2923_v2 = vrot.slane %v2872_v13, 4 }
 0x709   : > { %v3395_v24 = vrot.slane %v10468_v8, 4 }
 0x70a   : > { %4229 = vxpose.xlu2.b32.start [1/2] (short) (narrow) %v11994_v45, 32  ;;  %v10532_v45 = vperm.slane %v3310_v38, %v9750_v54 }
 0x70c   : > { %4197 = vxpose.xlu0.b32.start [1/2] (short) (narrow) %v11996_v33, 32 }
 0x70d   : > { %v2708_v18 = vpop.trf.xlu0 }
 0x70e   : > { %v2873_v50 = vrot.slane %v2708_v18, 4  ;;  %v2876_v63 = vsel %vm2725_vm8, %v2708_v18, %v2875_v22  ;;  %v10542_v22 = vld [vmem:[%s7353_s17 + $0x8] sm:$0xff] }
 0x70f   : > { %v2884_v5 = vperm.slane %v2876_v63, %v9750_v54  ;;  %v12006_v63 = vld [vmem:[#allocation47_spill] sm:$0xff] }
 0x710   : > { %v2874_v47 = vsel %vm2725_vm8, %v2873_v50, %v11998_v53  ;;  %v12005_v53 = vld [vmem:[#allocation51_spill] sm:$0xff] }
 0x711   : > { %v2880_v49 = vperm.slane %v2874_v47, %v9750_v54  ;;  %v2921_v19 = vrot.slane %v2884_v5, 4  ;;  %v2924_v33 = vsel %vm2725_vm8, %v2884_v5, %v2923_v2 }
 0x712   : > { %v2932_v3 = vperm.slane %v2924_v33, %v10040_v59  ;;  %4230 = vxpose.xlu2.b32.end [2/2] (short) (narrow) %v12005_v53, 32  ;;  %v3359_v33 = vrot.slane %v10532_v45, 4  ;;  %v3536_v53 = vsel %vm2725_vm8, %v2679_v6, %v3535_v26 }
 0x713   : > { %v2909_v18 = vrot.slane %v2880_v49, 4  ;;  %v2912_v38 = vsel %vm2725_vm8, %v2880_v49, %v2911_v17  ;;  %v2922_v50 = vsel %vm2725_vm8, %v2921_v19, %v2872_v13 }
 0x714   : > { %4198 = vxpose.xlu0.b32.end [2/2] (short) (narrow) %v12006_v63, 32  ;;  %v2920_v2 = vperm.slane %v2912_v38, %v10040_v59  ;;  %v2928_v5 = vperm.slane %v2922_v50, %v10040_v59  ;;  %v2945_v56 = vrot.slane %v2932_v3, 4  ;;  %v2948_v47 = vsel %vm2725_vm8, %v2932_v3, %v2947_v1 }
 0x715   : > { %v2910_v28 = vsel %vm2725_vm8, %v2909_v18, %v2868_v40  ;;  %v3636_v17 = vmul.f32 %v2948_v47, %v10542_v22  ;;  %v2709_v13 = vpop.trf.xlu0 }
 0x716   : > { %v2916_v49 = vperm.slane %v2910_v28, %v10040_v59  ;;  %v2937_v19 = vrot.slane %v2920_v2, 4  ;;  %v2940_v38 = vsel %vm2725_vm8, %v2920_v2, %v2939_v20  ;;  %v2941_v50 = vrot.slane %v2928_v5, 4 }
 0x717   : > { %v2944_v1 = vsel %vm2725_vm8, %v2928_v5, %v2943_v27  ;;  %v2946_v26 = vsel %vm2725_vm8, %v2945_v56, %v10429_v10  ;;  %v3628_v40 = vmul.f32 %v2940_v38, %v10542_v22  ;;  %v5300_v6 = vpack.c.bf16 %v3636_v17, %v3636_v17 }
 0x718   : > { %v2933_v3 = vrot.slane %v2916_v49, 4  ;;  %v2936_v28 = vsel %vm2725_vm8, %v2916_v49, %v2935_v21  ;;  %v2938_v18 = vsel %vm2725_vm8, %v2937_v19, %v10433_v0  ;;  %v2942_v20 = vsel %vm2725_vm8, %v2941_v50, %v10437_v16 }
 0x719   : > { %v3624_v27 = vmul.f32 %v2936_v28, %v10542_v22  ;;  %v3626_v63 = vmul.f32 %v2938_v18, %v10542_v22  ;;  %v3630_v10 = vmul.f32 %v2942_v20, %v10542_v22  ;;  %v3632_v2 = vmul.f32 %v2944_v1, %v10542_v22  ;;  %5365 = vst.msk [vmem:[%s10166_s8 + $0x3c] sm:$0xf] %vm5349_vm9, %v5300_v6 }
 0x71a   : > { %v2934_v21 = vsel %vm2725_vm8, %v2933_v3, %v10441_v14  ;;  %v3634_v0 = vmul.f32 %v2946_v26, %v10542_v22  ;;  %v5292_v5 = vpack.c.bf16 %v3628_v40, %v3628_v40  ;;  %v3097_v56 = vrot.slane %v2709_v13, 4 }
 0x71b   : > { %v3534_v16 = vsel %vm2725_vm8, %v3533_v11, %v12003_v51  ;;  %v3622_v47 = vmul.f32 %v2934_v21, %v10542_v22  ;;  %v5288_v17 = vpack.c.bf16 %v3624_v27, %v3624_v27  ;;  %v5290_v49 = vpack.c.bf16 %v3626_v63, %v3626_v63 }
 0x71c   : > { %v5294_v19 = vpack.c.bf16 %v3630_v10, %v3630_v10  ;;  %v5296_v38 = vpack.c.bf16 %v3632_v2, %v3632_v2  ;;  %5357 = vst.msk [vmem:[%s10166_s8 + $0x1c] sm:$0xf] %vm5349_vm9, %v5292_v5  ;;  %v3098_v14 = vsel %vm2725_vm8, %v3097_v56, %v12001_v43  ;;  %v3100_v50 = vsel %vm2725_vm8, %v2709_v13, %v3099_v34 }
 0x71d   : > { %v3371_v1 = vrot.slane %v10539_v42, 4  ;;  %v5286_v51 = vpack.c.bf16 %v3622_v47, %v3622_v47  ;;  %5353 = vst.msk [vmem:[%s10166_s8 + $0xc] sm:$0xf] %vm5349_vm9, %v5288_v17  ;;  %v3104_v11 = vperm.slane %v3098_v14, %v9750_v54  ;;  %v3108_v26 = vperm.slane %v3100_v50, %v9750_v54  ;;  %v2710_v40 = vpop.trf.xlu0 }
 0x71e   : > { %4261 = vxpose.xlu1.b32.start [1/2] (short) (narrow) %v10417_v62, 32  ;;  %v10601_v6 = vperm.slane %v3536_v53, %v9750_v54  ;;  %v5298_v43 = vpack.c.bf16 %v3634_v0, %v3634_v0  ;;  %5355 = vst.msk [vmem:[%s10166_s8 + $0x14] sm:$0xf] %vm5349_vm9, %v5290_v49  ;;  %v3321_v34 = vrot.slane %v2710_v40, 4  ;;  %v3324_v13 = vsel %vm2725_vm8, %v2710_v40, %v3323_v39 }
 0x71f   : > { %5351 = vst.msk [vmem:[%s10166_s8 + $0x4] sm:$0xf] %vm5349_vm9, %v5286_v51  ;;  %v3133_v3 = vrot.slane %v3104_v11, 4  ;;  %v3136_v62 = vsel %vm2725_vm8, %v3104_v11, %v3135_v4  ;;  %v3145_v28 = vrot.slane %v3108_v26, 4  ;;  %v3148_v53 = vsel %vm2725_vm8, %v3108_v26, %v3147_v36 }
 0x720   : > { %v10617_v18 = vperm.slane %v3534_v16, %v9750_v54  ;;  %5359 = vst.msk [vmem:[%s10166_s8 + $0x24] sm:$0xf] %vm5349_vm9, %v5294_v19  ;;  %v3144_v39 = vperm.slane %v3136_v62, %v10040_v59  ;;  %v3156_v20 = vperm.slane %v3148_v53, %v10040_v59  ;;  %v3322_v27 = vsel %vm2725_vm8, %v3321_v34, %v12002_v58 }
 0x721   : > { %5361 = vst.msk [vmem:[%s10166_s8 + $0x2c] sm:$0xf] %vm5349_vm9, %v5296_v38  ;;  %v3134_v4 = vsel %vm2725_vm8, %v3133_v3, %v10519_v35  ;;  %v3146_v36 = vsel %vm2725_vm8, %v3145_v28, %v10516_v9  ;;  %v3328_v63 = vperm.slane %v3322_v27, %v9750_v54  ;;  %v3332_v10 = vperm.slane %v3324_v13, %v9750_v54 }
 0x722   : > { %5363 = vst.msk [vmem:[%s10166_s8 + $0x34] sm:$0xf] %vm5349_vm9, %v5298_v43  ;;  %v3140_v2 = vperm.slane %v3134_v4, %v10040_v59  ;;  %v3152_v21 = vperm.slane %v3146_v36, %v10040_v59  ;;  %v3161_v0 = vrot.slane %v3144_v39, 4  ;;  %v3164_v58 = vsel %vm2725_vm8, %v3144_v39, %v3163_v41 }
 0x723   : > { %v3169_v5 = vrot.slane %v3156_v20, 4  ;;  %v3172_v9 = vsel %vm2725_vm8, %v3156_v20, %v3171_v25  ;;  %v3644_v35 = vmul.f32 %v3164_v58, %v10542_v22  ;;  %v3357_v56 = vrot.slane %v3328_v63, 4 }
 0x724   : > { %v3157_v16 = vrot.slane %v3140_v2, 4  ;;  %v3160_v47 = vsel %vm2725_vm8, %v3140_v2, %v3159_v60  ;;  %v3162_v17 = vsel %vm2725_vm8, %v3161_v0, %v10455_v52  ;;  %v3165_v49 = vrot.slane %v3152_v21, 4  ;;  %v10659_v60 = vpop.trf.xlu2 }
 0x725   : > { %v3168_v41 = vsel %vm2725_vm8, %v3152_v21, %v3167_v61  ;;  %v3170_v19 = vsel %vm2725_vm8, %v3169_v5, %v10445_v44  ;;  %v3640_v25 = vmul.f32 %v3160_v47, %v10542_v22  ;;  %v3642_v38 = vmul.f32 %v3162_v17, %v10542_v22  ;;  %v10657_v14 = vpop.trf.xlu0 }
 0x726   : > { %4262 = vxpose.xlu1.b32.end [2/2] (short) (narrow) %v10414_v46, 32  ;;  %v3158_v52 = vsel %vm2725_vm8, %v3157_v16, %v10451_v12  ;;  %v3166_v61 = vsel %vm2725_vm8, %v3165_v49, %v10459_v15  ;;  %v3648_v44 = vmul.f32 %v3168_v41, %v10542_v22  ;;  %v3650_v50 = vmul.f32 %v3170_v19, %v10542_v22 }
 0x727   : > { %v3638_v51 = vmul.f32 %v3158_v52, %v10542_v22  ;;  %v3646_v46 = vmul.f32 %v3166_v61, %v10542_v22  ;;  %v3652_v11 = vmul.f32 %v3172_v9, %v10542_v22  ;;  %v5304_v26 = vpack.c.bf16 %v3640_v25, %v3640_v25 }
 0x728   : > { %v5306_v40 = vpack.c.bf16 %v3642_v38, %v3642_v38  ;;  %v5308_v43 = vpack.c.bf16 %v3644_v35, %v3644_v35  ;;  %v5312_v34 = vpack.c.bf16 %v3648_v44, %v3648_v44  ;;  %v5314_v12 = vpack.c.bf16 %v3650_v50, %v3650_v50 }
 0x729   : > { %v5302_v13 = vpack.c.bf16 %v3638_v51, %v3638_v51  ;;  %v5310_v15 = vpack.c.bf16 %v3646_v46, %v3646_v46  ;;  %v5316_v3 = vpack.c.bf16 %v3652_v11, %v3652_v11  ;;  %5369 = vst.msk [vmem:[%s10166_s8 + $0x4c] sm:$0xf] %vm5349_vm9, %v5304_v26  ;;  %v3358_v62 = vsel %vm2725_vm8, %v3357_v56, %v10532_v45  ;;  %v12009_v51 = vld [vmem:[#allocation44_spill] sm:$0xff] }
 0x72a   : > { %5371 = vst.msk [vmem:[%s10166_s8 + $0x54] sm:$0xf] %vm5349_vm9, %v5306_v40  ;;  %v3360_v28 = vsel %vm2725_vm8, %v3328_v63, %v3359_v33  ;;  %v3364_v53 = vperm.slane %v3358_v62, %v10040_v59  ;;  %v3369_v39 = vrot.slane %v3332_v10, 4  ;;  %v3372_v20 = vsel %vm2725_vm8, %v3332_v10, %v3371_v1  ;;  %v12007_v33 = vld [vmem:[#allocation52_spill] sm:$0xff] }
 0x72b   : > { %5367 = vst.msk [vmem:[%s10166_s8 + $0x44] sm:$0xf] %vm5349_vm9, %v5302_v13  ;;  %v3368_v27 = vperm.slane %v3360_v28, %v10040_v59  ;;  %v3380_v4 = vperm.slane %v3372_v20, %v10040_v59  ;;  %v3545_v36 = vrot.slane %v10657_v14, 4  ;;  %v3548_v45 = vsel %vm2725_vm8, %v10657_v14, %v3547_v32  ;;  %v3780_v14 = vpop.permute.xlu1 %3779 }
 0x72c   : > { %4293 = vxpose.xlu0.b32.start [1/2] (short) (narrow) %v12007_v33, 32  ;;  %5373 = vst.msk [vmem:[%s10166_s8 + $0x5c] sm:$0xf] %vm5349_vm9, %v5308_v43  ;;  %v3370_v1 = vsel %vm2725_vm8, %v3369_v39, %v10539_v42  ;;  %v3381_v63 = vrot.slane %v3364_v53, 4  ;;  %v3384_v10 = vsel %vm2725_vm8, %v3364_v53, %v3383_v48  ;;  %v3556_v2 = vperm.slane %v3548_v45, %v9750_v54  ;;  %v10709_v5 = vpop.trf.xlu2 }
 0x72d   : > { %5375 = vst.msk [vmem:[%s10166_s8 + $0x64] sm:$0xf] %vm5349_vm9, %v5310_v15  ;;  %v3376_v21 = vperm.slane %v3370_v1, %v10040_v59  ;;  %v3385_v32 = vrot.slane %v3368_v27, 4  ;;  %v3388_v0 = vsel %vm2725_vm8, %v3368_v27, %v3387_v55  ;;  %v3393_v58 = vrot.slane %v3380_v4, 4 }
 0x72e   : > { %v10707_v42 = vpop.trf.xlu0  ;;  %5377 = vst.msk [vmem:[%s10166_s8 + $0x6c] sm:$0xf] %vm5349_vm9, %v5312_v34  ;;  %v3382_v48 = vsel %vm2725_vm8, %v3381_v63, %v10481_v37  ;;  %v3396_v9 = vsel %vm2725_vm8, %v3380_v4, %v3395_v24  ;;  %v3656_v35 = vmul.f32 %v3384_v10, %v10542_v22  ;;  %v3660_v56 = vmul.f32 %v3388_v0, %v10542_v22 }
 0x72f   : > { %5379 = vst.msk [vmem:[%s10166_s8 + $0x74] sm:$0xf] %vm5349_vm9, %v5314_v12  ;;  %v3386_v55 = vsel %vm2725_vm8, %v3385_v32, %v10464_v30  ;;  %v3389_v16 = vrot.slane %v3376_v21, 4  ;;  %v12008_v47 = vrot.slane %v10475_v57, 4  ;;  %v3394_v37 = vsel %vm2725_vm8, %v3393_v58, %v10468_v8 }
 0x730   : > { %v3595_v49 = vrot.slane %v10601_v6, 4  ;;  %5381 = vst.msk [vmem:[%s10166_s8 + $0x7c] sm:$0xf] %vm5349_vm9, %v5316_v3  ;;  %v3654_v24 = vmul.f32 %v3382_v48, %v10542_v22  ;;  %v3658_v41 = vmul.f32 %v3386_v55, %v10542_v22  ;;  %v3666_v25 = vmul.f32 %v3394_v37, %v10542_v22 }
 0x731   : > { %v3392_v17 = vsel %vm2725_vm8, %v3376_v21, %v12008_v47  ;;  %v3390_v30 = vsel %vm2725_vm8, %v3389_v16, %v10475_v57  ;;  %v3668_v38 = vmul.f32 %v3396_v9, %v10542_v22  ;;  %v5320_v8 = vpack.c.bf16 %v3656_v35, %v3656_v35 }
 0x732   : > { %v3664_v19 = vmul.f32 %v3392_v17, %v10542_v22  ;;  %v3662_v52 = vmul.f32 %v3390_v30, %v10542_v22  ;;  %v5318_v61 = vpack.c.bf16 %v3654_v24, %v3654_v24  ;;  %v5322_v44 = vpack.c.bf16 %v3658_v41, %v3658_v41 }
 0x733   : > { %v5324_v50 = vpack.c.bf16 %v3660_v56, %v3660_v56  ;;  %v3564_v46 = vperm.slane %v12009_v51, %v10040_v59  ;;  %v3583_v11 = vrot.slane %v10617_v18, 4  ;;  %5385 = vst.msk [vmem:[%s10166_s8 + $0x8c] sm:$0xf] %vm5349_vm9, %v5320_v8  ;;  %v3546_v57 = vsel %vm2725_vm8, %v3545_v36, %v12004_v31 }
 0x734   : > { %v3593_v26 = vrot.slane %v3556_v2, 4  ;;  %4294 = vxpose.xlu0.b32.end [2/2] (short) (narrow) %v3780_v14, 32  ;;  %v5326_v40 = vpack.c.bf16 %v3662_v52, %v3662_v52  ;;  %v5328_v43 = vpack.c.bf16 %v3664_v19, %v3664_v19  ;;  %5383 = vst.msk [vmem:[%s10166_s8 + $0x84] sm:$0xf] %vm5349_vm9, %v5318_v61  ;;  %v3552_v34 = vperm.slane %v3546_v57, %v9750_v54  ;;  %v10759_v28 = vpop.trf.xlu2 }
 0x735   : > { %v3596_v12 = vsel %vm2725_vm8, %v3556_v2, %v3595_v49  ;;  %v3615_v13 = vrot.slane %v10512_v23, 4  ;;  %v5330_v15 = vpack.c.bf16 %v3666_v25, %v3666_v25  ;;  %5387 = vst.msk [vmem:[%s10166_s8 + $0x94] sm:$0xf] %vm5349_vm9, %v5322_v44  ;;  %v5332_v53 = vpack.c.bf16 %v3668_v38, %v3668_v38 }
 0x736   : > { %v3594_v31 = vsel %vm2725_vm8, %v3593_v26, %v10601_v6  ;;  %v3604_v3 = vperm.slane %v3596_v12, %v10040_v59  ;;  %v10757_v62 = vpop.trf.xlu0  ;;  %5389 = vst.msk [vmem:[%s10166_s8 + $0x9c] sm:$0xf] %vm5349_vm9, %v5324_v50  ;;  %v3581_v39 = vrot.slane %v3552_v34, 4  ;;  %v3584_v20 = vsel %vm2725_vm8, %v3552_v34, %v3583_v11 }
 0x737   : > { %v3600_v27 = vperm.slane %v3594_v31, %v10040_v59  ;;  %v3611_v4 = vrot.slane %v10508_v7, 4  ;;  %v3619_v6 = vrot.slane %v10502_v29, 4  ;;  %5391 = vst.msk [vmem:[%s10166_s8 + $0xa4] sm:$0xf] %vm5349_vm9, %v5326_v40  ;;  %v3592_v36 = vperm.slane %v3584_v20, %v10040_v59 }
 0x738   : > { %v3617_v45 = vrot.slane %v3604_v3, 4  ;;  %v3607_v33 = vrot.slane %v3564_v46, 4  ;;  %5393 = vst.msk [vmem:[%s10166_s8 + $0xac] sm:$0xf] %vm5349_vm9, %v5328_v43  ;;  %v3582_v1 = vsel %vm2725_vm8, %v3581_v39, %v10617_v18  ;;  %v4327_v51 = vrot.slane %v10707_v42, 4 }
 0x739   : > { %v3613_v63 = vrot.slane %v3600_v27, 4  ;;  %v3616_v10 = vsel %vm2725_vm8, %v3600_v27, %v3615_v13  ;;  %5395 = vst.msk [vmem:[%s10166_s8 + $0xb4] sm:$0xf] %vm5349_vm9, %v5330_v15  ;;  %v3588_v2 = vperm.slane %v3582_v1, %v10040_v59  ;;  %v3609_v21 = vrot.slane %v3592_v36, 4 }
 0x73a   : > { %v3612_v32 = vsel %vm2725_vm8, %v3592_v36, %v3611_v4  ;;  %v3618_v0 = vsel %vm2725_vm8, %v3617_v45, %v10502_v29  ;;  %5397 = vst.msk [vmem:[%s10166_s8 + $0xbc] sm:$0xf] %vm5349_vm9, %v5332_v53  ;;  %v3620_v18 = vsel %vm2725_vm8, %v3604_v3, %v3619_v6  ;;  %v3680_v9 = vmul.f32 %v3616_v10, %v10542_v22 }
 0x73b   : > { %v3614_v58 = vsel %vm2725_vm8, %v3613_v63, %v10512_v23  ;;  %v3676_v48 = vmul.f32 %v3612_v32, %v10542_v22  ;;  %v3605_v35 = vrot.slane %v3588_v2, 4  ;;  %v3608_v56 = vsel %vm2725_vm8, %v3588_v2, %v3607_v33 }
 0x73c   : > { %v3610_v55 = vsel %vm2725_vm8, %v3609_v21, %v10508_v7  ;;  %v3678_v29 = vmul.f32 %v3614_v58, %v10542_v22  ;;  %v3672_v16 = vmul.f32 %v3608_v56, %v10542_v22  ;;  %v3682_v47 = vmul.f32 %v3618_v0, %v10542_v22  ;;  %v10799_v41 = vpop.trf.xlu2 }
 0x73d   : > { %v3674_v23 = vmul.f32 %v3610_v55, %v10542_v22  ;;  %v5340_v17 = vpack.c.bf16 %v3676_v48, %v3676_v48  ;;  %v3606_v37 = vsel %vm2725_vm8, %v3605_v35, %v3564_v46  ;;  %v3684_v49 = vmul.f32 %v3620_v18, %v10542_v22 }
 0x73e   : > { %v5342_v24 = vpack.c.bf16 %v3678_v29, %v3678_v29  ;;  %v10797_v7 = vpop.trf.xlu0  ;;  %v3670_v19 = vmul.f32 %v3606_v37, %v10542_v22  ;;  %v5336_v30 = vpack.c.bf16 %v3672_v16, %v3672_v16  ;;  %v5344_v38 = vpack.c.bf16 %v3680_v9, %v3680_v9 }
 0x73f   : > { %v5338_v25 = vpack.c.bf16 %v3674_v23, %v3674_v23  ;;  %5405 = vst.msk [vmem:[%s10166_s8 + $0xdc] sm:$0xf] %vm5349_vm9, %v5340_v17  ;;  %v5346_v14 = vpack.c.bf16 %v3682_v47, %v3682_v47  ;;  %v5348_v61 = vpack.c.bf16 %v3684_v49, %v3684_v49  ;;  %v4339_v26 = vrot.slane %v10659_v60, 4 }
 0x740   : > { %5407 = vst.msk [vmem:[%s10166_s8 + $0xe4] sm:$0xf] %vm5349_vm9, %v5342_v24  ;;  %v5334_v8 = vpack.c.bf16 %v3670_v19, %v3670_v19  ;;  %v4551_v53 = vrot.slane %v10757_v62, 4  ;;  %v4563_v1 = vrot.slane %v10709_v5, 4  ;;  %v4775_v18 = vrot.slane %v10797_v7, 4 }
 0x741   : > { %5401 = vst.msk [vmem:[%s10166_s8 + $0xcc] sm:$0xf] %vm5349_vm9, %v5336_v30  ;;  %v4787_v17 = vrot.slane %v10759_v28, 4 }
 0x742   : > { %v3893_v52 = vpop.trf.xlu1  ;;  %5403 = vst.msk [vmem:[%s10166_s8 + $0xd4] sm:$0xf] %vm5349_vm9, %v5338_v25 }
 0x743   : > { %5399 = vst.msk [vmem:[%s10166_s8 + $0xc4] sm:$0xf] %vm5349_vm9, %v5334_v8  ;;  %v4325_v50 = vrot.slane %v3893_v52, 4  ;;  %v4328_v11 = vsel %vm2725_vm8, %v3893_v52, %v4327_v51 }
 0x744   : > { %5409 = vst.msk [vmem:[%s10166_s8 + $0xec] sm:$0xf] %vm5349_vm9, %v5344_v38  ;;  %v10820_v44 = vpop.trf.xlu2  ;;  %v4336_v40 = vperm.slane %v4328_v11, %v9750_v54 }
 0x745   : > { %5411 = vst.msk [vmem:[%s10166_s8 + $0xf4] sm:$0xf] %vm5349_vm9, %v5346_v14  ;;  %v4326_v57 = vsel %vm2725_vm8, %v4325_v50, %v10707_v42 }
 0x746   : > { %5413 = vst.msk [vmem:[%s10166_s8 + $0xfc] sm:$0xf] %vm5349_vm9, %v5348_v61  ;;  %v10818_v22 = vpop.trf.xlu0  ;;  %v4332_v34 = vperm.slane %v4326_v57, %v9750_v54  ;;  %v4387_v39 = vrot.slane %v4336_v40, 4 }
 0x747   : > { %v4999_v14 = vrot.slane %v10818_v22, 4 }
 0x748   : > { %v4375_v42 = vrot.slane %v4332_v34, 4 }
 0x74a   : > { %v3894_v46 = vpop.trf.xlu1 }
 0x74b   : > { %v4549_v13 = vrot.slane %v3894_v46, 4  ;;  %v4552_v4 = vsel %vm2725_vm8, %v3894_v46, %v4551_v53 }
 0x74c   : > { %v10828_v43 = vpop.trf.xlu2 }
 0x74d   : > { %v4550_v33 = vsel %vm2725_vm8, %v4549_v13, %v10757_v62 }
 0x74e   : > { %v4556_v32 = vperm.slane %v4550_v33, %v9750_v54  ;;  %v4351_v33 = vrot.slane %v10820_v44, 4 }
 0x750   : > { %v3925_v12 = vpop.trf.xlu0  ;;  %v4599_v23 = vrot.slane %v4556_v32, 4 }
 0x751   : > { %v4337_v15 = vrot.slane %v3925_v12, 4  ;;  %v4340_v31 = vsel %vm2725_vm8, %v3925_v12, %v4339_v26 }
 0x752   : > { %v3895_v3 = vpop.trf.xlu1  ;;  %v4348_v20 = vperm.slane %v4340_v31, %v9750_v54 }
 0x753   : > { %v4338_v27 = vsel %vm2725_vm8, %v4337_v15, %v10659_v60  ;;  %v4560_v60 = vperm.slane %v4552_v4, %v9750_v54  ;;  %v4773_v48 = vrot.slane %v3895_v3, 4  ;;  %v4776_v55 = vsel %vm2725_vm8, %v3895_v3, %v4775_v18 }
 0x754   : > { %v4344_v6 = vperm.slane %v4338_v27, %v9750_v54  ;;  %v4385_v36 = vrot.slane %v4348_v20, 4  ;;  %v4388_v45 = vsel %vm2725_vm8, %v4348_v20, %v4387_v39  ;;  %v10844_v21 = vpop.trf.xlu2  ;;  %v4784_v19 = vperm.slane %v4776_v55, %v9750_v54 }
 0x755   : > { %v4611_v56 = vrot.slane %v4560_v60, 4  ;;  %v4774_v37 = vsel %vm2725_vm8, %v4773_v48, %v10797_v7  ;;  %v10870_v11 = vperm.slane %v4388_v45, %v10040_v59  ;;  %v5011_v20 = vrot.slane %v10799_v41, 4 }
 0x756   : > { %v4373_v63 = vrot.slane %v4344_v6, 4  ;;  %v4376_v10 = vsel %vm2725_vm8, %v4344_v6, %v4375_v42  ;;  %v4386_v2 = vsel %vm2725_vm8, %v4385_v36, %v4336_v40  ;;  %v4780_v52 = vperm.slane %v4774_v37, %v9750_v54 }
 0x757   : > { %v4835_v57 = vrot.slane %v4784_v19, 4  ;;  %v10878_v12 = vperm.slane %v4386_v2, %v10040_v59 }
 0x758   : > { %v4374_v0 = vsel %vm2725_vm8, %v4373_v63, %v4332_v34  ;;  %v3926_v58 = vpop.trf.xlu0  ;;  %v10875_v34 = vperm.slane %v4376_v10, %v10040_v59  ;;  %v4823_v31 = vrot.slane %v4780_v52, 4  ;;  %v4575_v63 = vrot.slane %v10828_v43, 4 }
 0x759   : > { %v4561_v62 = vrot.slane %v3926_v58, 4  ;;  %v4564_v35 = vsel %vm2725_vm8, %v3926_v58, %v4563_v1  ;;  %v10888_v42 = vperm.slane %v4374_v0, %v10040_v59  ;;  %v4435_v1 = vrot.slane %v10870_v11, 4 }
 0x75a   : > { %v3896_v9 = vpop.trf.xlu1  ;;  %v4572_v16 = vperm.slane %v4564_v35, %v9750_v54  ;;  %v4427_v2 = vrot.slane %v10875_v34, 4 }
 0x75b   : > { %v4562_v29 = vsel %vm2725_vm8, %v4561_v62, %v10709_v5  ;;  %v4997_v8 = vrot.slane %v3896_v9, 4  ;;  %v5000_v26 = vsel %vm2725_vm8, %v3896_v9, %v4999_v14  ;;  %v4423_v18 = vrot.slane %v10888_v42, 4 }
 0x75c   : > { %v4568_v47 = vperm.slane %v4562_v29, %v9750_v54  ;;  %v4609_v49 = vrot.slane %v4572_v16, 4  ;;  %v4612_v24 = vsel %vm2725_vm8, %v4572_v16, %v4611_v56  ;;  %v10862_v38 = vpop.trf.xlu2  ;;  %v5008_v27 = vperm.slane %v5000_v26, %v9750_v54 }
 0x75d   : > { %v4998_v13 = vsel %vm2725_vm8, %v4997_v8, %v10818_v22  ;;  %v10903_v48 = vperm.slane %v4612_v24, %v10040_v59  ;;  %v5023_v24 = vrot.slane %v10862_v38, 4 }
 0x75e   : > { %v4597_v30 = vrot.slane %v4568_v47, 4  ;;  %v4600_v25 = vsel %vm2725_vm8, %v4568_v47, %v4599_v23  ;;  %v4610_v5 = vsel %vm2725_vm8, %v4609_v49, %v4560_v60  ;;  %v5004_v6 = vperm.slane %v4998_v13, %v9750_v54 }
 0x75f   : > { %v4431_v60 = vrot.slane %v10878_v12, 4  ;;  %v10907_v56 = vperm.slane %v4600_v25, %v10040_v59  ;;  %v5059_v29 = vrot.slane %v5008_v27, 4  ;;  %v10915_v49 = vperm.slane %v4610_v5, %v10040_v59 }
 0x760   : > { %v4598_v61 = vsel %vm2725_vm8, %v4597_v30, %v4556_v32  ;;  %v3927_v7 = vpop.trf.xlu0  ;;  %v4799_v32 = vrot.slane %v10844_v21, 4  ;;  %v5047_v55 = vrot.slane %v5004_v6, 4  ;;  %v4659_v8 = vrot.slane %v10903_v48, 4 }
 0x761   : > { %v4785_v50 = vrot.slane %v3927_v7, 4  ;;  %v4788_v51 = vsel %vm2725_vm8, %v3927_v7, %v4787_v17  ;;  %v10921_v25 = vperm.slane %v4598_v61, %v10040_v59  ;;  %v4655_v13 = vrot.slane %v10915_v49, 4 }
 0x762   : > { %v3989_v46 = vpop.trf.xlu1  ;;  %v4796_v40 = vperm.slane %v4788_v51, %v9750_v54 }
 0x763   : > { %v4786_v15 = vsel %vm2725_vm8, %v4785_v50, %v10759_v28  ;;  %v4363_v4 = vrot.slane %v3989_v46, 4 }
 0x764   : > { %v4792_v3 = vperm.slane %v4786_v15, %v9750_v54  ;;  %v4833_v53 = vrot.slane %v4796_v40, 4  ;;  %v4836_v39 = vsel %vm2725_vm8, %v4796_v40, %v4835_v57  ;;  %v4053_v45 = vpop.trf.xlu2  ;;  %v4651_v40 = vrot.slane %v10907_v56, 4 }
 0x765   : > { %v4361_v10 = vrot.slane %v4053_v45, 4  ;;  %v4364_v35 = vsel %vm2725_vm8, %v4053_v45, %v4363_v4 }
 0x766   : > { %v4821_v22 = vrot.slane %v4792_v3, 4  ;;  %v4824_v36 = vsel %vm2725_vm8, %v4792_v3, %v4823_v31  ;;  %v4834_v28 = vsel %vm2725_vm8, %v4833_v53, %v4784_v19  ;;  %v4372_v30 = vperm.slane %v4364_v35, %v9750_v54 }
 0x767   : > { %v4362_v37 = vsel %vm2725_vm8, %v4361_v10, %v3989_v46  ;;  %v10935_v46 = vperm.slane %v4824_v36, %v10040_v59  ;;  %v4647_v10 = vrot.slane %v10921_v25, 4 }
 0x768   : > { %v4822_v0 = vsel %vm2725_vm8, %v4821_v22, %v4780_v52  ;;  %v3928_v58 = vpop.trf.xlu0  ;;  %v10928_v52 = vperm.slane %v4836_v39, %v10040_v59  ;;  %v4368_v50 = vperm.slane %v4362_v37, %v9750_v54  ;;  %v4409_v31 = vrot.slane %v4372_v30, 4 }
 0x769   : > { %v5009_v62 = vrot.slane %v3928_v58, 4  ;;  %v5012_v16 = vsel %vm2725_vm8, %v3928_v58, %v5011_v20  ;;  %v10947_v53 = vperm.slane %v4822_v0, %v10040_v59  ;;  %v10950_v39 = vperm.slane %v4834_v28, %v10040_v59 }
 0x76a   : > { %v3990_v9 = vpop.trf.xlu1  ;;  %v5020_v47 = vperm.slane %v5012_v16, %v9750_v54  ;;  %v4397_v22 = vrot.slane %v4368_v50, 4  ;;  %v4875_v0 = vrot.slane %v10935_v46, 4  ;;  %v4883_v28 = vrot.slane %v10928_v52, 4 }
 0x76b   : > { %v5010_v23 = vsel %vm2725_vm8, %v5009_v62, %v10799_v41  ;;  %v4587_v17 = vrot.slane %v3990_v9, 4 }
 0x76c   : > { %v5016_v19 = vperm.slane %v5010_v23, %v9750_v54  ;;  %v5057_v41 = vrot.slane %v5020_v47, 4  ;;  %v10925_v14 = vsel %vm2725_vm8, %v5020_v47, %v5059_v29  ;;  %v4054_v51 = vpop.trf.xlu2  ;;  %v4879_v29 = vrot.slane %v10950_v39, 4 }
 0x76d   : > { %v4585_v57 = vrot.slane %v4054_v51, 4  ;;  %v4588_v26 = vsel %vm2725_vm8, %v4054_v51, %v4587_v17 }
 0x76e   : > { %v5045_v5 = vrot.slane %v5016_v19, 4  ;;  %v10931_v7 = vsel %vm2725_vm8, %v5016_v19, %v5047_v55  ;;  %v10938_v61 = vsel %vm2725_vm8, %v5057_v41, %v5008_v27  ;;  %v4871_v55 = vrot.slane %v10947_v53, 4 }
 0x76f   : > { %v4586_v45 = vsel %vm2725_vm8, %v4585_v57, %v3990_v9 }
 0x770   : > { %v10944_v15 = vsel %vm2725_vm8, %v5045_v5, %v5004_v6  ;;  %v4021_v3 = vpop.trf.xlu0  ;;  %v10958_v6 = vperm.slane %v4588_v26, %v9750_v54  ;;  %v10968_v9 = vperm.slane %v4586_v45, %v9750_v54 }
 0x771   : > { %v4349_v20 = vrot.slane %v4021_v3, 4  ;;  %v4352_v27 = vsel %vm2725_vm8, %v4021_v3, %v4351_v33 }
 0x772   : > { %v10953_v4 = vpop.trf.xlu1  ;;  %v4360_v36 = vperm.slane %v4352_v27, %v9750_v54  ;;  %v4633_v37 = vrot.slane %v10958_v6, 4 }
 0x773   : > { %v4350_v58 = vsel %vm2725_vm8, %v4349_v20, %v10820_v44  ;;  %v4811_v23 = vrot.slane %v10953_v4, 4 }
 0x774   : > { %v4356_v33 = vperm.slane %v4350_v58, %v9750_v54  ;;  %v4410_v62 = vsel %vm2725_vm8, %v4409_v31, %v4360_v36  ;;  %v4411_v35 = vrot.slane %v4360_v36, 4  ;;  %v4055_v19 = vpop.trf.xlu2  ;;  %v10984_v31 = vld [vmem:[%s7353_s17] sm:$0xff] }
 0x775   : > { %v4416_v16 = vperm.slane %v4410_v62, %v10040_v59  ;;  %v4809_v27 = vrot.slane %v4055_v19, 4 }
 0x776   : > { %v4398_v47 = vsel %vm2725_vm8, %v4397_v22, %v4356_v33  ;;  %v4399_v44 = vrot.slane %v4356_v33, 4  ;;  %v4412_v17 = vsel %vm2725_vm8, %v4372_v30, %v4411_v35  ;;  %v4621_v30 = vrot.slane %v10968_v9, 4 }
 0x777   : > { %v4404_v41 = vperm.slane %v4398_v47, %v10040_v59  ;;  %v4420_v5 = vperm.slane %v4412_v17, %v10040_v59  ;;  %v4429_v51 = vrot.slane %v4416_v16, 4  ;;  %v4432_v57 = vsel %vm2725_vm8, %v4416_v16, %v4431_v60 }
 0x778   : > { %v4400_v26 = vsel %vm2725_vm8, %v4368_v50, %v4399_v44  ;;  %v5231_v3 = vmul.f32 %v10984_v31, %v4432_v57  ;;  %v4022_v20 = vpop.trf.xlu0 }
 0x779   : > { %v4408_v22 = vperm.slane %v4400_v26, %v10040_v59  ;;  %v4421_v36 = vrot.slane %v4404_v41, 4  ;;  %v4424_v45 = vsel %vm2725_vm8, %v4404_v41, %v4423_v18  ;;  %v4430_v60 = vsel %vm2725_vm8, %v4429_v51, %v10878_v12 }
 0x77a   : > { %v10994_v50 = vpop.trf.xlu1  ;;  %v4433_v58 = vrot.slane %v4420_v5, 4  ;;  %v4436_v33 = vsel %vm2725_vm8, %v4420_v5, %v4435_v1  ;;  %v5223_v62 = vmul.f32 %v10984_v31, %v4424_v45  ;;  %v5229_v35 = vmul.f32 %v10984_v31, %v4430_v60 }
 0x77b   : > { %v4422_v16 = vsel %vm2725_vm8, %v4421_v36, %v10888_v42  ;;  %v4425_v47 = vrot.slane %v4408_v22, 4  ;;  %v4428_v18 = vsel %vm2725_vm8, %v4408_v22, %v4427_v2  ;;  %v5235_v12 = vmul.f32 %v10984_v31, %v4436_v33 }
 0x77c   : > { %v4434_v44 = vsel %vm2725_vm8, %v4433_v58, %v10870_v11  ;;  %v5221_v17 = vmul.f32 %v10984_v31, %v4422_v16  ;;  %v5227_v1 = vmul.f32 %v10984_v31, %v4428_v18  ;;  %v5416_v41 = vpack.c.bf16 %v5223_v62, %v5223_v62 }
 0x77d   : > { %v4426_v42 = vsel %vm2725_vm8, %v4425_v47, %v10875_v34  ;;  %v5233_v2 = vmul.f32 %v10984_v31, %v4434_v44  ;;  %v5422_v11 = vpack.c.bf16 %v5229_v35, %v5229_v35  ;;  %v4812_v5 = vsel %vm2725_vm8, %v4055_v19, %v4811_v23 }
 0x77e   : > { %v5225_v51 = vmul.f32 %v10984_v31, %v4426_v42  ;;  %v5414_v57 = vpack.c.bf16 %v5221_v17, %v5221_v17  ;;  %v5420_v26 = vpack.c.bf16 %v5227_v1, %v5227_v1  ;;  %v5424_v22 = vpack.c.bf16 %v5231_v3, %v5231_v3  ;;  %5480 = vst.msk [vmem:[%s11016_s11 + $0x8] sm:$0xf] %vm5349_vm9, %v5416_v41 }
 0x77f   : > { %v5426_v36 = vpack.c.bf16 %v5233_v2, %v5233_v2  ;;  %v5428_v45 = vpack.c.bf16 %v5235_v12, %v5235_v12  ;;  %5486 = vst.msk [vmem:[%s11016_s11 + $0x20] sm:$0xf] %vm5349_vm9, %v5422_v11  ;;  %v4573_v60 = vrot.slane %v4022_v20, 4  ;;  %v4576_v34 = vsel %vm2725_vm8, %v4022_v20, %v4575_v63 }
 0x780   : > { %v5418_v58 = vpack.c.bf16 %v5225_v51, %v5225_v51  ;;  %5478 = vst.msk [vmem:[%s11016_s11] sm:$0xf] %vm5349_vm9, %v5414_v57  ;;  %v4584_v23 = vperm.slane %v4576_v34, %v9750_v54  ;;  %v4810_v19 = vsel %vm2725_vm8, %v4809_v27, %v10953_v4  ;;  %v11036_v3 = vperm.slane %v4812_v5, %v9750_v54  ;;  %v4023_v33 = vpop.trf.xlu0 }
 0x781   : > { %5484 = vst.msk [vmem:[%s11016_s11 + $0x18] sm:$0xf] %vm5349_vm9, %v5420_v26  ;;  %v4574_v62 = vsel %vm2725_vm8, %v4573_v60, %v10828_v43  ;;  %v5035_v63 = vrot.slane %v10994_v50, 4  ;;  %v4816_v20 = vperm.slane %v4810_v19, %v9750_v54  ;;  %v4797_v35 = vrot.slane %v4023_v33, 4 }
 0x782   : > { %5482 = vst.msk [vmem:[%s11016_s11 + $0x10] sm:$0xf] %vm5349_vm9, %v5418_v58  ;;  %v4580_v4 = vperm.slane %v4574_v62, %v9750_v54  ;;  %v4634_v27 = vsel %vm2725_vm8, %v4633_v37, %v4584_v23  ;;  %v4635_v16 = vrot.slane %v4584_v23, 4  ;;  %v4800_v47 = vsel %vm2725_vm8, %v4023_v33, %v4799_v32  ;;  %v11057_v17 = vpop.trf.xlu1 }
 0x783   : > { %5488 = vst.msk [vmem:[%s11016_s11 + $0x28] sm:$0xf] %vm5349_vm9, %v5424_v22  ;;  %v4640_v43 = vperm.slane %v4634_v27, %v10040_v59  ;;  %v4845_v18 = vrot.slane %v4816_v20, 4  ;;  %v4857_v12 = vrot.slane %v11036_v3, 4  ;;  %v4798_v44 = vsel %vm2725_vm8, %v4797_v35, %v10844_v21  ;;  %v11103_v27 = vpop.trf.xlu2 }
 0x784   : > { %5490 = vst.msk [vmem:[%s11016_s11 + $0x30] sm:$0xf] %vm5349_vm9, %v5426_v36  ;;  %v4622_v37 = vsel %vm2725_vm8, %v4621_v30, %v4580_v4  ;;  %v4623_v1 = vrot.slane %v4580_v4, 4  ;;  %v4636_v32 = vsel %vm2725_vm8, %v10958_v6, %v4635_v16  ;;  %v4804_v41 = vperm.slane %v4798_v44, %v9750_v54 }
 0x785   : > { %5492 = vst.msk [vmem:[%s11016_s11 + $0x38] sm:$0xf] %vm5349_vm9, %v5428_v45  ;;  %v4628_v42 = vperm.slane %v4622_v37, %v10040_v59  ;;  %v4644_v2 = vperm.slane %v4636_v32, %v10040_v59  ;;  %v4653_v11 = vrot.slane %v4640_v43, 4  ;;  %v4656_v21 = vsel %vm2725_vm8, %v4640_v43, %v4655_v13 }
 0x786   : > { %v4624_v30 = vsel %vm2725_vm8, %v10968_v9, %v4623_v1  ;;  %v5247_v5 = vmul.f32 %v10984_v31, %v4656_v21  ;;  %v4808_v6 = vperm.slane %v4800_v47, %v9750_v54  ;;  %v4846_v51 = vsel %vm2725_vm8, %v4845_v18, %v4804_v41 }
 0x787   : > { %v4632_v57 = vperm.slane %v4624_v30, %v10040_v59  ;;  %v4645_v26 = vrot.slane %v4628_v42, 4  ;;  %v4648_v22 = vsel %vm2725_vm8, %v4628_v42, %v4647_v10  ;;  %v4654_v36 = vsel %vm2725_vm8, %v4653_v11, %v10915_v49 }
 0x788   : > { %v4657_v13 = vrot.slane %v4644_v2, 4  ;;  %v4660_v9 = vsel %vm2725_vm8, %v4644_v2, %v4659_v8  ;;  %v5239_v45 = vmul.f32 %v10984_v31, %v4648_v22  ;;  %v5245_v60 = vmul.f32 %v10984_v31, %v4654_v36  ;;  %v11088_v34 = vpop.trf.xlu0 }
 0x789   : > { %v4646_v58 = vsel %vm2725_vm8, %v4645_v26, %v10921_v25  ;;  %v4649_v23 = vrot.slane %v4632_v57, 4  ;;  %v4652_v49 = vsel %vm2725_vm8, %v4632_v57, %v4651_v40  ;;  %v4847_v10 = vrot.slane %v4804_v41, 4 }
 0x78a   : > { %v4658_v8 = vsel %vm2725_vm8, %v4657_v13, %v10903_v48  ;;  %v5237_v19 = vmul.f32 %v10984_v31, %v4646_v58  ;;  %v5243_v33 = vmul.f32 %v10984_v31, %v4652_v49  ;;  %v5432_v62 = vpack.c.bf16 %v5239_v45, %v5239_v45  ;;  %v11114_v1 = vpop.trf.xlu1 }
 0x78b   : > { %v4650_v25 = vsel %vm2725_vm8, %v4649_v23, %v10907_v56  ;;  %v5249_v35 = vmul.f32 %v10984_v31, %v4658_v8  ;;  %v5251_v4 = vmul.f32 %v10984_v31, %v4660_v9  ;;  %v5438_v40 = vpack.c.bf16 %v5245_v60, %v5245_v60 }
 0x78c   : > { %v5241_v48 = vmul.f32 %v10984_v31, %v4650_v25  ;;  %v5430_v16 = vpack.c.bf16 %v5237_v19, %v5237_v19  ;;  %v5436_v47 = vpack.c.bf16 %v5243_v33, %v5243_v33  ;;  %v5440_v43 = vpack.c.bf16 %v5247_v5, %v5247_v5  ;;  %5496 = vst.msk [vmem:[%s11016_s11 + $0x48] sm:$0xf] %vm5349_vm9, %v5432_v62 }
 0x78d   : > { %v5442_v18 = vpack.c.bf16 %v5249_v35, %v5249_v35  ;;  %5502 = vst.msk [vmem:[%s11016_s11 + $0x60] sm:$0xf] %vm5349_vm9, %v5438_v40  ;;  %v4848_v56 = vsel %vm2725_vm8, %v4816_v20, %v4847_v10  ;;  %v4852_v44 = vperm.slane %v4846_v51, %v10040_v59  ;;  %v4858_v37 = vsel %vm2725_vm8, %v4857_v12, %v4808_v6 }
 0x78e   : > { %v5434_v32 = vpack.c.bf16 %v5241_v48, %v5241_v48  ;;  %5494 = vst.msk [vmem:[%s11016_s11 + $0x40] sm:$0xf] %vm5349_vm9, %v5430_v16  ;;  %v4856_v41 = vperm.slane %v4848_v56, %v10040_v59  ;;  %v4859_v42 = vrot.slane %v4808_v6, 4  ;;  %v4864_v20 = vperm.slane %v4858_v37, %v10040_v59 }
 0x78f   : > { %v5444_v2 = vpack.c.bf16 %v5251_v4, %v5251_v4  ;;  %5500 = vst.msk [vmem:[%s11016_s11 + $0x58] sm:$0xf] %vm5349_vm9, %v5436_v47  ;;  %v4869_v12 = vrot.slane %v4852_v44, 4  ;;  %v4872_v11 = vsel %vm2725_vm8, %v4852_v44, %v4871_v55  ;;  %v5033_v21 = vrot.slane %v11103_v27, 4 }
 0x790   : > { %5498 = vst.msk [vmem:[%s11016_s11 + $0x50] sm:$0xf] %vm5349_vm9, %v5434_v32  ;;  %v4860_v30 = vsel %vm2725_vm8, %v11036_v3, %v4859_v42  ;;  %v4873_v5 = vrot.slane %v4856_v41, 4  ;;  %v4876_v6 = vsel %vm2725_vm8, %v4856_v41, %v4875_v0  ;;  %v4877_v51 = vrot.slane %v4864_v20, 4  ;;  %v11137_v57 = vpop.trf.xlu0 }
 0x791   : > { %5504 = vst.msk [vmem:[%s11016_s11 + $0x68] sm:$0xf] %vm5349_vm9, %v5440_v43  ;;  %v4868_v55 = vperm.slane %v4860_v30, %v10040_v59  ;;  %v4870_v3 = vsel %vm2725_vm8, %v4869_v12, %v10947_v53  ;;  %v4880_v26 = vsel %vm2725_vm8, %v4864_v20, %v4879_v29  ;;  %v5255_v0 = vmul.f32 %v10984_v31, %v4872_v11 }
 0x792   : > { %5506 = vst.msk [vmem:[%s11016_s11 + $0x70] sm:$0xf] %vm5349_vm9, %v5442_v18  ;;  %v4874_v22 = vsel %vm2725_vm8, %v4873_v5, %v10935_v46  ;;  %v4878_v36 = vsel %vm2725_vm8, %v4877_v51, %v10950_v39  ;;  %v5253_v13 = vmul.f32 %v10984_v31, %v4870_v3  ;;  %v5259_v53 = vmul.f32 %v10984_v31, %v4876_v6 }
 0x793   : > { %5508 = vst.msk [vmem:[%s11016_s11 + $0x78] sm:$0xf] %vm5349_vm9, %v5444_v2  ;;  %v4881_v29 = vrot.slane %v4868_v55, 4  ;;  %v4884_v9 = vsel %vm2725_vm8, %v4868_v55, %v4883_v28  ;;  %v5257_v45 = vmul.f32 %v10984_v31, %v4874_v22  ;;  %v5261_v60 = vmul.f32 %v10984_v31, %v4878_v36 }
 0x794   : > { %v11169_v46 = vperm.slane %v10925_v14, %v10040_v59  ;;  %v5263_v39 = vmul.f32 %v10984_v31, %v4880_v26  ;;  %v5446_v58 = vpack.c.bf16 %v5253_v13, %v5253_v13  ;;  %v5448_v23 = vpack.c.bf16 %v5255_v0, %v5255_v0 }
 0x795   : > { %7120 = shalt.err (!%p7117_p3)
}
 0x796   : > { %s7193_s2 = smov 128   ;;  %s7194_s9 = smov 8   ;;  %v4882_v14 = vsel %vm2725_vm8, %v4881_v29, %v10928_v52  ;;  %v5267_v28 = vmul.f32 %v10984_v31, %v4884_v9  ;;  %v5450_v49 = vpack.c.bf16 %v5257_v45, %v5257_v45  ;;  %v5452_v10 = vpack.c.bf16 %v5259_v53, %v5259_v53  ;;  %v11189_v8 = vpop.trf.xlu2  ;;  %v11191_v19 = vpop.trf.xlu1  ;;  %5510 = vst.msk [vmem:[%s11016_s11 + $0x80] sm:$0xf] %vm5349_vm9, %v5446_v58 }
 0x797   : > { %6599 = dma.vmem_to_hbm [thread:$0]  (%p7308_p5), %s11139_s10, 4096, %s11141_s24, %s6207_s27, %s7193_s2, %s7193_s2, %s7194_s9   ;;  %v5265_v33 = vmul.f32 %v10984_v31, %v4882_v14  ;;  %v5454_v62 = vpack.c.bf16 %v5261_v60, %v5261_v60  ;;  %v5456_v25 = vpack.c.bf16 %v5263_v39, %v5263_v39  ;;  %v5034_v35 = vsel %vm2725_vm8, %v5033_v21, %v10994_v50 }
 0x798   : > { %5512 = vst.msk [vmem:[%s11016_s11 + $0x88] sm:$0xf] %vm5349_vm9, %v5448_v23  ;;  %v5036_v52 = vsel %vm2725_vm8, %v11103_v27, %v5035_v63  ;;  %v5040_v4 = vperm.slane %v5034_v35, %v9750_v54  ;;  %v5021_v40 = vrot.slane %v11088_v34, 4  ;;  %v5024_v48 = vsel %vm2725_vm8, %v11088_v34, %v5023_v24  ;;  %v11216_v27 = vpop.trf.xlu0 }
 0x799   : > { %v5056_v16 = vperm.slane %v10931_v7, %v10040_v59  ;;  %v5458_v47 = vpack.c.bf16 %v5265_v33, %v5265_v33  ;;  %5514 = vst.msk [vmem:[%s11016_s11 + $0x90] sm:$0xf] %vm5349_vm9, %v5450_v49  ;;  %v5044_v50 = vperm.slane %v5036_v52, %v9750_v54  ;;  %v5032_v63 = vperm.slane %v5024_v48, %v9750_v54 }
 0x79a   : > { %v5052_v43 = vperm.slane %v10944_v15, %v10040_v59  ;;  %v5460_v18 = vpack.c.bf16 %v5267_v28, %v5267_v28  ;;  %5516 = vst.msk [vmem:[%s11016_s11 + $0x98] sm:$0xf] %vm5349_vm9, %v5452_v10  ;;  %v5069_v24 = vrot.slane %v5040_v4, 4  ;;  %v5022_v7 = vsel %vm2725_vm8, %v5021_v40, %v10862_v38 }
 0x79b   : > { %v5064_v34 = vperm.slane %v10938_v61, %v10040_v59  ;;  %5518 = vst.msk [vmem:[%s11016_s11 + $0xa0] sm:$0xf] %vm5349_vm9, %v5454_v62  ;;  %v5081_v56 = vrot.slane %v5044_v50, 4  ;;  %v5028_v44 = vperm.slane %v5022_v7, %v9750_v54  ;;  %v5083_v37 = vrot.slane %v5032_v63, 4 }
 0x79c   : > { %v5107_v32 = vrot.slane %v11169_v46, 4  ;;  %5520 = vst.msk [vmem:[%s11016_s11 + $0xa8] sm:$0xf] %vm5349_vm9, %v5456_v25  ;;  %v5095_v61 = vrot.slane %v5052_v43, 4  ;;  %v5099_v21 = vrot.slane %v5056_v16, 4  ;;  %v4437_v6 = vrot.slane %v11189_v8, 4 }
 0x79d   : > { %5522 = vst.msk [vmem:[%s11016_s11 + $0xb0] sm:$0xf] %vm5349_vm9, %v5458_v47  ;;  %v5070_v15 = vsel %vm2725_vm8, %v5069_v24, %v5028_v44  ;;  %v5071_v41 = vrot.slane %v5028_v44, 4  ;;  %v5082_v38 = vsel %vm2725_vm8, %v5081_v56, %v5032_v63  ;;  %v5084_v42 = vsel %vm2725_vm8, %v5044_v50, %v5083_v37 }
 0x79e   : > { %5524 = vst.msk [vmem:[%s11016_s11 + $0xb8] sm:$0xf] %vm5349_vm9, %v5460_v18  ;;  %v5076_v20 = vperm.slane %v5070_v15, %v10040_v59  ;;  %v5088_v2 = vperm.slane %v5082_v38, %v10040_v59  ;;  %v5092_v12 = vperm.slane %v5084_v42, %v10040_v59  ;;  %v11242_v11 = vpop.trf.xlu1  ;;  %v5103_v30 = vrot.slane %v5064_v34, 4  ;;  %v4150_v0 = vpop.trf.xlu2 }
 0x79f   : > { %v5072_v5 = vsel %vm2725_vm8, %v5040_v4, %v5071_v41  ;;  %v4438_v4 = vsel %vm2725_vm8, %v4437_v6, %v11057_v17  ;;  %v4663_v47 = vrot.slane %v11114_v1, 4  ;;  %v4661_v50 = vrot.slane %v4150_v0, 4 }
 0x7a0   : > { %v5080_v51 = vperm.slane %v5072_v5, %v10040_v59  ;;  %v5093_v55 = vrot.slane %v5076_v20, 4  ;;  %v5096_v3 = vsel %vm2725_vm8, %v5076_v20, %v5095_v61  ;;  %v5101_v26 = vrot.slane %v5088_v2, 4  ;;  %v11251_v29 = vpop.trf.xlu0 }
 0x7a1   : > { %v5104_v22 = vsel %vm2725_vm8, %v5088_v2, %v5103_v30  ;;  %v5105_v36 = vrot.slane %v5092_v12, 4  ;;  %v5108_v13 = vsel %vm2725_vm8, %v5092_v12, %v5107_v32  ;;  %v5271_v53 = vmul.f32 %v10984_v31, %v5096_v3 }
 0x7a2   : > { %v5094_v9 = vsel %vm2725_vm8, %v5093_v55, %v5052_v43  ;;  %v5097_v45 = vrot.slane %v5080_v51, 4  ;;  %v5100_v60 = vsel %vm2725_vm8, %v5080_v51, %v5099_v21  ;;  %v5102_v39 = vsel %vm2725_vm8, %v5101_v26, %v5064_v34 }
 0x7a3   : > { %v5106_v58 = vsel %vm2725_vm8, %v5105_v36, %v11169_v46  ;;  %v5269_v23 = vmul.f32 %v10984_v31, %v5094_v9  ;;  %v5275_v14 = vmul.f32 %v10984_v31, %v5100_v60  ;;  %v5277_v28 = vmul.f32 %v10984_v31, %v5102_v39 }
 0x7a4   : > { %v5098_v49 = vsel %vm2725_vm8, %v5097_v45, %v5056_v16  ;;  %v5279_v10 = vmul.f32 %v10984_v31, %v5104_v22  ;;  %v5281_v62 = vmul.f32 %v10984_v31, %v5106_v58  ;;  %v5464_v35 = vpack.c.bf16 %v5271_v53, %v5271_v53 }
 0x7a5   : > { %v5273_v33 = vmul.f32 %v10984_v31, %v5098_v49  ;;  %v5462_v25 = vpack.c.bf16 %v5269_v23, %v5269_v23  ;;  %v5283_v46 = vmul.f32 %v10984_v31, %v5108_v13  ;;  %v5468_v52 = vpack.c.bf16 %v5275_v14, %v5275_v14 }
 0x7a6   : > { %v11268_v40 = vpop.trf.xlu1  ;;  %v5470_v16 = vpack.c.bf16 %v5277_v28, %v5277_v28  ;;  %v5472_v63 = vpack.c.bf16 %v5279_v10, %v5279_v10  ;;  %5528 = vst.msk [vmem:[%s11016_s11 + $0xc8] sm:$0xf] %vm5349_vm9, %v5464_v35  ;;  %v5474_v31 = vpack.c.bf16 %v5281_v62, %v5281_v62  ;;  %v4444_v43 = vperm.slane %v4438_v4, %v9750_v54  ;;  %v4151_v7 = vpop.trf.xlu2 }
 0x7a7   : > { %v5466_v48 = vpack.c.bf16 %v5273_v33, %v5273_v33  ;;  %5526 = vst.msk [vmem:[%s11016_s11 + $0xc0] sm:$0xf] %vm5349_vm9, %v5462_v25  ;;  %v5476_v24 = vpack.c.bf16 %v5283_v46, %v5283_v46  ;;  %v4449_v34 = vrot.slane %v11268_v40, 4  ;;  %v4662_v56 = vsel %vm2725_vm8, %v4661_v50, %v11114_v1 }
 0x7a8   : > { %v11278_v18 = vpop.trf.xlu0  ;;  %5532 = vst.msk [vmem:[%s11016_s11 + $0xd8] sm:$0xf] %vm5349_vm9, %v5468_v52  ;;  %v4664_v44 = vsel %vm2725_vm8, %v4150_v0, %v4663_v47  ;;  %v4487_v32 = vrot.slane %v4444_v43, 4  ;;  %v4887_v41 = vrot.slane %v11191_v19, 4  ;;  %v4668_v38 = vperm.slane %v4662_v56, %v9750_v54 }
 0x7a9   : > { %5530 = vst.msk [vmem:[%s11016_s11 + $0xd0] sm:$0xf] %vm5349_vm9, %v5466_v48  ;;  %v4450_v37 = vsel %vm2725_vm8, %v4449_v34, %v11137_v57  ;;  %v4672_v1 = vperm.slane %v4664_v44, %v9750_v54  ;;  %v4675_v42 = vrot.slane %v11216_v27, 4  ;;  %v4885_v20 = vrot.slane %v4151_v7, 4 }
 0x7aa   : > { %5534 = vst.msk [vmem:[%s11016_s11 + $0xe0] sm:$0xf] %vm5349_vm9, %v5470_v16  ;;  %v4456_v15 = vperm.slane %v4450_v37, %v9750_v54  ;;  %v4711_v55 = vrot.slane %v4668_v38, 4  ;;  %v4888_v3 = vsel %vm2725_vm8, %v4151_v7, %v4887_v41  ;;  %v4439_v58 = vrot.slane %v11057_v17, 4 }
 0x7ab   : > { %5536 = vst.msk [vmem:[%s11016_s11 + $0xe8] sm:$0xf] %vm5349_vm9, %v5472_v63  ;;  %v4723_v0 = vrot.slane %v4672_v1, 4  ;;  %v4886_v22 = vsel %vm2725_vm8, %v4885_v20, %v11191_v19  ;;  %v4896_v45 = vperm.slane %v4888_v3, %v9750_v54  ;;  %v4899_v19 = vrot.slane %v11251_v29, 4 }
 0x7ac   : > { %5538 = vst.msk [vmem:[%s11016_s11 + $0xf0] sm:$0xf] %vm5349_vm9, %v5474_v31  ;;  %v4485_v2 = vrot.slane %v4456_v15, 4  ;;  %v11302_v12 = vsel %vm2725_vm8, %v4456_v15, %v4487_v32  ;;  %v4892_v23 = vperm.slane %v4886_v22, %v9750_v54  ;;  %v4440_v4 = vsel %vm2725_vm8, %v11189_v8, %v4439_v58 }
 0x7ad   : > { %5540 = vst.msk [vmem:[%s11016_s11 + $0xf8] sm:$0xf] %vm5349_vm9, %v5476_v24  ;;  %v4947_v25 = vrot.slane %v4896_v45, 4  ;;  %v4451_v48 = vrot.slane %v11137_v57, 4  ;;  %v4448_v8 = vperm.slane %v4440_v4, %v9750_v54  ;;  %v5123_v57 = vrot.slane %v11278_v18, 4 }
 0x7ae   : > { %v4182_v61 = vpop.trf.xlu1  ;;  %v11305_v30 = vsel %vm2725_vm8, %v4485_v2, %v4444_v43  ;;  %v4152_v13 = vpop.trf.xlu2  ;;  %v4935_v16 = vrot.slane %v4892_v23, 4 }
 0x7af   : > { %v4673_v21 = vrot.slane %v4182_v61, 4  ;;  %v4676_v6 = vsel %vm2725_vm8, %v4182_v61, %v4675_v42  ;;  %v5109_v49 = vrot.slane %v4152_v13, 4 }
 0x7b0   : > { %v11310_v51 = vpop.trf.xlu0  ;;  %v4684_v36 = vperm.slane %v4676_v6, %v9750_v54 }
 0x7b1   : > { %v4674_v5 = vsel %vm2725_vm8, %v4673_v21, %v11216_v27  ;;  %v5111_v27 = vrot.slane %v11242_v11, 4  ;;  %v5110_v50 = vsel %vm2725_vm8, %v5109_v49, %v11242_v11 }
 0x7b2   : > { %v4680_v26 = vperm.slane %v4674_v5, %v9750_v54  ;;  %v4721_v60 = vrot.slane %v4684_v36, 4  ;;  %v11323_v39 = vsel %vm2725_vm8, %v4684_v36, %v4723_v0  ;;  %v5116_v56 = vperm.slane %v5110_v50, %v9750_v54 }
 0x7b3   : > { %v5112_v35 = vsel %vm2725_vm8, %v4152_v13, %v5111_v27  ;;  %v11400_v49 = vperm.slane %v11323_v39, %v10040_v59 }
 0x7b4   : > { %v4709_v53 = vrot.slane %v4680_v26, 4  ;;  %v11318_v9 = vsel %vm2725_vm8, %v4680_v26, %v4711_v55  ;;  %v4722_v10 = vsel %vm2725_vm8, %v4721_v60, %v4672_v1  ;;  %v5120_v43 = vperm.slane %v5112_v35, %v9750_v54 }
 0x7b5   : > { %v5159_v61 = vrot.slane %v5116_v56, 4  ;;  %v4463_v60 = vrot.slane %v11310_v51, 4 }
 0x7b6   : > { %v4710_v14 = vsel %vm2725_vm8, %v4709_v53, %v4668_v38  ;;  %v4183_v28 = vpop.trf.xlu1  ;;  %v5171_v15 = vrot.slane %v5120_v43, 4  ;;  %v4499_v38 = vrot.slane %v4448_v8, 4  ;;  %v4245_v13 = vpop.trf.xlu2  ;;  %v11380_v53 = vperm.slane %v11302_v12, %v10040_v59 }
 0x7b7   : > { %v4897_v33 = vrot.slane %v4183_v28, 4  ;;  %v4900_v62 = vsel %vm2725_vm8, %v4183_v28, %v4899_v19  ;;  %v11396_v12 = vperm.slane %v11318_v9, %v10040_v59  ;;  %v4475_v4 = vrot.slane %v4245_v13, 4 }
 0x7b8   : > { %v4908_v17 = vperm.slane %v4900_v62, %v9750_v54  ;;  %v11335_v52 = vpop.trf.xlu0  ;;  %v4539_v28 = vrot.slane %v11380_v53, 4  ;;  %v11404_v62 = vperm.slane %v4710_v14, %v10040_v59 }
 0x7b9   : > { %v4898_v46 = vsel %vm2725_vm8, %v4897_v33, %v11251_v29  ;;  %v4452_v29 = vsel %vm2725_vm8, %v11268_v40, %v4451_v48  ;;  %v4687_v35 = vrot.slane %v11335_v52, 4  ;;  %v4763_v50 = vrot.slane %v11396_v12, 4 }
 0x7ba   : > { %v4904_v47 = vperm.slane %v4898_v46, %v9750_v54  ;;  %v4945_v63 = vrot.slane %v4908_v17, 4  ;;  %v4948_v31 = vsel %vm2725_vm8, %v4908_v17, %v4947_v25  ;;  %v4460_v37 = vperm.slane %v4452_v29, %v9750_v54 }
 0x7bb   : > { %v11410_v25 = vperm.slane %v4948_v31, %v10040_v59 }
 0x7bc   : > { %v4933_v24 = vrot.slane %v4904_v47, 4  ;;  %v4936_v7 = vsel %vm2725_vm8, %v4904_v47, %v4935_v16  ;;  %v4946_v34 = vsel %vm2725_vm8, %v4945_v63, %v4896_v45  ;;  %v4497_v5 = vrot.slane %v4460_v37, 4 }
 0x7bd   : > { %v4500_v6 = vsel %vm2725_vm8, %v4460_v37, %v4499_v38  ;;  %v11415_v46 = vperm.slane %v4936_v7, %v10040_v59  ;;  %v11420_v14 = vperm.slane %v4946_v34, %v10040_v59  ;;  %v4771_v63 = vrot.slane %v11400_v49, 4 }
 0x7be   : > { %v4934_v11 = vsel %vm2725_vm8, %v4933_v24, %v4892_v23  ;;  %v4184_v44 = vpop.trf.xlu1  ;;  %v4498_v22 = vsel %vm2725_vm8, %v4497_v5, %v4448_v8  ;;  %v11376_v36 = vperm.slane %v4500_v6, %v10040_v59  ;;  %v11390_v23 = vperm.slane %v11305_v30, %v10040_v59  ;;  %v11434_v8 = vpop.trf.xlu2 }
 0x7bf   : > { %v5121_v32 = vrot.slane %v4184_v44, 4  ;;  %v5124_v40 = vsel %vm2725_vm8, %v4184_v44, %v5123_v57  ;;  %v11385_v45 = vperm.slane %v4498_v22, %v10040_v59  ;;  %v11407_v30 = vperm.slane %v4722_v10, %v10040_v59 }
 0x7c0   : > { %v5132_v41 = vperm.slane %v5124_v40, %v9750_v54  ;;  %v11358_v42 = vpop.trf.xlu0  ;;  %v4547_v19 = vrot.slane %v11376_v36, 4  ;;  %v4535_v47 = vrot.slane %v11390_v23, 4  ;;  %v11428_v31 = vperm.slane %v4934_v11, %v10040_v59 }
 0x7c1   : > { %v5122_v1 = vsel %vm2725_vm8, %v5121_v32, %v11278_v18  ;;  %v4543_v9 = vrot.slane %v11385_v45, 4  ;;  %v4767_v29 = vrot.slane %v11407_v30, 4  ;;  %v4987_v57 = vrot.slane %v11415_v46, 4 }
 0x7c2   : > { %v5128_v20 = vperm.slane %v5122_v1, %v9750_v54  ;;  %v5169_v2 = vrot.slane %v5132_v41, 4  ;;  %v11362_v21 = vsel %vm2725_vm8, %v5132_v41, %v5171_v15  ;;  %v4991_v44 = vrot.slane %v11420_v14, 4 }
 0x7c3   : > { %v4983_v15 = vrot.slane %v11428_v31, 4  ;;  %v4911_v41 = vrot.slane %v11358_v42, 4  ;;  %v4699_v1 = vrot.slane %v11434_v8, 4 }
 0x7c4   : > { %v5157_v55 = vrot.slane %v5128_v20, 4  ;;  %v11366_v3 = vsel %vm2725_vm8, %v5128_v20, %v5159_v61  ;;  %v11369_v26 = vsel %vm2725_vm8, %v5169_v2, %v5120_v43  ;;  %v4995_v43 = vrot.slane %v11410_v25, 4 }
 0x7c6   : > { %v11372_v18 = vsel %vm2725_vm8, %v5157_v55, %v5116_v56  ;;  %v4277_v0 = vpop.trf.xlu1 }
 0x7c7   : > { %v4461_v58 = vrot.slane %v4277_v0, 4  ;;  %v4464_v33 = vsel %vm2725_vm8, %v4277_v0, %v4463_v60 }
 0x7c8   : > { %v11382_v27 = vpop.trf.xlu0  ;;  %v4472_v10 = vperm.slane %v4464_v33, %v9750_v54 }
 0x7c9   : > { %v4462_v39 = vsel %vm2725_vm8, %v4461_v58, %v11310_v51  ;;  %v4759_v51 = vrot.slane %v11404_v62, 4  ;;  %v5135_v6 = vrot.slane %v11382_v27, 4 }
 0x7ca   : > { %v4468_v24 = vperm.slane %v4462_v39, %v9750_v54  ;;  %v4523_v37 = vrot.slane %v4472_v10, 4 }
 0x7cc   : > { %v4511_v61 = vrot.slane %v4468_v24, 4 }
 0x7ce   : > { %v4278_v17 = vpop.trf.xlu1 }
 0x7cf   : > { %v4685_v48 = vrot.slane %v4278_v17, 4  ;;  %v4688_v16 = vsel %vm2725_vm8, %v4278_v17, %v4687_v35 }
 0x7d0   : > { %v4309_v7 = vpop.trf.xlu0  ;;  %v11438_v34 = vperm.slane %v4688_v16, %v9750_v54  ;;  %v11464_v16 = vld [vmem:[%s7353_s17 + $0x8] sm:$0xff] }
 0x7d1   : > { %v4473_v56 = vrot.slane %v4309_v7, 4  ;;  %v4476_v11 = vsel %vm2725_vm8, %v4309_v7, %v4475_v4  ;;  %v4686_v32 = vsel %vm2725_vm8, %v4685_v48, %v11335_v52 }
 0x7d2   : > { %v4484_v40 = vperm.slane %v4476_v11, %v9750_v54  ;;  %v11453_v52 = vperm.slane %v4686_v32, %v9750_v54  ;;  %v4747_v55 = vrot.slane %v11438_v34, 4 }
 0x7d3   : > { %v4474_v38 = vsel %vm2725_vm8, %v4473_v56, %v4245_v13 }
 0x7d4   : > { %v4480_v20 = vperm.slane %v4474_v38, %v9750_v54  ;;  %v4521_v2 = vrot.slane %v4484_v40, 4  ;;  %v4524_v5 = vsel %vm2725_vm8, %v4484_v40, %v4523_v37 }
 0x7d5   : > { %v4532_v0 = vperm.slane %v4524_v5, %v10040_v59 }
 0x7d6   : > { %v4279_v22 = vpop.trf.xlu1  ;;  %v4509_v13 = vrot.slane %v4480_v20, 4  ;;  %v4512_v60 = vsel %vm2725_vm8, %v4480_v20, %v4511_v61  ;;  %v4522_v58 = vsel %vm2725_vm8, %v4521_v2, %v4472_v10  ;;  %v4247_v20 = vpop.trf.xlu2 }
 0x7d7   : > { %v4909_v33 = vrot.slane %v4279_v22, 4  ;;  %v4520_v35 = vperm.slane %v4512_v60, %v10040_v59  ;;  %v4528_v39 = vperm.slane %v4522_v58, %v10040_v59  ;;  %v4545_v17 = vrot.slane %v4532_v0, 4 }
 0x7d8   : > { %v4548_v4 = vsel %vm2725_vm8, %v4532_v0, %v4547_v19  ;;  %v4510_v48 = vsel %vm2725_vm8, %v4509_v13, %v4468_v24  ;;  %v4912_v11 = vsel %vm2725_vm8, %v4279_v22, %v4911_v41  ;;  %v4310_v10 = vpop.trf.xlu0 }
 0x7d9   : > { %v5236_v7 = vmul.f32 %v11464_v16, %v4548_v4  ;;  %v4910_v56 = vsel %vm2725_vm8, %v4909_v33, %v11358_v42  ;;  %v4516_v37 = vperm.slane %v4510_v48, %v10040_v59  ;;  %v4537_v32 = vrot.slane %v4520_v35, 4 }
 0x7da   : > { %v4540_v19 = vsel %vm2725_vm8, %v4520_v35, %v4539_v28  ;;  %v4541_v40 = vrot.slane %v4528_v39, 4  ;;  %v4544_v24 = vsel %vm2725_vm8, %v4528_v39, %v4543_v9  ;;  %v4546_v38 = vsel %vm2725_vm8, %v4545_v17, %v11376_v36 }
 0x7db   : > { %v5228_v61 = vmul.f32 %v11464_v16, %v4540_v19  ;;  %v5429_v42 = vpack.c.bf16 %v5236_v7, %v5236_v7  ;;  %v4533_v41 = vrot.slane %v4516_v37, 4  ;;  %v4536_v2 = vsel %vm2725_vm8, %v4516_v37, %v4535_v47 }
 0x7dc   : > { %v4538_v5 = vsel %vm2725_vm8, %v4537_v32, %v11380_v53  ;;  %v4542_v0 = vsel %vm2725_vm8, %v4541_v40, %v11385_v45  ;;  %v5224_v28 = vmul.f32 %v11464_v16, %v4536_v2  ;;  %v5232_v22 = vmul.f32 %v11464_v16, %v4544_v24 }
 0x7dd   : > { %v5226_v9 = vmul.f32 %v11464_v16, %v4538_v5  ;;  %v5230_v36 = vmul.f32 %v11464_v16, %v4542_v0  ;;  %5493 = vst.msk [vmem:[%s11016_s11 + $0x3c] sm:$0xf] %vm5349_vm9, %v5429_v42  ;;  %v4534_v47 = vsel %vm2725_vm8, %v4533_v41, %v11390_v23  ;;  %v5234_v53 = vmul.f32 %v11464_v16, %v4546_v38 }
 0x7de   : > { %v5421_v13 = vpack.c.bf16 %v5228_v61, %v5228_v61  ;;  %v4280_v60 = vpop.trf.xlu1  ;;  %v4923_v45 = vrot.slane %v4247_v20, 4  ;;  %v5222_v58 = vmul.f32 %v11464_v16, %v4534_v47  ;;  %v5417_v33 = vpack.c.bf16 %v5224_v28, %v5224_v28 }
 0x7df   : > { %v5419_v35 = vpack.c.bf16 %v5226_v9, %v5226_v9  ;;  %v11494_v39 = vperm.slane %v4910_v56, %v9750_v54  ;;  %v4735_v17 = vrot.slane %v11453_v52, 4  ;;  %v5423_v4 = vpack.c.bf16 %v5230_v36, %v5230_v36 }
 0x7e0   : > { %v5425_v48 = vpack.c.bf16 %v5232_v22, %v5232_v22  ;;  %5485 = vst.msk [vmem:[%s11016_s11 + $0x1c] sm:$0xf] %vm5349_vm9, %v5421_v13  ;;  %v11500_v23 = vperm.slane %v4912_v11, %v9750_v54  ;;  %v5415_v7 = vpack.c.bf16 %v5222_v58, %v5222_v58  ;;  %v4697_v37 = vrot.slane %v4310_v10, 4  ;;  %v4311_v56 = vpop.trf.xlu0 }
 0x7e1   : > { %5481 = vst.msk [vmem:[%s11016_s11 + $0xc] sm:$0xf] %vm5349_vm9, %v5417_v33  ;;  %v4700_v32 = vsel %vm2725_vm8, %v4310_v10, %v4699_v1  ;;  %v5133_v19 = vrot.slane %v4280_v60, 4  ;;  %v5427_v40 = vpack.c.bf16 %v5234_v53, %v5234_v53  ;;  %v5136_v38 = vsel %vm2725_vm8, %v4280_v60, %v5135_v6 }
 0x7e2   : > { %5483 = vst.msk [vmem:[%s11016_s11 + $0x14] sm:$0xf] %vm5349_vm9, %v5419_v35  ;;  %v4708_v24 = vperm.slane %v4700_v32, %v9750_v54  ;;  %v4921_v61 = vrot.slane %v4311_v56, 4  ;;  %v4959_v11 = vrot.slane %v11494_v39, 4  ;;  %v4698_v42 = vsel %vm2725_vm8, %v4697_v37, %v11434_v8 }
 0x7e3   : > { %5479 = vst.msk [vmem:[%s11016_s11 + $0x4] sm:$0xf] %vm5349_vm9, %v5415_v7  ;;  %v5134_v1 = vsel %vm2725_vm8, %v5133_v19, %v11382_v27  ;;  %v4924_v10 = vsel %vm2725_vm8, %v4311_v56, %v4923_v45  ;;  %v4971_v41 = vrot.slane %v11500_v23, 4  ;;  %v4704_v6 = vperm.slane %v4698_v42, %v9750_v54 }
 0x7e4   : > { %5487 = vst.msk [vmem:[%s11016_s11 + $0x24] sm:$0xf] %vm5349_vm9, %v5423_v4  ;;  %v4745_v2 = vrot.slane %v4708_v24, 4  ;;  %v4748_v5 = vsel %vm2725_vm8, %v4708_v24, %v4747_v55  ;;  %v11528_v0 = vperm.slane %v5136_v38, %v9750_v54  ;;  %v4922_v27 = vsel %vm2725_vm8, %v4921_v61, %v4247_v20 }
 0x7e5   : > { %5489 = vst.msk [vmem:[%s11016_s11 + $0x2c] sm:$0xf] %vm5349_vm9, %v5425_v48  ;;  %v4756_v8 = vperm.slane %v4748_v5, %v10040_v59  ;;  %v4932_v28 = vperm.slane %v4924_v10, %v9750_v54  ;;  %v4733_v9 = vrot.slane %v4704_v6, 4  ;;  %v4736_v36 = vsel %vm2725_vm8, %v4704_v6, %v4735_v17  ;;  %v4248_v10 = vpop.trf.xlu2 }
 0x7e6   : > { %5491 = vst.msk [vmem:[%s11016_s11 + $0x34] sm:$0xf] %vm5349_vm9, %v5427_v40  ;;  %v4746_v22 = vsel %vm2725_vm8, %v4745_v2, %v11438_v34  ;;  %v11538_v55 = vperm.slane %v5134_v1, %v9750_v54  ;;  %v4744_v47 = vperm.slane %v4736_v36, %v10040_v59  ;;  %v4928_v58 = vperm.slane %v4922_v27, %v9750_v54 }
 0x7e7   : > { %v4752_v53 = vperm.slane %v4746_v22, %v10040_v59  ;;  %v4769_v13 = vrot.slane %v4756_v8, 4  ;;  %v4772_v20 = vsel %vm2725_vm8, %v4756_v8, %v4771_v63  ;;  %v4734_v60 = vsel %vm2725_vm8, %v4733_v9, %v11453_v52 }
 0x7e8   : > { %v5252_v45 = vmul.f32 %v11464_v16, %v4772_v20  ;;  %v4969_v34 = vrot.slane %v4932_v28, 4  ;;  %v4740_v33 = vperm.slane %v4734_v60, %v10040_v59  ;;  %v4761_v35 = vrot.slane %v4744_v47, 4  ;;  %v4312_v6 = vpop.trf.xlu0 }
 0x7e9   : > { %v4764_v17 = vsel %vm2725_vm8, %v4744_v47, %v4763_v50  ;;  %v4765_v4 = vrot.slane %v4752_v53, 4  ;;  %v4768_v63 = vsel %vm2725_vm8, %v4752_v53, %v4767_v29  ;;  %v4770_v52 = vsel %vm2725_vm8, %v4769_v13, %v11400_v49 }
 0x7ea   : > { %v5244_v48 = vmul.f32 %v11464_v16, %v4764_v17  ;;  %v5445_v7 = vpack.c.bf16 %v5252_v45, %v5252_v45  ;;  %v4757_v37 = vrot.slane %v4740_v33, 4  ;;  %v4760_v32 = vsel %vm2725_vm8, %v4740_v33, %v4759_v51 }
 0x7eb   : > { %v4762_v19 = vsel %vm2725_vm8, %v4761_v35, %v11396_v12  ;;  %v4766_v50 = vsel %vm2725_vm8, %v4765_v4, %v11407_v30  ;;  %v5240_v56 = vmul.f32 %v11464_v16, %v4760_v32  ;;  %v5248_v40 = vmul.f32 %v11464_v16, %v4768_v63 }
 0x7ec   : > { %v5242_v29 = vmul.f32 %v11464_v16, %v4762_v19  ;;  %v5246_v49 = vmul.f32 %v11464_v16, %v4766_v50  ;;  %5509 = vst.msk [vmem:[%s11016_s11 + $0x7c] sm:$0xf] %vm5349_vm9, %v5445_v7  ;;  %v4758_v51 = vsel %vm2725_vm8, %v4757_v37, %v11404_v62  ;;  %v5250_v12 = vmul.f32 %v11464_v16, %v4770_v52 }
 0x7ed   : > { %v5437_v24 = vpack.c.bf16 %v5244_v48, %v5244_v48  ;;  %v4957_v38 = vrot.slane %v4928_v58, 4  ;;  %v5238_v30 = vmul.f32 %v11464_v16, %v4758_v51  ;;  %v5433_v61 = vpack.c.bf16 %v5240_v56, %v5240_v56 }
 0x7ee   : > { %v5435_v42 = vpack.c.bf16 %v5242_v29, %v5242_v29  ;;  %v5439_v1 = vpack.c.bf16 %v5246_v49, %v5246_v49  ;;  %v5441_v2 = vpack.c.bf16 %v5248_v40, %v5248_v40  ;;  %v5443_v5 = vpack.c.bf16 %v5250_v12, %v5250_v12 }
 0x7ef   : > { %5501 = vst.msk [vmem:[%s11016_s11 + $0x5c] sm:$0xf] %vm5349_vm9, %v5437_v24  ;;  %v4958_v62 = vsel %vm2725_vm8, %v4957_v38, %v11494_v39  ;;  %v4960_v8 = vsel %vm2725_vm8, %v4928_v58, %v4959_v11  ;;  %v5431_v27 = vpack.c.bf16 %v5238_v30, %v5238_v30  ;;  %v4970_v22 = vsel %vm2725_vm8, %v4969_v34, %v11500_v23 }
 0x7f0   : > { %5497 = vst.msk [vmem:[%s11016_s11 + $0x4c] sm:$0xf] %vm5349_vm9, %v5433_v61  ;;  %v4964_v9 = vperm.slane %v4958_v62, %v10040_v59  ;;  %v4968_v36 = vperm.slane %v4960_v8, %v10040_v59  ;;  %v4972_v47 = vsel %vm2725_vm8, %v4932_v28, %v4971_v41  ;;  %v4976_v39 = vperm.slane %v4970_v22, %v10040_v59 }
 0x7f1   : > { %5499 = vst.msk [vmem:[%s11016_s11 + $0x54] sm:$0xf] %vm5349_vm9, %v5435_v42  ;;  %v5147_v53 = vrot.slane %v4248_v10, 4  ;;  %v5145_v11 = vrot.slane %v4312_v6, 4  ;;  %v4980_v13 = vperm.slane %v4972_v47, %v10040_v59  ;;  %v5164_v37 = vperm.slane %v11372_v18, %v10040_v59 }
 0x7f2   : > { %5495 = vst.msk [vmem:[%s11016_s11 + $0x44] sm:$0xf] %vm5349_vm9, %v5431_v27  ;;  %v4981_v20 = vrot.slane %v4964_v9, 4  ;;  %v4984_v60 = vsel %vm2725_vm8, %v4964_v9, %v4983_v15  ;;  %v4985_v23 = vrot.slane %v4968_v36, 4  ;;  %v4988_v41 = vsel %vm2725_vm8, %v4968_v36, %v4987_v57 }
 0x7f3   : > { %5503 = vst.msk [vmem:[%s11016_s11 + $0x64] sm:$0xf] %vm5349_vm9, %v5439_v1  ;;  %v4989_v28 = vrot.slane %v4976_v39, 4  ;;  %v4992_v45 = vsel %vm2725_vm8, %v4976_v39, %v4991_v44  ;;  %v5256_v58 = vmul.f32 %v11464_v16, %v4984_v60  ;;  %v4993_v33 = vrot.slane %v4980_v13, 4 }
 0x7f4   : > { %5505 = vst.msk [vmem:[%s11016_s11 + $0x6c] sm:$0xf] %vm5349_vm9, %v5441_v2  ;;  %v4982_v34 = vsel %vm2725_vm8, %v4981_v20, %v11428_v31  ;;  %v4986_v15 = vsel %vm2725_vm8, %v4985_v23, %v11415_v46  ;;  %v4996_v57 = vsel %vm2725_vm8, %v4980_v13, %v4995_v43  ;;  %v5260_v31 = vmul.f32 %v11464_v16, %v4988_v41 }
 0x7f5   : > { %5507 = vst.msk [vmem:[%s11016_s11 + $0x74] sm:$0xf] %vm5349_vm9, %v5443_v5  ;;  %v4990_v44 = vsel %vm2725_vm8, %v4989_v28, %v11420_v14  ;;  %v5254_v35 = vmul.f32 %v11464_v16, %v4982_v34  ;;  %v5258_v17 = vmul.f32 %v11464_v16, %v4986_v15  ;;  %v4994_v46 = vsel %vm2725_vm8, %v4993_v33, %v11410_v25 }
 0x7f6   : > { %v5262_v4 = vmul.f32 %v11464_v16, %v4990_v44  ;;  %v5264_v63 = vmul.f32 %v11464_v16, %v4992_v45  ;;  %v5268_v43 = vmul.f32 %v11464_v16, %v4996_v57  ;;  %v5266_v52 = vmul.f32 %v11464_v16, %v4994_v46 }
 0x7f7   : > { %v5447_v14 = vpack.c.bf16 %v5254_v35, %v5254_v35  ;;  %v5449_v48 = vpack.c.bf16 %v5256_v58, %v5256_v58  ;;  %v5451_v7 = vpack.c.bf16 %v5258_v17, %v5258_v17  ;;  %v5168_v32 = vperm.slane %v11366_v3, %v10040_v59 }
 0x7f8   : > { %v5180_v25 = vperm.slane %v11362_v21, %v10040_v59  ;;  %v5453_v19 = vpack.c.bf16 %v5260_v31, %v5260_v31  ;;  %v5195_v50 = vrot.slane %v11528_v0, 4  ;;  %v5455_v56 = vpack.c.bf16 %v5262_v4, %v5262_v4 }
 0x7f9   : > { %5511 = vst.msk [vmem:[%s11016_s11 + $0x84] sm:$0xf] %vm5349_vm9, %v5447_v14  ;;  %v5146_v29 = vsel %vm2725_vm8, %v5145_v11, %v4248_v10  ;;  %v5148_v49 = vsel %vm2725_vm8, %v4312_v6, %v5147_v53  ;;  %v5183_v18 = vrot.slane %v11538_v55, 4  ;;  %v5457_v40 = vpack.c.bf16 %v5264_v63, %v5264_v63 }
 0x7fa   : > { %5513 = vst.msk [vmem:[%s11016_s11 + $0x8c] sm:$0xf] %vm5349_vm9, %v5449_v48  ;;  %v5152_v3 = vperm.slane %v5146_v29, %v9750_v54  ;;  %v5156_v21 = vperm.slane %v5148_v49, %v9750_v54  ;;  %v5176_v51 = vperm.slane %v11369_v26, %v10040_v59  ;;  %v5459_v12 = vpack.c.bf16 %v5266_v52, %v5266_v52 }
 0x7fb   : > { %v5461_v24 = vpack.c.bf16 %v5268_v43, %v5268_v43  ;;  %5515 = vst.msk [vmem:[%s11016_s11 + $0x94] sm:$0xf] %vm5349_vm9, %v5451_v7  ;;  %v5211_v1 = vrot.slane %v5168_v32, 4  ;;  %v5207_v10 = vrot.slane %v5164_v37, 4  ;;  %v5219_v6 = vrot.slane %v5180_v25, 4 }
 0x7fc   : > { %5517 = vst.msk [vmem:[%s11016_s11 + $0x9c] sm:$0xf] %vm5349_vm9, %v5453_v19  ;;  %v5181_v38 = vrot.slane %v5152_v3, 4  ;;  %v5184_v30 = vsel %vm2725_vm8, %v5152_v3, %v5183_v18  ;;  %v5193_v61 = vrot.slane %v5156_v21, 4  ;;  %v5196_v42 = vsel %vm2725_vm8, %v5156_v21, %v5195_v50 }
 0x7fd   : > { %5519 = vst.msk [vmem:[%s11016_s11 + $0xa4] sm:$0xf] %vm5349_vm9, %v5455_v56  ;;  %v5192_v54 = vperm.slane %v5184_v30, %v10040_v59  ;;  %v5204_v26 = vperm.slane %v5196_v42, %v10040_v59  ;;  %v5215_v36 = vrot.slane %v5176_v51, 4 }
 0x7fe   : > { %5521 = vst.msk [vmem:[%s11016_s11 + $0xac] sm:$0xf] %vm5349_vm9, %v5457_v40  ;;  %v5182_v2 = vsel %vm2725_vm8, %v5181_v38, %v11538_v55  ;;  %v5194_v5 = vsel %vm2725_vm8, %v5193_v61, %v11528_v0 }
 0x7ff   : > { %5523 = vst.msk [vmem:[%s11016_s11 + $0xb4] sm:$0xf] %vm5349_vm9, %v5459_v12  ;;  %v5188_v62 = vperm.slane %v5182_v2, %v10040_v59  ;;  %v5200_v8 = vperm.slane %v5194_v5, %v10040_v59  ;;  %v5209_v27 = vrot.slane %v5192_v54, 4  ;;  %v5212_v9 = vsel %vm2725_vm8, %v5192_v54, %v5211_v1 }
 0x800   : > { %5525 = vst.msk [vmem:[%s11016_s11 + $0xbc] sm:$0xf] %vm5349_vm9, %v5461_v24  ;;  %v5217_v22 = vrot.slane %v5204_v26, 4  ;;  %v5220_v47 = vsel %vm2725_vm8, %v5204_v26, %v5219_v6  ;;  %v5276_v55 = vmul.f32 %v11464_v16, %v5212_v9 }
 0x801   : > { %v5205_v39 = vrot.slane %v5188_v62, 4  ;;  %v5208_v0 = vsel %vm2725_vm8, %v5188_v62, %v5207_v10  ;;  %v5210_v53 = vsel %vm2725_vm8, %v5209_v27, %v5168_v32  ;;  %v5213_v11 = vrot.slane %v5200_v8, 4 }
 0x802   : > { %v5216_v13 = vsel %vm2725_vm8, %v5200_v8, %v5215_v36  ;;  %v5218_v59 = vsel %vm2725_vm8, %v5217_v22, %v5180_v25  ;;  %v5272_v20 = vmul.f32 %v11464_v16, %v5208_v0  ;;  %v5274_v60 = vmul.f32 %v11464_v16, %v5210_v53 }
 0x803   : > { %v5206_v23 = vsel %vm2725_vm8, %v5205_v39, %v5164_v37  ;;  %v5214_v41 = vsel %vm2725_vm8, %v5213_v11, %v5176_v51  ;;  %v5280_v28 = vmul.f32 %v11464_v16, %v5216_v13  ;;  %v5282_v34 = vmul.f32 %v11464_v16, %v5218_v59 }
 0x804   : > { %v5270_v45 = vmul.f32 %v11464_v16, %v5206_v23  ;;  %v5278_v58 = vmul.f32 %v11464_v16, %v5214_v41  ;;  %v5465_v15 = vpack.c.bf16 %v5272_v20, %v5272_v20  ;;  %v5284_v33 = vmul.f32 %v11464_v16, %v5220_v47 }
 0x805   : > { %v5467_v57 = vpack.c.bf16 %v5274_v60, %v5274_v60  ;;  %v5469_v44 = vpack.c.bf16 %v5276_v55, %v5276_v55  ;;  %v5473_v31 = vpack.c.bf16 %v5280_v28, %v5280_v28  ;;  %v5475_v46 = vpack.c.bf16 %v5282_v34, %v5282_v34 }
 0x806   : > { %v5463_v35 = vpack.c.bf16 %v5270_v45, %v5270_v45  ;;  %v5471_v17 = vpack.c.bf16 %v5278_v58, %v5278_v58  ;;  %5529 = vst.msk [vmem:[%s11016_s11 + $0xcc] sm:$0xf] %vm5349_vm9, %v5465_v15  ;;  %v5477_v4 = vpack.c.bf16 %v5284_v33, %v5284_v33 }
 0x807   : > { %5531 = vst.msk [vmem:[%s11016_s11 + $0xd4] sm:$0xf] %vm5349_vm9, %v5467_v57 }
 0x808   : > { %5527 = vst.msk [vmem:[%s11016_s11 + $0xc4] sm:$0xf] %vm5349_vm9, %v5463_v35 }
 0x809   : > { %5533 = vst.msk [vmem:[%s11016_s11 + $0xdc] sm:$0xf] %vm5349_vm9, %v5469_v44 }
 0x80a   : > { %5535 = vst.msk [vmem:[%s11016_s11 + $0xe4] sm:$0xf] %vm5349_vm9, %v5471_v17 }
 0x80b   : > { %5537 = vst.msk [vmem:[%s11016_s11 + $0xec] sm:$0xf] %vm5349_vm9, %v5473_v31 }
 0x80c   : > { %5539 = vst.msk [vmem:[%s11016_s11 + $0xf4] sm:$0xf] %vm5349_vm9, %v5475_v46 }
 0x80d   : > { %5541 = vst.msk [vmem:[%s11016_s11 + $0xfc] sm:$0xf] %vm5349_vm9, %v5477_v4 }
 0x80e PF: > { %s12011_s17 = sld [smem:[#allocation13_spill]]  ;;  %p6613_p5 = pnand %p6457_p11, %p7275_p6 }
 0x810   : > { %p6614_p7 = pneg %p6613_p5 }
 0x814   : > { %s6279_s28 = sand.u32 1, %s12011_s17  }
 0x815   : > { %s6280_s13 = scalar_lea.sflag [#allocation4], %s6279_s28 }
 0x816   : > { %7158 = dma.done.wait (%p6614_p7), %s6280_s13, 4096  }
 0x817   : > { %7160 = vsyncadd (%p6614_p7), %s6280_s13, 4294963200  ;;  %s26_s26 = sadd.s32 1, %s7183_s26   ;;  %s12013_s23 = sld [smem:[#allocation14_spill]] }
 0x818   : > { %p23_p9 = scmp.ge.s32.totalorder %s26_s26, 4   ;;  %s12014_s30 = sld [smem:[#allocation18_spill]] }
 0x819   : > { %s12015_s11 = sld [smem:[#allocation16_spill]]  ;;  %s12016_s21 = smov %s7167_s22 }
 0x81a   : > { %s12019_s24 = smov %s7179_s25 }
 0x81b   :  { %25 = sbr.rel (!%p23_p9) target bundleno = 10 (0xa), region = 122 }
 0x81d   : > { %s12017_s22 = smov %s12013_s23 }
 0x81e   : > { %s12018_s23 = smov %s12014_s30 }
 0x81f   : > { %s12020_s25 = smov %s12015_s11 }
 0x820   :  { %6286 = vsyncpa [#allocation3], 1 }
 0x821   :  { %6288 = vsyncpa [#allocation3 + $0x1], 1 }
 0x822   :  { %6289 = vsyncpa [#allocation6], 1 }
 0x823   :  { %6291 = vsyncpa [#allocation6 + $0x1], 1 }
 0x824   :  { %6292 = vsyncpa [#allocation4], 1 }
 0x825   :  { %6294 = vsyncpa [#allocation4 + $0x1], 1 }

</bundles_post_ra>
